<compile_context>
chip_gen: v6e
topology: v6e:2x2x1
jax: 0.10.0
libtpu: 0.0.40
codegen_flags: <defaults>
</compile_context>

<pallas_src>
import functools

import jax
import jax.numpy as jnp
from jax import lax
from jax.experimental import pallas as pl
from jax.experimental.pallas import tpu as pltpu


# ----------------------------------------------------------------------------
# In-kernel helpers
# ----------------------------------------------------------------------------
def _row_masks(H):
    """{0,1} scalars zeroing the (clamped) H-halo rows at the volume boundary."""
    i = pl.program_id(0)

    def mask(dh):
        r = i - 1 + dh
        ok = jnp.logical_and(r >= 0, r < H)
        return jnp.where(ok, 1.0, 0.0).astype(jnp.float32)

    return mask(0), mask(1), mask(2)


def _conv3d_row(slab_refs, row_masks, w_ref, W, T):
    """3x3x3 conv (cross-correlation) for one H-row of output.

    slab_refs : three refs (1, W+2, T+2, Cin): W/T zero-padded rows i-1, i, i+1
    row_masks : three f32 scalars in {0, 1} (zero out-of-range H rows)
    w_ref     : (27, Cin, Cout) tap matrices, tap = a*9 + b*3 + c with (a, b, c)
                the kernel offsets along (H, W, T)
    returns   : (W*T, Cout) float32
    """
    WT = W * T
    cin = slab_refs[0].shape[-1]
    cout = w_ref.shape[-1]
    acc = jnp.zeros((WT, cout), jnp.float32)
    for a in range(3):
        ref = slab_refs[a]
        part = jnp.zeros((WT, cout), jnp.float32)
        for b in range(3):
            for c in range(3):
                x = ref[0, b:b + W, c:c + T, :].reshape(WT, cin)
                part = part + jnp.dot(x, w_ref[a * 9 + b * 3 + c],
                                      preferred_element_type=jnp.float32)
        acc = acc + row_masks[a] * part
    return acc


# ----------------------------------------------------------------------------
# Pallas kernels (grid = (H,): one H-row of the volume per step)
# ----------------------------------------------------------------------------
def _down_attn_kernel(zm_ref, z0_ref, zp_ref, wd_ref, bd_ref,
                      wq_ref, kt_ref, vp_ref, bp_ref, h_ref,
                      *, H, W, T, C):
    """Conv3d(4->C) + bias + ReLU + cross-attention residual for one H row.

    Writes the resulting h row already zero-padded along W/T so the up-conv
    stage can consume it with halo reads (no HBM im2col).
    """
    masks = _row_masks(H)
    conv = _conv3d_row((zm_ref, z0_ref, zp_ref), masks, wd_ref, W, T)
    h = jnp.maximum(conv + bd_ref[...], 0.0)                            # (W*T, C)

    # Cross-attention over the S VMEM-resident cond tokens.  `wq` already
    # carries the 1/sqrt(C) scale; `vp` = (cond @ Wv^T) @ Wproj^T.
    q = jnp.dot(h, wq_ref[...], preferred_element_type=jnp.float32)
    logits = jnp.dot(q, kt_ref[...], preferred_element_type=jnp.float32)  # (W*T, S)
    m = jnp.max(logits, axis=-1, keepdims=True)
    p = jnp.exp(logits - m)
    attn = p / jnp.sum(p, axis=-1, keepdims=True)
    o = jnp.dot(attn, vp_ref[...], preferred_element_type=jnp.float32) + bp_ref[...]

    row = (h + o).reshape(W, T, C)
    h_ref[0] = jnp.zeros((W + 2, T + 2, C), jnp.float32)
    h_ref[0, 1:1 + W, 1:1 + T, :] = row


def _up_kernel(hm_ref, h0_ref, hp_ref, wu_ref, bu_ref, y_ref, *, H, W, T):
    """ConvTranspose3d(C->4, stride 1, pad 1) + bias + tanh for one H row.

    Output stored lane-dense as (4, W*T) (rows on the lane axis) instead of a
    4-lane-wide (W*T, 4) block.
    """
    masks = _row_masks(H)
    conv = _conv3d_row((hm_ref, h0_ref, hp_ref), masks, wu_ref, W, T)
    y = jnp.tanh(conv + bu_ref[...])                                    # (W*T, 4)
    y_ref[0] = jnp.transpose(y)                                         # (4, W*T)


# ----------------------------------------------------------------------------
# BlockSpec helpers
# ----------------------------------------------------------------------------
def _slab_spec(nch, dh, H, W, T):
    """One W/T-padded H-row; H index clamped to [0, H) (masked in-kernel)."""
    def imap(i):
        r = jnp.minimum(jnp.maximum(i - 1 + dh, 0), H - 1)
        return (r, 0, 0, 0)
    return pl.BlockSpec((1, W + 2, T + 2, nch), imap)


def _resident_spec(shape):
    """Full-array block with a constant index map (stays VMEM-resident)."""
    zeros = (0,) * len(shape)
    return pl.BlockSpec(shape, lambda i: zeros)


# ----------------------------------------------------------------------------
# Parameters + forward
# ----------------------------------------------------------------------------
def init_params(key, clip_dim, base_channels):
    C = base_channels
    ks = jax.random.split(key, 9)

    def w(k, shape, s=0.05):
        return s * jax.random.normal(k, shape, dtype=jnp.float32)

    return dict(
        down_w=w(ks[0], (C, 4, 3, 3, 3)),      # Conv3d weight (Cout, Cin, k, k, k)
        down_b=w(ks[1], (C,)),
        q_w=w(ks[2], (C, C)),                  # nn.Linear weights (out, in)
        k_w=w(ks[3], (C, clip_dim)),
        v_w=w(ks[4], (C, clip_dim)),
        proj_w=w(ks[5], (C, C)),
        proj_b=w(ks[6], (C,)),
        up_w=w(ks[7], (C, 4, 3, 3, 3)),        # ConvTranspose3d weight (Cin, Cout, k, k, k)
        up_b=w(ks[8], (4,)),
    )


def temporal_unet3d_forward(z, clip_tokens, params):
    """z: (B, 4, H, W, T) f32; clip_tokens: (B, S, clip_dim) f32."""
    B, Cin, H, W, T = z.shape
    assert B == 1, "reference attention reshape is only valid for batch size 1"
    C = params['down_w'].shape[0]
    S = clip_tokens.shape[1]
    Wp, Tp, WT, N = W + 2, T + 2, W * T, H * W * T
    scale = float(C) ** -0.5

    # Channels-last volume, zero-padded along W and T only (the H halo is
    # handled with clamped index maps + row masks inside the kernels).
    x = jnp.transpose(z[0], (1, 2, 3, 0))                         # (H, W, T, 4)
    x = jnp.pad(x, ((0, 0), (1, 1), (1, 1), (0, 0)))              # (H, Wp, Tp, 4)

    # Conv3d weight as 27 (Cin, C) tap matrices; tap = a*9 + b*3 + c over (H, W, T).
    wd = jnp.transpose(params['down_w'], (2, 3, 4, 1, 0)).reshape(27, Cin, C)
    bd = params['down_b'].reshape(1, C)

    # Attention operands: fold the softmax scale into Wq and the output
    # projection into V; k / vp are tiny and computed once here.
    cond = clip_tokens[0]                                         # (S, clip_dim)
    wq = params['q_w'].T * scale                                  # (C, C)
    kt = (cond @ params['k_w'].T).T                               # (C, S)
    vp = (cond @ params['v_w'].T) @ params['proj_w'].T            # (S, C)
    bp = params['proj_b'].reshape(1, C)

    # ConvTranspose3d(stride=1, pad=1) == Conv3d with flipped kernel and
    # swapped in/out channel axes.
    w_eq = jnp.flip(params['up_w'], axis=(2, 3, 4))               # (C, 4, 3, 3, 3)
    wu = jnp.transpose(w_eq, (2, 3, 4, 0, 1)).reshape(27, C, Cin)
    bu = params['up_b'].reshape(1, Cin)

    cparams = pltpu.CompilerParams(
        dimension_semantics=("parallel",),
        vmem_limit_bytes=32 * 1024 * 1024,
    )

    # ---- stage 1: down conv + bias + ReLU + cross-attention residual ----
    ce_down = pl.CostEstimate(
        flops=int(2 * N * (27 * Cin * C + C * C + 2 * C * S)),
        transcendentals=int(N * S),
        bytes_accessed=int(4 * (3 * H * Wp * Tp * Cin + H * Wp * Tp * C
                                + 27 * Cin * C + C * C + C * S + 2 * S * C)),
    )
    h_pad = pl.pallas_call(
        functools.partial(_down_attn_kernel, H=H, W=W, T=T, C=C),
        out_shape=jax.ShapeDtypeStruct((H, Wp, Tp, C), jnp.float32),
        grid=(H,),
        in_specs=[
            _slab_spec(Cin, 0, H, W, T),
            _slab_spec(Cin, 1, H, W, T),
            _slab_spec(Cin, 2, H, W, T),
            _resident_spec((27, Cin, C)),
            _resident_spec((1, C)),
            _resident_spec((C, C)),
            _resident_spec((C, S)),
            _resident_spec((S, C)),
            _resident_spec((1, C)),
        ],
        out_specs=pl.BlockSpec((1, Wp, Tp, C), lambda i: (i, 0, 0, 0)),
        compiler_params=cparams,
        cost_estimate=ce_down,
    )(x, x, x, wd, bd, wq, kt, vp, bp)

    # ---- stage 2: up (transposed) conv + bias + tanh ----
    ce_up = pl.CostEstimate(
        flops=int(2 * N * 27 * C * Cin),
        transcendentals=int(N * Cin),
        bytes_accessed=int(4 * (3 * H * Wp * Tp * C + H * Cin * WT + 27 * C * Cin)),
    )
    y = pl.pallas_call(
        functools.partial(_up_kernel, H=H, W=W, T=T),
        out_shape=jax.ShapeDtypeStruct((H, Cin, WT), jnp.float32),
        grid=(H,),
        in_specs=[
            _slab_spec(C, 0, H, W, T),
            _slab_spec(C, 1, H, W, T),
            _slab_spec(C, 2, H, W, T),
            _resident_spec((27, C, Cin)),
            _resident_spec((1, Cin)),
        ],
        out_specs=pl.BlockSpec((1, Cin, WT), lambda i: (i, 0, 0)),
        compiler_params=cparams,
        cost_estimate=ce_up,
    )(h_pad, h_pad, h_pad, wu, bu)

    y = jnp.transpose(y.reshape(H, Cin, W, T), (1, 0, 2, 3))      # (4, H, W, T)
    return y[None]                                                # (1, 4, H, W, T)


# ----------------------------------------------------------------------------
# Pure-JAX reference (mirrors the PyTorch module) for validation
# ----------------------------------------------------------------------------
def ref_forward(z, clip_tokens, params):
    C = params['down_w'].shape[0]
    scale = float(C) ** -0.5
    dn = ('NCDHW', 'OIDHW', 'NCDHW')
    h = lax.conv_general_dilated(z, params['down_w'], (1, 1, 1),
                                 ((1, 1), (1, 1), (1, 1)), dimension_numbers=dn)
    h = jnp.maximum(h + params['down_b'].reshape(1, -1, 1, 1, 1), 0.0)
    B, _, H, W, T = h.shape
    x = jnp.transpose(h, (0, 4, 2, 3, 1)).reshape(B * T * H * W, C)
    q = x @ params['q_w'].T
    k = clip_tokens[0] @ params['k_w'].T
    v = clip_tokens[0] @ params['v_w'].T
    attn = jax.nn.softmax((q * scale) @ k.T, axis=-1)
    o = attn @ v
    o = o @ params['proj_w'].T + params['proj_b']
    o = o.reshape(B, T, H, W, C).transpose(0, 4, 2, 3, 1)
    h = h + o
    w_eq = jnp.flip(params['up_w'], axis=(2, 3, 4)).transpose(1, 0, 2, 3, 4)
    y = lax.conv_general_dilated(h, w_eq, (1, 1, 1),
                                 ((1, 1), (1, 1), (1, 1)), dimension_numbers=dn)
    return jnp.tanh(y + params['up_b'].reshape(1, -1, 1, 1, 1))


if __name__ == "__main__":
    key = jax.random.PRNGKey(0)
    kz, kc, kp = jax.random.split(key, 3)

    B, H, W, T = 1, 16, 16, 8
    clip_dim, base_channels, S = 32, 32, 8

    z = jax.random.normal(kz, (B, 4, H, W, T), dtype=jnp.float32)
    clip_tokens = jax.random.normal(kc, (B, S, clip_dim), dtype=jnp.float32)
    params = init_params(kp, clip_dim, base_channels)

    fwd = jax.jit(lambda z_, c_: temporal_unet3d_forward(z_, c_, params))
    out = jax.block_until_ready(fwd(z, clip_tokens))
    assert out.shape == (B, 4, H, W, T), out.shape

    ref = jax.block_until_ready(ref_forward(z, clip_tokens, params))
    err = float(jnp.max(jnp.abs(out - ref)))
    assert err < 2e-3, f"max abs err {err}"

    print("KERNEL_OK")
</pallas_src>

<mosaic_0001>
module attributes {stable_mosaic.version = 11 : i64} {
  func.func @_down_attn_kernel(%arg0: i32, %arg1: memref<1x18x10x4xf32, #tpu.memory_space<vmem>>, %arg2: memref<1x18x10x4xf32, #tpu.memory_space<vmem>>, %arg3: memref<1x18x10x4xf32, #tpu.memory_space<vmem>>, %arg4: memref<27x4x32xf32, #tpu.memory_space<vmem>>, %arg5: memref<1x32xf32, #tpu.memory_space<vmem>>, %arg6: memref<32x32xf32, #tpu.memory_space<vmem>>, %arg7: memref<32x8xf32, #tpu.memory_space<vmem>>, %arg8: memref<8x32xf32, #tpu.memory_space<vmem>>, %arg9: memref<1x32xf32, #tpu.memory_space<vmem>>, %arg10: memref<1x18x10x32xf32, #tpu.memory_space<vmem>>) attributes {dimension_semantics = [#tpu.dimension_semantics<parallel>], iteration_bounds = array<i64: 16>, scalar_prefetch = 0 : i64, scratch_operands = 0 : i64, tpu.core_type = #tpu.core_type<tc>, window_params = [{transform_indices = @transform_0, window_bounds = array<i64: 1, 18, 10, 4>}, {transform_indices = @transform_1, window_bounds = array<i64: 1, 18, 10, 4>}, {transform_indices = @transform_2, window_bounds = array<i64: 1, 18, 10, 4>}, {pipeline_mode = #tpu.pipeline_mode<synchronous>, transform_indices = @transform_3, window_bounds = array<i64: 27, 4, 32>}, {pipeline_mode = #tpu.pipeline_mode<synchronous>, transform_indices = @transform_4, window_bounds = array<i64: 1, 32>}, {pipeline_mode = #tpu.pipeline_mode<synchronous>, transform_indices = @transform_5, window_bounds = array<i64: 32, 32>}, {pipeline_mode = #tpu.pipeline_mode<synchronous>, transform_indices = @transform_6, window_bounds = array<i64: 32, 8>}, {pipeline_mode = #tpu.pipeline_mode<synchronous>, transform_indices = @transform_7, window_bounds = array<i64: 8, 32>}, {pipeline_mode = #tpu.pipeline_mode<synchronous>, transform_indices = @transform_8, window_bounds = array<i64: 1, 32>}, {transform_indices = @transform_9, window_bounds = array<i64: 1, 18, 10, 32>}]} {
    %c1_i32 = arith.constant 1 : i32
    %0 = arith.subi %arg0, %c1_i32 : i32
    %c0_i32 = arith.constant 0 : i32
    %1 = arith.addi %0, %c0_i32 : i32
    %c0_i32_0 = arith.constant 0 : i32
    %2 = arith.cmpi sge, %1, %c0_i32_0 : i32
    %c16_i32 = arith.constant 16 : i32
    %3 = arith.cmpi slt, %1, %c16_i32 : i32
    %4 = arith.andi %2, %3 : i1
    %cst = arith.constant 1.000000e+00 : f32
    %cst_1 = arith.constant 0.000000e+00 : f32
    %5 = arith.select %4, %cst, %cst_1 : f32
    %c1_i32_2 = arith.constant 1 : i32
    %6 = arith.subi %arg0, %c1_i32_2 : i32
    %c1_i32_3 = arith.constant 1 : i32
    %7 = arith.addi %6, %c1_i32_3 : i32
    %c0_i32_4 = arith.constant 0 : i32
    %8 = arith.cmpi sge, %7, %c0_i32_4 : i32
    %c16_i32_5 = arith.constant 16 : i32
    %9 = arith.cmpi slt, %7, %c16_i32_5 : i32
    %10 = arith.andi %8, %9 : i1
    %cst_6 = arith.constant 1.000000e+00 : f32
    %cst_7 = arith.constant 0.000000e+00 : f32
    %11 = arith.select %10, %cst_6, %cst_7 : f32
    %c1_i32_8 = arith.constant 1 : i32
    %12 = arith.subi %arg0, %c1_i32_8 : i32
    %c2_i32 = arith.constant 2 : i32
    %13 = arith.addi %12, %c2_i32 : i32
    %c0_i32_9 = arith.constant 0 : i32
    %14 = arith.cmpi sge, %13, %c0_i32_9 : i32
    %c16_i32_10 = arith.constant 16 : i32
    %15 = arith.cmpi slt, %13, %c16_i32_10 : i32
    %16 = arith.andi %14, %15 : i1
    %cst_11 = arith.constant 1.000000e+00 : f32
    %cst_12 = arith.constant 0.000000e+00 : f32
    %17 = arith.select %16, %cst_11, %cst_12 : f32
    %cst_13 = arith.constant 0.000000e+00 : f32
    %18 = vector.broadcast %cst_13 : f32 to vector<128x32xf32>
    %cst_14 = arith.constant 0.000000e+00 : f32
    %19 = vector.broadcast %cst_14 : f32 to vector<128x32xf32>
    %c0 = arith.constant 0 : index
    %c0_15 = arith.constant 0 : index
    %c0_16 = arith.constant 0 : index
    %c0_17 = arith.constant 0 : index
    %20 = vector.load %arg1[%c0, %c0_15, %c0_16, %c0_17] : memref<1x18x10x4xf32, #tpu.memory_space<vmem>>, vector<1x16x8x4xf32>
    %21 = vector.shape_cast %20 : vector<1x16x8x4xf32> to vector<16x8x4xf32>
    %22 = vector.shape_cast %21 : vector<16x8x4xf32> to vector<128x4xf32>
    %c0_18 = arith.constant 0 : index
    %c0_19 = arith.constant 0 : index
    %c0_20 = arith.constant 0 : index
    %23 = vector.load %arg4[%c0_18, %c0_19, %c0_20] : memref<27x4x32xf32, #tpu.memory_space<vmem>>, vector<1x4x32xf32>
    %24 = vector.shape_cast %23 : vector<1x4x32xf32> to vector<4x32xf32>
    %cst_21 = arith.constant dense<0.000000e+00> : vector<128x32xf32>
    %25 = tpu.matmul %22, %24, %cst_21 {dimension_numbers = #tpu.dot_dimension_numbers<[1], [0], [0], [1], [0, 0, 1, 1], [], []>} : vector<128x4xf32>, vector<4x32xf32>, vector<128x32xf32> -> vector<128x32xf32>
    %26 = arith.addf %19, %25 : vector<128x32xf32>
    %c0_22 = arith.constant 0 : index
    %c0_23 = arith.constant 0 : index
    %c1 = arith.constant 1 : index
    %c0_24 = arith.constant 0 : index
    %27 = vector.load %arg1[%c0_22, %c0_23, %c1, %c0_24] : memref<1x18x10x4xf32, #tpu.memory_space<vmem>>, vector<1x16x8x4xf32>
    %28 = vector.shape_cast %27 : vector<1x16x8x4xf32> to vector<16x8x4xf32>
    %29 = vector.shape_cast %28 : vector<16x8x4xf32> to vector<128x4xf32>
    %c1_25 = arith.constant 1 : index
    %c0_26 = arith.constant 0 : index
    %c0_27 = arith.constant 0 : index
    %30 = vector.load %arg4[%c1_25, %c0_26, %c0_27] : memref<27x4x32xf32, #tpu.memory_space<vmem>>, vector<1x4x32xf32>
    %31 = vector.shape_cast %30 : vector<1x4x32xf32> to vector<4x32xf32>
    %cst_28 = arith.constant dense<0.000000e+00> : vector<128x32xf32>
    %32 = tpu.matmul %29, %31, %cst_28 {dimension_numbers = #tpu.dot_dimension_numbers<[1], [0], [0], [1], [0, 0, 1, 1], [], []>} : vector<128x4xf32>, vector<4x32xf32>, vector<128x32xf32> -> vector<128x32xf32>
    %33 = arith.addf %26, %32 : vector<128x32xf32>
    %c0_29 = arith.constant 0 : index
    %c0_30 = arith.constant 0 : index
    %c2 = arith.constant 2 : index
    %c0_31 = arith.constant 0 : index
    %34 = vector.load %arg1[%c0_29, %c0_30, %c2, %c0_31] : memref<1x18x10x4xf32, #tpu.memory_space<vmem>>, vector<1x16x8x4xf32>
    %35 = vector.shape_cast %34 : vector<1x16x8x4xf32> to vector<16x8x4xf32>
    %36 = vector.shape_cast %35 : vector<16x8x4xf32> to vector<128x4xf32>
    %c2_32 = arith.constant 2 : index
    %c0_33 = arith.constant 0 : index
    %c0_34 = arith.constant 0 : index
    %37 = vector.load %arg4[%c2_32, %c0_33, %c0_34] : memref<27x4x32xf32, #tpu.memory_space<vmem>>, vector<1x4x32xf32>
    %38 = vector.shape_cast %37 : vector<1x4x32xf32> to vector<4x32xf32>
    %cst_35 = arith.constant dense<0.000000e+00> : vector<128x32xf32>
    %39 = tpu.matmul %36, %38, %cst_35 {dimension_numbers = #tpu.dot_dimension_numbers<[1], [0], [0], [1], [0, 0, 1, 1], [], []>} : vector<128x4xf32>, vector<4x32xf32>, vector<128x32xf32> -> vector<128x32xf32>
    %40 = arith.addf %33, %39 : vector<128x32xf32>
    %c0_36 = arith.constant 0 : index
    %c1_37 = arith.constant 1 : index
    %c0_38 = arith.constant 0 : index
    %c0_39 = arith.constant 0 : index
    %41 = vector.load %arg1[%c0_36, %c1_37, %c0_38, %c0_39] : memref<1x18x10x4xf32, #tpu.memory_space<vmem>>, vector<1x16x8x4xf32>
    %42 = vector.shape_cast %41 : vector<1x16x8x4xf32> to vector<16x8x4xf32>
    %43 = vector.shape_cast %42 : vector<16x8x4xf32> to vector<128x4xf32>
    %c3 = arith.constant 3 : index
    %c0_40 = arith.constant 0 : index
    %c0_41 = arith.constant 0 : index
    %44 = vector.load %arg4[%c3, %c0_40, %c0_41] : memref<27x4x32xf32, #tpu.memory_space<vmem>>, vector<1x4x32xf32>
    %45 = vector.shape_cast %44 : vector<1x4x32xf32> to vector<4x32xf32>
    %cst_42 = arith.constant dense<0.000000e+00> : vector<128x32xf32>
    %46 = tpu.matmul %43, %45, %cst_42 {dimension_numbers = #tpu.dot_dimension_numbers<[1], [0], [0], [1], [0, 0, 1, 1], [], []>} : vector<128x4xf32>, vector<4x32xf32>, vector<128x32xf32> -> vector<128x32xf32>
    %47 = arith.addf %40, %46 : vector<128x32xf32>
    %c0_43 = arith.constant 0 : index
    %c1_44 = arith.constant 1 : index
    %c1_45 = arith.constant 1 : index
    %c0_46 = arith.constant 0 : index
    %48 = vector.load %arg1[%c0_43, %c1_44, %c1_45, %c0_46] : memref<1x18x10x4xf32, #tpu.memory_space<vmem>>, vector<1x16x8x4xf32>
    %49 = vector.shape_cast %48 : vector<1x16x8x4xf32> to vector<16x8x4xf32>
    %50 = vector.shape_cast %49 : vector<16x8x4xf32> to vector<128x4xf32>
    %c4 = arith.constant 4 : index
    %c0_47 = arith.constant 0 : index
    %c0_48 = arith.constant 0 : index
    %51 = vector.load %arg4[%c4, %c0_47, %c0_48] : memref<27x4x32xf32, #tpu.memory_space<vmem>>, vector<1x4x32xf32>
    %52 = vector.shape_cast %51 : vector<1x4x32xf32> to vector<4x32xf32>
    %cst_49 = arith.constant dense<0.000000e+00> : vector<128x32xf32>
    %53 = tpu.matmul %50, %52, %cst_49 {dimension_numbers = #tpu.dot_dimension_numbers<[1], [0], [0], [1], [0, 0, 1, 1], [], []>} : vector<128x4xf32>, vector<4x32xf32>, vector<128x32xf32> -> vector<128x32xf32>
    %54 = arith.addf %47, %53 : vector<128x32xf32>
    %c0_50 = arith.constant 0 : index
    %c1_51 = arith.constant 1 : index
    %c2_52 = arith.constant 2 : index
    %c0_53 = arith.constant 0 : index
    %55 = vector.load %arg1[%c0_50, %c1_51, %c2_52, %c0_53] : memref<1x18x10x4xf32, #tpu.memory_space<vmem>>, vector<1x16x8x4xf32>
    %56 = vector.shape_cast %55 : vector<1x16x8x4xf32> to vector<16x8x4xf32>
    %57 = vector.shape_cast %56 : vector<16x8x4xf32> to vector<128x4xf32>
    %c5 = arith.constant 5 : index
    %c0_54 = arith.constant 0 : index
    %c0_55 = arith.constant 0 : index
    %58 = vector.load %arg4[%c5, %c0_54, %c0_55] : memref<27x4x32xf32, #tpu.memory_space<vmem>>, vector<1x4x32xf32>
    %59 = vector.shape_cast %58 : vector<1x4x32xf32> to vector<4x32xf32>
    %cst_56 = arith.constant dense<0.000000e+00> : vector<128x32xf32>
    %60 = tpu.matmul %57, %59, %cst_56 {dimension_numbers = #tpu.dot_dimension_numbers<[1], [0], [0], [1], [0, 0, 1, 1], [], []>} : vector<128x4xf32>, vector<4x32xf32>, vector<128x32xf32> -> vector<128x32xf32>
    %61 = arith.addf %54, %60 : vector<128x32xf32>
    %c0_57 = arith.constant 0 : index
    %c2_58 = arith.constant 2 : index
    %c0_59 = arith.constant 0 : index
    %c0_60 = arith.constant 0 : index
    %62 = vector.load %arg1[%c0_57, %c2_58, %c0_59, %c0_60] : memref<1x18x10x4xf32, #tpu.memory_space<vmem>>, vector<1x16x8x4xf32>
    %63 = vector.shape_cast %62 : vector<1x16x8x4xf32> to vector<16x8x4xf32>
    %64 = vector.shape_cast %63 : vector<16x8x4xf32> to vector<128x4xf32>
    %c6 = arith.constant 6 : index
    %c0_61 = arith.constant 0 : index
    %c0_62 = arith.constant 0 : index
    %65 = vector.load %arg4[%c6, %c0_61, %c0_62] : memref<27x4x32xf32, #tpu.memory_space<vmem>>, vector<1x4x32xf32>
    %66 = vector.shape_cast %65 : vector<1x4x32xf32> to vector<4x32xf32>
    %cst_63 = arith.constant dense<0.000000e+00> : vector<128x32xf32>
    %67 = tpu.matmul %64, %66, %cst_63 {dimension_numbers = #tpu.dot_dimension_numbers<[1], [0], [0], [1], [0, 0, 1, 1], [], []>} : vector<128x4xf32>, vector<4x32xf32>, vector<128x32xf32> -> vector<128x32xf32>
    %68 = arith.addf %61, %67 : vector<128x32xf32>
    %c0_64 = arith.constant 0 : index
    %c2_65 = arith.constant 2 : index
    %c1_66 = arith.constant 1 : index
    %c0_67 = arith.constant 0 : index
    %69 = vector.load %arg1[%c0_64, %c2_65, %c1_66, %c0_67] : memref<1x18x10x4xf32, #tpu.memory_space<vmem>>, vector<1x16x8x4xf32>
    %70 = vector.shape_cast %69 : vector<1x16x8x4xf32> to vector<16x8x4xf32>
    %71 = vector.shape_cast %70 : vector<16x8x4xf32> to vector<128x4xf32>
    %c7 = arith.constant 7 : index
    %c0_68 = arith.constant 0 : index
    %c0_69 = arith.constant 0 : index
    %72 = vector.load %arg4[%c7, %c0_68, %c0_69] : memref<27x4x32xf32, #tpu.memory_space<vmem>>, vector<1x4x32xf32>
    %73 = vector.shape_cast %72 : vector<1x4x32xf32> to vector<4x32xf32>
    %cst_70 = arith.constant dense<0.000000e+00> : vector<128x32xf32>
    %74 = tpu.matmul %71, %73, %cst_70 {dimension_numbers = #tpu.dot_dimension_numbers<[1], [0], [0], [1], [0, 0, 1, 1], [], []>} : vector<128x4xf32>, vector<4x32xf32>, vector<128x32xf32> -> vector<128x32xf32>
    %75 = arith.addf %68, %74 : vector<128x32xf32>
    %c0_71 = arith.constant 0 : index
    %c2_72 = arith.constant 2 : index
    %c2_73 = arith.constant 2 : index
    %c0_74 = arith.constant 0 : index
    %76 = vector.load %arg1[%c0_71, %c2_72, %c2_73, %c0_74] : memref<1x18x10x4xf32, #tpu.memory_space<vmem>>, vector<1x16x8x4xf32>
    %77 = vector.shape_cast %76 : vector<1x16x8x4xf32> to vector<16x8x4xf32>
    %78 = vector.shape_cast %77 : vector<16x8x4xf32> to vector<128x4xf32>
    %c8 = arith.constant 8 : index
    %c0_75 = arith.constant 0 : index
    %c0_76 = arith.constant 0 : index
    %79 = vector.load %arg4[%c8, %c0_75, %c0_76] : memref<27x4x32xf32, #tpu.memory_space<vmem>>, vector<1x4x32xf32>
    %80 = vector.shape_cast %79 : vector<1x4x32xf32> to vector<4x32xf32>
    %cst_77 = arith.constant dense<0.000000e+00> : vector<128x32xf32>
    %81 = tpu.matmul %78, %80, %cst_77 {dimension_numbers = #tpu.dot_dimension_numbers<[1], [0], [0], [1], [0, 0, 1, 1], [], []>} : vector<128x4xf32>, vector<4x32xf32>, vector<128x32xf32> -> vector<128x32xf32>
    %82 = arith.addf %75, %81 : vector<128x32xf32>
    %83 = vector.broadcast %5 : f32 to vector<128x32xf32>
    %84 = arith.mulf %83, %82 : vector<128x32xf32>
    %85 = arith.addf %18, %84 : vector<128x32xf32>
    %cst_78 = arith.constant 0.000000e+00 : f32
    %86 = vector.broadcast %cst_78 : f32 to vector<128x32xf32>
    %c0_79 = arith.constant 0 : index
    %c0_80 = arith.constant 0 : index
    %c0_81 = arith.constant 0 : index
    %c0_82 = arith.constant 0 : index
    %87 = vector.load %arg2[%c0_79, %c0_80, %c0_81, %c0_82] : memref<1x18x10x4xf32, #tpu.memory_space<vmem>>, vector<1x16x8x4xf32>
    %88 = vector.shape_cast %87 : vector<1x16x8x4xf32> to vector<16x8x4xf32>
    %89 = vector.shape_cast %88 : vector<16x8x4xf32> to vector<128x4xf32>
    %c9 = arith.constant 9 : index
    %c0_83 = arith.constant 0 : index
    %c0_84 = arith.constant 0 : index
    %90 = vector.load %arg4[%c9, %c0_83, %c0_84] : memref<27x4x32xf32, #tpu.memory_space<vmem>>, vector<1x4x32xf32>
    %91 = vector.shape_cast %90 : vector<1x4x32xf32> to vector<4x32xf32>
    %cst_85 = arith.constant dense<0.000000e+00> : vector<128x32xf32>
    %92 = tpu.matmul %89, %91, %cst_85 {dimension_numbers = #tpu.dot_dimension_numbers<[1], [0], [0], [1], [0, 0, 1, 1], [], []>} : vector<128x4xf32>, vector<4x32xf32>, vector<128x32xf32> -> vector<128x32xf32>
    %93 = arith.addf %86, %92 : vector<128x32xf32>
    %c0_86 = arith.constant 0 : index
    %c0_87 = arith.constant 0 : index
    %c1_88 = arith.constant 1 : index
    %c0_89 = arith.constant 0 : index
    %94 = vector.load %arg2[%c0_86, %c0_87, %c1_88, %c0_89] : memref<1x18x10x4xf32, #tpu.memory_space<vmem>>, vector<1x16x8x4xf32>
    %95 = vector.shape_cast %94 : vector<1x16x8x4xf32> to vector<16x8x4xf32>
    %96 = vector.shape_cast %95 : vector<16x8x4xf32> to vector<128x4xf32>
    %c10 = arith.constant 10 : index
    %c0_90 = arith.constant 0 : index
    %c0_91 = arith.constant 0 : index
    %97 = vector.load %arg4[%c10, %c0_90, %c0_91] : memref<27x4x32xf32, #tpu.memory_space<vmem>>, vector<1x4x32xf32>
    %98 = vector.shape_cast %97 : vector<1x4x32xf32> to vector<4x32xf32>
    %cst_92 = arith.constant dense<0.000000e+00> : vector<128x32xf32>
    %99 = tpu.matmul %96, %98, %cst_92 {dimension_numbers = #tpu.dot_dimension_numbers<[1], [0], [0], [1], [0, 0, 1, 1], [], []>} : vector<128x4xf32>, vector<4x32xf32>, vector<128x32xf32> -> vector<128x32xf32>
    %100 = arith.addf %93, %99 : vector<128x32xf32>
    %c0_93 = arith.constant 0 : index
    %c0_94 = arith.constant 0 : index
    %c2_95 = arith.constant 2 : index
    %c0_96 = arith.constant 0 : index
    %101 = vector.load %arg2[%c0_93, %c0_94, %c2_95, %c0_96] : memref<1x18x10x4xf32, #tpu.memory_space<vmem>>, vector<1x16x8x4xf32>
    %102 = vector.shape_cast %101 : vector<1x16x8x4xf32> to vector<16x8x4xf32>
    %103 = vector.shape_cast %102 : vector<16x8x4xf32> to vector<128x4xf32>
    %c11 = arith.constant 11 : index
    %c0_97 = arith.constant 0 : index
    %c0_98 = arith.constant 0 : index
    %104 = vector.load %arg4[%c11, %c0_97, %c0_98] : memref<27x4x32xf32, #tpu.memory_space<vmem>>, vector<1x4x32xf32>
    %105 = vector.shape_cast %104 : vector<1x4x32xf32> to vector<4x32xf32>
    %cst_99 = arith.constant dense<0.000000e+00> : vector<128x32xf32>
    %106 = tpu.matmul %103, %105, %cst_99 {dimension_numbers = #tpu.dot_dimension_numbers<[1], [0], [0], [1], [0, 0, 1, 1], [], []>} : vector<128x4xf32>, vector<4x32xf32>, vector<128x32xf32> -> vector<128x32xf32>
    %107 = arith.addf %100, %106 : vector<128x32xf32>
    %c0_100 = arith.constant 0 : index
    %c1_101 = arith.constant 1 : index
    %c0_102 = arith.constant 0 : index
    %c0_103 = arith.constant 0 : index
    %108 = vector.load %arg2[%c0_100, %c1_101, %c0_102, %c0_103] : memref<1x18x10x4xf32, #tpu.memory_space<vmem>>, vector<1x16x8x4xf32>
    %109 = vector.shape_cast %108 : vector<1x16x8x4xf32> to vector<16x8x4xf32>
    %110 = vector.shape_cast %109 : vector<16x8x4xf32> to vector<128x4xf32>
    %c12 = arith.constant 12 : index
    %c0_104 = arith.constant 0 : index
    %c0_105 = arith.constant 0 : index
    %111 = vector.load %arg4[%c12, %c0_104, %c0_105] : memref<27x4x32xf32, #tpu.memory_space<vmem>>, vector<1x4x32xf32>
    %112 = vector.shape_cast %111 : vector<1x4x32xf32> to vector<4x32xf32>
    %cst_106 = arith.constant dense<0.000000e+00> : vector<128x32xf32>
    %113 = tpu.matmul %110, %112, %cst_106 {dimension_numbers = #tpu.dot_dimension_numbers<[1], [0], [0], [1], [0, 0, 1, 1], [], []>} : vector<128x4xf32>, vector<4x32xf32>, vector<128x32xf32> -> vector<128x32xf32>
    %114 = arith.addf %107, %113 : vector<128x32xf32>
    %c0_107 = arith.constant 0 : index
    %c1_108 = arith.constant 1 : index
    %c1_109 = arith.constant 1 : index
    %c0_110 = arith.constant 0 : index
    %115 = vector.load %arg2[%c0_107, %c1_108, %c1_109, %c0_110] : memref<1x18x10x4xf32, #tpu.memory_space<vmem>>, vector<1x16x8x4xf32>
    %116 = vector.shape_cast %115 : vector<1x16x8x4xf32> to vector<16x8x4xf32>
    %117 = vector.shape_cast %116 : vector<16x8x4xf32> to vector<128x4xf32>
    %c13 = arith.constant 13 : index
    %c0_111 = arith.constant 0 : index
    %c0_112 = arith.constant 0 : index
    %118 = vector.load %arg4[%c13, %c0_111, %c0_112] : memref<27x4x32xf32, #tpu.memory_space<vmem>>, vector<1x4x32xf32>
    %119 = vector.shape_cast %118 : vector<1x4x32xf32> to vector<4x32xf32>
    %cst_113 = arith.constant dense<0.000000e+00> : vector<128x32xf32>
    %120 = tpu.matmul %117, %119, %cst_113 {dimension_numbers = #tpu.dot_dimension_numbers<[1], [0], [0], [1], [0, 0, 1, 1], [], []>} : vector<128x4xf32>, vector<4x32xf32>, vector<128x32xf32> -> vector<128x32xf32>
    %121 = arith.addf %114, %120 : vector<128x32xf32>
    %c0_114 = arith.constant 0 : index
    %c1_115 = arith.constant 1 : index
    %c2_116 = arith.constant 2 : index
    %c0_117 = arith.constant 0 : index
    %122 = vector.load %arg2[%c0_114, %c1_115, %c2_116, %c0_117] : memref<1x18x10x4xf32, #tpu.memory_space<vmem>>, vector<1x16x8x4xf32>
    %123 = vector.shape_cast %122 : vector<1x16x8x4xf32> to vector<16x8x4xf32>
    %124 = vector.shape_cast %123 : vector<16x8x4xf32> to vector<128x4xf32>
    %c14 = arith.constant 14 : index
    %c0_118 = arith.constant 0 : index
    %c0_119 = arith.constant 0 : index
    %125 = vector.load %arg4[%c14, %c0_118, %c0_119] : memref<27x4x32xf32, #tpu.memory_space<vmem>>, vector<1x4x32xf32>
    %126 = vector.shape_cast %125 : vector<1x4x32xf32> to vector<4x32xf32>
    %cst_120 = arith.constant dense<0.000000e+00> : vector<128x32xf32>
    %127 = tpu.matmul %124, %126, %cst_120 {dimension_numbers = #tpu.dot_dimension_numbers<[1], [0], [0], [1], [0, 0, 1, 1], [], []>} : vector<128x4xf32>, vector<4x32xf32>, vector<128x32xf32> -> vector<128x32xf32>
    %128 = arith.addf %121, %127 : vector<128x32xf32>
    %c0_121 = arith.constant 0 : index
    %c2_122 = arith.constant 2 : index
    %c0_123 = arith.constant 0 : index
    %c0_124 = arith.constant 0 : index
    %129 = vector.load %arg2[%c0_121, %c2_122, %c0_123, %c0_124] : memref<1x18x10x4xf32, #tpu.memory_space<vmem>>, vector<1x16x8x4xf32>
    %130 = vector.shape_cast %129 : vector<1x16x8x4xf32> to vector<16x8x4xf32>
    %131 = vector.shape_cast %130 : vector<16x8x4xf32> to vector<128x4xf32>
    %c15 = arith.constant 15 : index
    %c0_125 = arith.constant 0 : index
    %c0_126 = arith.constant 0 : index
    %132 = vector.load %arg4[%c15, %c0_125, %c0_126] : memref<27x4x32xf32, #tpu.memory_space<vmem>>, vector<1x4x32xf32>
    %133 = vector.shape_cast %132 : vector<1x4x32xf32> to vector<4x32xf32>
    %cst_127 = arith.constant dense<0.000000e+00> : vector<128x32xf32>
    %134 = tpu.matmul %131, %133, %cst_127 {dimension_numbers = #tpu.dot_dimension_numbers<[1], [0], [0], [1], [0, 0, 1, 1], [], []>} : vector<128x4xf32>, vector<4x32xf32>, vector<128x32xf32> -> vector<128x32xf32>
    %135 = arith.addf %128, %134 : vector<128x32xf32>
    %c0_128 = arith.constant 0 : index
    %c2_129 = arith.constant 2 : index
    %c1_130 = arith.constant 1 : index
    %c0_131 = arith.constant 0 : index
    %136 = vector.load %arg2[%c0_128, %c2_129, %c1_130, %c0_131] : memref<1x18x10x4xf32, #tpu.memory_space<vmem>>, vector<1x16x8x4xf32>
    %137 = vector.shape_cast %136 : vector<1x16x8x4xf32> to vector<16x8x4xf32>
    %138 = vector.shape_cast %137 : vector<16x8x4xf32> to vector<128x4xf32>
    %c16 = arith.constant 16 : index
    %c0_132 = arith.constant 0 : index
    %c0_133 = arith.constant 0 : index
    %139 = vector.load %arg4[%c16, %c0_132, %c0_133] : memref<27x4x32xf32, #tpu.memory_space<vmem>>, vector<1x4x32xf32>
    %140 = vector.shape_cast %139 : vector<1x4x32xf32> to vector<4x32xf32>
    %cst_134 = arith.constant dense<0.000000e+00> : vector<128x32xf32>
    %141 = tpu.matmul %138, %140, %cst_134 {dimension_numbers = #tpu.dot_dimension_numbers<[1], [0], [0], [1], [0, 0, 1, 1], [], []>} : vector<128x4xf32>, vector<4x32xf32>, vector<128x32xf32> -> vector<128x32xf32>
    %142 = arith.addf %135, %141 : vector<128x32xf32>
    %c0_135 = arith.constant 0 : index
    %c2_136 = arith.constant 2 : index
    %c2_137 = arith.constant 2 : index
    %c0_138 = arith.constant 0 : index
    %143 = vector.load %arg2[%c0_135, %c2_136, %c2_137, %c0_138] : memref<1x18x10x4xf32, #tpu.memory_space<vmem>>, vector<1x16x8x4xf32>
    %144 = vector.shape_cast %143 : vector<1x16x8x4xf32> to vector<16x8x4xf32>
    %145 = vector.shape_cast %144 : vector<16x8x4xf32> to vector<128x4xf32>
    %c17 = arith.constant 17 : index
    %c0_139 = arith.constant 0 : index
    %c0_140 = arith.constant 0 : index
    %146 = vector.load %arg4[%c17, %c0_139, %c0_140] : memref<27x4x32xf32, #tpu.memory_space<vmem>>, vector<1x4x32xf32>
    %147 = vector.shape_cast %146 : vector<1x4x32xf32> to vector<4x32xf32>
    %cst_141 = arith.constant dense<0.000000e+00> : vector<128x32xf32>
    %148 = tpu.matmul %145, %147, %cst_141 {dimension_numbers = #tpu.dot_dimension_numbers<[1], [0], [0], [1], [0, 0, 1, 1], [], []>} : vector<128x4xf32>, vector<4x32xf32>, vector<128x32xf32> -> vector<128x32xf32>
    %149 = arith.addf %142, %148 : vector<128x32xf32>
    %150 = vector.broadcast %11 : f32 to vector<128x32xf32>
    %151 = arith.mulf %150, %149 : vector<128x32xf32>
    %152 = arith.addf %85, %151 : vector<128x32xf32>
    %cst_142 = arith.constant 0.000000e+00 : f32
    %153 = vector.broadcast %cst_142 : f32 to vector<128x32xf32>
    %c0_143 = arith.constant 0 : index
    %c0_144 = arith.constant 0 : index
    %c0_145 = arith.constant 0 : index
    %c0_146 = arith.constant 0 : index
    %154 = vector.load %arg3[%c0_143, %c0_144, %c0_145, %c0_146] : memref<1x18x10x4xf32, #tpu.memory_space<vmem>>, vector<1x16x8x4xf32>
    %155 = vector.shape_cast %154 : vector<1x16x8x4xf32> to vector<16x8x4xf32>
    %156 = vector.shape_cast %155 : vector<16x8x4xf32> to vector<128x4xf32>
    %c18 = arith.constant 18 : index
    %c0_147 = arith.constant 0 : index
    %c0_148 = arith.constant 0 : index
    %157 = vector.load %arg4[%c18, %c0_147, %c0_148] : memref<27x4x32xf32, #tpu.memory_space<vmem>>, vector<1x4x32xf32>
    %158 = vector.shape_cast %157 : vector<1x4x32xf32> to vector<4x32xf32>
    %cst_149 = arith.constant dense<0.000000e+00> : vector<128x32xf32>
    %159 = tpu.matmul %156, %158, %cst_149 {dimension_numbers = #tpu.dot_dimension_numbers<[1], [0], [0], [1], [0, 0, 1, 1], [], []>} : vector<128x4xf32>, vector<4x32xf32>, vector<128x32xf32> -> vector<128x32xf32>
    %160 = arith.addf %153, %159 : vector<128x32xf32>
    %c0_150 = arith.constant 0 : index
    %c0_151 = arith.constant 0 : index
    %c1_152 = arith.constant 1 : index
    %c0_153 = arith.constant 0 : index
    %161 = vector.load %arg3[%c0_150, %c0_151, %c1_152, %c0_153] : memref<1x18x10x4xf32, #tpu.memory_space<vmem>>, vector<1x16x8x4xf32>
    %162 = vector.shape_cast %161 : vector<1x16x8x4xf32> to vector<16x8x4xf32>
    %163 = vector.shape_cast %162 : vector<16x8x4xf32> to vector<128x4xf32>
    %c19 = arith.constant 19 : index
    %c0_154 = arith.constant 0 : index
    %c0_155 = arith.constant 0 : index
    %164 = vector.load %arg4[%c19, %c0_154, %c0_155] : memref<27x4x32xf32, #tpu.memory_space<vmem>>, vector<1x4x32xf32>
    %165 = vector.shape_cast %164 : vector<1x4x32xf32> to vector<4x32xf32>
    %cst_156 = arith.constant dense<0.000000e+00> : vector<128x32xf32>
    %166 = tpu.matmul %163, %165, %cst_156 {dimension_numbers = #tpu.dot_dimension_numbers<[1], [0], [0], [1], [0, 0, 1, 1], [], []>} : vector<128x4xf32>, vector<4x32xf32>, vector<128x32xf32> -> vector<128x32xf32>
    %167 = arith.addf %160, %166 : vector<128x32xf32>
    %c0_157 = arith.constant 0 : index
    %c0_158 = arith.constant 0 : index
    %c2_159 = arith.constant 2 : index
    %c0_160 = arith.constant 0 : index
    %168 = vector.load %arg3[%c0_157, %c0_158, %c2_159, %c0_160] : memref<1x18x10x4xf32, #tpu.memory_space<vmem>>, vector<1x16x8x4xf32>
    %169 = vector.shape_cast %168 : vector<1x16x8x4xf32> to vector<16x8x4xf32>
    %170 = vector.shape_cast %169 : vector<16x8x4xf32> to vector<128x4xf32>
    %c20 = arith.constant 20 : index
    %c0_161 = arith.constant 0 : index
    %c0_162 = arith.constant 0 : index
    %171 = vector.load %arg4[%c20, %c0_161, %c0_162] : memref<27x4x32xf32, #tpu.memory_space<vmem>>, vector<1x4x32xf32>
    %172 = vector.shape_cast %171 : vector<1x4x32xf32> to vector<4x32xf32>
    %cst_163 = arith.constant dense<0.000000e+00> : vector<128x32xf32>
    %173 = tpu.matmul %170, %172, %cst_163 {dimension_numbers = #tpu.dot_dimension_numbers<[1], [0], [0], [1], [0, 0, 1, 1], [], []>} : vector<128x4xf32>, vector<4x32xf32>, vector<128x32xf32> -> vector<128x32xf32>
    %174 = arith.addf %167, %173 : vector<128x32xf32>
    %c0_164 = arith.constant 0 : index
    %c1_165 = arith.constant 1 : index
    %c0_166 = arith.constant 0 : index
    %c0_167 = arith.constant 0 : index
    %175 = vector.load %arg3[%c0_164, %c1_165, %c0_166, %c0_167] : memref<1x18x10x4xf32, #tpu.memory_space<vmem>>, vector<1x16x8x4xf32>
    %176 = vector.shape_cast %175 : vector<1x16x8x4xf32> to vector<16x8x4xf32>
    %177 = vector.shape_cast %176 : vector<16x8x4xf32> to vector<128x4xf32>
    %c21 = arith.constant 21 : index
    %c0_168 = arith.constant 0 : index
    %c0_169 = arith.constant 0 : index
    %178 = vector.load %arg4[%c21, %c0_168, %c0_169] : memref<27x4x32xf32, #tpu.memory_space<vmem>>, vector<1x4x32xf32>
    %179 = vector.shape_cast %178 : vector<1x4x32xf32> to vector<4x32xf32>
    %cst_170 = arith.constant dense<0.000000e+00> : vector<128x32xf32>
    %180 = tpu.matmul %177, %179, %cst_170 {dimension_numbers = #tpu.dot_dimension_numbers<[1], [0], [0], [1], [0, 0, 1, 1], [], []>} : vector<128x4xf32>, vector<4x32xf32>, vector<128x32xf32> -> vector<128x32xf32>
    %181 = arith.addf %174, %180 : vector<128x32xf32>
    %c0_171 = arith.constant 0 : index
    %c1_172 = arith.constant 1 : index
    %c1_173 = arith.constant 1 : index
    %c0_174 = arith.constant 0 : index
    %182 = vector.load %arg3[%c0_171, %c1_172, %c1_173, %c0_174] : memref<1x18x10x4xf32, #tpu.memory_space<vmem>>, vector<1x16x8x4xf32>
    %183 = vector.shape_cast %182 : vector<1x16x8x4xf32> to vector<16x8x4xf32>
    %184 = vector.shape_cast %183 : vector<16x8x4xf32> to vector<128x4xf32>
    %c22 = arith.constant 22 : index
    %c0_175 = arith.constant 0 : index
    %c0_176 = arith.constant 0 : index
    %185 = vector.load %arg4[%c22, %c0_175, %c0_176] : memref<27x4x32xf32, #tpu.memory_space<vmem>>, vector<1x4x32xf32>
    %186 = vector.shape_cast %185 : vector<1x4x32xf32> to vector<4x32xf32>
    %cst_177 = arith.constant dense<0.000000e+00> : vector<128x32xf32>
    %187 = tpu.matmul %184, %186, %cst_177 {dimension_numbers = #tpu.dot_dimension_numbers<[1], [0], [0], [1], [0, 0, 1, 1], [], []>} : vector<128x4xf32>, vector<4x32xf32>, vector<128x32xf32> -> vector<128x32xf32>
    %188 = arith.addf %181, %187 : vector<128x32xf32>
    %c0_178 = arith.constant 0 : index
    %c1_179 = arith.constant 1 : index
    %c2_180 = arith.constant 2 : index
    %c0_181 = arith.constant 0 : index
    %189 = vector.load %arg3[%c0_178, %c1_179, %c2_180, %c0_181] : memref<1x18x10x4xf32, #tpu.memory_space<vmem>>, vector<1x16x8x4xf32>
    %190 = vector.shape_cast %189 : vector<1x16x8x4xf32> to vector<16x8x4xf32>
    %191 = vector.shape_cast %190 : vector<16x8x4xf32> to vector<128x4xf32>
    %c23 = arith.constant 23 : index
    %c0_182 = arith.constant 0 : index
    %c0_183 = arith.constant 0 : index
    %192 = vector.load %arg4[%c23, %c0_182, %c0_183] : memref<27x4x32xf32, #tpu.memory_space<vmem>>, vector<1x4x32xf32>
    %193 = vector.shape_cast %192 : vector<1x4x32xf32> to vector<4x32xf32>
    %cst_184 = arith.constant dense<0.000000e+00> : vector<128x32xf32>
    %194 = tpu.matmul %191, %193, %cst_184 {dimension_numbers = #tpu.dot_dimension_numbers<[1], [0], [0], [1], [0, 0, 1, 1], [], []>} : vector<128x4xf32>, vector<4x32xf32>, vector<128x32xf32> -> vector<128x32xf32>
    %195 = arith.addf %188, %194 : vector<128x32xf32>
    %c0_185 = arith.constant 0 : index
    %c2_186 = arith.constant 2 : index
    %c0_187 = arith.constant 0 : index
    %c0_188 = arith.constant 0 : index
    %196 = vector.load %arg3[%c0_185, %c2_186, %c0_187, %c0_188] : memref<1x18x10x4xf32, #tpu.memory_space<vmem>>, vector<1x16x8x4xf32>
    %197 = vector.shape_cast %196 : vector<1x16x8x4xf32> to vector<16x8x4xf32>
    %198 = vector.shape_cast %197 : vector<16x8x4xf32> to vector<128x4xf32>
    %c24 = arith.constant 24 : index
    %c0_189 = arith.constant 0 : index
    %c0_190 = arith.constant 0 : index
    %199 = vector.load %arg4[%c24, %c0_189, %c0_190] : memref<27x4x32xf32, #tpu.memory_space<vmem>>, vector<1x4x32xf32>
    %200 = vector.shape_cast %199 : vector<1x4x32xf32> to vector<4x32xf32>
    %cst_191 = arith.constant dense<0.000000e+00> : vector<128x32xf32>
    %201 = tpu.matmul %198, %200, %cst_191 {dimension_numbers = #tpu.dot_dimension_numbers<[1], [0], [0], [1], [0, 0, 1, 1], [], []>} : vector<128x4xf32>, vector<4x32xf32>, vector<128x32xf32> -> vector<128x32xf32>
    %202 = arith.addf %195, %201 : vector<128x32xf32>
    %c0_192 = arith.constant 0 : index
    %c2_193 = arith.constant 2 : index
    %c1_194 = arith.constant 1 : index
    %c0_195 = arith.constant 0 : index
    %203 = vector.load %arg3[%c0_192, %c2_193, %c1_194, %c0_195] : memref<1x18x10x4xf32, #tpu.memory_space<vmem>>, vector<1x16x8x4xf32>
    %204 = vector.shape_cast %203 : vector<1x16x8x4xf32> to vector<16x8x4xf32>
    %205 = vector.shape_cast %204 : vector<16x8x4xf32> to vector<128x4xf32>
    %c25 = arith.constant 25 : index
    %c0_196 = arith.constant 0 : index
    %c0_197 = arith.constant 0 : index
    %206 = vector.load %arg4[%c25, %c0_196, %c0_197] : memref<27x4x32xf32, #tpu.memory_space<vmem>>, vector<1x4x32xf32>
    %207 = vector.shape_cast %206 : vector<1x4x32xf32> to vector<4x32xf32>
    %cst_198 = arith.constant dense<0.000000e+00> : vector<128x32xf32>
    %208 = tpu.matmul %205, %207, %cst_198 {dimension_numbers = #tpu.dot_dimension_numbers<[1], [0], [0], [1], [0, 0, 1, 1], [], []>} : vector<128x4xf32>, vector<4x32xf32>, vector<128x32xf32> -> vector<128x32xf32>
    %209 = arith.addf %202, %208 : vector<128x32xf32>
    %c0_199 = arith.constant 0 : index
    %c2_200 = arith.constant 2 : index
    %c2_201 = arith.constant 2 : index
    %c0_202 = arith.constant 0 : index
    %210 = vector.load %arg3[%c0_199, %c2_200, %c2_201, %c0_202] : memref<1x18x10x4xf32, #tpu.memory_space<vmem>>, vector<1x16x8x4xf32>
    %211 = vector.shape_cast %210 : vector<1x16x8x4xf32> to vector<16x8x4xf32>
    %212 = vector.shape_cast %211 : vector<16x8x4xf32> to vector<128x4xf32>
    %c26 = arith.constant 26 : index
    %c0_203 = arith.constant 0 : index
    %c0_204 = arith.constant 0 : index
    %213 = vector.load %arg4[%c26, %c0_203, %c0_204] : memref<27x4x32xf32, #tpu.memory_space<vmem>>, vector<1x4x32xf32>
    %214 = vector.shape_cast %213 : vector<1x4x32xf32> to vector<4x32xf32>
    %cst_205 = arith.constant dense<0.000000e+00> : vector<128x32xf32>
    %215 = tpu.matmul %212, %214, %cst_205 {dimension_numbers = #tpu.dot_dimension_numbers<[1], [0], [0], [1], [0, 0, 1, 1], [], []>} : vector<128x4xf32>, vector<4x32xf32>, vector<128x32xf32> -> vector<128x32xf32>
    %216 = arith.addf %209, %215 : vector<128x32xf32>
    %217 = vector.broadcast %17 : f32 to vector<128x32xf32>
    %218 = arith.mulf %217, %216 : vector<128x32xf32>
    %219 = arith.addf %152, %218 : vector<128x32xf32>
    %c0_206 = arith.constant 0 : index
    %c0_207 = arith.constant 0 : index
    %220 = vector.load %arg5[%c0_206, %c0_207] : memref<1x32xf32, #tpu.memory_space<vmem>>, vector<1x32xf32>
    %221 = vector.broadcast %220 : vector<1x32xf32> to vector<128x32xf32>
    %222 = arith.addf %219, %221 : vector<128x32xf32>
    %cst_208 = arith.constant 0.000000e+00 : f32
    %223 = vector.broadcast %cst_208 : f32 to vector<128x32xf32>
    %224 = arith.maximumf %222, %223 : vector<128x32xf32>
    %c0_209 = arith.constant 0 : index
    %c0_210 = arith.constant 0 : index
    %225 = vector.load %arg6[%c0_209, %c0_210] : memref<32x32xf32, #tpu.memory_space<vmem>>, vector<32x32xf32>
    %cst_211 = arith.constant dense<0.000000e+00> : vector<128x32xf32>
    %226 = tpu.matmul %224, %225, %cst_211 {dimension_numbers = #tpu.dot_dimension_numbers<[1], [0], [0], [1], [0, 0, 1, 1], [], []>} : vector<128x32xf32>, vector<32x32xf32>, vector<128x32xf32> -> vector<128x32xf32>
    %c0_212 = arith.constant 0 : index
    %c0_213 = arith.constant 0 : index
    %227 = vector.load %arg7[%c0_212, %c0_213] : memref<32x8xf32, #tpu.memory_space<vmem>>, vector<32x8xf32>
    %cst_214 = arith.constant dense<0.000000e+00> : vector<128x8xf32>
    %228 = tpu.matmul %226, %227, %cst_214 {dimension_numbers = #tpu.dot_dimension_numbers<[1], [0], [0], [1], [0, 0, 1, 1], [], []>} : vector<128x32xf32>, vector<32x8xf32>, vector<128x8xf32> -> vector<128x8xf32>
    %cst_215 = arith.constant dense<0xFF800000> : vector<128xf32>
    %229 = vector.multi_reduction <maximumf>, %228, %cst_215 [1] : vector<128x8xf32> to vector<128xf32>
    %230 = vector.shape_cast %229 : vector<128xf32> to vector<128x1xf32>
    %231 = vector.broadcast %230 : vector<128x1xf32> to vector<128x8xf32>
    %232 = arith.subf %228, %231 : vector<128x8xf32>
    %233 = math.exp %232 : vector<128x8xf32>
    %cst_216 = arith.constant dense<0.000000e+00> : vector<128xf32>
    %234 = vector.multi_reduction <add>, %233, %cst_216 [1] : vector<128x8xf32> to vector<128xf32>
    %235 = vector.shape_cast %234 : vector<128xf32> to vector<128x1xf32>
    %236 = vector.broadcast %235 : vector<128x1xf32> to vector<128x8xf32>
    %237 = arith.divf %233, %236 : vector<128x8xf32>
    %c0_217 = arith.constant 0 : index
    %c0_218 = arith.constant 0 : index
    %238 = vector.load %arg8[%c0_217, %c0_218] : memref<8x32xf32, #tpu.memory_space<vmem>>, vector<8x32xf32>
    %cst_219 = arith.constant dense<0.000000e+00> : vector<128x32xf32>
    %239 = tpu.matmul %237, %238, %cst_219 {dimension_numbers = #tpu.dot_dimension_numbers<[1], [0], [0], [1], [0, 0, 1, 1], [], []>} : vector<128x8xf32>, vector<8x32xf32>, vector<128x32xf32> -> vector<128x32xf32>
    %c0_220 = arith.constant 0 : index
    %c0_221 = arith.constant 0 : index
    %240 = vector.load %arg9[%c0_220, %c0_221] : memref<1x32xf32, #tpu.memory_space<vmem>>, vector<1x32xf32>
    %241 = vector.broadcast %240 : vector<1x32xf32> to vector<128x32xf32>
    %242 = arith.addf %239, %241 : vector<128x32xf32>
    %243 = arith.addf %224, %242 : vector<128x32xf32>
    %244 = vector.shape_cast %243 : vector<128x32xf32> to vector<16x8x32xf32>
    %cst_222 = arith.constant 0.000000e+00 : f32
    %245 = vector.broadcast %cst_222 : f32 to vector<18x10x32xf32>
    %c0_223 = arith.constant 0 : index
    %c0_224 = arith.constant 0 : index
    %c0_225 = arith.constant 0 : index
    %c0_226 = arith.constant 0 : index
    %246 = vector.load %arg10[%c0_223, %c0_224, %c0_225, %c0_226] : memref<1x18x10x32xf32, #tpu.memory_space<vmem>>, vector<1x18x10x32xf32>
    %247 = vector.shape_cast %246 : vector<1x18x10x32xf32> to vector<18x10x32xf32>
    %248 = vector.shape_cast %245 : vector<18x10x32xf32> to vector<1x18x10x32xf32>
    tpu.vector_store %arg10[%c0_223, %c0_224, %c0_225, %c0_226], %248 {strides = array<i32>} : memref<1x18x10x32xf32, #tpu.memory_space<vmem>>, vector<1x18x10x32xf32>,
    %c0_227 = arith.constant 0 : index
    %c1_228 = arith.constant 1 : index
    %c1_229 = arith.constant 1 : index
    %c0_230 = arith.constant 0 : index
    %249 = vector.load %arg10[%c0_227, %c1_228, %c1_229, %c0_230] : memref<1x18x10x32xf32, #tpu.memory_space<vmem>>, vector<1x16x8x32xf32>
    %250 = vector.shape_cast %249 : vector<1x16x8x32xf32> to vector<16x8x32xf32>
    %251 = vector.shape_cast %244 : vector<16x8x32xf32> to vector<1x16x8x32xf32>
    tpu.vector_store %arg10[%c0_227, %c1_228, %c1_229, %c0_230], %251 {strides = array<i32>} : memref<1x18x10x32xf32, #tpu.memory_space<vmem>>, vector<1x16x8x32xf32>,
    return
  }
  func.func @transform_0(%arg0: i32) -> (i32, i32, i32, i32) {
    %c1_i32 = arith.constant 1 : i32
    %0 = arith.subi %arg0, %c1_i32 : i32
    %c0_i32 = arith.constant 0 : i32
    %1 = arith.addi %0, %c0_i32 : i32
    %c0_i32_0 = arith.constant 0 : i32
    %2 = arith.maxsi %1, %c0_i32_0 : i32
    %c15_i32 = arith.constant 15 : i32
    %3 = arith.minsi %2, %c15_i32 : i32
    %c0_i32_1 = arith.constant 0 : i32
    %c0_i32_2 = arith.constant 0 : i32
    %c0_i32_3 = arith.constant 0 : i32
    %c0_i32_4 = arith.constant 0 : i32
    return %3, %c0_i32_1, %c0_i32_2, %c0_i32_3 : i32, i32, i32, i32
  }
  func.func @transform_1(%arg0: i32) -> (i32, i32, i32, i32) {
    %c1_i32 = arith.constant 1 : i32
    %0 = arith.subi %arg0, %c1_i32 : i32
    %c1_i32_0 = arith.constant 1 : i32
    %1 = arith.addi %0, %c1_i32_0 : i32
    %c0_i32 = arith.constant 0 : i32
    %2 = arith.maxsi %1, %c0_i32 : i32
    %c15_i32 = arith.constant 15 : i32
    %3 = arith.minsi %2, %c15_i32 : i32
    %c0_i32_1 = arith.constant 0 : i32
    %c0_i32_2 = arith.constant 0 : i32
    %c0_i32_3 = arith.constant 0 : i32
    %c0_i32_4 = arith.constant 0 : i32
    return %3, %c0_i32_1, %c0_i32_2, %c0_i32_3 : i32, i32, i32, i32
  }
  func.func @transform_2(%arg0: i32) -> (i32, i32, i32, i32) {
    %c1_i32 = arith.constant 1 : i32
    %0 = arith.subi %arg0, %c1_i32 : i32
    %c2_i32 = arith.constant 2 : i32
    %1 = arith.addi %0, %c2_i32 : i32
    %c0_i32 = arith.constant 0 : i32
    %2 = arith.maxsi %1, %c0_i32 : i32
    %c15_i32 = arith.constant 15 : i32
    %3 = arith.minsi %2, %c15_i32 : i32
    %c0_i32_0 = arith.constant 0 : i32
    %c0_i32_1 = arith.constant 0 : i32
    %c0_i32_2 = arith.constant 0 : i32
    %c0_i32_3 = arith.constant 0 : i32
    return %3, %c0_i32_0, %c0_i32_1, %c0_i32_2 : i32, i32, i32, i32
  }
  func.func @transform_3(%arg0: i32) -> (i32, i32, i32) {
    %c0_i32 = arith.constant 0 : i32
    %c0_i32_0 = arith.constant 0 : i32
    %c0_i32_1 = arith.constant 0 : i32
    %c0_i32_2 = arith.constant 0 : i32
    return %c0_i32, %c0_i32_0, %c0_i32_1 : i32, i32, i32
  }
  func.func @transform_4(%arg0: i32) -> (i32, i32) {
    %c0_i32 = arith.constant 0 : i32
    %c0_i32_0 = arith.constant 0 : i32
    %c0_i32_1 = arith.constant 0 : i32
    return %c0_i32, %c0_i32_0 : i32, i32
  }
  func.func @transform_5(%arg0: i32) -> (i32, i32) {
    %c0_i32 = arith.constant 0 : i32
    %c0_i32_0 = arith.constant 0 : i32
    %c0_i32_1 = arith.constant 0 : i32
    return %c0_i32, %c0_i32_0 : i32, i32
  }
  func.func @transform_6(%arg0: i32) -> (i32, i32) {
    %c0_i32 = arith.constant 0 : i32
    %c0_i32_0 = arith.constant 0 : i32
    %c0_i32_1 = arith.constant 0 : i32
    return %c0_i32, %c0_i32_0 : i32, i32
  }
  func.func @transform_7(%arg0: i32) -> (i32, i32) {
    %c0_i32 = arith.constant 0 : i32
    %c0_i32_0 = arith.constant 0 : i32
    %c0_i32_1 = arith.constant 0 : i32
    return %c0_i32, %c0_i32_0 : i32, i32
  }
  func.func @transform_8(%arg0: i32) -> (i32, i32) {
    %c0_i32 = arith.constant 0 : i32
    %c0_i32_0 = arith.constant 0 : i32
    %c0_i32_1 = arith.constant 0 : i32
    return %c0_i32, %c0_i32_0 : i32, i32
  }
  func.func @transform_9(%arg0: i32) -> (i32, i32, i32, i32) {
    %c0_i32 = arith.constant 0 : i32
    %c0_i32_0 = arith.constant 0 : i32
    %c0_i32_1 = arith.constant 0 : i32
    %c0_i32_2 = arith.constant 0 : i32
    return %arg0, %c0_i32, %c0_i32_0, %c0_i32_1 : i32, i32, i32, i32
  }
}

module attributes {stable_mosaic.version = 11 : i64} {
  func.func @_up_kernel(%arg0: i32, %arg1: memref<1x18x10x32xf32, #tpu.memory_space<vmem>>, %arg2: memref<1x18x10x32xf32, #tpu.memory_space<vmem>>, %arg3: memref<1x18x10x32xf32, #tpu.memory_space<vmem>>, %arg4: memref<27x32x4xf32, #tpu.memory_space<vmem>>, %arg5: memref<1x4xf32, #tpu.memory_space<vmem>>, %arg6: memref<1x4x128xf32, #tpu.memory_space<vmem>>) attributes {dimension_semantics = [#tpu.dimension_semantics<parallel>], iteration_bounds = array<i64: 16>, scalar_prefetch = 0 : i64, scratch_operands = 0 : i64, tpu.core_type = #tpu.core_type<tc>, window_params = [{transform_indices = @transform_0, window_bounds = array<i64: 1, 18, 10, 32>}, {transform_indices = @transform_1, window_bounds = array<i64: 1, 18, 10, 32>}, {transform_indices = @transform_2, window_bounds = array<i64: 1, 18, 10, 32>}, {pipeline_mode = #tpu.pipeline_mode<synchronous>, transform_indices = @transform_3, window_bounds = array<i64: 27, 32, 4>}, {pipeline_mode = #tpu.pipeline_mode<synchronous>, transform_indices = @transform_4, window_bounds = array<i64: 1, 4>}, {transform_indices = @transform_5, window_bounds = array<i64: 1, 4, 128>}]} {
    %c1_i32 = arith.constant 1 : i32
    %0 = arith.subi %arg0, %c1_i32 : i32
    %c0_i32 = arith.constant 0 : i32
    %1 = arith.addi %0, %c0_i32 : i32
    %c0_i32_0 = arith.constant 0 : i32
    %2 = arith.cmpi sge, %1, %c0_i32_0 : i32
    %c16_i32 = arith.constant 16 : i32
    %3 = arith.cmpi slt, %1, %c16_i32 : i32
    %4 = arith.andi %2, %3 : i1
    %cst = arith.constant 1.000000e+00 : f32
    %cst_1 = arith.constant 0.000000e+00 : f32
    %5 = arith.select %4, %cst, %cst_1 : f32
    %c1_i32_2 = arith.constant 1 : i32
    %6 = arith.subi %arg0, %c1_i32_2 : i32
    %c1_i32_3 = arith.constant 1 : i32
    %7 = arith.addi %6, %c1_i32_3 : i32
    %c0_i32_4 = arith.constant 0 : i32
    %8 = arith.cmpi sge, %7, %c0_i32_4 : i32
    %c16_i32_5 = arith.constant 16 : i32
    %9 = arith.cmpi slt, %7, %c16_i32_5 : i32
    %10 = arith.andi %8, %9 : i1
    %cst_6 = arith.constant 1.000000e+00 : f32
    %cst_7 = arith.constant 0.000000e+00 : f32
    %11 = arith.select %10, %cst_6, %cst_7 : f32
    %c1_i32_8 = arith.constant 1 : i32
    %12 = arith.subi %arg0, %c1_i32_8 : i32
    %c2_i32 = arith.constant 2 : i32
    %13 = arith.addi %12, %c2_i32 : i32
    %c0_i32_9 = arith.constant 0 : i32
    %14 = arith.cmpi sge, %13, %c0_i32_9 : i32
    %c16_i32_10 = arith.constant 16 : i32
    %15 = arith.cmpi slt, %13, %c16_i32_10 : i32
    %16 = arith.andi %14, %15 : i1
    %cst_11 = arith.constant 1.000000e+00 : f32
    %cst_12 = arith.constant 0.000000e+00 : f32
    %17 = arith.select %16, %cst_11, %cst_12 : f32
    %cst_13 = arith.constant 0.000000e+00 : f32
    %18 = vector.broadcast %cst_13 : f32 to vector<128x4xf32>
    %cst_14 = arith.constant 0.000000e+00 : f32
    %19 = vector.broadcast %cst_14 : f32 to vector<128x4xf32>
    %c0 = arith.constant 0 : index
    %c0_15 = arith.constant 0 : index
    %c0_16 = arith.constant 0 : index
    %c0_17 = arith.constant 0 : index
    %20 = vector.load %arg1[%c0, %c0_15, %c0_16, %c0_17] : memref<1x18x10x32xf32, #tpu.memory_space<vmem>>, vector<1x16x8x32xf32>
    %21 = vector.shape_cast %20 : vector<1x16x8x32xf32> to vector<16x8x32xf32>
    %22 = vector.shape_cast %21 : vector<16x8x32xf32> to vector<128x32xf32>
    %c0_18 = arith.constant 0 : index
    %c0_19 = arith.constant 0 : index
    %c0_20 = arith.constant 0 : index
    %23 = vector.load %arg4[%c0_18, %c0_19, %c0_20] : memref<27x32x4xf32, #tpu.memory_space<vmem>>, vector<1x32x4xf32>
    %24 = vector.shape_cast %23 : vector<1x32x4xf32> to vector<32x4xf32>
    %cst_21 = arith.constant dense<0.000000e+00> : vector<128x4xf32>
    %25 = tpu.matmul %22, %24, %cst_21 {dimension_numbers = #tpu.dot_dimension_numbers<[1], [0], [0], [1], [0, 0, 1, 1], [], []>} : vector<128x32xf32>, vector<32x4xf32>, vector<128x4xf32> -> vector<128x4xf32>
    %26 = arith.addf %19, %25 : vector<128x4xf32>
    %c0_22 = arith.constant 0 : index
    %c0_23 = arith.constant 0 : index
    %c1 = arith.constant 1 : index
    %c0_24 = arith.constant 0 : index
    %27 = vector.load %arg1[%c0_22, %c0_23, %c1, %c0_24] : memref<1x18x10x32xf32, #tpu.memory_space<vmem>>, vector<1x16x8x32xf32>
    %28 = vector.shape_cast %27 : vector<1x16x8x32xf32> to vector<16x8x32xf32>
    %29 = vector.shape_cast %28 : vector<16x8x32xf32> to vector<128x32xf32>
    %c1_25 = arith.constant 1 : index
    %c0_26 = arith.constant 0 : index
    %c0_27 = arith.constant 0 : index
    %30 = vector.load %arg4[%c1_25, %c0_26, %c0_27] : memref<27x32x4xf32, #tpu.memory_space<vmem>>, vector<1x32x4xf32>
    %31 = vector.shape_cast %30 : vector<1x32x4xf32> to vector<32x4xf32>
    %cst_28 = arith.constant dense<0.000000e+00> : vector<128x4xf32>
    %32 = tpu.matmul %29, %31, %cst_28 {dimension_numbers = #tpu.dot_dimension_numbers<[1], [0], [0], [1], [0, 0, 1, 1], [], []>} : vector<128x32xf32>, vector<32x4xf32>, vector<128x4xf32> -> vector<128x4xf32>
    %33 = arith.addf %26, %32 : vector<128x4xf32>
    %c0_29 = arith.constant 0 : index
    %c0_30 = arith.constant 0 : index
    %c2 = arith.constant 2 : index
    %c0_31 = arith.constant 0 : index
    %34 = vector.load %arg1[%c0_29, %c0_30, %c2, %c0_31] : memref<1x18x10x32xf32, #tpu.memory_space<vmem>>, vector<1x16x8x32xf32>
    %35 = vector.shape_cast %34 : vector<1x16x8x32xf32> to vector<16x8x32xf32>
    %36 = vector.shape_cast %35 : vector<16x8x32xf32> to vector<128x32xf32>
    %c2_32 = arith.constant 2 : index
    %c0_33 = arith.constant 0 : index
    %c0_34 = arith.constant 0 : index
    %37 = vector.load %arg4[%c2_32, %c0_33, %c0_34] : memref<27x32x4xf32, #tpu.memory_space<vmem>>, vector<1x32x4xf32>
    %38 = vector.shape_cast %37 : vector<1x32x4xf32> to vector<32x4xf32>
    %cst_35 = arith.constant dense<0.000000e+00> : vector<128x4xf32>
    %39 = tpu.matmul %36, %38, %cst_35 {dimension_numbers = #tpu.dot_dimension_numbers<[1], [0], [0], [1], [0, 0, 1, 1], [], []>} : vector<128x32xf32>, vector<32x4xf32>, vector<128x4xf32> -> vector<128x4xf32>
    %40 = arith.addf %33, %39 : vector<128x4xf32>
    %c0_36 = arith.constant 0 : index
    %c1_37 = arith.constant 1 : index
    %c0_38 = arith.constant 0 : index
    %c0_39 = arith.constant 0 : index
    %41 = vector.load %arg1[%c0_36, %c1_37, %c0_38, %c0_39] : memref<1x18x10x32xf32, #tpu.memory_space<vmem>>, vector<1x16x8x32xf32>
    %42 = vector.shape_cast %41 : vector<1x16x8x32xf32> to vector<16x8x32xf32>
    %43 = vector.shape_cast %42 : vector<16x8x32xf32> to vector<128x32xf32>
    %c3 = arith.constant 3 : index
    %c0_40 = arith.constant 0 : index
    %c0_41 = arith.constant 0 : index
    %44 = vector.load %arg4[%c3, %c0_40, %c0_41] : memref<27x32x4xf32, #tpu.memory_space<vmem>>, vector<1x32x4xf32>
    %45 = vector.shape_cast %44 : vector<1x32x4xf32> to vector<32x4xf32>
    %cst_42 = arith.constant dense<0.000000e+00> : vector<128x4xf32>
    %46 = tpu.matmul %43, %45, %cst_42 {dimension_numbers = #tpu.dot_dimension_numbers<[1], [0], [0], [1], [0, 0, 1, 1], [], []>} : vector<128x32xf32>, vector<32x4xf32>, vector<128x4xf32> -> vector<128x4xf32>
    %47 = arith.addf %40, %46 : vector<128x4xf32>
    %c0_43 = arith.constant 0 : index
    %c1_44 = arith.constant 1 : index
    %c1_45 = arith.constant 1 : index
    %c0_46 = arith.constant 0 : index
    %48 = vector.load %arg1[%c0_43, %c1_44, %c1_45, %c0_46] : memref<1x18x10x32xf32, #tpu.memory_space<vmem>>, vector<1x16x8x32xf32>
    %49 = vector.shape_cast %48 : vector<1x16x8x32xf32> to vector<16x8x32xf32>
    %50 = vector.shape_cast %49 : vector<16x8x32xf32> to vector<128x32xf32>
    %c4 = arith.constant 4 : index
    %c0_47 = arith.constant 0 : index
    %c0_48 = arith.constant 0 : index
    %51 = vector.load %arg4[%c4, %c0_47, %c0_48] : memref<27x32x4xf32, #tpu.memory_space<vmem>>, vector<1x32x4xf32>
    %52 = vector.shape_cast %51 : vector<1x32x4xf32> to vector<32x4xf32>
    %cst_49 = arith.constant dense<0.000000e+00> : vector<128x4xf32>
    %53 = tpu.matmul %50, %52, %cst_49 {dimension_numbers = #tpu.dot_dimension_numbers<[1], [0], [0], [1], [0, 0, 1, 1], [], []>} : vector<128x32xf32>, vector<32x4xf32>, vector<128x4xf32> -> vector<128x4xf32>
    %54 = arith.addf %47, %53 : vector<128x4xf32>
    %c0_50 = arith.constant 0 : index
    %c1_51 = arith.constant 1 : index
    %c2_52 = arith.constant 2 : index
    %c0_53 = arith.constant 0 : index
    %55 = vector.load %arg1[%c0_50, %c1_51, %c2_52, %c0_53] : memref<1x18x10x32xf32, #tpu.memory_space<vmem>>, vector<1x16x8x32xf32>
    %56 = vector.shape_cast %55 : vector<1x16x8x32xf32> to vector<16x8x32xf32>
    %57 = vector.shape_cast %56 : vector<16x8x32xf32> to vector<128x32xf32>
    %c5 = arith.constant 5 : index
    %c0_54 = arith.constant 0 : index
    %c0_55 = arith.constant 0 : index
    %58 = vector.load %arg4[%c5, %c0_54, %c0_55] : memref<27x32x4xf32, #tpu.memory_space<vmem>>, vector<1x32x4xf32>
    %59 = vector.shape_cast %58 : vector<1x32x4xf32> to vector<32x4xf32>
    %cst_56 = arith.constant dense<0.000000e+00> : vector<128x4xf32>
    %60 = tpu.matmul %57, %59, %cst_56 {dimension_numbers = #tpu.dot_dimension_numbers<[1], [0], [0], [1], [0, 0, 1, 1], [], []>} : vector<128x32xf32>, vector<32x4xf32>, vector<128x4xf32> -> vector<128x4xf32>
    %61 = arith.addf %54, %60 : vector<128x4xf32>
    %c0_57 = arith.constant 0 : index
    %c2_58 = arith.constant 2 : index
    %c0_59 = arith.constant 0 : index
    %c0_60 = arith.constant 0 : index
    %62 = vector.load %arg1[%c0_57, %c2_58, %c0_59, %c0_60] : memref<1x18x10x32xf32, #tpu.memory_space<vmem>>, vector<1x16x8x32xf32>
    %63 = vector.shape_cast %62 : vector<1x16x8x32xf32> to vector<16x8x32xf32>
    %64 = vector.shape_cast %63 : vector<16x8x32xf32> to vector<128x32xf32>
    %c6 = arith.constant 6 : index
    %c0_61 = arith.constant 0 : index
    %c0_62 = arith.constant 0 : index
    %65 = vector.load %arg4[%c6, %c0_61, %c0_62] : memref<27x32x4xf32, #tpu.memory_space<vmem>>, vector<1x32x4xf32>
    %66 = vector.shape_cast %65 : vector<1x32x4xf32> to vector<32x4xf32>
    %cst_63 = arith.constant dense<0.000000e+00> : vector<128x4xf32>
    %67 = tpu.matmul %64, %66, %cst_63 {dimension_numbers = #tpu.dot_dimension_numbers<[1], [0], [0], [1], [0, 0, 1, 1], [], []>} : vector<128x32xf32>, vector<32x4xf32>, vector<128x4xf32> -> vector<128x4xf32>
    %68 = arith.addf %61, %67 : vector<128x4xf32>
    %c0_64 = arith.constant 0 : index
    %c2_65 = arith.constant 2 : index
    %c1_66 = arith.constant 1 : index
    %c0_67 = arith.constant 0 : index
    %69 = vector.load %arg1[%c0_64, %c2_65, %c1_66, %c0_67] : memref<1x18x10x32xf32, #tpu.memory_space<vmem>>, vector<1x16x8x32xf32>
    %70 = vector.shape_cast %69 : vector<1x16x8x32xf32> to vector<16x8x32xf32>
    %71 = vector.shape_cast %70 : vector<16x8x32xf32> to vector<128x32xf32>
    %c7 = arith.constant 7 : index
    %c0_68 = arith.constant 0 : index
    %c0_69 = arith.constant 0 : index
    %72 = vector.load %arg4[%c7, %c0_68, %c0_69] : memref<27x32x4xf32, #tpu.memory_space<vmem>>, vector<1x32x4xf32>
    %73 = vector.shape_cast %72 : vector<1x32x4xf32> to vector<32x4xf32>
    %cst_70 = arith.constant dense<0.000000e+00> : vector<128x4xf32>
    %74 = tpu.matmul %71, %73, %cst_70 {dimension_numbers = #tpu.dot_dimension_numbers<[1], [0], [0], [1], [0, 0, 1, 1], [], []>} : vector<128x32xf32>, vector<32x4xf32>, vector<128x4xf32> -> vector<128x4xf32>
    %75 = arith.addf %68, %74 : vector<128x4xf32>
    %c0_71 = arith.constant 0 : index
    %c2_72 = arith.constant 2 : index
    %c2_73 = arith.constant 2 : index
    %c0_74 = arith.constant 0 : index
    %76 = vector.load %arg1[%c0_71, %c2_72, %c2_73, %c0_74] : memref<1x18x10x32xf32, #tpu.memory_space<vmem>>, vector<1x16x8x32xf32>
    %77 = vector.shape_cast %76 : vector<1x16x8x32xf32> to vector<16x8x32xf32>
    %78 = vector.shape_cast %77 : vector<16x8x32xf32> to vector<128x32xf32>
    %c8 = arith.constant 8 : index
    %c0_75 = arith.constant 0 : index
    %c0_76 = arith.constant 0 : index
    %79 = vector.load %arg4[%c8, %c0_75, %c0_76] : memref<27x32x4xf32, #tpu.memory_space<vmem>>, vector<1x32x4xf32>
    %80 = vector.shape_cast %79 : vector<1x32x4xf32> to vector<32x4xf32>
    %cst_77 = arith.constant dense<0.000000e+00> : vector<128x4xf32>
    %81 = tpu.matmul %78, %80, %cst_77 {dimension_numbers = #tpu.dot_dimension_numbers<[1], [0], [0], [1], [0, 0, 1, 1], [], []>} : vector<128x32xf32>, vector<32x4xf32>, vector<128x4xf32> -> vector<128x4xf32>
    %82 = arith.addf %75, %81 : vector<128x4xf32>
    %83 = vector.broadcast %5 : f32 to vector<128x4xf32>
    %84 = arith.mulf %83, %82 : vector<128x4xf32>
    %85 = arith.addf %18, %84 : vector<128x4xf32>
    %cst_78 = arith.constant 0.000000e+00 : f32
    %86 = vector.broadcast %cst_78 : f32 to vector<128x4xf32>
    %c0_79 = arith.constant 0 : index
    %c0_80 = arith.constant 0 : index
    %c0_81 = arith.constant 0 : index
    %c0_82 = arith.constant 0 : index
    %87 = vector.load %arg2[%c0_79, %c0_80, %c0_81, %c0_82] : memref<1x18x10x32xf32, #tpu.memory_space<vmem>>, vector<1x16x8x32xf32>
    %88 = vector.shape_cast %87 : vector<1x16x8x32xf32> to vector<16x8x32xf32>
    %89 = vector.shape_cast %88 : vector<16x8x32xf32> to vector<128x32xf32>
    %c9 = arith.constant 9 : index
    %c0_83 = arith.constant 0 : index
    %c0_84 = arith.constant 0 : index
    %90 = vector.load %arg4[%c9, %c0_83, %c0_84] : memref<27x32x4xf32, #tpu.memory_space<vmem>>, vector<1x32x4xf32>
    %91 = vector.shape_cast %90 : vector<1x32x4xf32> to vector<32x4xf32>
    %cst_85 = arith.constant dense<0.000000e+00> : vector<128x4xf32>
    %92 = tpu.matmul %89, %91, %cst_85 {dimension_numbers = #tpu.dot_dimension_numbers<[1], [0], [0], [1], [0, 0, 1, 1], [], []>} : vector<128x32xf32>, vector<32x4xf32>, vector<128x4xf32> -> vector<128x4xf32>
    %93 = arith.addf %86, %92 : vector<128x4xf32>
    %c0_86 = arith.constant 0 : index
    %c0_87 = arith.constant 0 : index
    %c1_88 = arith.constant 1 : index
    %c0_89 = arith.constant 0 : index
    %94 = vector.load %arg2[%c0_86, %c0_87, %c1_88, %c0_89] : memref<1x18x10x32xf32, #tpu.memory_space<vmem>>, vector<1x16x8x32xf32>
    %95 = vector.shape_cast %94 : vector<1x16x8x32xf32> to vector<16x8x32xf32>
    %96 = vector.shape_cast %95 : vector<16x8x32xf32> to vector<128x32xf32>
    %c10 = arith.constant 10 : index
    %c0_90 = arith.constant 0 : index
    %c0_91 = arith.constant 0 : index
    %97 = vector.load %arg4[%c10, %c0_90, %c0_91] : memref<27x32x4xf32, #tpu.memory_space<vmem>>, vector<1x32x4xf32>
    %98 = vector.shape_cast %97 : vector<1x32x4xf32> to vector<32x4xf32>
    %cst_92 = arith.constant dense<0.000000e+00> : vector<128x4xf32>
    %99 = tpu.matmul %96, %98, %cst_92 {dimension_numbers = #tpu.dot_dimension_numbers<[1], [0], [0], [1], [0, 0, 1, 1], [], []>} : vector<128x32xf32>, vector<32x4xf32>, vector<128x4xf32> -> vector<128x4xf32>
    %100 = arith.addf %93, %99 : vector<128x4xf32>
    %c0_93 = arith.constant 0 : index
    %c0_94 = arith.constant 0 : index
    %c2_95 = arith.constant 2 : index
    %c0_96 = arith.constant 0 : index
    %101 = vector.load %arg2[%c0_93, %c0_94, %c2_95, %c0_96] : memref<1x18x10x32xf32, #tpu.memory_space<vmem>>, vector<1x16x8x32xf32>
    %102 = vector.shape_cast %101 : vector<1x16x8x32xf32> to vector<16x8x32xf32>
    %103 = vector.shape_cast %102 : vector<16x8x32xf32> to vector<128x32xf32>
    %c11 = arith.constant 11 : index
    %c0_97 = arith.constant 0 : index
    %c0_98 = arith.constant 0 : index
    %104 = vector.load %arg4[%c11, %c0_97, %c0_98] : memref<27x32x4xf32, #tpu.memory_space<vmem>>, vector<1x32x4xf32>
    %105 = vector.shape_cast %104 : vector<1x32x4xf32> to vector<32x4xf32>
    %cst_99 = arith.constant dense<0.000000e+00> : vector<128x4xf32>
    %106 = tpu.matmul %103, %105, %cst_99 {dimension_numbers = #tpu.dot_dimension_numbers<[1], [0], [0], [1], [0, 0, 1, 1], [], []>} : vector<128x32xf32>, vector<32x4xf32>, vector<128x4xf32> -> vector<128x4xf32>
    %107 = arith.addf %100, %106 : vector<128x4xf32>
    %c0_100 = arith.constant 0 : index
    %c1_101 = arith.constant 1 : index
    %c0_102 = arith.constant 0 : index
    %c0_103 = arith.constant 0 : index
    %108 = vector.load %arg2[%c0_100, %c1_101, %c0_102, %c0_103] : memref<1x18x10x32xf32, #tpu.memory_space<vmem>>, vector<1x16x8x32xf32>
    %109 = vector.shape_cast %108 : vector<1x16x8x32xf32> to vector<16x8x32xf32>
    %110 = vector.shape_cast %109 : vector<16x8x32xf32> to vector<128x32xf32>
    %c12 = arith.constant 12 : index
    %c0_104 = arith.constant 0 : index
    %c0_105 = arith.constant 0 : index
    %111 = vector.load %arg4[%c12, %c0_104, %c0_105] : memref<27x32x4xf32, #tpu.memory_space<vmem>>, vector<1x32x4xf32>
    %112 = vector.shape_cast %111 : vector<1x32x4xf32> to vector<32x4xf32>
    %cst_106 = arith.constant dense<0.000000e+00> : vector<128x4xf32>
    %113 = tpu.matmul %110, %112, %cst_106 {dimension_numbers = #tpu.dot_dimension_numbers<[1], [0], [0], [1], [0, 0, 1, 1], [], []>} : vector<128x32xf32>, vector<32x4xf32>, vector<128x4xf32> -> vector<128x4xf32>
    %114 = arith.addf %107, %113 : vector<128x4xf32>
    %c0_107 = arith.constant 0 : index
    %c1_108 = arith.constant 1 : index
    %c1_109 = arith.constant 1 : index
    %c0_110 = arith.constant 0 : index
    %115 = vector.load %arg2[%c0_107, %c1_108, %c1_109, %c0_110] : memref<1x18x10x32xf32, #tpu.memory_space<vmem>>, vector<1x16x8x32xf32>
    %116 = vector.shape_cast %115 : vector<1x16x8x32xf32> to vector<16x8x32xf32>
    %117 = vector.shape_cast %116 : vector<16x8x32xf32> to vector<128x32xf32>
    %c13 = arith.constant 13 : index
    %c0_111 = arith.constant 0 : index
    %c0_112 = arith.constant 0 : index
    %118 = vector.load %arg4[%c13, %c0_111, %c0_112] : memref<27x32x4xf32, #tpu.memory_space<vmem>>, vector<1x32x4xf32>
    %119 = vector.shape_cast %118 : vector<1x32x4xf32> to vector<32x4xf32>
    %cst_113 = arith.constant dense<0.000000e+00> : vector<128x4xf32>
    %120 = tpu.matmul %117, %119, %cst_113 {dimension_numbers = #tpu.dot_dimension_numbers<[1], [0], [0], [1], [0, 0, 1, 1], [], []>} : vector<128x32xf32>, vector<32x4xf32>, vector<128x4xf32> -> vector<128x4xf32>
    %121 = arith.addf %114, %120 : vector<128x4xf32>
    %c0_114 = arith.constant 0 : index
    %c1_115 = arith.constant 1 : index
    %c2_116 = arith.constant 2 : index
    %c0_117 = arith.constant 0 : index
    %122 = vector.load %arg2[%c0_114, %c1_115, %c2_116, %c0_117] : memref<1x18x10x32xf32, #tpu.memory_space<vmem>>, vector<1x16x8x32xf32>
    %123 = vector.shape_cast %122 : vector<1x16x8x32xf32> to vector<16x8x32xf32>
    %124 = vector.shape_cast %123 : vector<16x8x32xf32> to vector<128x32xf32>
    %c14 = arith.constant 14 : index
    %c0_118 = arith.constant 0 : index
    %c0_119 = arith.constant 0 : index
    %125 = vector.load %arg4[%c14, %c0_118, %c0_119] : memref<27x32x4xf32, #tpu.memory_space<vmem>>, vector<1x32x4xf32>
    %126 = vector.shape_cast %125 : vector<1x32x4xf32> to vector<32x4xf32>
    %cst_120 = arith.constant dense<0.000000e+00> : vector<128x4xf32>
    %127 = tpu.matmul %124, %126, %cst_120 {dimension_numbers = #tpu.dot_dimension_numbers<[1], [0], [0], [1], [0, 0, 1, 1], [], []>} : vector<128x32xf32>, vector<32x4xf32>, vector<128x4xf32> -> vector<128x4xf32>
    %128 = arith.addf %121, %127 : vector<128x4xf32>
    %c0_121 = arith.constant 0 : index
    %c2_122 = arith.constant 2 : index
    %c0_123 = arith.constant 0 : index
    %c0_124 = arith.constant 0 : index
    %129 = vector.load %arg2[%c0_121, %c2_122, %c0_123, %c0_124] : memref<1x18x10x32xf32, #tpu.memory_space<vmem>>, vector<1x16x8x32xf32>
    %130 = vector.shape_cast %129 : vector<1x16x8x32xf32> to vector<16x8x32xf32>
    %131 = vector.shape_cast %130 : vector<16x8x32xf32> to vector<128x32xf32>
    %c15 = arith.constant 15 : index
    %c0_125 = arith.constant 0 : index
    %c0_126 = arith.constant 0 : index
    %132 = vector.load %arg4[%c15, %c0_125, %c0_126] : memref<27x32x4xf32, #tpu.memory_space<vmem>>, vector<1x32x4xf32>
    %133 = vector.shape_cast %132 : vector<1x32x4xf32> to vector<32x4xf32>
    %cst_127 = arith.constant dense<0.000000e+00> : vector<128x4xf32>
    %134 = tpu.matmul %131, %133, %cst_127 {dimension_numbers = #tpu.dot_dimension_numbers<[1], [0], [0], [1], [0, 0, 1, 1], [], []>} : vector<128x32xf32>, vector<32x4xf32>, vector<128x4xf32> -> vector<128x4xf32>
    %135 = arith.addf %128, %134 : vector<128x4xf32>
    %c0_128 = arith.constant 0 : index
    %c2_129 = arith.constant 2 : index
    %c1_130 = arith.constant 1 : index
    %c0_131 = arith.constant 0 : index
    %136 = vector.load %arg2[%c0_128, %c2_129, %c1_130, %c0_131] : memref<1x18x10x32xf32, #tpu.memory_space<vmem>>, vector<1x16x8x32xf32>
    %137 = vector.shape_cast %136 : vector<1x16x8x32xf32> to vector<16x8x32xf32>
    %138 = vector.shape_cast %137 : vector<16x8x32xf32> to vector<128x32xf32>
    %c16 = arith.constant 16 : index
    %c0_132 = arith.constant 0 : index
    %c0_133 = arith.constant 0 : index
    %139 = vector.load %arg4[%c16, %c0_132, %c0_133] : memref<27x32x4xf32, #tpu.memory_space<vmem>>, vector<1x32x4xf32>
    %140 = vector.shape_cast %139 : vector<1x32x4xf32> to vector<32x4xf32>
    %cst_134 = arith.constant dense<0.000000e+00> : vector<128x4xf32>
    %141 = tpu.matmul %138, %140, %cst_134 {dimension_numbers = #tpu.dot_dimension_numbers<[1], [0], [0], [1], [0, 0, 1, 1], [], []>} : vector<128x32xf32>, vector<32x4xf32>, vector<128x4xf32> -> vector<128x4xf32>
    %142 = arith.addf %135, %141 : vector<128x4xf32>
    %c0_135 = arith.constant 0 : index
    %c2_136 = arith.constant 2 : index
    %c2_137 = arith.constant 2 : index
    %c0_138 = arith.constant 0 : index
    %143 = vector.load %arg2[%c0_135, %c2_136, %c2_137, %c0_138] : memref<1x18x10x32xf32, #tpu.memory_space<vmem>>, vector<1x16x8x32xf32>
    %144 = vector.shape_cast %143 : vector<1x16x8x32xf32> to vector<16x8x32xf32>
    %145 = vector.shape_cast %144 : vector<16x8x32xf32> to vector<128x32xf32>
    %c17 = arith.constant 17 : index
    %c0_139 = arith.constant 0 : index
    %c0_140 = arith.constant 0 : index
    %146 = vector.load %arg4[%c17, %c0_139, %c0_140] : memref<27x32x4xf32, #tpu.memory_space<vmem>>, vector<1x32x4xf32>
    %147 = vector.shape_cast %146 : vector<1x32x4xf32> to vector<32x4xf32>
    %cst_141 = arith.constant dense<0.000000e+00> : vector<128x4xf32>
    %148 = tpu.matmul %145, %147, %cst_141 {dimension_numbers = #tpu.dot_dimension_numbers<[1], [0], [0], [1], [0, 0, 1, 1], [], []>} : vector<128x32xf32>, vector<32x4xf32>, vector<128x4xf32> -> vector<128x4xf32>
    %149 = arith.addf %142, %148 : vector<128x4xf32>
    %150 = vector.broadcast %11 : f32 to vector<128x4xf32>
    %151 = arith.mulf %150, %149 : vector<128x4xf32>
    %152 = arith.addf %85, %151 : vector<128x4xf32>
    %cst_142 = arith.constant 0.000000e+00 : f32
    %153 = vector.broadcast %cst_142 : f32 to vector<128x4xf32>
    %c0_143 = arith.constant 0 : index
    %c0_144 = arith.constant 0 : index
    %c0_145 = arith.constant 0 : index
    %c0_146 = arith.constant 0 : index
    %154 = vector.load %arg3[%c0_143, %c0_144, %c0_145, %c0_146] : memref<1x18x10x32xf32, #tpu.memory_space<vmem>>, vector<1x16x8x32xf32>
    %155 = vector.shape_cast %154 : vector<1x16x8x32xf32> to vector<16x8x32xf32>
    %156 = vector.shape_cast %155 : vector<16x8x32xf32> to vector<128x32xf32>
    %c18 = arith.constant 18 : index
    %c0_147 = arith.constant 0 : index
    %c0_148 = arith.constant 0 : index
    %157 = vector.load %arg4[%c18, %c0_147, %c0_148] : memref<27x32x4xf32, #tpu.memory_space<vmem>>, vector<1x32x4xf32>
    %158 = vector.shape_cast %157 : vector<1x32x4xf32> to vector<32x4xf32>
    %cst_149 = arith.constant dense<0.000000e+00> : vector<128x4xf32>
    %159 = tpu.matmul %156, %158, %cst_149 {dimension_numbers = #tpu.dot_dimension_numbers<[1], [0], [0], [1], [0, 0, 1, 1], [], []>} : vector<128x32xf32>, vector<32x4xf32>, vector<128x4xf32> -> vector<128x4xf32>
    %160 = arith.addf %153, %159 : vector<128x4xf32>
    %c0_150 = arith.constant 0 : index
    %c0_151 = arith.constant 0 : index
    %c1_152 = arith.constant 1 : index
    %c0_153 = arith.constant 0 : index
    %161 = vector.load %arg3[%c0_150, %c0_151, %c1_152, %c0_153] : memref<1x18x10x32xf32, #tpu.memory_space<vmem>>, vector<1x16x8x32xf32>
    %162 = vector.shape_cast %161 : vector<1x16x8x32xf32> to vector<16x8x32xf32>
    %163 = vector.shape_cast %162 : vector<16x8x32xf32> to vector<128x32xf32>
    %c19 = arith.constant 19 : index
    %c0_154 = arith.constant 0 : index
    %c0_155 = arith.constant 0 : index
    %164 = vector.load %arg4[%c19, %c0_154, %c0_155] : memref<27x32x4xf32, #tpu.memory_space<vmem>>, vector<1x32x4xf32>
    %165 = vector.shape_cast %164 : vector<1x32x4xf32> to vector<32x4xf32>
    %cst_156 = arith.constant dense<0.000000e+00> : vector<128x4xf32>
    %166 = tpu.matmul %163, %165, %cst_156 {dimension_numbers = #tpu.dot_dimension_numbers<[1], [0], [0], [1], [0, 0, 1, 1], [], []>} : vector<128x32xf32>, vector<32x4xf32>, vector<128x4xf32> -> vector<128x4xf32>
    %167 = arith.addf %160, %166 : vector<128x4xf32>
    %c0_157 = arith.constant 0 : index
    %c0_158 = arith.constant 0 : index
    %c2_159 = arith.constant 2 : index
    %c0_160 = arith.constant 0 : index
    %168 = vector.load %arg3[%c0_157, %c0_158, %c2_159, %c0_160] : memref<1x18x10x32xf32, #tpu.memory_space<vmem>>, vector<1x16x8x32xf32>
    %169 = vector.shape_cast %168 : vector<1x16x8x32xf32> to vector<16x8x32xf32>
    %170 = vector.shape_cast %169 : vector<16x8x32xf32> to vector<128x32xf32>
    %c20 = arith.constant 20 : index
    %c0_161 = arith.constant 0 : index
    %c0_162 = arith.constant 0 : index
    %171 = vector.load %arg4[%c20, %c0_161, %c0_162] : memref<27x32x4xf32, #tpu.memory_space<vmem>>, vector<1x32x4xf32>
    %172 = vector.shape_cast %171 : vector<1x32x4xf32> to vector<32x4xf32>
    %cst_163 = arith.constant dense<0.000000e+00> : vector<128x4xf32>
    %173 = tpu.matmul %170, %172, %cst_163 {dimension_numbers = #tpu.dot_dimension_numbers<[1], [0], [0], [1], [0, 0, 1, 1], [], []>} : vector<128x32xf32>, vector<32x4xf32>, vector<128x4xf32> -> vector<128x4xf32>
    %174 = arith.addf %167, %173 : vector<128x4xf32>
    %c0_164 = arith.constant 0 : index
    %c1_165 = arith.constant 1 : index
    %c0_166 = arith.constant 0 : index
    %c0_167 = arith.constant 0 : index
    %175 = vector.load %arg3[%c0_164, %c1_165, %c0_166, %c0_167] : memref<1x18x10x32xf32, #tpu.memory_space<vmem>>, vector<1x16x8x32xf32>
    %176 = vector.shape_cast %175 : vector<1x16x8x32xf32> to vector<16x8x32xf32>
    %177 = vector.shape_cast %176 : vector<16x8x32xf32> to vector<128x32xf32>
    %c21 = arith.constant 21 : index
    %c0_168 = arith.constant 0 : index
    %c0_169 = arith.constant 0 : index
    %178 = vector.load %arg4[%c21, %c0_168, %c0_169] : memref<27x32x4xf32, #tpu.memory_space<vmem>>, vector<1x32x4xf32>
    %179 = vector.shape_cast %178 : vector<1x32x4xf32> to vector<32x4xf32>
    %cst_170 = arith.constant dense<0.000000e+00> : vector<128x4xf32>
    %180 = tpu.matmul %177, %179, %cst_170 {dimension_numbers = #tpu.dot_dimension_numbers<[1], [0], [0], [1], [0, 0, 1, 1], [], []>} : vector<128x32xf32>, vector<32x4xf32>, vector<128x4xf32> -> vector<128x4xf32>
    %181 = arith.addf %174, %180 : vector<128x4xf32>
    %c0_171 = arith.constant 0 : index
    %c1_172 = arith.constant 1 : index
    %c1_173 = arith.constant 1 : index
    %c0_174 = arith.constant 0 : index
    %182 = vector.load %arg3[%c0_171, %c1_172, %c1_173, %c0_174] : memref<1x18x10x32xf32, #tpu.memory_space<vmem>>, vector<1x16x8x32xf32>
    %183 = vector.shape_cast %182 : vector<1x16x8x32xf32> to vector<16x8x32xf32>
    %184 = vector.shape_cast %183 : vector<16x8x32xf32> to vector<128x32xf32>
    %c22 = arith.constant 22 : index
    %c0_175 = arith.constant 0 : index
    %c0_176 = arith.constant 0 : index
    %185 = vector.load %arg4[%c22, %c0_175, %c0_176] : memref<27x32x4xf32, #tpu.memory_space<vmem>>, vector<1x32x4xf32>
    %186 = vector.shape_cast %185 : vector<1x32x4xf32> to vector<32x4xf32>
    %cst_177 = arith.constant dense<0.000000e+00> : vector<128x4xf32>
    %187 = tpu.matmul %184, %186, %cst_177 {dimension_numbers = #tpu.dot_dimension_numbers<[1], [0], [0], [1], [0, 0, 1, 1], [], []>} : vector<128x32xf32>, vector<32x4xf32>, vector<128x4xf32> -> vector<128x4xf32>
    %188 = arith.addf %181, %187 : vector<128x4xf32>
    %c0_178 = arith.constant 0 : index
    %c1_179 = arith.constant 1 : index
    %c2_180 = arith.constant 2 : index
    %c0_181 = arith.constant 0 : index
    %189 = vector.load %arg3[%c0_178, %c1_179, %c2_180, %c0_181] : memref<1x18x10x32xf32, #tpu.memory_space<vmem>>, vector<1x16x8x32xf32>
    %190 = vector.shape_cast %189 : vector<1x16x8x32xf32> to vector<16x8x32xf32>
    %191 = vector.shape_cast %190 : vector<16x8x32xf32> to vector<128x32xf32>
    %c23 = arith.constant 23 : index
    %c0_182 = arith.constant 0 : index
    %c0_183 = arith.constant 0 : index
    %192 = vector.load %arg4[%c23, %c0_182, %c0_183] : memref<27x32x4xf32, #tpu.memory_space<vmem>>, vector<1x32x4xf32>
    %193 = vector.shape_cast %192 : vector<1x32x4xf32> to vector<32x4xf32>
    %cst_184 = arith.constant dense<0.000000e+00> : vector<128x4xf32>
    %194 = tpu.matmul %191, %193, %cst_184 {dimension_numbers = #tpu.dot_dimension_numbers<[1], [0], [0], [1], [0, 0, 1, 1], [], []>} : vector<128x32xf32>, vector<32x4xf32>, vector<128x4xf32> -> vector<128x4xf32>
    %195 = arith.addf %188, %194 : vector<128x4xf32>
    %c0_185 = arith.constant 0 : index
    %c2_186 = arith.constant 2 : index
    %c0_187 = arith.constant 0 : index
    %c0_188 = arith.constant 0 : index
    %196 = vector.load %arg3[%c0_185, %c2_186, %c0_187, %c0_188] : memref<1x18x10x32xf32, #tpu.memory_space<vmem>>, vector<1x16x8x32xf32>
    %197 = vector.shape_cast %196 : vector<1x16x8x32xf32> to vector<16x8x32xf32>
    %198 = vector.shape_cast %197 : vector<16x8x32xf32> to vector<128x32xf32>
    %c24 = arith.constant 24 : index
    %c0_189 = arith.constant 0 : index
    %c0_190 = arith.constant 0 : index
    %199 = vector.load %arg4[%c24, %c0_189, %c0_190] : memref<27x32x4xf32, #tpu.memory_space<vmem>>, vector<1x32x4xf32>
    %200 = vector.shape_cast %199 : vector<1x32x4xf32> to vector<32x4xf32>
    %cst_191 = arith.constant dense<0.000000e+00> : vector<128x4xf32>
    %201 = tpu.matmul %198, %200, %cst_191 {dimension_numbers = #tpu.dot_dimension_numbers<[1], [0], [0], [1], [0, 0, 1, 1], [], []>} : vector<128x32xf32>, vector<32x4xf32>, vector<128x4xf32> -> vector<128x4xf32>
    %202 = arith.addf %195, %201 : vector<128x4xf32>
    %c0_192 = arith.constant 0 : index
    %c2_193 = arith.constant 2 : index
    %c1_194 = arith.constant 1 : index
    %c0_195 = arith.constant 0 : index
    %203 = vector.load %arg3[%c0_192, %c2_193, %c1_194, %c0_195] : memref<1x18x10x32xf32, #tpu.memory_space<vmem>>, vector<1x16x8x32xf32>
    %204 = vector.shape_cast %203 : vector<1x16x8x32xf32> to vector<16x8x32xf32>
    %205 = vector.shape_cast %204 : vector<16x8x32xf32> to vector<128x32xf32>
    %c25 = arith.constant 25 : index
    %c0_196 = arith.constant 0 : index
    %c0_197 = arith.constant 0 : index
    %206 = vector.load %arg4[%c25, %c0_196, %c0_197] : memref<27x32x4xf32, #tpu.memory_space<vmem>>, vector<1x32x4xf32>
    %207 = vector.shape_cast %206 : vector<1x32x4xf32> to vector<32x4xf32>
    %cst_198 = arith.constant dense<0.000000e+00> : vector<128x4xf32>
    %208 = tpu.matmul %205, %207, %cst_198 {dimension_numbers = #tpu.dot_dimension_numbers<[1], [0], [0], [1], [0, 0, 1, 1], [], []>} : vector<128x32xf32>, vector<32x4xf32>, vector<128x4xf32> -> vector<128x4xf32>
    %209 = arith.addf %202, %208 : vector<128x4xf32>
    %c0_199 = arith.constant 0 : index
    %c2_200 = arith.constant 2 : index
    %c2_201 = arith.constant 2 : index
    %c0_202 = arith.constant 0 : index
    %210 = vector.load %arg3[%c0_199, %c2_200, %c2_201, %c0_202] : memref<1x18x10x32xf32, #tpu.memory_space<vmem>>, vector<1x16x8x32xf32>
    %211 = vector.shape_cast %210 : vector<1x16x8x32xf32> to vector<16x8x32xf32>
    %212 = vector.shape_cast %211 : vector<16x8x32xf32> to vector<128x32xf32>
    %c26 = arith.constant 26 : index
    %c0_203 = arith.constant 0 : index
    %c0_204 = arith.constant 0 : index
    %213 = vector.load %arg4[%c26, %c0_203, %c0_204] : memref<27x32x4xf32, #tpu.memory_space<vmem>>, vector<1x32x4xf32>
    %214 = vector.shape_cast %213 : vector<1x32x4xf32> to vector<32x4xf32>
    %cst_205 = arith.constant dense<0.000000e+00> : vector<128x4xf32>
    %215 = tpu.matmul %212, %214, %cst_205 {dimension_numbers = #tpu.dot_dimension_numbers<[1], [0], [0], [1], [0, 0, 1, 1], [], []>} : vector<128x32xf32>, vector<32x4xf32>, vector<128x4xf32> -> vector<128x4xf32>
    %216 = arith.addf %209, %215 : vector<128x4xf32>
    %217 = vector.broadcast %17 : f32 to vector<128x4xf32>
    %218 = arith.mulf %217, %216 : vector<128x4xf32>
    %219 = arith.addf %152, %218 : vector<128x4xf32>
    %c0_206 = arith.constant 0 : index
    %c0_207 = arith.constant 0 : index
    %220 = vector.load %arg5[%c0_206, %c0_207] : memref<1x4xf32, #tpu.memory_space<vmem>>, vector<1x4xf32>
    %221 = vector.broadcast %220 : vector<1x4xf32> to vector<128x4xf32>
    %222 = arith.addf %219, %221 : vector<128x4xf32>
    %223 = math.tanh %222 : vector<128x4xf32>
    %224 = tpu.transpose %223, [1, 0] : vector<128x4xf32> -> vector<4x128xf32>
    %c0_208 = arith.constant 0 : index
    %c0_209 = arith.constant 0 : index
    %c0_210 = arith.constant 0 : index
    %225 = vector.load %arg6[%c0_208, %c0_209, %c0_210] : memref<1x4x128xf32, #tpu.memory_space<vmem>>, vector<1x4x128xf32>
    %226 = vector.shape_cast %225 : vector<1x4x128xf32> to vector<4x128xf32>
    %227 = vector.shape_cast %224 : vector<4x128xf32> to vector<1x4x128xf32>
    tpu.vector_store %arg6[%c0_208, %c0_209, %c0_210], %227 {strides = array<i32>} : memref<1x4x128xf32, #tpu.memory_space<vmem>>, vector<1x4x128xf32>,
    return
  }
  func.func @transform_0(%arg0: i32) -> (i32, i32, i32, i32) {
    %c1_i32 = arith.constant 1 : i32
    %0 = arith.subi %arg0, %c1_i32 : i32
    %c0_i32 = arith.constant 0 : i32
    %1 = arith.addi %0, %c0_i32 : i32
    %c0_i32_0 = arith.constant 0 : i32
    %2 = arith.maxsi %1, %c0_i32_0 : i32
    %c15_i32 = arith.constant 15 : i32
    %3 = arith.minsi %2, %c15_i32 : i32
    %c0_i32_1 = arith.constant 0 : i32
    %c0_i32_2 = arith.constant 0 : i32
    %c0_i32_3 = arith.constant 0 : i32
    %c0_i32_4 = arith.constant 0 : i32
    return %3, %c0_i32_1, %c0_i32_2, %c0_i32_3 : i32, i32, i32, i32
  }
  func.func @transform_1(%arg0: i32) -> (i32, i32, i32, i32) {
    %c1_i32 = arith.constant 1 : i32
    %0 = arith.subi %arg0, %c1_i32 : i32
    %c1_i32_0 = arith.constant 1 : i32
    %1 = arith.addi %0, %c1_i32_0 : i32
    %c0_i32 = arith.constant 0 : i32
    %2 = arith.maxsi %1, %c0_i32 : i32
    %c15_i32 = arith.constant 15 : i32
    %3 = arith.minsi %2, %c15_i32 : i32
    %c0_i32_1 = arith.constant 0 : i32
    %c0_i32_2 = arith.constant 0 : i32
    %c0_i32_3 = arith.constant 0 : i32
    %c0_i32_4 = arith.constant 0 : i32
    return %3, %c0_i32_1, %c0_i32_2, %c0_i32_3 : i32, i32, i32, i32
  }
  func.func @transform_2(%arg0: i32) -> (i32, i32, i32, i32) {
    %c1_i32 = arith.constant 1 : i32
    %0 = arith.subi %arg0, %c1_i32 : i32
    %c2_i32 = arith.constant 2 : i32
    %1 = arith.addi %0, %c2_i32 : i32
    %c0_i32 = arith.constant 0 : i32
    %2 = arith.maxsi %1, %c0_i32 : i32
    %c15_i32 = arith.constant 15 : i32
    %3 = arith.minsi %2, %c15_i32 : i32
    %c0_i32_0 = arith.constant 0 : i32
    %c0_i32_1 = arith.constant 0 : i32
    %c0_i32_2 = arith.constant 0 : i32
    %c0_i32_3 = arith.constant 0 : i32
    return %3, %c0_i32_0, %c0_i32_1, %c0_i32_2 : i32, i32, i32, i32
  }
  func.func @transform_3(%arg0: i32) -> (i32, i32, i32) {
    %c0_i32 = arith.constant 0 : i32
    %c0_i32_0 = arith.constant 0 : i32
    %c0_i32_1 = arith.constant 0 : i32
    %c0_i32_2 = arith.constant 0 : i32
    return %c0_i32, %c0_i32_0, %c0_i32_1 : i32, i32, i32
  }
  func.func @transform_4(%arg0: i32) -> (i32, i32) {
    %c0_i32 = arith.constant 0 : i32
    %c0_i32_0 = arith.constant 0 : i32
    %c0_i32_1 = arith.constant 0 : i32
    return %c0_i32, %c0_i32_0 : i32, i32
  }
  func.func @transform_5(%arg0: i32) -> (i32, i32, i32) {
    %c0_i32 = arith.constant 0 : i32
    %c0_i32_0 = arith.constant 0 : i32
    %c0_i32_1 = arith.constant 0 : i32
    return %arg0, %c0_i32, %c0_i32_0 : i32, i32, i32
  }
}

</mosaic_0001>

<bundles_post_ra>
// kernel: _lambda_.3
= control target key start
LH: loop header
LB: loop body
LE: loop exit
PB: predicated region body
PF: predicated region fallthrough
CT: control target
= control target key end

     0   :  { %s9145_s18 = smov 0   ;;  %s11592_s0 = inlined_call_operand.vmem [shape: f32[16,18,10,32], index: 0, kind: input, shape index: {}, may-alias: {0,1,2}]   ;;  %s11593_s1 = inlined_call_operand.vmem [shape: f32[16,18,10,32], index: 1, kind: input, shape index: {}, may-alias: {0,1,2}]   ;;  %s11594_s2 = inlined_call_operand.vmem [shape: f32[16,18,10,32], index: 2, kind: input, shape index: {}, may-alias: {0,1,2}]   ;;  %s11595_s3 = inlined_call_operand.vmem [shape: f32[27,32,4], index: 3, kind: input, shape index: {}]   ;;  %s11596_s4 = inlined_call_operand.vmem [shape: f32[1,4], index: 4, kind: input, shape index: {}]   ;;  %s11597_s5 = inlined_call_operand.vmem [shape: f32[16,4,128], index: 5, kind: output, shape index: {}]  }
   0x1 LB: > { %s9151_s19 = sadd.s32 4294967295, %s9113_s18   ;;  %p6782_p0 = scmp.ge.s32.totalorder %s9113_s18, 1  ;;  %s9113_s18 = sphi %s9145_s18, %s15_s18  }
   0x2   : > { %p263_p1 = scmp.lt.s32.totalorder %s9113_s18, 17 }
   0x4   : > { %p264_p2 = pnand %p6782_p0, %p263_p1 }
   0x6   : > { %267 = sbr.rel (%p264_p2) target bundleno = 772 (0x304), region = 40 }
   0xb   : > { %v6810_v0 = vld [vmem:[%s11595_s3 + $0x38] sm:$0xff]  ;;  %v6809_v1 = vld [vmem:[%s11595_s3 + $0x30] sm:$0xff]  ;;  %s9162_s24 = sadd.s32 4294967295, %s9151_s19  ;;  %v6808_v2 = vld [vmem:[%s11595_s3 + $0x28] sm:$0xff]  ;;  %vm419_vm0 = vcmask 261120   ;;  %p329_p6 = scmp.gt.s32.totalorder %s9151_s19, 0 }
   0xc   : > { %9056 = vmatprep.subr.mxu1 %v6810_v0  ;;  %8192 = vmatprep.subr.mxu0 %v6810_v0  ;;  %p315_p3 = scmp.gt.s32.totalorder %s9162_s24, 0  ;;  %p6784_p4 = scmp.lt.s32.totalorder %s9162_s24, 15  ;;  %v6807_v3 = vld [vmem:[%s11595_s3 + $0x20] sm:$0xff]  ;;  %v397_v4 = vld [vmem:[%s11595_s3 + $0x18] sm:$0xff]  ;;  %v396_v12 = vld [vmem:[%s11595_s3 + $0x10] sm:$0xff] }
   0xd   : > { %9060 = vmatpush3.msra.mxu1 %v6810_v0  ;;  %8193 = vmatpush3.msra.mxu0 %v6810_v0  ;;  %v6846_v5 = vld [vmem:[%s11595_s3 + $0x58] sm:$0xff]  ;;  %v6845_v13 = vld [vmem:[%s11595_s3 + $0x50] sm:$0xff]  ;;  %v395_v18 = vld [vmem:[%s11595_s3 + $0x8] sm:$0xff]  ;;  %s330_s20 = scalar_select %p329_p6, %s9151_s19, 0 }
   0xe   : > { %9057 = vmatprep.subr.mxu1 %v6809_v1  ;;  %8194 = vmatprep.subr.mxu0 %v6809_v1  ;;  %s316_s27 = scalar_select %p315_p3, %s9162_s24, 0  ;;  %v6844_v19 = vld [vmem:[%s11595_s3 + $0x48] sm:$0xff]  ;;  %v394_v24 = vld [vmem:[%s11595_s3] sm:$0xff]  ;;  %v6882_v30 = vld [vmem:[%s11595_s3 + $0x78] sm:$0xff] }
   0xf   : > { %9061 = vmatpush3.msra.mxu1 %v6809_v1  ;;  %8195 = vmatpush3.msra.mxu0 %v6809_v1  ;;  %v6843_v25 = vld [vmem:[%s11595_s3 + $0x40] sm:$0xff]  ;;  %v6918_v31 = vld [vmem:[%s11595_s3 + $0x98] sm:$0xff]  ;;  %v6881_v36 = vld [vmem:[%s11595_s3 + $0x70] sm:$0xff]  ;;  %p6790_p7 = scmp.lt.s32.totalorder %s9151_s19, 15  ;;  %s10207_s21 = sadd.s32 1, %s9151_s19 }
  0x10   : > { %9058 = vmatprep.subr.mxu1 %v6808_v2  ;;  %8196 = vmatprep.subr.mxu0 %v6808_v2  ;;  %s11682_s27 = smov (!%p6784_p4, %s316_s27), 15  ;;  %v6917_v37 = vld [vmem:[%s11595_s3 + $0x90] sm:$0xff]  ;;  %v6880_v42 = vld [vmem:[%s11595_s3 + $0x68] sm:$0xff]  ;;  %v6879_v48 = vld [vmem:[%s11595_s3 + $0x60] sm:$0xff]  ;;  %p343_p9 = scmp.gt.s32.totalorder %s10207_s21, 0 }
  0x11   : > { %9062 = vmatpush3.msra.mxu1 %v6808_v2  ;;  %8197 = vmatpush3.msra.mxu0 %v6808_v2  ;;  %p319_p5 = scmp.lt.s32.totalorder %s11682_s27, 15  ;;  %v6916_v43 = vld [vmem:[%s11595_s3 + $0x88] sm:$0xff]  ;;  %v6915_v49 = vld [vmem:[%s11595_s3 + $0x80] sm:$0xff]  ;;  %v6954_v54 = vld [vmem:[%s11595_s3 + $0xb8] sm:$0xff]  ;;  %s11686_s20 = smov (!%p6790_p7, %s330_s20), 15 }
  0x12   : > { %9059 = vmatprep.subr.mxu1 %v6807_v3  ;;  %8198 = vmatprep.subr.mxu0 %v6807_v3  ;;  %v6990_v55 = vld [vmem:[%s11595_s3 + $0xd8] sm:$0xff]  ;;  %p333_p8 = scmp.lt.s32.totalorder %s11686_s20, 15  ;;  %p6796_p10 = scmp.lt.s32.totalorder %s10207_s21, 15 }
  0x13   : > { %9063 = vmatpush3.msra.mxu1 %v6807_v3  ;;  %8199 = vmatpush3.msra.mxu0 %v6807_v3  ;;  %s11684_s27 = smov (!%p319_p5, %s11682_s27), 15  ;;  %p362_p12 = scmp.ge.s32.totalorder %s9162_s24, 0 }
  0x14   : > { %8224 = vmatprep.subr.mxu1 %v397_v4  ;;  %8256 = vmatprep.subr.mxu0 %v6846_v5  ;;  %s9064_s9 = smul.u32 288, %s11684_s27  ;;  %s11688_s20 = smov (!%p333_p8, %s11686_s20), 15 }
  0x15   : > { %s344_s27 = scalar_select %p343_p9, %s10207_s21, 0 }
  0x16   : > { %s9182_s12 = scalar_lea.vmem %s11592_s0, %s9064_s9  ;;  %s9065_s9 = smul.u32 288, %s11688_s20 }
  0x17   : > { %v398_v6 = vld [vmem:[%s9182_s12 + $0x1] sm:$0xff]  ;;  %v9189_v8 = vld [vmem:[%s9182_s12 + $0x11] sm:$0xff]  ;;  %s11690_s27 = smov (!%p6796_p10, %s344_s27), 15  ;;  %p363_p13 = scmp.lt.s32.totalorder %s9162_s24, 16 }
  0x18   : > { %v9186_v7 = vld [vmem:[%s9182_s12 + $0x81] sm:$0xff]  ;;  %8200 = vmatprep.mubr.msk.f32.mxu0 %vm419_vm0, %v398_v6  ;;  %v9195_v9 = vld [vmem:[%s9182_s12 + $0x91] sm:$0xff]  ;;  %s9728_s13 = scalar_lea.vmem %s11593_s1, %s9065_s9  ;;  %p347_p11 = scmp.lt.s32.totalorder %s11690_s27, 15 }
  0x19   : > { %8212 = vmatprep.mubr.msk.f32.mxu1 %vm419_vm0, %v9186_v7  ;;  %v9198_v10 = vld [vmem:[%s9182_s12 + $0x21] sm:$0xff]  ;;  %8201 = vmatmul.mubr.msk.f32.vlgmr.msra.gmra.mxu0 %vm419_vm0, %v9189_v8  ;;  %v9214_v14 = vld [vmem:[%s9182_s12 + $0x31] sm:$0xff]  ;;  %p367_p0 = scmp.ge.s32.totalorder %s9151_s19, 0  ;;  %p368_p1 = scmp.lt.s32.totalorder %s9151_s19, 16 }
  0x1a   : > { %v9201_v11 = vld [vmem:[%s9182_s12 + $0xa1] sm:$0xff]  ;;  %8213 = vmatmul.mubr.msk.f32.vlgmr.msra.gmra.mxu1 %vm419_vm0, %v9195_v9  ;;  %8257 = vmatpush3.msra.mxu0 %v6846_v5  ;;  %v9217_v15 = vld [vmem:[%s9182_s12 + $0xb1] sm:$0xff]  ;;  %s11692_s27 = smov (!%p347_p11, %s11690_s27), 15  ;;  %p11217_p2 = pnand %p363_p13, %p362_p12 }
  0x1b   : > { %8225 = vmatpush3.msra.mxu1 %v397_v4  ;;  %8203 = vmatprep.mubr.msk.f32.mxu0 %vm419_vm0, %v9198_v10  ;;  %v9224_v16 = vld [vmem:[%s9182_s12 + $0x41] sm:$0xff]  ;;  %v9240_v20 = vld [vmem:[%s9182_s12 + $0x51] sm:$0xff]  ;;  %s9066_s16 = smul.u32 288, %s11692_s27  ;;  %p11224_p3 = pnand %p368_p1, %p367_p0 }
  0x1c   : > { %8215 = vmatprep.mubr.msk.f32.mxu1 %vm419_vm0, %v9201_v11  ;;  %8226 = vmatprep.subr.mxu1 %v396_v12  ;;  %v9227_v17 = vld [vmem:[%s9182_s12 + $0xc1] sm:$0xff]  ;;  %v9243_v21 = vld [vmem:[%s9182_s12 + $0xd1] sm:$0xff]  ;;  %s6804_s23 = scalar_select %p11217_p2, 0.0, 1.0 }
  0x1d   : > { %8258 = vmatprep.subr.mxu0 %v6845_v13  ;;  %8204 = vmatmul.mubr.msk.f32.gmra.mxu0 %vm419_vm0, %v9214_v14  ;;  %v9250_v22 = vld [vmem:[%s9182_s12 + $0x61] sm:$0xff]  ;;  %v9266_v26 = vld [vmem:[%s9182_s12 + $0x71] sm:$0xff]  ;;  %s10358_s22 = scalar_lea.vmem %s11594_s2, %s9066_s16  ;;  %p373_p4 = scmp.ge.s32.totalorder %s10207_s21, 0 }
  0x1e   : > { %8216 = vmatmul.mubr.msk.f32.gmra.mxu1 %vm419_vm0, %v9217_v15  ;;  %8259 = vmatpush3.msra.mxu0 %v6845_v13  ;;  %v9253_v23 = vld [vmem:[%s9182_s12 + $0xe1] sm:$0xff]  ;;  %v9269_v27 = vld [vmem:[%s9182_s12 + $0xf1] sm:$0xff]  ;;  %s6805_s25 = scalar_select %p11224_p3, 0.0, 1.0 }
  0x1f   : > { %8227 = vmatpush3.msra.mxu1 %v396_v12  ;;  %8206 = vmatprep.mubr.msk.f32.mxu0 %vm419_vm0, %v9224_v16  ;;  %v378_v28 = vld [vmem:[%s9182_s12] sm:$0xff]  ;;  %v9288_v32 = vld [vmem:[%s9182_s12 + $0x10] sm:$0xff]  ;;  %v6988_v13 = vld [vmem:[%s11595_s3 + $0xc8] sm:$0xff]  ;;  %p374_p5 = scmp.lt.s32.totalorder %s10207_s21, 16  ;;  %s11694_s19 = smov (!%p6790_p7, %s9151_s19), 15 }
  0x20   : > { %8218 = vmatprep.mubr.msk.f32.mxu1 %vm419_vm0, %v9227_v17  ;;  %8228 = vmatprep.subr.mxu1 %v395_v18  ;;  %v806_v29 = vld [vmem:[%s9182_s12 + $0x2] sm:$0xff]  ;;  %v9291_v33 = vld [vmem:[%s9182_s12 + $0x12] sm:$0xff]  ;;  %s6802_s29 = sshll.u32 %s11694_s19, 2 }
  0x21   : > { %8260 = vmatprep.subr.mxu0 %v6844_v19  ;;  %8207 = vmatmul.mubr.msk.f32.gmra.mxu0 %vm419_vm0, %v9240_v20  ;;  %v9296_v34 = vld [vmem:[%s9182_s12 + $0x20] sm:$0xff]  ;;  %v9312_v38 = vld [vmem:[%s9182_s12 + $0x30] sm:$0xff]  ;;  %p11473_p6 = pnand %p374_p5, %p373_p4  ;;  %s360_s7 = scalar_lea.vmem %s11597_s5, %s6802_s29 }
  0x22   : > { %8219 = vmatmul.mubr.msk.f32.gmra.mxu1 %vm419_vm0, %v9243_v21  ;;  %8261 = vmatpush3.msra.mxu0 %v6844_v19  ;;  %v9299_v35 = vld [vmem:[%s9182_s12 + $0x22] sm:$0xff]  ;;  %v9315_v39 = vld [vmem:[%s9182_s12 + $0x32] sm:$0xff] }
  0x23   : > { %8229 = vmatpush3.msra.mxu1 %v395_v18  ;;  %8209 = vmatprep.mubr.msk.f32.mxu0 %vm419_vm0, %v9250_v22  ;;  %v9322_v40 = vld [vmem:[%s9182_s12 + $0x40] sm:$0xff]  ;;  %v9342_v44 = vld [vmem:[%s9182_s12 + $0x50] sm:$0xff]  ;;  %s6806_s21 = scalar_select %p11473_p6, 0.0, 1.0 }
  0x24   : > { %8221 = vmatprep.mubr.msk.f32.mxu1 %vm419_vm0, %v9253_v23  ;;  %8230 = vmatprep.subr.mxu1 %v394_v24  ;;  %v9325_v41 = vld [vmem:[%s9182_s12 + $0x42] sm:$0xff]  ;;  %v9345_v45 = vld [vmem:[%s9182_s12 + $0x52] sm:$0xff] }
  0x25   : > { %8262 = vmatprep.subr.mxu0 %v6843_v25  ;;  %8210 = vmatmul.mubr.msk.f32.gmra.mxu0 %vm419_vm0, %v9266_v26  ;;  %v9348_v46 = vld [vmem:[%s9182_s12 + $0x60] sm:$0xff]  ;;  %v9368_v50 = vld [vmem:[%s9182_s12 + $0x70] sm:$0xff] }
  0x26   : > { %8222 = vmatmul.mubr.msk.f32.gmra.mxu1 %vm419_vm0, %v9269_v27  ;;  %8263 = vmatpush3.msra.mxu0 %v6843_v25  ;;  %v9351_v47 = vld [vmem:[%s9182_s12 + $0x62] sm:$0xff]  ;;  %v9371_v51 = vld [vmem:[%s9182_s12 + $0x72] sm:$0xff] }
  0x27   : > { %8231 = vmatpush3.msra.mxu1 %v394_v24  ;;  %8232 = vmatprep.mubr.msk.f32.mxu1 %vm419_vm0, %v378_v28  ;;  %v9374_v52 = vld [vmem:[%s9182_s12 + $0x80] sm:$0xff]  ;;  %v9394_v56 = vld [vmem:[%s9182_s12 + $0x90] sm:$0xff]  ;;  %v7026_v24 = vld [vmem:[%s11595_s3 + $0xf8] sm:$0xff] }
  0x28   : > { %8264 = vmatprep.mubr.msk.f32.mxu0 %vm419_vm0, %v806_v29  ;;  %8288 = vmatprep.subr.mxu1 %v6882_v30  ;;  %v9377_v53 = vld [vmem:[%s9182_s12 + $0x82] sm:$0xff]  ;;  %v9397_v57 = vld [vmem:[%s9182_s12 + $0x92] sm:$0xff] }
  0x29   : > { %8320 = vmatprep.subr.mxu0 %v6918_v31  ;;  %8265 = vmatmul.mubr.msk.f32.vlgmr.msra.gmra.mxu0 %vm419_vm0, %v9291_v33  ;;  %v9400_v58 = vld [vmem:[%s9182_s12 + $0xa0] sm:$0xff]  ;;  %v9414_v60 = vld [vmem:[%s9182_s12 + $0xb0] sm:$0xff]  ;;  %v7062_v25 = vld [vmem:[%s11595_s3 + $0x118] sm:$0xff] }
  0x2a   : > { %8233 = vmatmul.mubr.msk.f32.vlgmr.msra.gmra.mxu1 %vm419_vm0, %v9288_v32  ;;  %8321 = vmatpush3.msra.mxu0 %v6918_v31  ;;  %v9403_v59 = vld [vmem:[%s9182_s12 + $0xa2] sm:$0xff]  ;;  %v9417_v61 = vld [vmem:[%s9182_s12 + $0xb2] sm:$0xff] }
  0x2b   : > { %8289 = vmatpush3.msra.mxu1 %v6882_v30  ;;  %8235 = vmatprep.mubr.msk.f32.mxu1 %vm419_vm0, %v9296_v34  ;;  %v9420_v62 = vld [vmem:[%s9182_s12 + $0xc0] sm:$0xff]  ;;  %v9434_v0 = vld [vmem:[%s9182_s12 + $0xd0] sm:$0xff] }
  0x2c   : > { %8267 = vmatprep.mubr.msk.f32.mxu0 %vm419_vm0, %v9299_v35  ;;  %8290 = vmatprep.subr.mxu1 %v6881_v36  ;;  %v9423_v63 = vld [vmem:[%s9182_s12 + $0xc2] sm:$0xff]  ;;  %v9437_v1 = vld [vmem:[%s9182_s12 + $0xd2] sm:$0xff] }
  0x2d   : > { %8322 = vmatprep.subr.mxu0 %v6917_v37  ;;  %8268 = vmatmul.mubr.msk.f32.gmra.mxu0 %vm419_vm0, %v9315_v39  ;;  %v9440_v2 = vld [vmem:[%s9182_s12 + $0xe0] sm:$0xff]  ;;  %v9454_v4 = vld [vmem:[%s9182_s12 + $0xf0] sm:$0xff] }
  0x2e   : > { %8236 = vmatmul.mubr.msk.f32.gmra.mxu1 %vm419_vm0, %v9312_v38  ;;  %8270 = vmatprep.mubr.msk.f32.mxu0 %vm419_vm0, %v9325_v41  ;;  %v9443_v3 = vld [vmem:[%s9182_s12 + $0xe2] sm:$0xff]  ;;  %v9457_v5 = vld [vmem:[%s9182_s12 + $0xf2] sm:$0xff] }
  0x2f   : > { %8238 = vmatprep.mubr.msk.f32.mxu1 %vm419_vm0, %v9322_v40  ;;  %8291 = vmatpush3.msra.mxu1 %v6881_v36  ;;  %v6953_v6 = vld [vmem:[%s11595_s3 + $0xb0] sm:$0xff]  ;;  %v6951_v18 = vld [vmem:[%s11595_s3 + $0xa0] sm:$0xff] }
  0x30   : > { %8323 = vmatpush3.msra.mxu0 %v6917_v37  ;;  %8292 = vmatprep.subr.mxu1 %v6880_v42  ;;  %v6989_v12 = vld [vmem:[%s11595_s3 + $0xd0] sm:$0xff]  ;;  %v6987_v19 = vld [vmem:[%s11595_s3 + $0xc0] sm:$0xff]  ;;  %v7086_v37 = vld [vmem:[%s11595_s3 + $0x158] sm:$0xff] }
  0x31   : > { %8324 = vmatprep.subr.mxu0 %v6916_v43  ;;  %8271 = vmatmul.mubr.msk.f32.gmra.mxu0 %vm419_vm0, %v9345_v45  ;;  %v6878_v28 = vld [vmem:[%s9182_s12 + $0x100] sm:$0xff]  ;;  %v7025_v30 = vld [vmem:[%s11595_s3 + $0xf0] sm:$0xff] }
  0x32   : > { %8239 = vmatmul.mubr.msk.f32.gmra.mxu1 %vm419_vm0, %v9342_v44  ;;  %8273 = vmatprep.mubr.msk.f32.mxu0 %vm419_vm0, %v9351_v47  ;;  %v9549_v29 = vld [vmem:[%s9182_s12 + $0x101] sm:$0xff]  ;;  %v7061_v31 = vld [vmem:[%s11595_s3 + $0x110] sm:$0xff] }
  0x33   : > { %8241 = vmatprep.mubr.msk.f32.mxu1 %vm419_vm0, %v9348_v46  ;;  %8293 = vmatpush3.msra.mxu1 %v6880_v42  ;;  %v7059_v36 = vld [vmem:[%s11595_s3 + $0x100] sm:$0xff]  ;;  %v6986_v42 = vld [vmem:[%s9182_s12 + $0x110] sm:$0xff] }
  0x34   : > { %8325 = vmatpush3.msra.mxu0 %v6916_v43  ;;  %8294 = vmatprep.subr.mxu1 %v6879_v48  ;;  %v7085_v43 = vld [vmem:[%s11595_s3 + $0x150] sm:$0xff] }
  0x35   : > { %8326 = vmatprep.subr.mxu0 %v6915_v49  ;;  %8274 = vmatmul.mubr.msk.f32.gmra.mxu0 %vm419_vm0, %v9371_v51 }
  0x36   : > { %8242 = vmatmul.mubr.msk.f32.gmra.mxu1 %vm419_vm0, %v9368_v50  ;;  %8276 = vmatprep.mubr.msk.f32.mxu0 %vm419_vm0, %v9377_v53 }
  0x37   : > { %8244 = vmatprep.mubr.msk.f32.mxu1 %vm419_vm0, %v9374_v52  ;;  %8295 = vmatpush3.msra.mxu1 %v6879_v48  ;;  %v7120_v48 = vld [vmem:[%s11595_s3 + $0x168] sm:$0xff] }
  0x38   : > { %8327 = vmatpush3.msra.mxu0 %v6915_v49  ;;  %8352 = vmatprep.subr.mxu1 %v6954_v54  ;;  %v7156_v49 = vld [vmem:[%s11595_s3 + $0x188] sm:$0xff] }
  0x39   : > { %8384 = vmatprep.subr.mxu0 %v6990_v55  ;;  %8277 = vmatmul.mubr.msk.f32.gmra.mxu0 %vm419_vm0, %v9397_v57 }
  0x3a   : > { %8245 = vmatmul.mubr.msk.f32.gmra.mxu1 %vm419_vm0, %v9394_v56  ;;  %8279 = vmatprep.mubr.msk.f32.mxu0 %vm419_vm0, %v9403_v59 }
  0x3b   : > { %8247 = vmatprep.mubr.msk.f32.mxu1 %vm419_vm0, %v9400_v58 }
  0x3d   : > { %8280 = vmatmul.mubr.msk.f32.gmra.mxu0 %vm419_vm0, %v9417_v61 }
  0x3e   : > { %8248 = vmatmul.mubr.msk.f32.gmra.mxu1 %vm419_vm0, %v9414_v60  ;;  %8282 = vmatprep.mubr.msk.f32.mxu0 %vm419_vm0, %v9423_v63 }
  0x3f   : > { %8250 = vmatprep.mubr.msk.f32.mxu1 %vm419_vm0, %v9420_v62 }
  0x41   : > { %8283 = vmatmul.mubr.msk.f32.gmra.mxu0 %vm419_vm0, %v9437_v1 }
  0x42   : > { %8251 = vmatmul.mubr.msk.f32.gmra.mxu1 %vm419_vm0, %v9434_v0  ;;  %8285 = vmatprep.mubr.msk.f32.mxu0 %vm419_vm0, %v9443_v3 }
  0x43   : > { %8253 = vmatprep.mubr.msk.f32.mxu1 %vm419_vm0, %v9440_v2 }
  0x45   : > { %8286 = vmatmul.mubr.msk.f32.gmra.mxu0 %vm419_vm0, %v9457_v5 }
  0x46   : > { %8254 = vmatmul.mubr.msk.f32.gmra.mxu1 %vm419_vm0, %v9454_v4  ;;  %8328 = vmatprep.mubr.msk.f32.mxu0 %vm419_vm0, %v9189_v8  ;;  %v6952_v8 = vld [vmem:[%s11595_s3 + $0xa8] sm:$0xff] }
  0x47   : > { %8296 = vmatprep.mubr.msk.f32.mxu1 %vm419_vm0, %v9288_v32  ;;  %v7024_v32 = vld [vmem:[%s11595_s3 + $0xe8] sm:$0xff] }
  0x49   : > { %8329 = vmatmul.mubr.msk.f32.vlgmr.msra.gmra.mxu0 %vm419_vm0, %v9198_v10 }
  0x4a   : > { %8297 = vmatmul.mubr.msk.f32.vlgmr.msra.gmra.mxu1 %vm419_vm0, %v9296_v34  ;;  %8385 = vmatpush3.msra.mxu0 %v6990_v55  ;;  %v7155_v55 = vld [vmem:[%s11595_s3 + $0x180] sm:$0xff] }
  0x4b   : > { %8353 = vmatpush3.msra.mxu1 %v6954_v54  ;;  %8299 = vmatprep.mubr.msk.f32.mxu1 %vm419_vm0, %v9312_v38  ;;  %v7119_v54 = vld [vmem:[%s11595_s3 + $0x160] sm:$0xff] }
  0x4c   : > { %8331 = vmatprep.mubr.msk.f32.mxu0 %vm419_vm0, %v9214_v14  ;;  %8354 = vmatprep.subr.mxu1 %v6953_v6 }
  0x4d   : > { %8386 = vmatprep.subr.mxu0 %v6989_v12  ;;  %8332 = vmatmul.mubr.msk.f32.gmra.mxu0 %vm419_vm0, %v9224_v16 }
  0x4e   : > { %8300 = vmatmul.mubr.msk.f32.gmra.mxu1 %vm419_vm0, %v9322_v40  ;;  %8334 = vmatprep.mubr.msk.f32.mxu0 %vm419_vm0, %v9240_v20 }
  0x4f   : > { %8302 = vmatprep.mubr.msk.f32.mxu1 %vm419_vm0, %v9342_v44  ;;  %8355 = vmatpush3.msra.mxu1 %v6953_v6  ;;  %v9891_v6 = vld [vmem:[%s9728_s13 + $0xd1] sm:$0xff] }
  0x50   : > { %8387 = vmatpush3.msra.mxu0 %v6989_v12  ;;  %8356 = vmatprep.subr.mxu1 %v6952_v8  ;;  %v9894_v12 = vld [vmem:[%s9728_s13 + $0xd0] sm:$0xff] }
  0x51   : > { %8388 = vmatprep.subr.mxu0 %v6988_v13  ;;  %8335 = vmatmul.mubr.msk.f32.gmra.mxu0 %vm419_vm0, %v9250_v22  ;;  %11611 = vst [vmem:[#allocation5_spill] sm:$0xff] %v9894_v12 }
  0x52   : > { %8303 = vmatmul.mubr.msk.f32.gmra.mxu1 %vm419_vm0, %v9348_v46  ;;  %8337 = vmatprep.mubr.msk.f32.mxu0 %vm419_vm0, %v9266_v26 }
  0x53   : > { %8305 = vmatprep.mubr.msk.f32.mxu1 %vm419_vm0, %v9368_v50  ;;  %8357 = vmatpush3.msra.mxu1 %v6952_v8  ;;  %v9897_v8 = vld [vmem:[%s9728_s13 + $0xe1] sm:$0xff] }
  0x54   : > { %8389 = vmatpush3.msra.mxu0 %v6988_v13  ;;  %8358 = vmatprep.subr.mxu1 %v6951_v18  ;;  %v9900_v13 = vld [vmem:[%s9728_s13 + $0xe0] sm:$0xff] }
  0x55   : > { %8390 = vmatprep.subr.mxu0 %v6987_v19  ;;  %8338 = vmatmul.mubr.msk.f32.gmra.mxu0 %vm419_vm0, %v9186_v7  ;;  %11612 = vst [vmem:[#allocation6_spill] sm:$0xff] %v9900_v13 }
  0x56   : > { %8306 = vmatmul.mubr.msk.f32.gmra.mxu1 %vm419_vm0, %v9374_v52  ;;  %8340 = vmatprep.mubr.msk.f32.mxu0 %vm419_vm0, %v9195_v9 }
  0x57   : > { %8308 = vmatprep.mubr.msk.f32.mxu1 %vm419_vm0, %v9394_v56  ;;  %8359 = vmatpush3.msra.mxu1 %v6951_v18  ;;  %v9911_v18 = vld [vmem:[%s9728_s13 + $0xf1] sm:$0xff] }
  0x58   : > { %8391 = vmatpush3.msra.mxu0 %v6987_v19  ;;  %8416 = vmatprep.subr.mxu1 %v7026_v24  ;;  %v9914_v19 = vld [vmem:[%s9728_s13 + $0xf0] sm:$0xff] }
  0x59   : > { %8448 = vmatprep.subr.mxu0 %v7062_v25  ;;  %8341 = vmatmul.mubr.msk.f32.gmra.mxu0 %vm419_vm0, %v9201_v11  ;;  %11613 = vst [vmem:[#allocation7_spill] sm:$0xff] %v9914_v19 }
  0x5a   : > { %8309 = vmatmul.mubr.msk.f32.gmra.mxu1 %vm419_vm0, %v9400_v58  ;;  %8343 = vmatprep.mubr.msk.f32.mxu0 %vm419_vm0, %v9217_v15 }
  0x5b   : > { %8311 = vmatprep.mubr.msk.f32.mxu1 %vm419_vm0, %v9414_v60 }
  0x5d   : > { %8344 = vmatmul.mubr.msk.f32.gmra.mxu0 %vm419_vm0, %v9227_v17 }
  0x5e   : > { %8312 = vmatmul.mubr.msk.f32.gmra.mxu1 %vm419_vm0, %v9420_v62  ;;  %8346 = vmatprep.mubr.msk.f32.mxu0 %vm419_vm0, %v9243_v21 }
  0x5f   : > { %8314 = vmatprep.mubr.msk.f32.mxu1 %vm419_vm0, %v9434_v0 }
  0x61   : > { %8347 = vmatmul.mubr.msk.f32.gmra.mxu0 %vm419_vm0, %v9253_v23 }
  0x62   : > { %8315 = vmatmul.mubr.msk.f32.gmra.mxu1 %vm419_vm0, %v9440_v2  ;;  %8349 = vmatprep.mubr.msk.f32.mxu0 %vm419_vm0, %v9269_v27 }
  0x63   : > { %8317 = vmatprep.mubr.msk.f32.mxu1 %vm419_vm0, %v9454_v4 }
  0x65   : > { %8350 = vmatmul.mubr.msk.f32.gmra.mxu0 %vm419_vm0, %v9549_v29 }
  0x66   : > { %8318 = vmatmul.mubr.msk.f32.gmra.mxu1 %vm419_vm0, %v6878_v28  ;;  %8392 = vmatprep.mubr.msk.f32.mxu0 %vm419_vm0, %v9296_v34  ;;  %v7023_v34 = vld [vmem:[%s11595_s3 + $0xe0] sm:$0xff] }
  0x67   : > { %8360 = vmatprep.mubr.msk.f32.mxu1 %vm419_vm0, %v9291_v33  ;;  %v7060_v33 = vld [vmem:[%s11595_s3 + $0x108] sm:$0xff] }
  0x69   : > { %8393 = vmatmul.mubr.msk.f32.vlgmr.msra.gmra.mxu0 %vm419_vm0, %v9312_v38  ;;  %v7082_v38 = vld [vmem:[%s11595_s3 + $0x138] sm:$0xff] }
  0x6a   : > { %8361 = vmatmul.mubr.msk.f32.vlgmr.msra.gmra.mxu1 %vm419_vm0, %v9299_v35  ;;  %8449 = vmatpush3.msra.mxu0 %v7062_v25  ;;  %v9925_v25 = vld [vmem:[%s9728_s13 + $0x12] sm:$0xff] }
  0x6b   : > { %8417 = vmatpush3.msra.mxu1 %v7026_v24  ;;  %8363 = vmatprep.mubr.msk.f32.mxu1 %vm419_vm0, %v9315_v39  ;;  %v2879_v24 = vld [vmem:[%s9728_s13 + $0x2] sm:$0xff] }
  0x6c   : > { %8395 = vmatprep.mubr.msk.f32.mxu0 %vm419_vm0, %v9322_v40  ;;  %8418 = vmatprep.subr.mxu1 %v7025_v30  ;;  %v9638_v40 = vld [vmem:[%s9182_s12 + $0x102] sm:$0xff] }
  0x6d   : > { %8450 = vmatprep.subr.mxu0 %v7061_v31  ;;  %8396 = vmatmul.mubr.msk.f32.gmra.mxu0 %vm419_vm0, %v9342_v44  ;;  %v7081_v44 = vld [vmem:[%s11595_s3 + $0x130] sm:$0xff] }
  0x6e   : > { %8364 = vmatmul.mubr.msk.f32.gmra.mxu1 %vm419_vm0, %v9325_v41  ;;  %8398 = vmatprep.mubr.msk.f32.mxu0 %vm419_vm0, %v9348_v46  ;;  %v9779_v46 = vld [vmem:[%s9728_s13 + $0x41] sm:$0xff] }
  0x6f   : > { %8366 = vmatprep.mubr.msk.f32.mxu1 %vm419_vm0, %v9345_v45  ;;  %8419 = vmatpush3.msra.mxu1 %v7025_v30  ;;  %v7229_v30 = vld [vmem:[%s11595_s3 + $0x1d0] sm:$0xff] }
  0x70   : > { %8451 = vmatpush3.msra.mxu0 %v7061_v31  ;;  %8420 = vmatprep.subr.mxu1 %v7024_v32  ;;  %v9941_v31 = vld [vmem:[%s9728_s13 + $0x32] sm:$0xff] }
  0x71   : > { %8452 = vmatprep.subr.mxu0 %v7060_v33  ;;  %8399 = vmatmul.mubr.msk.f32.gmra.mxu0 %vm419_vm0, %v9368_v50  ;;  %v9799_v50 = vld [vmem:[%s9728_s13 + $0x51] sm:$0xff]  ;;  %11615 = vst [vmem:[#allocation9_spill] sm:$0xff] %v9941_v31 }
  0x72   : > { %8367 = vmatmul.mubr.msk.f32.gmra.mxu1 %vm419_vm0, %v9351_v47  ;;  %8401 = vmatprep.mubr.msk.f32.mxu0 %vm419_vm0, %v9374_v52  ;;  %v9805_v52 = vld [vmem:[%s9728_s13 + $0x61] sm:$0xff] }
  0x73   : > { %8369 = vmatprep.mubr.msk.f32.mxu1 %vm419_vm0, %v9371_v51  ;;  %8421 = vmatpush3.msra.mxu1 %v7024_v32  ;;  %v9948_v32 = vld [vmem:[%s9728_s13 + $0x42] sm:$0xff] }
  0x74   : > { %8453 = vmatpush3.msra.mxu0 %v7060_v33  ;;  %8422 = vmatprep.subr.mxu1 %v7023_v34  ;;  %11616 = vst [vmem:[#allocation10_spill] sm:$0xff] %v9948_v32  ;;  %v7192_v33 = vld [vmem:[%s11595_s3 + $0x1a8] sm:$0xff] }
  0x75   : > { %8454 = vmatprep.subr.mxu0 %v7059_v36  ;;  %8402 = vmatmul.mubr.msk.f32.gmra.mxu0 %vm419_vm0, %v9394_v56  ;;  %v9825_v56 = vld [vmem:[%s9728_s13 + $0x71] sm:$0xff] }
  0x76   : > { %8370 = vmatmul.mubr.msk.f32.gmra.mxu1 %vm419_vm0, %v9377_v53  ;;  %8404 = vmatprep.mubr.msk.f32.mxu0 %vm419_vm0, %v9400_v58  ;;  %v9831_v58 = vld [vmem:[%s9728_s13 + $0x81] sm:$0xff] }
  0x77   : > { %8372 = vmatprep.mubr.msk.f32.mxu1 %vm419_vm0, %v9397_v57  ;;  %8423 = vmatpush3.msra.mxu1 %v7023_v34  ;;  %v7228_v34 = vld [vmem:[%s11595_s3 + $0x1c8] sm:$0xff] }
  0x78   : > { %8455 = vmatpush3.msra.mxu0 %v7059_v36  ;;  %8480 = vmatprep.subr.mxu1 %v7086_v37  ;;  %v9965_v36 = vld [vmem:[%s9728_s13 + $0x52] sm:$0xff] }
  0x79   : > { %8512 = vmatprep.subr.mxu0 %v7082_v38  ;;  %8405 = vmatmul.mubr.msk.f32.gmra.mxu0 %vm419_vm0, %v9414_v60  ;;  %v7194_v60 = vld [vmem:[%s11595_s3 + $0x1b8] sm:$0xff] }
  0x7a   : > { %8373 = vmatmul.mubr.msk.f32.gmra.mxu1 %vm419_vm0, %v9403_v59  ;;  %8407 = vmatprep.mubr.msk.f32.mxu0 %vm419_vm0, %v9420_v62  ;;  %v9851_v62 = vld [vmem:[%s9728_s13 + $0x91] sm:$0xff] }
  0x7b   : > { %8375 = vmatprep.mubr.msk.f32.mxu1 %vm419_vm0, %v9417_v61 }
  0x7d   : > { %8408 = vmatmul.mubr.msk.f32.gmra.mxu0 %vm419_vm0, %v9434_v0  ;;  %v9857_v0 = vld [vmem:[%s9728_s13 + $0xa1] sm:$0xff] }
  0x7e   : > { %8376 = vmatmul.mubr.msk.f32.gmra.mxu1 %vm419_vm0, %v9423_v63  ;;  %8410 = vmatprep.mubr.msk.f32.mxu0 %vm419_vm0, %v9440_v2  ;;  %v9871_v2 = vld [vmem:[%s9728_s13 + $0xb1] sm:$0xff] }
  0x7f   : > { %8378 = vmatprep.mubr.msk.f32.mxu1 %vm419_vm0, %v9437_v1 }
  0x81   : > { %8411 = vmatmul.mubr.msk.f32.gmra.mxu0 %vm419_vm0, %v9454_v4  ;;  %v9877_v4 = vld [vmem:[%s9728_s13 + $0xc1] sm:$0xff] }
  0x82   : > { %8379 = vmatmul.mubr.msk.f32.gmra.mxu1 %vm419_vm0, %v9443_v3  ;;  %8413 = vmatprep.mubr.msk.f32.mxu0 %vm419_vm0, %v6878_v28  ;;  %v9928_v28 = vld [vmem:[%s9728_s13 + $0x22] sm:$0xff] }
  0x83   : > { %8381 = vmatprep.mubr.msk.f32.mxu1 %vm419_vm0, %v9457_v5  ;;  %11614 = vst [vmem:[#allocation8_spill] sm:$0xff] %v9928_v28 }
  0x85   : > { %8414 = vmatmul.mubr.msk.f32.gmra.mxu0 %vm419_vm0, %v6986_v42  ;;  %v9985_v42 = vld [vmem:[%s9728_s13 + $0x72] sm:$0xff] }
  0x86   : > { %8382 = vmatmul.mubr.msk.f32.gmra.mxu1 %vm419_vm0, %v9638_v40  ;;  %8456 = vmatprep.mubr.msk.f32.mxu0 %vm419_vm0, %v9299_v35  ;;  %v7121_v35 = vld [vmem:[%s11595_s3 + $0x170] sm:$0xff] }
  0x87   : > { %8424 = vmatprep.mubr.msk.f32.mxu1 %vm419_vm0, %v9198_v10  ;;  %v7084_v10 = vld [vmem:[%s11595_s3 + $0x148] sm:$0xff] }
  0x89   : > { %8457 = vmatmul.mubr.msk.f32.vlgmr.msra.gmra.mxu0 %vm419_vm0, %v9315_v39  ;;  %v7157_v39 = vld [vmem:[%s11595_s3 + $0x190] sm:$0xff] }
  0x8a   : > { %8425 = vmatmul.mubr.msk.f32.vlgmr.msra.gmra.mxu1 %vm419_vm0, %v9214_v14  ;;  %8513 = vmatpush3.msra.mxu0 %v7082_v38  ;;  %v7080_v14 = vld [vmem:[%s11595_s3 + $0x128] sm:$0xff]  ;;  %v7191_v38 = vld [vmem:[%s11595_s3 + $0x1a0] sm:$0xff] }
  0x8b   : > { %8481 = vmatpush3.msra.mxu1 %v7086_v37  ;;  %8427 = vmatprep.mubr.msk.f32.mxu1 %vm419_vm0, %v9224_v16  ;;  %v7083_v16 = vld [vmem:[%s11595_s3 + $0x140] sm:$0xff] }
  0x8c   : > { %8459 = vmatprep.mubr.msk.f32.mxu0 %vm419_vm0, %v9325_v41  ;;  %8482 = vmatprep.subr.mxu1 %v7085_v43  ;;  %v9769_v41 = vld [vmem:[%s9728_s13 + $0x31] sm:$0xff]  ;;  %v9968_v37 = vld [vmem:[%s9728_s13 + $0x62] sm:$0xff] }
  0x8d   : > { %8514 = vmatprep.subr.mxu0 %v7081_v44  ;;  %8460 = vmatmul.mubr.msk.f32.gmra.mxu0 %vm419_vm0, %v9345_v45  ;;  %v9772_v45 = vld [vmem:[%s9728_s13 + $0x30] sm:$0xff] }
  0x8e   : > { %8428 = vmatmul.mubr.msk.f32.gmra.mxu1 %vm419_vm0, %v9240_v20  ;;  %8462 = vmatprep.mubr.msk.f32.mxu0 %vm419_vm0, %v9351_v47  ;;  %v7079_v20 = vld [vmem:[%s11595_s3 + $0x120] sm:$0xff] }
  0x8f   : > { %8430 = vmatprep.mubr.msk.f32.mxu1 %vm419_vm0, %v9250_v22  ;;  %8483 = vmatpush3.msra.mxu1 %v7085_v43  ;;  %v7122_v22 = vld [vmem:[%s11595_s3 + $0x178] sm:$0xff]  ;;  %v9782_v47 = vld [vmem:[%s9728_s13 + $0x40] sm:$0xff] }
  0x90   : > { %8515 = vmatpush3.msra.mxu0 %v7081_v44  ;;  %8484 = vmatprep.subr.mxu1 %v7084_v10  ;;  %v9988_v43 = vld [vmem:[%s9728_s13 + $0x82] sm:$0xff]  ;;  %v7266_v44 = vld [vmem:[%s11595_s3 + $0x1f8] sm:$0xff] }
  0x91   : > { %8516 = vmatprep.subr.mxu0 %v7080_v14  ;;  %8463 = vmatmul.mubr.msk.f32.gmra.mxu0 %vm419_vm0, %v9371_v51  ;;  %v9802_v51 = vld [vmem:[%s9728_s13 + $0x50] sm:$0xff] }
  0x92   : > { %8431 = vmatmul.mubr.msk.f32.gmra.mxu1 %vm419_vm0, %v9266_v26  ;;  %8465 = vmatprep.mubr.msk.f32.mxu0 %vm419_vm0, %v9377_v53  ;;  %v9753_v26 = vld [vmem:[%s9728_s13 + $0x21] sm:$0xff] }
  0x93   : > { %8433 = vmatprep.mubr.msk.f32.mxu1 %vm419_vm0, %v9186_v7  ;;  %8485 = vmatpush3.msra.mxu1 %v7084_v10  ;;  %v7158_v7 = vld [vmem:[%s11595_s3 + $0x198] sm:$0xff]  ;;  %v9808_v53 = vld [vmem:[%s9728_s13 + $0x60] sm:$0xff] }
  0x94   : > { %8517 = vmatpush3.msra.mxu0 %v7080_v14  ;;  %8486 = vmatprep.subr.mxu1 %v7083_v16  ;;  %v7302_v10 = vld [vmem:[%s11595_s3 + $0x218] sm:$0xff] }
  0x95   : > { %8518 = vmatprep.subr.mxu0 %v7079_v20  ;;  %8466 = vmatmul.mubr.msk.f32.gmra.mxu0 %vm419_vm0, %v9397_v57  ;;  %v9828_v57 = vld [vmem:[%s9728_s13 + $0x70] sm:$0xff] }
  0x96   : > { %8434 = vmatmul.mubr.msk.f32.gmra.mxu1 %vm419_vm0, %v9195_v9  ;;  %8468 = vmatprep.mubr.msk.f32.mxu0 %vm419_vm0, %v9403_v59  ;;  %v7022_v9 = vld [vmem:[%s9182_s12 + $0x111] sm:$0xff]  ;;  %v9834_v59 = vld [vmem:[%s9728_s13 + $0x80] sm:$0xff] }
  0x97   : > { %8436 = vmatprep.mubr.msk.f32.mxu1 %vm419_vm0, %v9201_v11  ;;  %8487 = vmatpush3.msra.mxu1 %v7083_v16  ;;  %v7058_v11 = vld [vmem:[%s9182_s12 + $0x112] sm:$0xff]  ;;  %v10008_v16 = vld [vmem:[%s9728_s13 + $0xa2] sm:$0xff] }
  0x98   : > { %8519 = vmatpush3.msra.mxu0 %v7079_v20  ;;  %8544 = vmatprep.subr.mxu1 %v7122_v22  ;;  %v10005_v14 = vld [vmem:[%s9728_s13 + $0x92] sm:$0xff] }
  0x99   : > { %8576 = vmatprep.subr.mxu0 %v7158_v7  ;;  %8469 = vmatmul.mubr.msk.f32.gmra.mxu0 %vm419_vm0, %v9417_v61  ;;  %v7230_v61 = vld [vmem:[%s11595_s3 + $0x1d8] sm:$0xff] }
  0x9a   : > { %8437 = vmatmul.mubr.msk.f32.gmra.mxu1 %vm419_vm0, %v9217_v15  ;;  %8471 = vmatprep.mubr.msk.f32.mxu0 %vm419_vm0, %v9423_v63  ;;  %v2472_v15 = vld [vmem:[%s9728_s13 + $0x1] sm:$0xff]  ;;  %v9854_v63 = vld [vmem:[%s9728_s13 + $0x90] sm:$0xff] }
  0x9b   : > { %8439 = vmatprep.mubr.msk.f32.mxu1 %vm419_vm0, %v9227_v17  ;;  %v2451_v17 = vld [vmem:[%s9728_s13] sm:$0xff] }
  0x9d   : > { %8472 = vmatmul.mubr.msk.f32.gmra.mxu0 %vm419_vm0, %v9437_v1  ;;  %v9860_v1 = vld [vmem:[%s9728_s13 + $0xa0] sm:$0xff] }
  0x9e   : > { %8440 = vmatmul.mubr.msk.f32.gmra.mxu1 %vm419_vm0, %v9243_v21  ;;  %8474 = vmatprep.mubr.msk.f32.mxu0 %vm419_vm0, %v9443_v3  ;;  %v9747_v21 = vld [vmem:[%s9728_s13 + $0x11] sm:$0xff]  ;;  %11608 = vst [vmem:[#allocation2_spill] sm:$0xff] %v9860_v1 }
  0x9f   : > { %8442 = vmatprep.mubr.msk.f32.mxu1 %vm419_vm0, %v9253_v23  ;;  %v9750_v23 = vld [vmem:[%s9728_s13 + $0x10] sm:$0xff] }
  0xa0   : > { %v9874_v3 = vld [vmem:[%s9728_s13 + $0xb0] sm:$0xff] }
  0xa1   : > { %8475 = vmatmul.mubr.msk.f32.gmra.mxu0 %vm419_vm0, %v9457_v5  ;;  %11609 = vst [vmem:[#allocation3_spill] sm:$0xff] %v9874_v3  ;;  %v9880_v5 = vld [vmem:[%s9728_s13 + $0xc0] sm:$0xff] }
  0xa2   : > { %8443 = vmatmul.mubr.msk.f32.gmra.mxu1 %vm419_vm0, %v9269_v27  ;;  %8477 = vmatprep.mubr.msk.f32.mxu0 %vm419_vm0, %v9638_v40  ;;  %v9756_v27 = vld [vmem:[%s9728_s13 + $0x20] sm:$0xff]  ;;  %11610 = vst [vmem:[#allocation4_spill] sm:$0xff] %v9880_v5 }
  0xa3   : > { %8445 = vmatprep.mubr.msk.f32.mxu1 %vm419_vm0, %v9549_v29  ;;  %v7193_v29 = vld [vmem:[%s11595_s3 + $0x1b0] sm:$0xff]  ;;  %v7227_v40 = vld [vmem:[%s11595_s3 + $0x1c0] sm:$0xff] }
  0xa5   : > { %8478 = vmatmul.mubr.msk.f32.gmra.mxu0 %vm419_vm0, %v7058_v11 }
  0xa6   : > { %8446 = vmatmul.mubr.msk.f32.gmra.mxu1 %vm419_vm0, %v7022_v9  ;;  %8520 = vmatprep.mubr.msk.f32.mxu0 %vm419_vm0, %v2451_v17 }
  0xa7   : > { %8488 = vmatprep.mubr.msk.f32.mxu1 %vm419_vm0, %v2472_v15  ;;  %v10026_v15 = vld [vmem:[%s9728_s13 + $0xc2] sm:$0xff] }
  0xa9   : > { %8521 = vmatmul.mubr.msk.f32.vlgmr.msra.gmra.mxu0 %vm419_vm0, %v9750_v23 }
  0xaa   : > { %8489 = vmatmul.mubr.msk.f32.vlgmr.msra.gmra.mxu1 %vm419_vm0, %v9747_v21  ;;  %8577 = vmatpush3.msra.mxu0 %v7158_v7  ;;  %v10021_v7 = vld [vmem:[%s9728_s13 + $0xb2] sm:$0xff] }
  0xab   : > { %8545 = vmatpush3.msra.mxu1 %v7122_v22  ;;  %8491 = vmatprep.mubr.msk.f32.mxu1 %vm419_vm0, %v9753_v26 }
  0xac   : > { %8523 = vmatprep.mubr.msk.f32.mxu0 %vm419_vm0, %v9756_v27  ;;  %8546 = vmatprep.subr.mxu1 %v7121_v35 }
  0xad   : > { %8578 = vmatprep.subr.mxu0 %v7157_v39  ;;  %8524 = vmatmul.mubr.msk.f32.gmra.mxu0 %vm419_vm0, %v9772_v45 }
  0xae   : > { %8492 = vmatmul.mubr.msk.f32.gmra.mxu1 %vm419_vm0, %v9769_v41  ;;  %8526 = vmatprep.mubr.msk.f32.mxu0 %vm419_vm0, %v9782_v47 }
  0xaf   : > { %8494 = vmatprep.mubr.msk.f32.mxu1 %vm419_vm0, %v9779_v46  ;;  %8547 = vmatpush3.msra.mxu1 %v7121_v35  ;;  %v10039_v35 = vld [vmem:[%s9728_s13 + $0xd2] sm:$0xff] }
  0xb0   : > { %8579 = vmatpush3.msra.mxu0 %v7157_v39  ;;  %8548 = vmatprep.subr.mxu1 %v7120_v48 }
  0xb1   : > { %8580 = vmatprep.subr.mxu0 %v7156_v49  ;;  %8527 = vmatmul.mubr.msk.f32.gmra.mxu0 %vm419_vm0, %v9802_v51 }
  0xb2   : > { %8495 = vmatmul.mubr.msk.f32.gmra.mxu1 %vm419_vm0, %v9799_v50  ;;  %8529 = vmatprep.mubr.msk.f32.mxu0 %vm419_vm0, %v9808_v53 }
  0xb3   : > { %8497 = vmatprep.mubr.msk.f32.mxu1 %vm419_vm0, %v9805_v52  ;;  %8549 = vmatpush3.msra.mxu1 %v7120_v48 }
  0xb4   : > { %8581 = vmatpush3.msra.mxu0 %v7156_v49  ;;  %8550 = vmatprep.subr.mxu1 %v7119_v54  ;;  %v10044_v49 = vld [vmem:[%s9728_s13 + $0xe2] sm:$0xff] }
  0xb5   : > { %8582 = vmatprep.subr.mxu0 %v7155_v55  ;;  %8530 = vmatmul.mubr.msk.f32.gmra.mxu0 %vm419_vm0, %v9828_v57 }
  0xb6   : > { %8498 = vmatmul.mubr.msk.f32.gmra.mxu1 %vm419_vm0, %v9825_v56  ;;  %8532 = vmatprep.mubr.msk.f32.mxu0 %vm419_vm0, %v9834_v59 }
  0xb7   : > { %8500 = vmatprep.mubr.msk.f32.mxu1 %vm419_vm0, %v9831_v58  ;;  %8551 = vmatpush3.msra.mxu1 %v7119_v54 }
  0xb8   : > { %8583 = vmatpush3.msra.mxu0 %v7155_v55  ;;  %8608 = vmatprep.subr.mxu1 %v7194_v60 }
  0xb9   : > { %8640 = vmatprep.subr.mxu0 %v7230_v61  ;;  %8533 = vmatmul.mubr.msk.f32.gmra.mxu0 %vm419_vm0, %v9854_v63 }
  0xba   : > { %8501 = vmatmul.mubr.msk.f32.gmra.mxu1 %vm419_vm0, %v9851_v62  ;;  %8535 = vmatprep.mubr.msk.f32.mxu0 %vm419_vm0, %v9860_v1 }
  0xbb   : > { %8503 = vmatprep.mubr.msk.f32.mxu1 %vm419_vm0, %v9857_v0 }
  0xbd   : > { %8536 = vmatmul.mubr.msk.f32.gmra.mxu0 %vm419_vm0, %v9874_v3 }
  0xbe   : > { %8504 = vmatmul.mubr.msk.f32.gmra.mxu1 %vm419_vm0, %v9871_v2  ;;  %8538 = vmatprep.mubr.msk.f32.mxu0 %vm419_vm0, %v9880_v5 }
  0xbf   : > { %8506 = vmatprep.mubr.msk.f32.mxu1 %vm419_vm0, %v9877_v4 }
  0xc1   : > { %8539 = vmatmul.mubr.msk.f32.gmra.mxu0 %vm419_vm0, %v9894_v12 }
  0xc2   : > { %8507 = vmatmul.mubr.msk.f32.gmra.mxu1 %vm419_vm0, %v9891_v6  ;;  %8541 = vmatprep.mubr.msk.f32.mxu0 %vm419_vm0, %v9900_v13 }
  0xc3   : > { %8509 = vmatprep.mubr.msk.f32.mxu1 %vm419_vm0, %v9897_v8 }
  0xc5   : > { %8542 = vmatmul.mubr.msk.f32.gmra.mxu0 %vm419_vm0, %v9914_v19 }
  0xc6   : > { %8510 = vmatmul.mubr.msk.f32.gmra.mxu1 %vm419_vm0, %v9911_v18  ;;  %8584 = vmatprep.mubr.msk.f32.mxu0 %vm419_vm0, %v9750_v23 }
  0xc7   : > { %8552 = vmatprep.mubr.msk.f32.mxu1 %vm419_vm0, %v2879_v24 }
  0xc9   : > { %8585 = vmatmul.mubr.msk.f32.vlgmr.msra.gmra.mxu0 %vm419_vm0, %v9756_v27 }
  0xca   : > { %8553 = vmatmul.mubr.msk.f32.vlgmr.msra.gmra.mxu1 %vm419_vm0, %v9925_v25  ;;  %8641 = vmatpush3.msra.mxu0 %v7230_v61  ;;  %v10060_v61 = vld [vmem:[%s9728_s13 + $0x100] sm:$0xff] }
  0xcb   : > { %8609 = vmatpush3.msra.mxu1 %v7194_v60  ;;  %8555 = vmatprep.mubr.msk.f32.mxu1 %vm419_vm0, %v9928_v28  ;;  %v10057_v60 = vld [vmem:[%s9728_s13 + $0xf2] sm:$0xff]  ;;  %11617 = vst [vmem:[#allocation11_spill] sm:$0xff] %v10060_v61 }
  0xcc   : > { %8587 = vmatprep.mubr.msk.f32.mxu0 %vm419_vm0, %v9772_v45  ;;  %8610 = vmatprep.subr.mxu1 %v7193_v29 }
  0xcd   : > { %8642 = vmatprep.subr.mxu0 %v7229_v30  ;;  %8588 = vmatmul.mubr.msk.f32.gmra.mxu0 %vm419_vm0, %v9782_v47 }
  0xce   : > { %8556 = vmatmul.mubr.msk.f32.gmra.mxu1 %vm419_vm0, %v9941_v31  ;;  %8590 = vmatprep.mubr.msk.f32.mxu0 %vm419_vm0, %v9802_v51 }
  0xcf   : > { %8558 = vmatprep.mubr.msk.f32.mxu1 %vm419_vm0, %v9948_v32  ;;  %8611 = vmatpush3.msra.mxu1 %v7193_v29 }
  0xd0   : > { %8643 = vmatpush3.msra.mxu0 %v7229_v30  ;;  %8612 = vmatprep.subr.mxu1 %v7192_v33 }
  0xd1   : > { %8644 = vmatprep.subr.mxu0 %v7228_v34  ;;  %8591 = vmatmul.mubr.msk.f32.gmra.mxu0 %vm419_vm0, %v9808_v53 }
  0xd2   : > { %8559 = vmatmul.mubr.msk.f32.gmra.mxu1 %vm419_vm0, %v9965_v36  ;;  %8593 = vmatprep.mubr.msk.f32.mxu0 %vm419_vm0, %v9828_v57 }
  0xd3   : > { %8561 = vmatprep.mubr.msk.f32.mxu1 %vm419_vm0, %v9968_v37  ;;  %8613 = vmatpush3.msra.mxu1 %v7192_v33 }
  0xd4   : > { %8645 = vmatpush3.msra.mxu0 %v7228_v34  ;;  %8614 = vmatprep.subr.mxu1 %v7191_v38 }
  0xd5   : > { %8646 = vmatprep.subr.mxu0 %v7227_v40  ;;  %8594 = vmatmul.mubr.msk.f32.gmra.mxu0 %vm419_vm0, %v9834_v59 }
  0xd6   : > { %8562 = vmatmul.mubr.msk.f32.gmra.mxu1 %vm419_vm0, %v9985_v42  ;;  %8596 = vmatprep.mubr.msk.f32.mxu0 %vm419_vm0, %v9854_v63 }
  0xd7   : > { %8564 = vmatprep.mubr.msk.f32.mxu1 %vm419_vm0, %v9988_v43  ;;  %8615 = vmatpush3.msra.mxu1 %v7191_v38 }
  0xd8   : > { %8647 = vmatpush3.msra.mxu0 %v7227_v40  ;;  %8672 = vmatprep.subr.mxu1 %v7266_v44 }
  0xd9   : > { %8704 = vmatprep.subr.mxu0 %v7302_v10  ;;  %v8202_v20 = vpop.f32.mrf.mxu0  ;;  %8597 = vmatmul.mubr.msk.f32.gmra.mxu0 %vm419_vm0, %v9860_v1 }
  0xda   : > { %v10010_v22 = vpop.f32.mrf.mxu1  ;;  %8565 = vmatmul.mubr.msk.f32.gmra.mxu1 %vm419_vm0, %v10005_v14  ;;  %8599 = vmatprep.mubr.msk.f32.mxu0 %vm419_vm0, %v9874_v3 }
  0xdb   : > { %8567 = vmatprep.mubr.msk.f32.mxu1 %vm419_vm0, %v10008_v16  ;;  %v534_v9 = vpop.f32.mrf.mxu0 }
  0xdc   : > { %v10023_v11 = vpop.f32.mrf.mxu1 }
  0xdd   : > { %v8205_v17 = vpop.f32.mrf.mxu0  ;;  %8600 = vmatmul.mubr.msk.f32.gmra.mxu0 %vm419_vm0, %v9880_v5 }
  0xde   : > { %v10028_v23 = vpop.f32.mrf.mxu1  ;;  %8568 = vmatmul.mubr.msk.f32.gmra.mxu1 %vm419_vm0, %v10021_v7  ;;  %8602 = vmatprep.mubr.msk.f32.mxu0 %vm419_vm0, %v9894_v12 }
  0xdf   : > { %8570 = vmatprep.mubr.msk.f32.mxu1 %vm419_vm0, %v10026_v15  ;;  %v544_v39 = vpop.f32.mrf.mxu0 }
  0xe0   : > { %v10041_v48 = vpop.f32.mrf.mxu1 }
  0xe1   : > { %v8208_v54 = vpop.f32.mrf.mxu0  ;;  %8603 = vmatmul.mubr.msk.f32.gmra.mxu0 %vm419_vm0, %v9900_v13 }
  0xe2   : > { %v10046_v55 = vpop.f32.mrf.mxu1  ;;  %8571 = vmatmul.mubr.msk.f32.gmra.mxu1 %vm419_vm0, %v10039_v35  ;;  %8605 = vmatprep.mubr.msk.f32.mxu0 %vm419_vm0, %v9914_v19 }
  0xe3   : > { %8573 = vmatprep.mubr.msk.f32.mxu1 %vm419_vm0, %v10044_v49  ;;  %v554_v24 = vpop.f32.mrf.mxu0 }
  0xe4   : > { %v10062_v29 = vpop.f32.mrf.mxu1 }
  0xe5   : > { %v10064_v30 = vpop.f32.mrf.mxu0  ;;  %8606 = vmatmul.mubr.msk.f32.gmra.mxu0 %vm419_vm0, %v10060_v61  ;;  %v7265_v61 = vld [vmem:[%s11595_s3 + $0x1f0] sm:$0xff] }
  0xe6   : > { %v10066_v33 = vpop.f32.mrf.mxu1  ;;  %8574 = vmatmul.mubr.msk.f32.gmra.mxu1 %vm419_vm0, %v10057_v60  ;;  %8648 = vmatprep.mubr.msk.f32.mxu0 %vm419_vm0, %v9925_v25 }
  0xe7   : > { %8616 = vmatprep.mubr.msk.f32.mxu1 %vm419_vm0, %v9747_v21  ;;  %v10076_v34 = vpop.f32.mrf.mxu0  ;;  %v7301_v21 = vld [vmem:[%s11595_s3 + $0x210] sm:$0xff] }
  0xe8   : > { %v10078_v38 = vpop.f32.mrf.mxu1 }
  0xe9   : > { %v8266_v19 = vpop.f32.mrf.mxu0  ;;  %8649 = vmatmul.mubr.msk.f32.vlgmr.msra.gmra.mxu0 %vm419_vm0, %v9928_v28 }
  0xea   : > { %v8234_v40 = vpop.f32.mrf.mxu1  ;;  %8617 = vmatmul.mubr.msk.f32.vlgmr.msra.gmra.mxu1 %vm419_vm0, %v9753_v26  ;;  %8705 = vmatpush3.msra.mxu0 %v7302_v10 }
  0xeb   : > { %v733_v25 = vadd.f32 %v8234_v40, %v8202_v20  ;;  %8673 = vmatpush3.msra.mxu1 %v7266_v44  ;;  %v941_v12 = vpop.f32.mrf.mxu0  ;;  %8619 = vmatprep.mubr.msk.f32.mxu1 %vm419_vm0, %v9769_v41  ;;  %v7264_v44 = vld [vmem:[%s11595_s3 + $0x1e8] sm:$0xff] }
  0xec   : > { %v727_v13 = vpop.f32.mrf.mxu1  ;;  %8651 = vmatprep.mubr.msk.f32.mxu0 %vm419_vm0, %v9941_v31  ;;  %8674 = vmatprep.subr.mxu1 %v7265_v61 }
  0xed   : > { %v10094_v28 = vadd.f32 %v8266_v19, %v733_v25  ;;  %v728_v5 = vadd.f32 %v727_v13, %v534_v9  ;;  %8706 = vmatprep.subr.mxu0 %v7301_v21  ;;  %v8269_v1 = vpop.f32.mrf.mxu0  ;;  %8652 = vmatmul.mubr.msk.f32.gmra.mxu0 %vm419_vm0, %v9948_v32  ;;  %v7300_v19 = vld [vmem:[%s11595_s3 + $0x208] sm:$0xff] }
  0xee   : > { %v8237_v3 = vpop.f32.mrf.mxu1  ;;  %8620 = vmatmul.mubr.msk.f32.gmra.mxu1 %vm419_vm0, %v9779_v46  ;;  %8654 = vmatprep.mubr.msk.f32.mxu0 %vm419_vm0, %v9965_v36 }
  0xef   : > { %v10106_v10 = vadd.f32 %v941_v12, %v728_v5  ;;  %v743_v13 = vadd.f32 %v8237_v3, %v8205_v17  ;;  %8622 = vmatprep.mubr.msk.f32.mxu1 %vm419_vm0, %v9799_v50  ;;  %v951_v9 = vpop.f32.mrf.mxu0  ;;  %8675 = vmatpush3.msra.mxu1 %v7265_v61  ;;  %v7263_v3 = vld [vmem:[%s11595_s3 + $0x1e0] sm:$0xff] }
  0xf0   : > { %v737_v20 = vpop.f32.mrf.mxu1  ;;  %8707 = vmatpush3.msra.mxu0 %v7301_v21  ;;  %8676 = vmatprep.subr.mxu1 %v7264_v44 }
  0xf1   : > { %v10112_v40 = vadd.f32 %v8269_v1, %v743_v13  ;;  %v738_v25 = vadd.f32 %v737_v20, %v544_v39  ;;  %8708 = vmatprep.subr.mxu0 %v7300_v19  ;;  %v8272_v31 = vpop.f32.mrf.mxu0  ;;  %8655 = vmatmul.mubr.msk.f32.gmra.mxu0 %vm419_vm0, %v9968_v37  ;;  %v7299_v1 = vld [vmem:[%s11595_s3 + $0x200] sm:$0xff] }
  0xf2   : > { %v8240_v32 = vpop.f32.mrf.mxu1  ;;  %8623 = vmatmul.mubr.msk.f32.gmra.mxu1 %vm419_vm0, %v9805_v52  ;;  %8657 = vmatprep.mubr.msk.f32.mxu0 %vm419_vm0, %v9985_v42 }
  0xf3   : > { %v10124_v5 = vadd.f32 %v951_v9, %v738_v25  ;;  %v753_v12 = vadd.f32 %v8240_v32, %v8208_v54  ;;  %8625 = vmatprep.mubr.msk.f32.mxu1 %vm419_vm0, %v9825_v56  ;;  %v961_v39 = vpop.f32.mrf.mxu0  ;;  %8677 = vmatpush3.msra.mxu1 %v7264_v44  ;;  %v10139_v32 = vld [vmem:[%s11595_s3 + $0x238] sm:$0xff] }
  0xf4   : > { %v747_v17 = vpop.f32.mrf.mxu1  ;;  %8709 = vmatpush3.msra.mxu0 %v7300_v19  ;;  %8678 = vmatprep.subr.mxu1 %v7263_v3 }
  0xf5   : > { %v10130_v61 = vadd.f32 %v8272_v31, %v753_v12  ;;  %v748_v21 = vadd.f32 %v747_v17, %v554_v24  ;;  %8710 = vmatprep.subr.mxu0 %v7299_v1  ;;  %v8275_v20 = vpop.f32.mrf.mxu0  ;;  %8658 = vmatmul.mubr.msk.f32.gmra.mxu0 %vm419_vm0, %v9988_v43  ;;  %v10144_v31 = vld [vmem:[%s11595_s3 + $0x278] sm:$0xff] }
  0xf6   : > { %v8243_v13 = vpop.f32.mrf.mxu1  ;;  %8626 = vmatmul.mubr.msk.f32.gmra.mxu1 %vm419_vm0, %v9831_v58  ;;  %8660 = vmatprep.mubr.msk.f32.mxu0 %vm419_vm0, %v10005_v14 }
  0xf7   : > { %v10146_v54 = vadd.f32 %v961_v39, %v748_v21  ;;  %v763_v24 = vadd.f32 %v8243_v13, %v10064_v30  ;;  %8628 = vmatprep.mubr.msk.f32.mxu1 %vm419_vm0, %v9851_v62  ;;  %v971_v19 = vpop.f32.mrf.mxu0  ;;  %8679 = vmatpush3.msra.mxu1 %v7263_v3 }
  0xf8   : > { %v757_v44 = vpop.f32.mrf.mxu1  ;;  %8711 = vmatpush3.msra.mxu0 %v7299_v1  ;;  %8736 = vmatprep.subr.mxu1 %v10139_v32 }
  0xf9   : > { %v10153_v9 = vadd.f32 %v8275_v20, %v763_v24  ;;  %v758_v25 = vadd.f32 %v757_v44, %v10076_v34  ;;  %8768 = vmatprep.subr.mxu0 %v10144_v31  ;;  %v8278_v30 = vpop.f32.mrf.mxu0  ;;  %8661 = vmatmul.mubr.msk.f32.gmra.mxu0 %vm419_vm0, %v10008_v16 }
  0xfa   : > { %v8246_v12 = vpop.f32.mrf.mxu1  ;;  %8629 = vmatmul.mubr.msk.f32.gmra.mxu1 %vm419_vm0, %v9857_v0  ;;  %8663 = vmatprep.mubr.msk.f32.mxu0 %vm419_vm0, %v10021_v7 }
  0xfb   : > { %v10162_v17 = vadd.f32 %v971_v19, %v758_v25  ;;  %v773_v3 = vadd.f32 %v8246_v12, %v10010_v22  ;;  %8631 = vmatprep.mubr.msk.f32.mxu1 %vm419_vm0, %v9871_v2  ;;  %v981_v1 = vpop.f32.mrf.mxu0 }
  0xfc   : > { %v767_v34 = vpop.f32.mrf.mxu1 }
  0xfd   : > { %v10169_v39 = vadd.f32 %v8278_v30, %v773_v3  ;;  %v768_v21 = vadd.f32 %v767_v34, %v10023_v11  ;;  %v8281_v20 = vpop.f32.mrf.mxu0  ;;  %8664 = vmatmul.mubr.msk.f32.gmra.mxu0 %vm419_vm0, %v10026_v15  ;;  %v10198_v34 = vld [vmem:[%s9728_s13 + $0x101] sm:$0xff] }
  0xfe   : > { %v8249_v13 = vpop.f32.mrf.mxu1  ;;  %8632 = vmatmul.mubr.msk.f32.gmra.mxu1 %vm419_vm0, %v9877_v4  ;;  %8666 = vmatprep.mubr.msk.f32.mxu0 %vm419_vm0, %v10039_v35 }
  0xff   : > { %v10176_v22 = vadd.f32 %v981_v1, %v768_v21  ;;  %v783_v24 = vadd.f32 %v8249_v13, %v10028_v23  ;;  %8634 = vmatprep.mubr.msk.f32.mxu1 %vm419_vm0, %v9891_v6  ;;  %v991_v44 = vpop.f32.mrf.mxu0 }
 0x100   : > { %v777_v11 = vpop.f32.mrf.mxu1 }
 0x101   : > { %v10183_v19 = vadd.f32 %v8281_v20, %v783_v24  ;;  %v778_v25 = vadd.f32 %v777_v11, %v10041_v48  ;;  %v8284_v30 = vpop.f32.mrf.mxu0  ;;  %8667 = vmatmul.mubr.msk.f32.gmra.mxu0 %vm419_vm0, %v10044_v49  ;;  %v10201_v48 = vld [vmem:[%s9728_s13 + $0x102] sm:$0xff] }
 0x102   : > { %v8252_v12 = vpop.f32.mrf.mxu1  ;;  %8635 = vmatmul.mubr.msk.f32.gmra.mxu1 %vm419_vm0, %v9897_v8  ;;  %8669 = vmatprep.mubr.msk.f32.mxu0 %vm419_vm0, %v10057_v60 }
 0x103   : > { %v10190_v23 = vadd.f32 %v991_v44, %v778_v25  ;;  %v793_v3 = vadd.f32 %v8252_v12, %v10046_v55  ;;  %8637 = vmatprep.mubr.msk.f32.mxu1 %vm419_vm0, %v9911_v18  ;;  %v1001_v21 = vpop.f32.mrf.mxu0 }
 0x104   : > { %v787_v1 = vpop.f32.mrf.mxu1 }
 0x105   : > { %v10203_v13 = vadd.f32 %v8284_v30, %v793_v3  ;;  %v788_v20 = vadd.f32 %v787_v1, %v10062_v29  ;;  %v8287_v24 = vpop.f32.mrf.mxu0  ;;  %8670 = vmatmul.mubr.msk.f32.gmra.mxu0 %vm419_vm0, %v10201_v48 }
 0x106   : > { %v8255_v55 = vpop.f32.mrf.mxu1  ;;  %8638 = vmatmul.mubr.msk.f32.gmra.mxu1 %vm419_vm0, %v10198_v34  ;;  %8712 = vmatprep.mubr.msk.f32.mxu0 %vm419_vm0, %v9753_v26  ;;  %v7337_v26 = vld [vmem:[%s11595_s3 + $0x230] sm:$0xff] }
 0x107   : > { %v10213_v11 = vadd.f32 %v1001_v21, %v788_v20  ;;  %v803_v44 = vadd.f32 %v8255_v55, %v10066_v33  ;;  %8680 = vmatprep.mubr.msk.f32.mxu1 %vm419_vm0, %v9756_v27  ;;  %v1011_v25 = vpop.f32.mrf.mxu0  ;;  %v7361_v27 = vld [vmem:[%s11595_s3 + $0x270] sm:$0xff] }
 0x108   : > { %v797_v29 = vpop.f32.mrf.mxu1 }
 0x109   : > { %v10221_v12 = vadd.f32 %v8287_v24, %v803_v44  ;;  %v798_v30 = vadd.f32 %v797_v29, %v10078_v38  ;;  %v8330_v1 = vpop.f32.mrf.mxu0  ;;  %8713 = vmatmul.mubr.msk.f32.vlgmr.msra.gmra.mxu0 %vm419_vm0, %v9769_v41 }
 0x10a   : > { %v8298_v3 = vpop.f32.mrf.mxu1  ;;  %8681 = vmatmul.mubr.msk.f32.vlgmr.msra.gmra.mxu1 %vm419_vm0, %v9772_v45  ;;  %8769 = vmatpush3.msra.mxu0 %v10144_v31 }
 0x10b   : > { %v10234_v33 = vadd.f32 %v1011_v25, %v798_v30  ;;  %v1252_v38 = vadd.f32 %v8298_v3, %v10094_v28  ;;  %8737 = vmatpush3.msra.mxu1 %v10139_v32  ;;  %v1402_v21 = vpop.f32.mrf.mxu0  ;;  %8683 = vmatprep.mubr.msk.f32.mxu1 %vm419_vm0, %v9782_v47  ;;  %v7360_v47 = vld [vmem:[%s11595_s3 + $0x268] sm:$0xff] }
 0x10c   : > { %v1172_v45 = vpop.f32.mrf.mxu1  ;;  %8715 = vmatprep.mubr.msk.f32.mxu0 %vm419_vm0, %v9779_v46  ;;  %8738 = vmatprep.subr.mxu1 %v7337_v26  ;;  %v7336_v46 = vld [vmem:[%s11595_s3 + $0x228] sm:$0xff] }
 0x10d   : > { %v10246_v41 = vadd.f32 %v8330_v1, %v1252_v38  ;;  %v1251_v20 = vadd.f32 %v1172_v45, %v10106_v10  ;;  %8770 = vmatprep.subr.mxu0 %v7361_v27  ;;  %v8333_v32 = vpop.f32.mrf.mxu0  ;;  %8716 = vmatmul.mubr.msk.f32.gmra.mxu0 %vm419_vm0, %v9799_v50 }
 0x10e   : > { %v8301_v28 = vpop.f32.mrf.mxu1  ;;  %8684 = vmatmul.mubr.msk.f32.gmra.mxu1 %vm419_vm0, %v9802_v51  ;;  %8718 = vmatprep.mubr.msk.f32.mxu0 %vm419_vm0, %v9805_v52  ;;  %v7335_v52 = vld [vmem:[%s11595_s3 + $0x220] sm:$0xff] }
 0x10f   : > { %v10260_v10 = vadd.f32 %v1402_v21, %v1251_v20  ;;  %v1254_v31 = vadd.f32 %v8301_v28, %v10112_v40  ;;  %8686 = vmatprep.mubr.msk.f32.mxu1 %vm419_vm0, %v9808_v53  ;;  %v1412_v50 = vpop.f32.mrf.mxu0  ;;  %8739 = vmatpush3.msra.mxu1 %v7337_v26  ;;  %v7359_v53 = vld [vmem:[%s11595_s3 + $0x260] sm:$0xff]  ;;  %v11619_v21 = vld [vmem:[#allocation3_spill] sm:$0xff]  ;;  %v11620_v20 = vld [vmem:[#allocation4_spill] sm:$0xff] }
 0x110   : > { %v1182_v51 = vpop.f32.mrf.mxu1  ;;  %8771 = vmatpush3.msra.mxu0 %v7361_v27  ;;  %8740 = vmatprep.subr.mxu1 %v7336_v46  ;;  %v11618_v26 = vld [vmem:[#allocation2_spill] sm:$0xff] }
 0x111   : > { %v10267_v55 = vadd.f32 %v8333_v32, %v1254_v31  ;;  %v1253_v24 = vadd.f32 %v1182_v51, %v10124_v5  ;;  %8772 = vmatprep.subr.mxu0 %v7360_v47  ;;  %v8336_v44 = vpop.f32.mrf.mxu0  ;;  %8719 = vmatmul.mubr.msk.f32.gmra.mxu0 %vm419_vm0, %v9825_v56 }
 0x112   : > { %v8304_v40 = vpop.f32.mrf.mxu1  ;;  %8687 = vmatmul.mubr.msk.f32.gmra.mxu1 %vm419_vm0, %v9828_v57  ;;  %8721 = vmatprep.mubr.msk.f32.mxu0 %vm419_vm0, %v9831_v58  ;;  %v10302_v58 = vld [vmem:[%s11595_s3 + $0x258] sm:$0xff] }
 0x113   : > { %v10284_v5 = vadd.f32 %v1412_v50, %v1253_v24  ;;  %v1256_v29 = vadd.f32 %v8304_v40, %v10130_v61  ;;  %8689 = vmatprep.mubr.msk.f32.mxu1 %vm419_vm0, %v9834_v59  ;;  %v1422_v56 = vpop.f32.mrf.mxu0  ;;  %8741 = vmatpush3.msra.mxu1 %v7336_v46  ;;  %v10307_v59 = vld [vmem:[%s11595_s3 + $0x298] sm:$0xff] }
 0x114   : > { %v1192_v57 = vpop.f32.mrf.mxu1  ;;  %8773 = vmatpush3.msra.mxu0 %v7360_v47  ;;  %8742 = vmatprep.subr.mxu1 %v7335_v52 }
 0x115   : > { %v10291_v25 = vadd.f32 %v8336_v44, %v1256_v29  ;;  %v1255_v30 = vadd.f32 %v1192_v57, %v10146_v54  ;;  %8774 = vmatprep.subr.mxu0 %v7359_v53  ;;  %v8339_v61 = vpop.f32.mrf.mxu0  ;;  %8722 = vmatmul.mubr.msk.f32.gmra.mxu0 %vm419_vm0, %v9851_v62  ;;  %v11624_v29 = vld [vmem:[#allocation11_spill] sm:$0xff]  ;;  %v7298_v57 = vld [vmem:[%s9728_s13 + $0x111] sm:$0xff] }
 0x116   : > { %v8307_v3 = vpop.f32.mrf.mxu1  ;;  %8690 = vmatmul.mubr.msk.f32.gmra.mxu1 %vm419_vm0, %v9854_v63  ;;  %8724 = vmatprep.mubr.msk.f32.mxu0 %vm419_vm0, %v9857_v0 }
 0x117   : > { %v10309_v54 = vadd.f32 %v1422_v56, %v1255_v30  ;;  %v1258_v1 = vadd.f32 %v8307_v3, %v10153_v9  ;;  %8692 = vmatprep.mubr.msk.f32.mxu1 %vm419_vm0, %v11618_v26  ;;  %v1432_v63 = vpop.f32.mrf.mxu0  ;;  %8743 = vmatpush3.msra.mxu1 %v7335_v52  ;;  %v11623_v52 = vld [vmem:[#allocation7_spill] sm:$0xff] }
 0x118   : > { %v1202_v62 = vpop.f32.mrf.mxu1  ;;  %8775 = vmatpush3.msra.mxu0 %v7359_v53  ;;  %8800 = vmatprep.subr.mxu1 %v10302_v58  ;;  %v4545_v3 = vld [vmem:[%s10358_s22 + $0x1] sm:$0xff] }
 0x119   : > { %v10316_v27 = vadd.f32 %v8339_v61, %v1258_v1  ;;  %v1257_v38 = vadd.f32 %v1202_v62, %v10162_v17  ;;  %8832 = vmatprep.subr.mxu0 %v10307_v59  ;;  %v8342_v45 = vpop.f32.mrf.mxu0  ;;  %8725 = vmatmul.mubr.msk.f32.gmra.mxu0 %vm419_vm0, %v9871_v2  ;;  %v11621_v2 = vld [vmem:[#allocation5_spill] sm:$0xff]  ;;  %v11625_v62 = vld [vmem:[#allocation8_spill] sm:$0xff] }
 0x11a   : > { %v8310_v9 = vpop.f32.mrf.mxu1  ;;  %8693 = vmatmul.mubr.msk.f32.gmra.mxu1 %vm419_vm0, %v11619_v21  ;;  %8727 = vmatprep.mubr.msk.f32.mxu0 %vm419_vm0, %v9877_v4  ;;  %v11622_v4 = vld [vmem:[#allocation6_spill] sm:$0xff] }
 0x11b   : > { %v10330_v0 = vadd.f32 %v1432_v63, %v1257_v38  ;;  %v1260_v17 = vadd.f32 %v8310_v9, %v10169_v39  ;;  %8695 = vmatprep.mubr.msk.f32.mxu1 %vm419_vm0, %v11620_v20  ;;  %v1442_v32 = vpop.f32.mrf.mxu0  ;;  %v10386_v63 = vld [vmem:[%s10358_s22 + $0x11] sm:$0xff]  ;;  %v10392_v21 = vld [vmem:[%s10358_s22 + $0x21] sm:$0xff] }
 0x11c   : > { %v1212_v28 = vpop.f32.mrf.mxu1 }
 0x11d   : > { %v10337_v46 = vadd.f32 %v8342_v45, %v1260_v17  ;;  %v1259_v47 = vadd.f32 %v1212_v28, %v10176_v22  ;;  %v8345_v51 = vpop.f32.mrf.mxu0  ;;  %8728 = vmatmul.mubr.msk.f32.gmra.mxu0 %vm419_vm0, %v9891_v6  ;;  %v7357_v28 = vld [vmem:[%s11595_s3 + $0x250] sm:$0xff] }
 0x11e   : > { %v8313_v31 = vpop.f32.mrf.mxu1  ;;  %8696 = vmatmul.mubr.msk.f32.gmra.mxu1 %vm419_vm0, %v11621_v2  ;;  %8730 = vmatprep.mubr.msk.f32.mxu0 %vm419_vm0, %v9897_v8 }
 0x11f   : > { %v10345_v39 = vadd.f32 %v1442_v32, %v1259_v47  ;;  %v1262_v50 = vadd.f32 %v8313_v31, %v10183_v19  ;;  %8698 = vmatprep.mubr.msk.f32.mxu1 %vm419_vm0, %v11622_v4  ;;  %v1452_v24 = vpop.f32.mrf.mxu0  ;;  %v7397_v32 = vld [vmem:[%s11595_s3 + $0x290] sm:$0xff]  ;;  %v10417_v4 = vld [vmem:[%s10358_s22 + $0x41] sm:$0xff] }
 0x120   : > { %v1222_v22 = vpop.f32.mrf.mxu1  ;;  %v10410_v31 = vld [vmem:[%s10358_s22 + $0x31] sm:$0xff] }
 0x121   : > { %v10352_v40 = vadd.f32 %v8345_v51, %v1262_v50  ;;  %v1261_v44 = vadd.f32 %v1222_v22, %v10190_v23  ;;  %v8348_v19 = vpop.f32.mrf.mxu0  ;;  %8731 = vmatmul.mubr.msk.f32.gmra.mxu0 %vm419_vm0, %v9911_v18  ;;  %v7262_v23 = vld [vmem:[%s9728_s13 + $0x110] sm:$0xff]  ;;  %v11627_v50 = vld [vmem:[#allocation10_spill] sm:$0xff] }
 0x122   : > { %v8316_v6 = vpop.f32.mrf.mxu1  ;;  %8699 = vmatmul.mubr.msk.f32.gmra.mxu1 %vm419_vm0, %v11623_v52  ;;  %8733 = vmatprep.mubr.msk.f32.mxu0 %vm419_vm0, %v10198_v34 }
 0x123   : > { %v10364_v8 = vadd.f32 %v1452_v24, %v1261_v44  ;;  %v1264_v53 = vadd.f32 %v8316_v6, %v10203_v13  ;;  %8701 = vmatprep.mubr.msk.f32.mxu1 %vm419_vm0, %v11624_v29  ;;  %v1462_v30 = vpop.f32.mrf.mxu0  ;;  %v7356_v24 = vld [vmem:[%s11595_s3 + $0x248] sm:$0xff] }
 0x124   : > { %v1232_v56 = vpop.f32.mrf.mxu1  ;;  %v7396_v44 = vld [vmem:[%s11595_s3 + $0x288] sm:$0xff] }
 0x125   : > { %v10374_v61 = vadd.f32 %v8348_v19, %v1264_v53  ;;  %v1263_v18 = vadd.f32 %v1232_v56, %v10213_v11  ;;  %v8351_v26 = vpop.f32.mrf.mxu0  ;;  %8734 = vmatmul.mubr.msk.f32.gmra.mxu0 %vm419_vm0, %v7298_v57  ;;  %v10443_v53 = vld [vmem:[%s10358_s22 + $0x61] sm:$0xff] }
 0x126   : > { %v8319_v1 = vpop.f32.mrf.mxu1  ;;  %8702 = vmatmul.mubr.msk.f32.gmra.mxu1 %vm419_vm0, %v7262_v23  ;;  %8776 = vmatprep.mubr.msk.f32.mxu0 %vm419_vm0, %v4545_v3  ;;  %v7355_v57 = vld [vmem:[%s11595_s3 + $0x240] sm:$0xff] }
 0x127   : > { %v10379_v13 = vadd.f32 %v1462_v30, %v1263_v18  ;;  %v1266_v34 = vadd.f32 %v8319_v1, %v10221_v12  ;;  %8744 = vmatprep.mubr.msk.f32.mxu1 %vm419_vm0, %v11625_v62  ;;  %v1472_v11 = vpop.f32.mrf.mxu0  ;;  %v11626_v12 = vld [vmem:[#allocation9_spill] sm:$0xff]  ;;  %v7395_v56 = vld [vmem:[%s11595_s3 + $0x280] sm:$0xff] }
 0x128   : > { %v1242_v38 = vpop.f32.mrf.mxu1  ;;  %v10469_v1 = vld [vmem:[%s10358_s22 + $0x81] sm:$0xff]  ;;  %v10481_v62 = vld [vmem:[%s11595_s3 + $0x2b8] sm:$0xff] }
 0x129   : > { %v10388_v9 = vadd.f32 %v8351_v26, %v1266_v34  ;;  %v1265_v45 = vadd.f32 %v1242_v38, %v10234_v33  ;;  %v8394_v20 = vpop.f32.mrf.mxu0  ;;  %8777 = vmatmul.mubr.msk.f32.vlgmr.msra.gmra.mxu0 %vm419_vm0, %v10386_v63 }
 0x12a   : > { %v8362_v17 = vpop.f32.mrf.mxu1  ;;  %8745 = vmatmul.mubr.msk.f32.vlgmr.msra.gmra.mxu1 %vm419_vm0, %v11626_v12  ;;  %8833 = vmatpush3.msra.mxu0 %v10307_v59 }
 0x12b   : > { %v10404_v33 = vadd.f32 %v1472_v11, %v1265_v45  ;;  %v1712_v47 = vadd.f32 %v8362_v17, %v10246_v41  ;;  %8801 = vmatpush3.msra.mxu1 %v10302_v58  ;;  %v1863_v2 = vpop.f32.mrf.mxu0  ;;  %8747 = vmatprep.mubr.msk.f32.mxu1 %vm419_vm0, %v11627_v50 }
 0x12c   : > { %v1632_v51 = vpop.f32.mrf.mxu1  ;;  %8779 = vmatprep.mubr.msk.f32.mxu0 %vm419_vm0, %v10392_v21  ;;  %8802 = vmatprep.subr.mxu1 %v7357_v28 }
 0x12d   : > { %v10419_v22 = vadd.f32 %v8394_v20, %v1712_v47  ;;  %v1711_v41 = vadd.f32 %v1632_v51, %v10260_v10  ;;  %8834 = vmatprep.subr.mxu0 %v7397_v32  ;;  %v8397_v59 = vpop.f32.mrf.mxu0  ;;  %8780 = vmatmul.mubr.msk.f32.gmra.mxu0 %vm419_vm0, %v10410_v31  ;;  %v10499_v20 = vld [vmem:[%s10358_s22 + $0xa1] sm:$0xff] }
 0x12e   : > { %v8365_v58 = vpop.f32.mrf.mxu1  ;;  %8748 = vmatmul.mubr.msk.f32.gmra.mxu1 %vm419_vm0, %v9965_v36  ;;  %8782 = vmatprep.mubr.msk.f32.mxu0 %vm419_vm0, %v10417_v4  ;;  %v10440_v36 = vld [vmem:[%s10358_s22 + $0x51] sm:$0xff] }
 0x12f   : > { %v10432_v10 = vadd.f32 %v1863_v2, %v1711_v41  ;;  %v1714_v6 = vadd.f32 %v8365_v58, %v10267_v55  ;;  %8750 = vmatprep.mubr.msk.f32.mxu1 %vm419_vm0, %v9968_v37  ;;  %v1873_v52 = vpop.f32.mrf.mxu0  ;;  %8803 = vmatpush3.msra.mxu1 %v7357_v28 }
 0x130   : > { %v1642_v19 = vpop.f32.mrf.mxu1  ;;  %8835 = vmatpush3.msra.mxu0 %v7397_v32  ;;  %8804 = vmatprep.subr.mxu1 %v7356_v24 }
 0x131   : > { %v10445_v29 = vadd.f32 %v8397_v59, %v1714_v6  ;;  %v1713_v23 = vadd.f32 %v1642_v19, %v10284_v5  ;;  %8836 = vmatprep.subr.mxu0 %v7396_v44  ;;  %v8400_v55 = vpop.f32.mrf.mxu0  ;;  %8783 = vmatmul.mubr.msk.f32.gmra.mxu0 %vm419_vm0, %v10440_v36 }
 0x132   : > { %v8368_v37 = vpop.f32.mrf.mxu1  ;;  %8751 = vmatmul.mubr.msk.f32.gmra.mxu1 %vm419_vm0, %v9985_v42  ;;  %8785 = vmatprep.mubr.msk.f32.mxu0 %vm419_vm0, %v10443_v53  ;;  %v10466_v42 = vld [vmem:[%s10358_s22 + $0x71] sm:$0xff] }
 0x133   : > { %v10458_v5 = vadd.f32 %v1873_v52, %v1713_v23  ;;  %v1716_v30 = vadd.f32 %v8368_v37, %v10291_v25  ;;  %8753 = vmatprep.mubr.msk.f32.mxu1 %vm419_vm0, %v9988_v43  ;;  %v1883_v18 = vpop.f32.mrf.mxu0  ;;  %8805 = vmatpush3.msra.mxu1 %v7356_v24  ;;  %v7334_v37 = vld [vmem:[%s9728_s13 + $0x112] sm:$0xff] }
 0x134   : > { %v1652_v3 = vpop.f32.mrf.mxu1  ;;  %8837 = vmatpush3.msra.mxu0 %v7396_v44  ;;  %8806 = vmatprep.subr.mxu1 %v7355_v57 }
 0x135   : > { %v10471_v26 = vadd.f32 %v8400_v55, %v1716_v30  ;;  %v1715_v34 = vadd.f32 %v1652_v3, %v10309_v54  ;;  %8838 = vmatprep.subr.mxu0 %v7395_v56  ;;  %v8403_v25 = vpop.f32.mrf.mxu0  ;;  %8786 = vmatmul.mubr.msk.f32.gmra.mxu0 %vm419_vm0, %v10466_v42  ;;  %v10486_v54 = vld [vmem:[%s11595_s3 + $0x2d8] sm:$0xff] }
 0x136   : > { %v8371_v43 = vpop.f32.mrf.mxu1  ;;  %8754 = vmatmul.mubr.msk.f32.gmra.mxu1 %vm419_vm0, %v10005_v14  ;;  %8788 = vmatprep.mubr.msk.f32.mxu0 %vm419_vm0, %v10469_v1  ;;  %v10496_v14 = vld [vmem:[%s10358_s22 + $0x91] sm:$0xff] }
 0x137   : > { %v10488_v38 = vadd.f32 %v1883_v18, %v1715_v34  ;;  %v1718_v11 = vadd.f32 %v8371_v43, %v10316_v27  ;;  %8756 = vmatprep.mubr.msk.f32.mxu1 %vm419_vm0, %v10008_v16  ;;  %v1893_v17 = vpop.f32.mrf.mxu0  ;;  %8807 = vmatpush3.msra.mxu1 %v7355_v57  ;;  %v4524_v57 = vld [vmem:[%s10358_s22] sm:$0xff]  ;;  %v10575_v43 = vld [vmem:[%s10358_s22 + $0x10] sm:$0xff] }
 0x138   : > { %v1662_v45 = vpop.f32.mrf.mxu1  ;;  %8839 = vmatpush3.msra.mxu0 %v7395_v56  ;;  %8864 = vmatprep.subr.mxu1 %v10481_v62  ;;  %v4952_v56 = vld [vmem:[%s10358_s22 + $0x2] sm:$0xff] }
 0x139   : > { %v10501_v12 = vadd.f32 %v8403_v25, %v1718_v11  ;;  %v1717_v27 = vadd.f32 %v1662_v45, %v10330_v0  ;;  %8896 = vmatprep.subr.mxu0 %v10486_v54  ;;  %v8406_v28 = vpop.f32.mrf.mxu0  ;;  %8789 = vmatmul.mubr.msk.f32.gmra.mxu0 %vm419_vm0, %v10496_v14  ;;  %v10518_v0 = vld [vmem:[%s10358_s22 + $0xb1] sm:$0xff] }
 0x13a   : > { %v8374_v16 = vpop.f32.mrf.mxu1  ;;  %8757 = vmatmul.mubr.msk.f32.gmra.mxu1 %vm419_vm0, %v10021_v7  ;;  %8791 = vmatprep.mubr.msk.f32.mxu0 %vm419_vm0, %v10499_v20  ;;  %v10521_v7 = vld [vmem:[%s10358_s22 + $0xc1] sm:$0xff]  ;;  %v10578_v25 = vld [vmem:[%s10358_s22 + $0x12] sm:$0xff] }
 0x13b   : > { %v10510_v32 = vadd.f32 %v1893_v17, %v1717_v27  ;;  %v1720_v47 = vadd.f32 %v8374_v16, %v10337_v46  ;;  %8759 = vmatprep.mubr.msk.f32.mxu1 %vm419_vm0, %v10026_v15  ;;  %v1903_v2 = vpop.f32.mrf.mxu0  ;;  %v10584_v27 = vld [vmem:[%s10358_s22 + $0x20] sm:$0xff] }
 0x13c   : > { %v1672_v51 = vpop.f32.mrf.mxu1  ;;  %v10587_v16 = vld [vmem:[%s10358_s22 + $0x22] sm:$0xff] }
 0x13d   : > { %v10523_v50 = vadd.f32 %v8406_v28, %v1720_v47  ;;  %v1719_v41 = vadd.f32 %v1672_v51, %v10345_v39  ;;  %v8409_v46 = vpop.f32.mrf.mxu0  ;;  %8792 = vmatmul.mubr.msk.f32.gmra.mxu0 %vm419_vm0, %v10518_v0  ;;  %v10538_v39 = vld [vmem:[%s10358_s22 + $0xd1] sm:$0xff] }
 0x13e   : > { %v8377_v58 = vpop.f32.mrf.mxu1  ;;  %8760 = vmatmul.mubr.msk.f32.gmra.mxu1 %vm419_vm0, %v10039_v35  ;;  %8794 = vmatprep.mubr.msk.f32.mxu0 %vm419_vm0, %v10521_v7  ;;  %v10541_v35 = vld [vmem:[%s10358_s22 + $0xe1] sm:$0xff]  ;;  %v7433_v47 = vld [vmem:[%s11595_s3 + $0x2b0] sm:$0xff] }
 0x13f   : > { %v10530_v15 = vadd.f32 %v1903_v2, %v1719_v41  ;;  %v1722_v59 = vadd.f32 %v8377_v58, %v10352_v40  ;;  %8762 = vmatprep.mubr.msk.f32.mxu1 %vm419_vm0, %v10044_v49  ;;  %v1913_v44 = vpop.f32.mrf.mxu0  ;;  %v10605_v41 = vld [vmem:[%s10358_s22 + $0x30] sm:$0xff] }
 0x140   : > { %v1682_v24 = vpop.f32.mrf.mxu1  ;;  %v10608_v58 = vld [vmem:[%s10358_s22 + $0x32] sm:$0xff] }
 0x141   : > { %v10543_v6 = vadd.f32 %v8409_v46, %v1722_v59  ;;  %v1721_v40 = vadd.f32 %v1682_v24, %v10364_v8  ;;  %v8412_v52 = vpop.f32.mrf.mxu0  ;;  %8795 = vmatmul.mubr.msk.f32.gmra.mxu0 %vm419_vm0, %v10538_v39  ;;  %v10559_v8 = vld [vmem:[%s10358_s22 + $0xf1] sm:$0xff]  ;;  %v10615_v24 = vld [vmem:[%s10358_s22 + $0x40] sm:$0xff] }
 0x142   : > { %v8380_v19 = vpop.f32.mrf.mxu1  ;;  %8763 = vmatmul.mubr.msk.f32.gmra.mxu1 %vm419_vm0, %v10057_v60  ;;  %8797 = vmatprep.mubr.msk.f32.mxu0 %vm419_vm0, %v10541_v35 }
 0x143   : > { %v10550_v49 = vadd.f32 %v1913_v44, %v1721_v40  ;;  %v1724_v23 = vadd.f32 %v8380_v19, %v10374_v61  ;;  %8765 = vmatprep.mubr.msk.f32.mxu1 %vm419_vm0, %v10201_v48  ;;  %v1923_v60 = vpop.f32.mrf.mxu0  ;;  %v7432_v19 = vld [vmem:[%s11595_s3 + $0x2a8] sm:$0xff] }
 0x144   : > { %v1692_v55 = vpop.f32.mrf.mxu1 }
 0x145   : > { %v10563_v30 = vadd.f32 %v8412_v52, %v1724_v23  ;;  %v1723_v61 = vadd.f32 %v1692_v55, %v10379_v13  ;;  %v8415_v48 = vpop.f32.mrf.mxu0  ;;  %8798 = vmatmul.mubr.msk.f32.gmra.mxu0 %vm419_vm0, %v10559_v8  ;;  %v10644_v55 = vld [vmem:[%s10358_s22 + $0x52] sm:$0xff] }
 0x146   : > { %v8383_v3 = vpop.f32.mrf.mxu1  ;;  %8766 = vmatmul.mubr.msk.f32.gmra.mxu1 %vm419_vm0, %v7334_v37  ;;  %8840 = vmatprep.mubr.msk.f32.mxu0 %vm419_vm0, %v4952_v56  ;;  %v10641_v37 = vld [vmem:[%s10358_s22 + $0x50] sm:$0xff]  ;;  %v10647_v56 = vld [vmem:[%s10358_s22 + $0x60] sm:$0xff] }
 0x147   : > { %v10569_v18 = vadd.f32 %v1923_v60, %v1723_v61  ;;  %v1726_v34 = vadd.f32 %v8383_v3, %v10388_v9  ;;  %8808 = vmatprep.mubr.msk.f32.mxu1 %vm419_vm0, %v4524_v57  ;;  %v1933_v11 = vpop.f32.mrf.mxu0  ;;  %v10650_v61 = vld [vmem:[%s10358_s22 + $0x62] sm:$0xff] }
 0x148   : > { %v1702_v13 = vpop.f32.mrf.mxu1 }
 0x149   : > { %v10580_v45 = vadd.f32 %v8415_v48, %v1726_v34  ;;  %v1725_v17 = vadd.f32 %v1702_v13, %v10404_v33  ;;  %v8458_v28 = vpop.f32.mrf.mxu0  ;;  %8841 = vmatmul.mubr.msk.f32.vlgmr.msra.gmra.mxu0 %vm419_vm0, %v10578_v25  ;;  %v7469_v33 = vld [vmem:[%s11595_s3 + $0x2d0] sm:$0xff]  ;;  %v7431_v13 = vld [vmem:[%s11595_s3 + $0x2a0] sm:$0xff] }
 0x14a   : > { %v8426_v9 = vpop.f32.mrf.mxu1  ;;  %8809 = vmatmul.mubr.msk.f32.vlgmr.msra.gmra.mxu1 %vm419_vm0, %v10575_v43  ;;  %8897 = vmatpush3.msra.mxu0 %v10486_v54 }
 0x14b   : > { %v10599_v51 = vadd.f32 %v1933_v11, %v1725_v17  ;;  %v2173_v2 = vadd.f32 %v8426_v9, %v10419_v22  ;;  %8865 = vmatpush3.msra.mxu1 %v10481_v62  ;;  %v2323_v59 = vpop.f32.mrf.mxu0  ;;  %8811 = vmatprep.mubr.msk.f32.mxu1 %vm419_vm0, %v10584_v27  ;;  %v10618_v22 = vld [vmem:[%s10358_s22 + $0x42] sm:$0xff]  ;;  %v10673_v9 = vld [vmem:[%s10358_s22 + $0x70] sm:$0xff] }
 0x14c   : > { %v2093_v46 = vpop.f32.mrf.mxu1  ;;  %8843 = vmatprep.mubr.msk.f32.mxu0 %vm419_vm0, %v10587_v16  ;;  %8866 = vmatprep.subr.mxu1 %v7433_v47 }
 0x14d   : > { %v10620_v62 = vadd.f32 %v8458_v28, %v2173_v2  ;;  %v2172_v54 = vadd.f32 %v2093_v46, %v10432_v10  ;;  %8898 = vmatprep.subr.mxu0 %v7469_v33  ;;  %v8461_v40 = vpop.f32.mrf.mxu0  ;;  %8844 = vmatmul.mubr.msk.f32.gmra.mxu0 %vm419_vm0, %v10608_v58  ;;  %v7468_v10 = vld [vmem:[%s11595_s3 + $0x2c8] sm:$0xff]  ;;  %v10676_v28 = vld [vmem:[%s10358_s22 + $0x72] sm:$0xff]  ;;  %v10679_v2 = vld [vmem:[%s10358_s22 + $0x80] sm:$0xff] }
 0x14e   : > { %v8429_v44 = vpop.f32.mrf.mxu1  ;;  %8812 = vmatmul.mubr.msk.f32.gmra.mxu1 %vm419_vm0, %v10605_v41  ;;  %8846 = vmatprep.mubr.msk.f32.mxu0 %vm419_vm0, %v10618_v22  ;;  %v10682_v46 = vld [vmem:[%s10358_s22 + $0x82] sm:$0xff] }
 0x14f   : > { %v10633_v52 = vadd.f32 %v2323_v59, %v2172_v54  ;;  %v2175_v23 = vadd.f32 %v8429_v44, %v10445_v29  ;;  %8814 = vmatprep.mubr.msk.f32.mxu1 %vm419_vm0, %v10615_v24  ;;  %v2333_v57 = vpop.f32.mrf.mxu0  ;;  %8867 = vmatpush3.msra.mxu1 %v7433_v47 }
 0x150   : > { %v2103_v60 = vpop.f32.mrf.mxu1  ;;  %8899 = vmatpush3.msra.mxu0 %v7469_v33  ;;  %8868 = vmatprep.subr.mxu1 %v7432_v19 }
 0x151   : > { %v10652_v29 = vadd.f32 %v8461_v40, %v2175_v23  ;;  %v2174_v3 = vadd.f32 %v2103_v60, %v10458_v5  ;;  %8900 = vmatprep.subr.mxu0 %v7468_v10  ;;  %v8464_v34 = vpop.f32.mrf.mxu0  ;;  %8847 = vmatmul.mubr.msk.f32.gmra.mxu0 %vm419_vm0, %v10644_v55  ;;  %v7467_v5 = vld [vmem:[%s11595_s3 + $0x2c0] sm:$0xff]  ;;  %v10694_v40 = vld [vmem:[%s11595_s3 + $0x2f8] sm:$0xff]  ;;  %v10709_v23 = vld [vmem:[%s10358_s22 + $0x90] sm:$0xff] }
 0x152   : > { %v8432_v48 = vpop.f32.mrf.mxu1  ;;  %8815 = vmatmul.mubr.msk.f32.gmra.mxu1 %vm419_vm0, %v10641_v37  ;;  %8849 = vmatprep.mubr.msk.f32.mxu0 %vm419_vm0, %v10650_v61  ;;  %v10712_v60 = vld [vmem:[%s10358_s22 + $0x92] sm:$0xff] }
 0x153   : > { %v10665_v11 = vadd.f32 %v2333_v57, %v2174_v3  ;;  %v2177_v17 = vadd.f32 %v8432_v48, %v10471_v26  ;;  %8817 = vmatprep.mubr.msk.f32.mxu1 %vm419_vm0, %v10647_v56  ;;  %v2343_v33 = vpop.f32.mrf.mxu0  ;;  %8869 = vmatpush3.msra.mxu1 %v7432_v19  ;;  %v10715_v48 = vld [vmem:[%s10358_s22 + $0xa0] sm:$0xff] }
 0x154   : > { %v2113_v47 = vpop.f32.mrf.mxu1  ;;  %8901 = vmatpush3.msra.mxu0 %v7468_v10  ;;  %8870 = vmatprep.subr.mxu1 %v7431_v13 }
 0x155   : > { %11628 = vst [vmem:[#allocation2_spill] sm:$0xff] %v10665_v11  ;;  %v10684_v26 = vadd.f32 %v8464_v34, %v2177_v17  ;;  %v2176_v59 = vadd.f32 %v2113_v47, %v10488_v38  ;;  %8902 = vmatprep.subr.mxu0 %v7467_v5  ;;  %v8467_v44 = vpop.f32.mrf.mxu0  ;;  %8850 = vmatmul.mubr.msk.f32.gmra.mxu0 %vm419_vm0, %v10676_v28  ;;  %v10699_v38 = vld [vmem:[%s11595_s3 + $0x318] sm:$0xff]  ;;  %v10718_v34 = vld [vmem:[%s10358_s22 + $0xa2] sm:$0xff] }
 0x156   : > { %v8435_v54 = vpop.f32.mrf.mxu1  ;;  %8818 = vmatmul.mubr.msk.f32.gmra.mxu1 %vm419_vm0, %v10673_v9  ;;  %8852 = vmatprep.mubr.msk.f32.mxu0 %vm419_vm0, %v10682_v46 }
 0x157   : > { %11629 = vst [vmem:[#allocation3_spill] sm:$0xff] %v10684_v26  ;;  %v10701_v19 = vadd.f32 %v2343_v33, %v2176_v59  ;;  %v2179_v10 = vadd.f32 %v8435_v54, %v10501_v12  ;;  %8820 = vmatprep.mubr.msk.f32.mxu1 %vm419_vm0, %v10679_v2  ;;  %v2353_v3 = vpop.f32.mrf.mxu0  ;;  %8871 = vmatpush3.msra.mxu1 %v7431_v13  ;;  %v10740_v59 = vld [vmem:[%s10358_s22 + $0xb2] sm:$0xff] }
 0x158   : > { %v2123_v57 = vpop.f32.mrf.mxu1  ;;  %8903 = vmatpush3.msra.mxu0 %v7467_v5  ;;  %8928 = vmatprep.subr.mxu1 %v10694_v40 }
 0x159   : > { %11630 = vst [vmem:[#allocation4_spill] sm:$0xff] %v10701_v19  ;;  %v10720_v12 = vadd.f32 %v8467_v44, %v2179_v10  ;;  %v2178_v17 = vadd.f32 %v2123_v57, %v10510_v32  ;;  %8960 = vmatprep.subr.mxu0 %v10699_v38  ;;  %v8470_v33 = vpop.f32.mrf.mxu0  ;;  %8853 = vmatmul.mubr.msk.f32.gmra.mxu0 %vm419_vm0, %v10712_v60  ;;  %v10737_v32 = vld [vmem:[%s10358_s22 + $0xb0] sm:$0xff]  ;;  %v10743_v10 = vld [vmem:[%s10358_s22 + $0xc0] sm:$0xff] }
 0x15a   : > { %v8438_v47 = vpop.f32.mrf.mxu1  ;;  %8821 = vmatmul.mubr.msk.f32.gmra.mxu1 %vm419_vm0, %v10709_v23  ;;  %8855 = vmatprep.mubr.msk.f32.mxu0 %vm419_vm0, %v10718_v34  ;;  %v10746_v57 = vld [vmem:[%s10358_s22 + $0xc2] sm:$0xff] }
 0x15b   : > { %11631 = vst [vmem:[#allocation5_spill] sm:$0xff] %v10720_v12  ;;  %v10729_v13 = vadd.f32 %v2353_v3, %v2178_v17  ;;  %v2181_v5 = vadd.f32 %v8438_v47, %v10523_v50  ;;  %8823 = vmatprep.mubr.msk.f32.mxu1 %vm419_vm0, %v10715_v48  ;;  %v2363_v44 = vpop.f32.mrf.mxu0 }
 0x15c   : > { %v2133_v54 = vpop.f32.mrf.mxu1 }
 0x15d   : > { %11632 = vst [vmem:[#allocation6_spill] sm:$0xff] %v10729_v13  ;;  %v10748_v50 = vadd.f32 %v8470_v33, %v2181_v5  ;;  %v2180_v3 = vadd.f32 %v2133_v54, %v10530_v15  ;;  %v8473_v47 = vpop.f32.mrf.mxu0  ;;  %8856 = vmatmul.mubr.msk.f32.gmra.mxu0 %vm419_vm0, %v10740_v59  ;;  %v10763_v33 = vld [vmem:[%s10358_s22 + $0xd0] sm:$0xff] }
 0x15e   : > { %v8441_v17 = vpop.f32.mrf.mxu1  ;;  %8824 = vmatmul.mubr.msk.f32.gmra.mxu1 %vm419_vm0, %v10737_v32  ;;  %8858 = vmatprep.mubr.msk.f32.mxu0 %vm419_vm0, %v10746_v57  ;;  %v10766_v15 = vld [vmem:[%s10358_s22 + $0xd2] sm:$0xff] }
 0x15f   : > { %11633 = vst [vmem:[#allocation7_spill] sm:$0xff] %v10748_v50  ;;  %v10755_v13 = vadd.f32 %v2363_v44, %v2180_v3  ;;  %v2183_v12 = vadd.f32 %v8441_v17, %v10543_v6  ;;  %8826 = vmatprep.mubr.msk.f32.mxu1 %vm419_vm0, %v10743_v10  ;;  %v2373_v54 = vpop.f32.mrf.mxu0  ;;  %v10769_v50 = vld [vmem:[%s10358_s22 + $0xe0] sm:$0xff] }
 0x160   : > { %v2143_v5 = vpop.f32.mrf.mxu1  ;;  %v10772_v44 = vld [vmem:[%s10358_s22 + $0xe2] sm:$0xff] }
 0x161   : > { %11634 = vst [vmem:[#allocation11_spill] sm:$0xff] %v10755_v13  ;;  %v10774_v3 = vadd.f32 %v8473_v47, %v2183_v12  ;;  %v2182_v6 = vadd.f32 %v2143_v5, %v10550_v49  ;;  %v8476_v13 = vpop.f32.mrf.mxu0  ;;  %8859 = vmatmul.mubr.msk.f32.gmra.mxu0 %vm419_vm0, %v10766_v15  ;;  %v10789_v12 = vld [vmem:[%s10358_s22 + $0xf0] sm:$0xff] }
 0x162   : > { %v8444_v17 = vpop.f32.mrf.mxu1  ;;  %8827 = vmatmul.mubr.msk.f32.gmra.mxu1 %vm419_vm0, %v10763_v33  ;;  %8861 = vmatprep.mubr.msk.f32.mxu0 %vm419_vm0, %v10772_v44  ;;  %v10792_v49 = vld [vmem:[%s10358_s22 + $0xf2] sm:$0xff] }
 0x163   : > { %11635 = vst [vmem:[#allocation8_spill] sm:$0xff] %v10774_v3  ;;  %v10781_v19 = vadd.f32 %v2373_v54, %v2182_v6  ;;  %v2185_v26 = vadd.f32 %v8444_v17, %v10563_v30  ;;  %8829 = vmatprep.mubr.msk.f32.mxu1 %vm419_vm0, %v10769_v50  ;;  %v2383_v5 = vpop.f32.mrf.mxu0 }
 0x164   : > { %v2153_v47 = vpop.f32.mrf.mxu1 }
 0x165   : > { %11636 = vst [vmem:[#allocation9_spill] sm:$0xff] %v10781_v19  ;;  %v10794_v3 = vadd.f32 %v8476_v13, %v2185_v26  ;;  %v2184_v11 = vadd.f32 %v2153_v47, %v10569_v18  ;;  %v8479_v6 = vpop.f32.mrf.mxu0  ;;  %8862 = vmatmul.mubr.msk.f32.gmra.mxu0 %vm419_vm0, %v10792_v49 }
 0x166   : > { %v8447_v54 = vpop.f32.mrf.mxu1  ;;  %8830 = vmatmul.mubr.msk.f32.gmra.mxu1 %vm419_vm0, %v10789_v12  ;;  %8904 = vmatprep.mubr.msk.f32.mxu0 %vm419_vm0, %v10386_v63  ;;  %v7541_v63 = vld [vmem:[%s11595_s3 + $0x310] sm:$0xff] }
 0x167   : > { %11637 = vst [vmem:[#allocation10_spill] sm:$0xff] %v10794_v3  ;;  %v10801_v30 = vadd.f32 %v2383_v5, %v2184_v11  ;;  %v2187_v17 = vadd.f32 %v8447_v54, %v10580_v45  ;;  %8872 = vmatprep.mubr.msk.f32.mxu1 %vm419_vm0, %v10575_v43  ;;  %v2393_v18 = vpop.f32.mrf.mxu0  ;;  %v7505_v43 = vld [vmem:[%s11595_s3 + $0x2f0] sm:$0xff] }
 0x168   : > { %v2163_v26 = vpop.f32.mrf.mxu1 }
 0x169   : > { %v10808_v13 = vadd.f32 %v8479_v6, %v2187_v17  ;;  %v2186_v47 = vadd.f32 %v2163_v26, %v10599_v51  ;;  %v8522_v19 = vpop.f32.mrf.mxu0  ;;  %8905 = vmatmul.mubr.msk.f32.vlgmr.msra.gmra.mxu0 %vm419_vm0, %v10392_v21 }
 0x16a   : > { %v8490_v3 = vpop.f32.mrf.mxu1  ;;  %8873 = vmatmul.mubr.msk.f32.vlgmr.msra.gmra.mxu1 %vm419_vm0, %v10584_v27  ;;  %8961 = vmatpush3.msra.mxu0 %v10699_v38 }
 0x16b   : > { %v10821_v45 = vadd.f32 %v2393_v18, %v2186_v47  ;;  %v10823_v11 = vadd.f32 %v8522_v19, %v8490_v3  ;;  %8929 = vmatpush3.msra.mxu1 %v10694_v40  ;;  %v2800_v5 = vpop.f32.mrf.mxu0  ;;  %8875 = vmatprep.mubr.msk.f32.mxu1 %vm419_vm0, %v10605_v41  ;;  %v7504_v40 = vld [vmem:[%s11595_s3 + $0x2e8] sm:$0xff]  ;;  %v7539_v18 = vld [vmem:[%s11595_s3 + $0x300] sm:$0xff] }
 0x16c   : > { %v2607_v51 = vpop.f32.mrf.mxu1  ;;  %8907 = vmatprep.mubr.msk.f32.mxu0 %vm419_vm0, %v10410_v31  ;;  %8930 = vmatprep.subr.mxu1 %v7505_v43  ;;  %v7540_v31 = vld [vmem:[%s11595_s3 + $0x308] sm:$0xff] }
 0x16d   : > { %v10831_v21 = vadd.f32 %v2800_v5, %v2607_v51  ;;  %8962 = vmatprep.subr.mxu0 %v7541_v63  ;;  %v8525_v6 = vpop.f32.mrf.mxu0  ;;  %8908 = vmatmul.mubr.msk.f32.gmra.mxu0 %vm419_vm0, %v10417_v4 }
 0x16e   : > { %v8493_v54 = vpop.f32.mrf.mxu1  ;;  %8876 = vmatmul.mubr.msk.f32.gmra.mxu1 %vm419_vm0, %v10615_v24  ;;  %8910 = vmatprep.mubr.msk.f32.mxu0 %vm419_vm0, %v10440_v36  ;;  %v7503_v36 = vld [vmem:[%s11595_s3 + $0x2e0] sm:$0xff] }
 0x16f   : > { %v10843_v38 = vadd.f32 %v8525_v6, %v8493_v54  ;;  %8878 = vmatprep.mubr.msk.f32.mxu1 %vm419_vm0, %v10641_v37  ;;  %v2810_v3 = vpop.f32.mrf.mxu0  ;;  %8931 = vmatpush3.msra.mxu1 %v7505_v43  ;;  %v7614_v54 = vld [vmem:[%s11595_s3 + $0x358] sm:$0xff] }
 0x170   : > { %v2617_v19 = vpop.f32.mrf.mxu1  ;;  %8963 = vmatpush3.msra.mxu0 %v7541_v63  ;;  %8932 = vmatprep.subr.mxu1 %v7504_v40 }
 0x171   : > { %v10849_v4 = vadd.f32 %v2810_v3, %v2617_v19  ;;  %8964 = vmatprep.subr.mxu0 %v7540_v31  ;;  %v8528_v26 = vpop.f32.mrf.mxu0  ;;  %8911 = vmatmul.mubr.msk.f32.gmra.mxu0 %vm419_vm0, %v10443_v53 }
 0x172   : > { %v8496_v17 = vpop.f32.mrf.mxu1  ;;  %8879 = vmatmul.mubr.msk.f32.gmra.mxu1 %vm419_vm0, %v10647_v56  ;;  %8913 = vmatprep.mubr.msk.f32.mxu0 %vm419_vm0, %v10466_v42  ;;  %v7578_v42 = vld [vmem:[%s11595_s3 + $0x338] sm:$0xff] }
 0x173   : > { %v10861_v47 = vadd.f32 %v8528_v26, %v8496_v17  ;;  %8881 = vmatprep.mubr.msk.f32.mxu1 %vm419_vm0, %v10673_v9  ;;  %v2820_v63 = vpop.f32.mrf.mxu0  ;;  %8933 = vmatpush3.msra.mxu1 %v7504_v40 }
 0x174   : > { %v2627_v43 = vpop.f32.mrf.mxu1  ;;  %8965 = vmatpush3.msra.mxu0 %v7540_v31  ;;  %8934 = vmatprep.subr.mxu1 %v7503_v36 }
 0x175   : > { %v10867_v53 = vadd.f32 %v2820_v63, %v2627_v43  ;;  %8966 = vmatprep.subr.mxu0 %v7539_v18  ;;  %v8531_v5 = vpop.f32.mrf.mxu0  ;;  %8914 = vmatmul.mubr.msk.f32.gmra.mxu0 %vm419_vm0, %v10469_v1 }
 0x176   : > { %v8499_v51 = vpop.f32.mrf.mxu1  ;;  %8882 = vmatmul.mubr.msk.f32.gmra.mxu1 %vm419_vm0, %v10679_v2  ;;  %8916 = vmatprep.mubr.msk.f32.mxu0 %vm419_vm0, %v10496_v14 }
 0x177   : > { %v10879_v6 = vadd.f32 %v8531_v5, %v8499_v51  ;;  %8884 = vmatprep.mubr.msk.f32.mxu1 %vm419_vm0, %v10709_v23  ;;  %v2830_v31 = vpop.f32.mrf.mxu0  ;;  %8935 = vmatpush3.msra.mxu1 %v7503_v36 }
 0x178   : > { %v2637_v40 = vpop.f32.mrf.mxu1  ;;  %8967 = vmatpush3.msra.mxu0 %v7539_v18  ;;  %8992 = vmatprep.subr.mxu1 %v7578_v42 }
 0x179   : > { %v10885_v1 = vadd.f32 %v2830_v31, %v2637_v40  ;;  %9024 = vmatprep.subr.mxu0 %v7614_v54  ;;  %v8534_v3 = vpop.f32.mrf.mxu0  ;;  %8917 = vmatmul.mubr.msk.f32.gmra.mxu0 %vm419_vm0, %v10499_v20  ;;  %v10925_v31 = vld [vmem:[%s10358_s22 + $0x101] sm:$0xff] }
 0x17a   : > { %v8502_v19 = vpop.f32.mrf.mxu1  ;;  %8885 = vmatmul.mubr.msk.f32.gmra.mxu1 %vm419_vm0, %v10715_v48  ;;  %8919 = vmatprep.mubr.msk.f32.mxu0 %vm419_vm0, %v10518_v0 }
 0x17b   : > { %v10891_v17 = vadd.f32 %v8534_v3, %v8502_v19  ;;  %8887 = vmatprep.mubr.msk.f32.mxu1 %vm419_vm0, %v10737_v32  ;;  %v2840_v26 = vpop.f32.mrf.mxu0 }
 0x17c   : > { %v2647_v14 = vpop.f32.mrf.mxu1 }
 0x17d   : > { %v10897_v36 = vadd.f32 %v2840_v26, %v2647_v14  ;;  %v8537_v43 = vpop.f32.mrf.mxu0  ;;  %8920 = vmatmul.mubr.msk.f32.gmra.mxu0 %vm419_vm0, %v10521_v7 }
 0x17e   : > { %v8505_v18 = vpop.f32.mrf.mxu1  ;;  %8888 = vmatmul.mubr.msk.f32.gmra.mxu1 %vm419_vm0, %v10743_v10  ;;  %8922 = vmatprep.mubr.msk.f32.mxu0 %vm419_vm0, %v10538_v39  ;;  %v10922_v39 = vld [vmem:[%s10358_s22 + $0x100] sm:$0xff] }
 0x17f   : > { %v10903_v20 = vadd.f32 %v8537_v43, %v8505_v18  ;;  %8890 = vmatprep.mubr.msk.f32.mxu1 %vm419_vm0, %v10763_v33  ;;  %v2850_v63 = vpop.f32.mrf.mxu0 }
 0x180   : > { %v2657_v0 = vpop.f32.mrf.mxu1 }
 0x181   : > { %v10909_v51 = vadd.f32 %v2850_v63, %v2657_v0  ;;  %v8540_v40 = vpop.f32.mrf.mxu0  ;;  %8923 = vmatmul.mubr.msk.f32.gmra.mxu0 %vm419_vm0, %v10541_v35 }
 0x182   : > { %v8508_v5 = vpop.f32.mrf.mxu1  ;;  %8891 = vmatmul.mubr.msk.f32.gmra.mxu1 %vm419_vm0, %v10769_v50  ;;  %8925 = vmatprep.mubr.msk.f32.mxu0 %vm419_vm0, %v10559_v8 }
 0x183   : > { %v10915_v7 = vadd.f32 %v8540_v40, %v8508_v5  ;;  %8893 = vmatprep.mubr.msk.f32.mxu1 %vm419_vm0, %v10789_v12  ;;  %v2860_v3 = vpop.f32.mrf.mxu0  ;;  %v7577_v40 = vld [vmem:[%s11595_s3 + $0x330] sm:$0xff] }
 0x184   : > { %v2667_v19 = vpop.f32.mrf.mxu1 }
 0x185   : > { %v10927_v14 = vadd.f32 %v2860_v3, %v2667_v19  ;;  %v8543_v18 = vpop.f32.mrf.mxu0  ;;  %8926 = vmatmul.mubr.msk.f32.gmra.mxu0 %vm419_vm0, %v10925_v31 }
 0x186   : > { %v8511_v26 = vpop.f32.mrf.mxu1  ;;  %8894 = vmatmul.mubr.msk.f32.gmra.mxu1 %vm419_vm0, %v10922_v39  ;;  %8968 = vmatprep.mubr.msk.f32.mxu0 %vm419_vm0, %v10584_v27 }
 0x187   : > { %v10933_v35 = vadd.f32 %v8543_v18, %v8511_v26  ;;  %8936 = vmatprep.mubr.msk.f32.mxu1 %vm419_vm0, %v10578_v25  ;;  %v2870_v43 = vpop.f32.mrf.mxu0  ;;  %v7613_v25 = vld [vmem:[%s11595_s3 + $0x350] sm:$0xff] }
 0x188   : > { %v2677_v8 = vpop.f32.mrf.mxu1 }
 0x189   : > { %v10939_v0 = vadd.f32 %v2870_v43, %v2677_v8  ;;  %v8586_v5 = vpop.f32.mrf.mxu0  ;;  %8969 = vmatmul.mubr.msk.f32.vlgmr.msra.gmra.mxu0 %vm419_vm0, %v10605_v41 }
 0x18a   : > { %v8554_v63 = vpop.f32.mrf.mxu1  ;;  %8937 = vmatmul.mubr.msk.f32.vlgmr.msra.gmra.mxu1 %vm419_vm0, %v10587_v16  ;;  %9025 = vmatpush3.msra.mxu0 %v7614_v54 }
 0x18b   : > { %v3094_v27 = vadd.f32 %v8554_v63, %v10823_v11  ;;  %8993 = vmatpush3.msra.mxu1 %v7578_v42  ;;  %v3245_v3 = vpop.f32.mrf.mxu0  ;;  %8939 = vmatprep.mubr.msk.f32.mxu1 %vm419_vm0, %v10608_v58  ;;  %v7576_v11 = vld [vmem:[%s11595_s3 + $0x328] sm:$0xff] }
 0x18c   : > { %v3014_v19 = vpop.f32.mrf.mxu1  ;;  %8971 = vmatprep.mubr.msk.f32.mxu0 %vm419_vm0, %v10615_v24  ;;  %8994 = vmatprep.subr.mxu1 %v7577_v40  ;;  %v7612_v24 = vld [vmem:[%s11595_s3 + $0x348] sm:$0xff] }
 0x18d   : > { %v10956_v41 = vadd.f32 %v8586_v5, %v3094_v27  ;;  %v3093_v26 = vadd.f32 %v3014_v19, %v10831_v21  ;;  %9026 = vmatprep.subr.mxu0 %v7613_v25  ;;  %v8589_v8 = vpop.f32.mrf.mxu0  ;;  %8972 = vmatmul.mubr.msk.f32.gmra.mxu0 %vm419_vm0, %v10641_v37 }
 0x18e   : > { %v8557_v18 = vpop.f32.mrf.mxu1  ;;  %8940 = vmatmul.mubr.msk.f32.gmra.mxu1 %vm419_vm0, %v10618_v22  ;;  %8974 = vmatprep.mubr.msk.f32.mxu0 %vm419_vm0, %v10647_v56  ;;  %v7575_v56 = vld [vmem:[%s11595_s3 + $0x320] sm:$0xff] }
 0x18f   : > { %v10969_v42 = vadd.f32 %v3245_v3, %v3093_v26  ;;  %v3096_v21 = vadd.f32 %v8557_v18, %v10843_v38  ;;  %8942 = vmatprep.mubr.msk.f32.mxu1 %vm419_vm0, %v10644_v55  ;;  %v3255_v37 = vpop.f32.mrf.mxu0  ;;  %8995 = vmatpush3.msra.mxu1 %v7577_v40  ;;  %v7611_v38 = vld [vmem:[%s11595_s3 + $0x340] sm:$0xff] }
 0x190   : > { %v3024_v54 = vpop.f32.mrf.mxu1  ;;  %9027 = vmatpush3.msra.mxu0 %v7613_v25  ;;  %8996 = vmatprep.subr.mxu1 %v7576_v11 }
 0x191   : > { %v10976_v43 = vadd.f32 %v8589_v8, %v3096_v21  ;;  %v3095_v63 = vadd.f32 %v3024_v54, %v10849_v4  ;;  %9028 = vmatprep.subr.mxu0 %v7612_v24  ;;  %v8592_v27 = vpop.f32.mrf.mxu0  ;;  %8975 = vmatmul.mubr.msk.f32.gmra.mxu0 %vm419_vm0, %v10673_v9 }
 0x192   : > { %v8560_v5 = vpop.f32.mrf.mxu1  ;;  %8943 = vmatmul.mubr.msk.f32.gmra.mxu1 %vm419_vm0, %v10650_v61  ;;  %8977 = vmatprep.mubr.msk.f32.mxu0 %vm419_vm0, %v10679_v2 }
 0x193   : > { %v10989_v40 = vadd.f32 %v3255_v37, %v3095_v63  ;;  %v3098_v4 = vadd.f32 %v8560_v5, %v10861_v47  ;;  %8945 = vmatprep.mubr.msk.f32.mxu1 %vm419_vm0, %v10676_v28  ;;  %v3265_v9 = vpop.f32.mrf.mxu0  ;;  %8997 = vmatpush3.msra.mxu1 %v7576_v11 }
 0x194   : > { %v3034_v25 = vpop.f32.mrf.mxu1  ;;  %9029 = vmatpush3.msra.mxu0 %v7612_v24  ;;  %8998 = vmatprep.subr.mxu1 %v7575_v56 }
 0x195   : > { %v10996_v19 = vadd.f32 %v8592_v27, %v3098_v4  ;;  %v3097_v3 = vadd.f32 %v3034_v25, %v10867_v53  ;;  %9030 = vmatprep.subr.mxu0 %v7611_v38  ;;  %v8595_v18 = vpop.f32.mrf.mxu0  ;;  %8978 = vmatmul.mubr.msk.f32.gmra.mxu0 %vm419_vm0, %v10709_v23 }
 0x196   : > { %v8563_v26 = vpop.f32.mrf.mxu1  ;;  %8946 = vmatmul.mubr.msk.f32.gmra.mxu1 %vm419_vm0, %v10682_v46  ;;  %8980 = vmatprep.mubr.msk.f32.mxu0 %vm419_vm0, %v10715_v48 }
 0x197   : > { %v11003_v47 = vadd.f32 %v3265_v9, %v3097_v3  ;;  %v3100_v2 = vadd.f32 %v8563_v26, %v10879_v6  ;;  %8948 = vmatprep.mubr.msk.f32.mxu1 %vm419_vm0, %v10712_v60  ;;  %v3275_v8 = vpop.f32.mrf.mxu0  ;;  %8999 = vmatpush3.msra.mxu1 %v7575_v56  ;;  %v7559_v26 = vld [vmem:[%s10358_s22 + $0x21] sm:$0xff] }
 0x198   : > { %v3044_v53 = vpop.f32.mrf.mxu1  ;;  %9031 = vmatpush3.msra.mxu0 %v7611_v38 }
 0x199   : > { %v11010_v11 = vadd.f32 %v8595_v18, %v3100_v2  ;;  %v3099_v24 = vadd.f32 %v3044_v53, %v10885_v1  ;;  %v8598_v23 = vpop.f32.mrf.mxu0  ;;  %8981 = vmatmul.mubr.msk.f32.gmra.mxu0 %vm419_vm0, %v10737_v32 }
 0x19a   : > { %v8566_v21 = vpop.f32.mrf.mxu1  ;;  %8949 = vmatmul.mubr.msk.f32.gmra.mxu1 %vm419_vm0, %v10718_v34  ;;  %8983 = vmatprep.mubr.msk.f32.mxu0 %vm419_vm0, %v10743_v10 }
 0x19b   : > { %v11017_v6 = vadd.f32 %v3275_v8, %v3099_v24  ;;  %v3102_v48 = vadd.f32 %v8566_v21, %v10891_v17  ;;  %8951 = vmatprep.mubr.msk.f32.mxu1 %vm419_vm0, %v10740_v59  ;;  %v3285_v1 = vpop.f32.mrf.mxu0  ;;  %v7560_v8 = vld [vmem:[%s10358_s22 + $0x31] sm:$0xff]  ;;  %v7561_v21 = vld [vmem:[%s10358_s22 + $0x41] sm:$0xff] }
 0x19c   : > { %v3054_v54 = vpop.f32.mrf.mxu1 }
 0x19d   : > { %v11024_v37 = vadd.f32 %v8598_v23, %v3102_v48  ;;  %v3101_v63 = vadd.f32 %v3054_v54, %v10897_v36  ;;  %v8601_v27 = vpop.f32.mrf.mxu0  ;;  %8984 = vmatmul.mubr.msk.f32.gmra.mxu0 %vm419_vm0, %v10763_v33 }
 0x19e   : > { %v8569_v5 = vpop.f32.mrf.mxu1  ;;  %8952 = vmatmul.mubr.msk.f32.gmra.mxu1 %vm419_vm0, %v10746_v57  ;;  %8986 = vmatprep.mubr.msk.f32.mxu0 %vm419_vm0, %v10769_v50  ;;  %v11053_v50 = vld [vmem:[%s10358_s22 + $0x102] sm:$0xff] }
 0x19f   : > { %v11031_v32 = vadd.f32 %v3285_v1, %v3101_v63  ;;  %v3104_v17 = vadd.f32 %v8569_v5, %v10903_v20  ;;  %8954 = vmatprep.mubr.msk.f32.mxu1 %vm419_vm0, %v10766_v15  ;;  %v3295_v36 = vpop.f32.mrf.mxu0  ;;  %v7562_v63 = vld [vmem:[%s10358_s22 + $0x51] sm:$0xff] }
 0x1a0   : > { %v3064_v10 = vpop.f32.mrf.mxu1 }
 0x1a1   : > { %v11038_v56 = vadd.f32 %v8601_v27, %v3104_v17  ;;  %v3103_v38 = vadd.f32 %v3064_v10, %v10909_v51  ;;  %v8604_v4 = vpop.f32.mrf.mxu0  ;;  %8987 = vmatmul.mubr.msk.f32.gmra.mxu0 %vm419_vm0, %v10789_v12  ;;  %v7538_v51 = vld [vmem:[%s10358_s22 + $0x110] sm:$0xff]  ;;  %v7563_v27 = vld [vmem:[%s10358_s22 + $0x61] sm:$0xff] }
 0x1a2   : > { %v8572_v33 = vpop.f32.mrf.mxu1  ;;  %8955 = vmatmul.mubr.msk.f32.gmra.mxu1 %vm419_vm0, %v10772_v44  ;;  %8989 = vmatprep.mubr.msk.f32.mxu0 %vm419_vm0, %v10922_v39 }
 0x1a3   : > { %v11045_v20 = vadd.f32 %v3295_v36, %v3103_v38  ;;  %v3106_v25 = vadd.f32 %v8572_v33, %v10915_v7  ;;  %8957 = vmatprep.mubr.msk.f32.mxu1 %vm419_vm0, %v10792_v49  ;;  %v3305_v3 = vpop.f32.mrf.mxu0 }
 0x1a4   : > { %v3074_v9 = vpop.f32.mrf.mxu1 }
 0x1a5   : > { %v11057_v18 = vadd.f32 %v8604_v4, %v3106_v25  ;;  %v3105_v12 = vadd.f32 %v3074_v9, %v10927_v14  ;;  %v8607_v7 = vpop.f32.mrf.mxu0  ;;  %8990 = vmatmul.mubr.msk.f32.gmra.mxu0 %vm419_vm0, %v7538_v51  ;;  %v7565_v4 = vld [vmem:[%s10358_s22 + $0x81] sm:$0xff] }
 0x1a6   : > { %v8575_v2 = vpop.f32.mrf.mxu1  ;;  %8958 = vmatmul.mubr.msk.f32.gmra.mxu1 %vm419_vm0, %v11053_v50  ;;  %9032 = vmatprep.mubr.msk.f32.mxu0 %vm419_vm0, %v10587_v16 }
 0x1a7   : > { %v11063_v39 = vadd.f32 %v3305_v3, %v3105_v12  ;;  %v3108_v53 = vadd.f32 %v8575_v2, %v10933_v35  ;;  %9000 = vmatprep.mubr.msk.f32.mxu1 %vm419_vm0, %v7559_v26  ;;  %v3315_v14 = vpop.f32.mrf.mxu0  ;;  %v7567_v12 = vld [vmem:[%s10358_s22 + $0xa1] sm:$0xff] }
 0x1a8   : > { %v3084_v24 = vpop.f32.mrf.mxu1 }
 0x1a9   : > { %v11071_v23 = vadd.f32 %v8607_v7, %v3108_v53  ;;  %v3107_v48 = vadd.f32 %v3084_v24, %v10939_v0  ;;  %v8650_v1 = vpop.f32.mrf.mxu0  ;;  %9033 = vmatmul.mubr.msk.f32.vlgmr.msra.gmra.mxu0 %vm419_vm0, %v10608_v58 }
 0x1aa   : > { %v8618_v54 = vpop.f32.mrf.mxu1  ;;  %9001 = vmatmul.mubr.msk.f32.vlgmr.msra.gmra.mxu1 %vm419_vm0, %v7560_v8  ;;  %9035 = vmatprep.mubr.msk.f32.mxu0 %vm419_vm0, %v10618_v22  ;;  %v7564_v22 = vld [vmem:[%s10358_s22 + $0x71] sm:$0xff] }
 0x1ab   : > { %v11077_v35 = vadd.f32 %v3315_v14, %v3107_v48  ;;  %v3555_v16 = vadd.f32 %v8618_v54, %v10956_v41  ;;  %9003 = vmatprep.mubr.msk.f32.mxu1 %vm419_vm0, %v7561_v21  ;;  %v3705_v0 = vpop.f32.mrf.mxu0  ;;  %v7569_v14 = vld [vmem:[%s10358_s22 + $0xc1] sm:$0xff] }
 0x1ac   : > { %v3475_v5 = vpop.f32.mrf.mxu1 }
 0x1ad   : > { %v11085_v17 = vadd.f32 %v8650_v1, %v3555_v16  ;;  %v3554_v10 = vadd.f32 %v3475_v5, %v10969_v42  ;;  %v8653_v36 = vpop.f32.mrf.mxu0  ;;  %9036 = vmatmul.mubr.msk.f32.gmra.mxu0 %vm419_vm0, %v10644_v55 }
 0x1ae   : > { %v8621_v58 = vpop.f32.mrf.mxu1  ;;  %9004 = vmatmul.mubr.msk.f32.gmra.mxu1 %vm419_vm0, %v7562_v63  ;;  %9038 = vmatprep.mubr.msk.f32.mxu0 %vm419_vm0, %v10650_v61  ;;  %v7566_v61 = vld [vmem:[%s10358_s22 + $0x91] sm:$0xff]  ;;  %v7571_v63 = vld [vmem:[%s10358_s22 + $0xe1] sm:$0xff] }
 0x1af   : > { %v11091_v41 = vadd.f32 %v3705_v0, %v3554_v10  ;;  %v3557_v38 = vadd.f32 %v8621_v58, %v10976_v43  ;;  %9006 = vmatprep.mubr.msk.f32.mxu1 %vm419_vm0, %v7563_v27  ;;  %v3715_v42 = vpop.f32.mrf.mxu0 }
 0x1b0   : > { %v3485_v33 = vpop.f32.mrf.mxu1 }
 0x1b1   : > { %v11099_v25 = vadd.f32 %v8653_v36, %v3557_v38  ;;  %v3556_v51 = vadd.f32 %v3485_v33, %v10989_v40  ;;  %v8656_v9 = vpop.f32.mrf.mxu0  ;;  %9039 = vmatmul.mubr.msk.f32.gmra.mxu0 %vm419_vm0, %v10676_v28 }
 0x1b2   : > { %v8624_v55 = vpop.f32.mrf.mxu1  ;;  %9007 = vmatmul.mubr.msk.f32.gmra.mxu1 %vm419_vm0, %v7564_v22  ;;  %9041 = vmatprep.mubr.msk.f32.mxu0 %vm419_vm0, %v10682_v46  ;;  %v7568_v46 = vld [vmem:[%s10358_s22 + $0xb1] sm:$0xff] }
 0x1b3   : > { %v11105_v43 = vadd.f32 %v3715_v42, %v3556_v51  ;;  %v3559_v3 = vadd.f32 %v8624_v55, %v10996_v19  ;;  %9009 = vmatprep.mubr.msk.f32.mxu1 %vm419_vm0, %v7565_v4  ;;  %v3725_v40 = vpop.f32.mrf.mxu0  ;;  %v7610_v42 = vld [vmem:[%s10358_s22 + $0x112] sm:$0xff] }
 0x1b4   : > { %v3495_v26 = vpop.f32.mrf.mxu1 }
 0x1b5   : > { %v11113_v2 = vadd.f32 %v8656_v9, %v3559_v3  ;;  %v3558_v7 = vadd.f32 %v3495_v26, %v11003_v47  ;;  %v8659_v53 = vpop.f32.mrf.mxu0  ;;  %9042 = vmatmul.mubr.msk.f32.gmra.mxu0 %vm419_vm0, %v10712_v60 }
 0x1b6   : > { %v8627_v28 = vpop.f32.mrf.mxu1  ;;  %9010 = vmatmul.mubr.msk.f32.gmra.mxu1 %vm419_vm0, %v7566_v61  ;;  %9044 = vmatprep.mubr.msk.f32.mxu0 %vm419_vm0, %v10718_v34  ;;  %v7570_v34 = vld [vmem:[%s10358_s22 + $0xd1] sm:$0xff] }
 0x1b7   : > { %v11119_v19 = vadd.f32 %v3725_v40, %v3558_v7  ;;  %v3561_v8 = vadd.f32 %v8627_v28, %v11010_v11  ;;  %9012 = vmatprep.mubr.msk.f32.mxu1 %vm419_vm0, %v7567_v12  ;;  %v3735_v47 = vpop.f32.mrf.mxu0 }
 0x1b8   : > { %v3505_v24 = vpop.f32.mrf.mxu1 }
 0x1b9   : > { %v11127_v21 = vadd.f32 %v8659_v53, %v3561_v8  ;;  %v3560_v48 = vadd.f32 %v3505_v24, %v11017_v6  ;;  %v8662_v54 = vpop.f32.mrf.mxu0  ;;  %9045 = vmatmul.mubr.msk.f32.gmra.mxu0 %vm419_vm0, %v10740_v59 }
 0x1ba   : > { %v8630_v60 = vpop.f32.mrf.mxu1  ;;  %9013 = vmatmul.mubr.msk.f32.gmra.mxu1 %vm419_vm0, %v7568_v46  ;;  %9047 = vmatprep.mubr.msk.f32.mxu0 %vm419_vm0, %v10746_v57  ;;  %v7572_v57 = vld [vmem:[%s10358_s22 + $0xf1] sm:$0xff] }
 0x1bb   : > { %v11133_v11 = vadd.f32 %v3735_v47, %v3560_v48  ;;  %v3563_v1 = vadd.f32 %v8630_v60, %v11024_v37  ;;  %9015 = vmatprep.mubr.msk.f32.mxu1 %vm419_vm0, %v7569_v14  ;;  %v3745_v6 = vpop.f32.mrf.mxu0 }
 0x1bc   : > { %v3515_v16 = vpop.f32.mrf.mxu1 }
 0x1bd   : > { %v11141_v5 = vadd.f32 %v8662_v54, %v3563_v1  ;;  %v3562_v0 = vadd.f32 %v3515_v16, %v11031_v32  ;;  %v8665_v59 = vpop.f32.mrf.mxu0  ;;  %9048 = vmatmul.mubr.msk.f32.gmra.mxu0 %vm419_vm0, %v10766_v15 }
 0x1be   : > { %v8633_v27 = vpop.f32.mrf.mxu1  ;;  %9016 = vmatmul.mubr.msk.f32.gmra.mxu1 %vm419_vm0, %v7570_v34  ;;  %9050 = vmatprep.mubr.msk.f32.mxu0 %vm419_vm0, %v10772_v44  ;;  %v7574_v44 = vld [vmem:[%s10358_s22 + $0x111] sm:$0xff] }
 0x1bf   : > { %v11147_v37 = vadd.f32 %v3745_v6, %v3562_v0  ;;  %v3565_v10 = vadd.f32 %v8633_v27, %v11038_v56  ;;  %9018 = vmatprep.mubr.msk.f32.mxu1 %vm419_vm0, %v7571_v63  ;;  %v3755_v58 = vpop.f32.mrf.mxu0 }
 0x1c0   : > { %v3525_v32 = vpop.f32.mrf.mxu1 }
 0x1c1   : > { %v11154_v36 = vadd.f32 %v8665_v59, %v3565_v10  ;;  %v3564_v38 = vadd.f32 %v3525_v32, %v11045_v20  ;;  %v8668_v15 = vpop.f32.mrf.mxu0  ;;  %9051 = vmatmul.mubr.msk.f32.gmra.mxu0 %vm419_vm0, %v10792_v49 }
 0x1c2   : > { %v8636_v22 = vpop.f32.mrf.mxu1  ;;  %9019 = vmatmul.mubr.msk.f32.gmra.mxu1 %vm419_vm0, %v7572_v57  ;;  %9053 = vmatprep.mubr.msk.f32.mxu0 %vm419_vm0, %v11053_v50 }
 0x1c3   : > { %v11160_v56 = vadd.f32 %v3755_v58, %v3564_v38  ;;  %v3567_v33 = vadd.f32 %v8636_v22, %v11057_v18  ;;  %9021 = vmatprep.mubr.msk.f32.mxu1 %vm419_vm0, %v10925_v31  ;;  %v3765_v4 = vpop.f32.mrf.mxu0 }
 0x1c4   : > { %v3535_v20 = vpop.f32.mrf.mxu1 }
 0x1c5   : > { %v11169_v51 = vadd.f32 %v8668_v15, %v3567_v33  ;;  %v3566_v55 = vadd.f32 %v3535_v20, %v11063_v39  ;;  %v8671_v49 = vpop.f32.mrf.mxu0  ;;  %9054 = vmatmul.mubr.msk.f32.gmra.mxu0 %vm419_vm0, %v7610_v42 }
 0x1c6   : > { %v8639_v9 = vpop.f32.mrf.mxu1  ;;  %9022 = vmatmul.mubr.msk.f32.gmra.mxu1 %vm419_vm0, %v7574_v44 }
 0x1c7   : > { %v11174_v18 = vadd.f32 %v3765_v4, %v3566_v55  ;;  %v3569_v31 = vadd.f32 %v8639_v9, %v11071_v23  ;;  %v3775_v61 = vpop.f32.mrf.mxu0 }
 0x1c8   : > { %v3545_v3 = vpop.f32.mrf.mxu1 }
 0x1c9   : > { %v11177_v50 = vadd.f32 %v8671_v49, %v3569_v31  ;;  %v3568_v26 = vadd.f32 %v3545_v3, %v11077_v35  ;;  %v8714_v12 = vpop.f32.mrf.mxu0 }
 0x1ca   : > { %v8682_v40 = vpop.f32.mrf.mxu1 }
 0x1cb   : > { %v11180_v7 = vadd.f32 %v3775_v61, %v3568_v26  ;;  %v4016_v39 = vadd.f32 %v8682_v40, %v11085_v17  ;;  %v4166_v53 = vpop.f32.mrf.mxu0 }
 0x1cc   : > { %v3936_v28 = vpop.f32.mrf.mxu1 }
 0x1cd   : > { %v11183_v8 = vadd.f32 %v8714_v12, %v4016_v39  ;;  %v4015_v46 = vadd.f32 %v3936_v28, %v11091_v41  ;;  %v8717_v23 = vpop.f32.mrf.mxu0 }
 0x1ce   : > { %v8685_v24 = vpop.f32.mrf.mxu1 }
 0x1cf   : > { %v11186_v47 = vadd.f32 %v4166_v53, %v4015_v46  ;;  %v4018_v14 = vadd.f32 %v8685_v24, %v11099_v25  ;;  %v4176_v35 = vpop.f32.mrf.mxu0 }
 0x1d0   : > { %v3946_v48 = vpop.f32.mrf.mxu1 }
 0x1d1   : > { %v11189_v60 = vadd.f32 %v8717_v23, %v4018_v14  ;;  %v4017_v54 = vadd.f32 %v3946_v48, %v11105_v43  ;;  %v8720_v17 = vpop.f32.mrf.mxu0  ;;  %v11244_v14 = vstv %s6804_s23 }
 0x1d2   : > { %v8688_v1 = vpop.f32.mrf.mxu1 }
 0x1d3   : > { %v11192_v34 = vadd.f32 %v4176_v35, %v4017_v54  ;;  %v4020_v16 = vadd.f32 %v8688_v1, %v11113_v2  ;;  %v4186_v41 = vpop.f32.mrf.mxu0  ;;  %v11246_v35 = vstv %s6805_s25 }
 0x1d4   : > { %v3956_v6 = vpop.f32.mrf.mxu1 }
 0x1d5   : > { %v11195_v63 = vadd.f32 %v8720_v17, %v4020_v16  ;;  %v4019_v0 = vadd.f32 %v3956_v6, %v11119_v19  ;;  %v8723_v27 = vpop.f32.mrf.mxu0 }
 0x1d6   : > { %v8691_v25 = vpop.f32.mrf.mxu1 }
 0x1d7   : > { %v11198_v59 = vadd.f32 %v4186_v41, %v4019_v0  ;;  %v4022_v43 = vadd.f32 %v8691_v25, %v11127_v21  ;;  %v4196_v57 = vpop.f32.mrf.mxu0  ;;  %v2419_v25 = vmul.f32 %v11244_v14, %v10633_v52 }
 0x1d8   : > { %v3966_v10 = vpop.f32.mrf.mxu1 }
 0x1d9   : > { %v11201_v32 = vadd.f32 %v8723_v27, %v4022_v43  ;;  %v4021_v2 = vadd.f32 %v3966_v10, %v11133_v11  ;;  %v8726_v38 = vpop.f32.mrf.mxu0 }
 0x1da   : > { %v8694_v58 = vpop.f32.mrf.mxu1 }
 0x1db   : > { %v11204_v22 = vadd.f32 %v4196_v57, %v4021_v2  ;;  %v4024_v19 = vadd.f32 %v8694_v58, %v11141_v5  ;;  %v4206_v33 = vpop.f32.mrf.mxu0 }
 0x1dc   : > { %v3976_v15 = vpop.f32.mrf.mxu1 }
 0x1dd   : > { %v11209_v44 = vadd.f32 %v8726_v38, %v4024_v19  ;;  %v4023_v21 = vadd.f32 %v3976_v15, %v11147_v37  ;;  %v8729_v20 = vpop.f32.mrf.mxu0  ;;  %v11640_v19 = vld [vmem:[#allocation2_spill] sm:$0xff] }
 0x1de   : > { %v8697_v42 = vpop.f32.mrf.mxu1  ;;  %v2421_v15 = vmul.f32 %v11244_v14, %v11640_v19 }
 0x1df   : > { %v11214_v4 = vadd.f32 %v4206_v33, %v4023_v21  ;;  %v4026_v11 = vadd.f32 %v8697_v42, %v11154_v36  ;;  %v4216_v9 = vpop.f32.mrf.mxu0 }
 0x1e0   : > { %v3986_v55 = vpop.f32.mrf.mxu1 }
 0x1e1   : > { %v11221_v5 = vadd.f32 %v8729_v20, %v4026_v11  ;;  %v4025_v49 = vadd.f32 %v3986_v55, %v11160_v56  ;;  %v8732_v31 = vpop.f32.mrf.mxu0  ;;  %v11641_v20 = vld [vmem:[#allocation3_spill] sm:$0xff] }
 0x1e2   : > { %v8700_v37 = vpop.f32.mrf.mxu1  ;;  %v2424_v11 = vmul.f32 %v11244_v14, %v11641_v20 }
 0x1e3   : > { %v11228_v3 = vadd.f32 %v4216_v9, %v4025_v49  ;;  %v4028_v36 = vadd.f32 %v8700_v37, %v11169_v51  ;;  %v4226_v26 = vpop.f32.mrf.mxu0 }
 0x1e4   : > { %v3996_v61 = vpop.f32.mrf.mxu1 }
 0x1e5   : > { %v11233_v40 = vadd.f32 %v8732_v31, %v4028_v36  ;;  %v4027_v12 = vadd.f32 %v3996_v61, %v11174_v18  ;;  %v8735_v39 = vpop.f32.mrf.mxu0  ;;  %v11642_v31 = vld [vmem:[#allocation4_spill] sm:$0xff] }
 0x1e6   : > { %v8703_v56 = vpop.f32.mrf.mxu1  ;;  %v2423_v36 = vmul.f32 %v11244_v14, %v11642_v31  ;;  %v11650_v31 = vld [vmem:[#allocation9_spill] sm:$0xff] }
 0x1e7   : > { %v11238_v28 = vadd.f32 %v4226_v26, %v4027_v12  ;;  %v4030_v53 = vadd.f32 %v8703_v56, %v11177_v50  ;;  %v4236_v24 = vpop.f32.mrf.mxu0  ;;  %v2420_v50 = vmul.f32 %v11244_v14, %v10620_v62  ;;  %v2422_v62 = vmul.f32 %v11244_v14, %v10652_v29 }
 0x1e8   : > { %v4006_v46 = vpop.f32.mrf.mxu1 }
 0x1e9   : > { %v11241_v23 = vadd.f32 %v8735_v39, %v4030_v53  ;;  %v4029_v51 = vadd.f32 %v4006_v46, %v11180_v7  ;;  %v11248_v18 = vpop.f32.mrf.mxu0  ;;  %v11643_v39 = vld [vmem:[#allocation5_spill] sm:$0xff] }
 0x1ea   : > { %v8746_v48 = vpop.f32.mrf.mxu1  ;;  %v2426_v53 = vmul.f32 %v11244_v14, %v11643_v39 }
 0x1eb   : > { %v11250_v54 = vadd.f32 %v4236_v24, %v4029_v51  ;;  %v4476_v1 = vadd.f32 %v8746_v48, %v11183_v8  ;;  %v11253_v16 = vpop.f32.mrf.mxu0 }
 0x1ec   : > { %v4396_v17 = vpop.f32.mrf.mxu1 }
 0x1ed   : > { %v4493_v6 = vmul.f32 %v11246_v35, %v4476_v1  ;;  %v4475_v7 = vadd.f32 %v4396_v17, %v11186_v47  ;;  %v11259_v0 = vpop.f32.mrf.mxu0  ;;  %v11644_v1 = vld [vmem:[#allocation6_spill] sm:$0xff] }
 0x1ee   : > { %v8749_v41 = vpop.f32.mrf.mxu1  ;;  %v2425_v17 = vmul.f32 %v11244_v14, %v11644_v1 }
 0x1ef   : > { %v11263_v27 = vadd.f32 %v4493_v6, %v2420_v50  ;;  %v4492_v8 = vmul.f32 %v11246_v35, %v4475_v7  ;;  %v4478_v43 = vadd.f32 %v8749_v41, %v11189_v60  ;;  %v11267_v57 = vpop.f32.mrf.mxu0 }
 0x1f0   : > { %v4406_v10 = vpop.f32.mrf.mxu1 }
 0x1f1   : > { %v11271_v2 = vadd.f32 %v4492_v8, %v2419_v25  ;;  %v4495_v47 = vmul.f32 %v11246_v35, %v4478_v43  ;;  %v4477_v58 = vadd.f32 %v4406_v10, %v11192_v34  ;;  %v11275_v52 = vpop.f32.mrf.mxu0  ;;  %v11645_v25 = vld [vmem:[#allocation7_spill] sm:$0xff] }
 0x1f2   : > { %v8752_v38 = vpop.f32.mrf.mxu1  ;;  %v2428_v8 = vmul.f32 %v11244_v14, %v11645_v25 }
 0x1f3   : > { %v11279_v33 = vadd.f32 %v4495_v47, %v2422_v62  ;;  %v4494_v60 = vmul.f32 %v11246_v35, %v4477_v58  ;;  %v4480_v21 = vadd.f32 %v8752_v38, %v11195_v63  ;;  %v11283_v29 = vpop.f32.mrf.mxu0  ;;  %v11646_v58 = vld [vmem:[#allocation11_spill] sm:$0xff] }
 0x1f4   : > { %v4416_v42 = vpop.f32.mrf.mxu1  ;;  %v2427_v38 = vmul.f32 %v11244_v14, %v11646_v58 }
 0x1f5   : > { %v11287_v55 = vadd.f32 %v4494_v60, %v2421_v15  ;;  %v4497_v34 = vmul.f32 %v11246_v35, %v4480_v21  ;;  %v4479_v9 = vadd.f32 %v4416_v42, %v11198_v59  ;;  %v11291_v37 = vpop.f32.mrf.mxu0  ;;  %v11648_v42 = vld [vmem:[#allocation8_spill] sm:$0xff] }
 0x1f6   : > { %v8755_v49 = vpop.f32.mrf.mxu1  ;;  %v2430_v20 = vmul.f32 %v11244_v14, %v11648_v42 }
 0x1f7   : > { %v11295_v61 = vadd.f32 %v4497_v34, %v2424_v11  ;;  %v4496_v63 = vmul.f32 %v11246_v35, %v4479_v9  ;;  %v4482_v26 = vadd.f32 %v8755_v49, %v11201_v32  ;;  %v11299_v56 = vpop.f32.mrf.mxu0 }
 0x1f8   : > { %v4426_v12 = vpop.f32.mrf.mxu1 }
 0x1f9   : > { %v11303_v46 = vadd.f32 %v4496_v63, %v2423_v36  ;;  %v4499_v59 = vmul.f32 %v11246_v35, %v4482_v26  ;;  %v4481_v24 = vadd.f32 %v4426_v12, %v11204_v22  ;;  %v11307_v48 = vpop.f32.mrf.mxu0  ;;  %v2429_v36 = vmul.f32 %v11244_v14, %v11650_v31 }
 0x1fa   : > { %v8758_v51 = vpop.f32.mrf.mxu1 }
 0x1fb   : > { %v11311_v50 = vadd.f32 %v4499_v59, %v2426_v53  ;;  %v4498_v32 = vmul.f32 %v11246_v35, %v4481_v24  ;;  %v4484_v6 = vadd.f32 %v8758_v51, %v11209_v44  ;;  %v11315_v41 = vpop.f32.mrf.mxu0  ;;  %v11652_v53 = vld [vmem:[#allocation10_spill] sm:$0xff] }
 0x1fc   : > { %v4436_v7 = vpop.f32.mrf.mxu1  ;;  %v2432_v59 = vmul.f32 %v11244_v14, %v11652_v53 }
 0x1fd   : > { %v11319_v43 = vadd.f32 %v4498_v32, %v2425_v17  ;;  %v4501_v22 = vmul.f32 %v11246_v35, %v4484_v6  ;;  %v4483_v10 = vadd.f32 %v4436_v7, %v11214_v4  ;;  %v11323_v47 = vpop.f32.mrf.mxu0  ;;  %v2431_v32 = vmul.f32 %v11244_v14, %v10801_v30 }
 0x1fe   : > { %v8761_v62 = vpop.f32.mrf.mxu1 }
 0x1ff   : > { %v11327_v19 = vadd.f32 %v4501_v22, %v2428_v8  ;;  %v4500_v44 = vmul.f32 %v11246_v35, %v4483_v10  ;;  %v4486_v15 = vadd.f32 %v8761_v62, %v11221_v5  ;;  %v11331_v21 = vpop.f32.mrf.mxu0  ;;  %v2434_v22 = vmul.f32 %v11244_v14, %v10808_v13 }
 0x200   : > { %v4446_v60 = vpop.f32.mrf.mxu1 }
 0x201   : > { %11647 = vst [vmem:[#allocation2_spill] sm:$0xff] %v11327_v19  ;;  %v11335_v11 = vadd.f32 %v4500_v44, %v2427_v38  ;;  %v4503_v4 = vmul.f32 %v11246_v35, %v4486_v15  ;;  %v4485_v34 = vadd.f32 %v4446_v60, %v11228_v3  ;;  %v11339_v49 = vpop.f32.mrf.mxu0  ;;  %v2433_v38 = vmul.f32 %v11244_v14, %v10821_v45 }
 0x202   : > { %v8764_v9 = vpop.f32.mrf.mxu1 }
 0x203   : > { %11649 = vst [vmem:[#allocation3_spill] sm:$0xff] %v11335_v11  ;;  %v11343_v63 = vadd.f32 %v4503_v4, %v2430_v20  ;;  %v4502_v5 = vmul.f32 %v11246_v35, %v4485_v34  ;;  %v4488_v26 = vadd.f32 %v8764_v9, %v11233_v40  ;;  %v11347_v39 = vpop.f32.mrf.mxu0 }
 0x204   : > { %v4456_v12 = vpop.f32.mrf.mxu1 }
 0x205   : > { %11651 = vst [vmem:[#allocation4_spill] sm:$0xff] %v11343_v63  ;;  %v11351_v24 = vadd.f32 %v4502_v5, %v2429_v36  ;;  %v4505_v3 = vmul.f32 %v11246_v35, %v4488_v26  ;;  %v4487_v51 = vadd.f32 %v4456_v12, %v11238_v28  ;;  %v11355_v17 = vpop.f32.mrf.mxu0 }
 0x206   : > { %v8767_v1 = vpop.f32.mrf.mxu1 }
 0x207   : > { %11653 = vst [vmem:[#allocation5_spill] sm:$0xff] %v11351_v24  ;;  %v11359_v6 = vadd.f32 %v4505_v3, %v2432_v59  ;;  %v4504_v40 = vmul.f32 %v11246_v35, %v4487_v51  ;;  %v4490_v7 = vadd.f32 %v8767_v1, %v11241_v23  ;;  %v11363_v8 = vpop.f32.mrf.mxu0 }
 0x208   : > { %v4466_v25 = vpop.f32.mrf.mxu1 }
 0x209   : > { %11654 = vst [vmem:[#allocation6_spill] sm:$0xff] %v11359_v6  ;;  %v11367_v10 = vadd.f32 %v4504_v40, %v2431_v32  ;;  %v4507_v28 = vmul.f32 %v11246_v35, %v4490_v7  ;;  %v4489_v62 = vadd.f32 %v4466_v25, %v11250_v54  ;;  %v8842_v30 = vpop.f32.mrf.mxu0 }
 0x20a   : > { %v8810_v58 = vpop.f32.mrf.mxu1 }
 0x20b   : > { %11655 = vst [vmem:[#allocation7_spill] sm:$0xff] %v11367_v10  ;;  %v11373_v44 = vadd.f32 %v4507_v28, %v2434_v22  ;;  %v4506_v23 = vmul.f32 %v11246_v35, %v4489_v62  ;;  %v4879_v15 = vadd.f32 %v8810_v58, %v11248_v18  ;;  %v5087_v42 = vpop.f32.mrf.mxu0 }
 0x20c   : > { %v4873_v60 = vpop.f32.mrf.mxu1 }
 0x20d   : > { %11656 = vst [vmem:[#allocation11_spill] sm:$0xff] %v11373_v44  ;;  %v11377_v13 = vadd.f32 %v4506_v23, %v2433_v38  ;;  %v11379_v20 = vadd.f32 %v8842_v30, %v4879_v15  ;;  %v4874_v4 = vadd.f32 %v4873_v60, %v11253_v16  ;;  %v8845_v34 = vpop.f32.mrf.mxu0 }
 0x20e   : > { %v8813_v54 = vpop.f32.mrf.mxu1 }
 0x20f   : > { %11657 = vst [vmem:[#allocation8_spill] sm:$0xff] %v11377_v13  ;;  %v11382_v9 = vadd.f32 %v5087_v42, %v4874_v4  ;;  %v4889_v45 = vadd.f32 %v8813_v54, %v11259_v0  ;;  %v5097_v31 = vpop.f32.mrf.mxu0 }
 0x210   : > { %v4883_v14 = vpop.f32.mrf.mxu1 }
 0x211   : > { %v5169_v36 = vadd.f32 %v8845_v34, %v4889_v45  ;;  %v4884_v35 = vadd.f32 %v4883_v14, %v11267_v57  ;;  %v8848_v5 = vpop.f32.mrf.mxu0 }
 0x212   : > { %v8816_v18 = vpop.f32.mrf.mxu1 }
 0x213   : > { %v11386_v26 = vadd.f32 %v5097_v31, %v4884_v35  ;;  %v4899_v12 = vadd.f32 %v8816_v18, %v11275_v52  ;;  %v5107_v59 = vpop.f32.mrf.mxu0 }
 0x214   : > { %v4893_v53 = vpop.f32.mrf.mxu1 }
 0x215   : > { %v5171_v16 = vadd.f32 %v8848_v5, %v4899_v12  ;;  %v4894_v3 = vadd.f32 %v4893_v53, %v11283_v29  ;;  %v8851_v1 = vpop.f32.mrf.mxu0 }
 0x216   : > { %v8819_v51 = vpop.f32.mrf.mxu1 }
 0x217   : > { %v5170_v32 = vadd.f32 %v5107_v59, %v4894_v3  ;;  %v4909_v0 = vadd.f32 %v8819_v51, %v11291_v37  ;;  %v5117_v7 = vpop.f32.mrf.mxu0 }
 0x218   : > { %v4903_v40 = vpop.f32.mrf.mxu1 }
 0x219   : > { %v5173_v25 = vadd.f32 %v8851_v1, %v4909_v0  ;;  %v4904_v57 = vadd.f32 %v4903_v40, %v11299_v56  ;;  %v8854_v28 = vpop.f32.mrf.mxu0 }
 0x21a   : > { %v8822_v22 = vpop.f32.mrf.mxu1 }
 0x21b   : > { %v5172_v62 = vadd.f32 %v5117_v7, %v4904_v57  ;;  %v4919_v52 = vadd.f32 %v8822_v22, %v11307_v48  ;;  %v5127_v30 = vpop.f32.mrf.mxu0 }
 0x21c   : > { %v4913_v58 = vpop.f32.mrf.mxu1 }
 0x21d   : > { %v5175_v38 = vadd.f32 %v8854_v28, %v4919_v52  ;;  %v4914_v29 = vadd.f32 %v4913_v58, %v11315_v41  ;;  %v8857_v15 = vpop.f32.mrf.mxu0 }
 0x21e   : > { %v8825_v23 = vpop.f32.mrf.mxu1 }
 0x21f   : > { %v5174_v60 = vadd.f32 %v5127_v30, %v4914_v29  ;;  %v4929_v37 = vadd.f32 %v8825_v23, %v11323_v47  ;;  %v5137_v4 = vpop.f32.mrf.mxu0 }
 0x220   : > { %v4923_v42 = vpop.f32.mrf.mxu1 }
 0x221   : > { %v5177_v54 = vadd.f32 %v8857_v15, %v4929_v37  ;;  %v4924_v56 = vadd.f32 %v4923_v42, %v11331_v21  ;;  %v8860_v45 = vpop.f32.mrf.mxu0 }
 0x222   : > { %v8828_v34 = vpop.f32.mrf.mxu1 }
 0x223   : > { %v5176_v14 = vadd.f32 %v5137_v4, %v4924_v56  ;;  %v4939_v48 = vadd.f32 %v8828_v34, %v11339_v49  ;;  %v5147_v35 = vpop.f32.mrf.mxu0 }
 0x224   : > { %v4933_v31 = vpop.f32.mrf.mxu1 }
 0x225   : > { %v5179_v18 = vadd.f32 %v8860_v45, %v4939_v48  ;;  %v4934_v41 = vadd.f32 %v4933_v31, %v11347_v39  ;;  %v8863_v12 = vpop.f32.mrf.mxu0 }
 0x226   : > { %v8831_v5 = vpop.f32.mrf.mxu1 }
 0x227   : > { %v5178_v53 = vadd.f32 %v5147_v35, %v4934_v41  ;;  %v4949_v47 = vadd.f32 %v8831_v5, %v11355_v17  ;;  %v5157_v3 = vpop.f32.mrf.mxu0 }
 0x228   : > { %v4943_v59 = vpop.f32.mrf.mxu1 }
 0x229   : > { %v5181_v51 = vadd.f32 %v8863_v12, %v4949_v47  ;;  %v4944_v21 = vadd.f32 %v4943_v59, %v11363_v8  ;;  %v11402_v0 = vpop.f32.mrf.mxu0 }
 0x22a   : > { %v11400_v1 = vpop.f32.mrf.mxu1 }
 0x22b   : > { %v5180_v49 = vadd.f32 %v5157_v3, %v4944_v21  ;;  %v11406_v7 = vpop.f32.mrf.mxu0 }
 0x22c   : > { %v11404_v40 = vpop.f32.mrf.mxu1 }
 0x22d   : > { %v8909_v57 = vpop.f32.mrf.mxu0 }
 0x22e   : > { %v8877_v39 = vpop.f32.mrf.mxu1 }
 0x22f   : > { %v5400_v22 = vadd.f32 %v8877_v39, %v5169_v36  ;;  %v11410_v17 = vpop.f32.mrf.mxu0 }
 0x230   : > { %v11408_v28 = vpop.f32.mrf.mxu1 }
 0x231   : > { %v11412_v52 = vadd.f32 %v8909_v57, %v5400_v22  ;;  %v8912_v8 = vpop.f32.mrf.mxu0 }
 0x232   : > { %v8880_v58 = vpop.f32.mrf.mxu1 }
 0x233   : > { %v5402_v30 = vadd.f32 %v8880_v58, %v5171_v16  ;;  %v5568_v23 = vpop.f32.mrf.mxu0 }
 0x234   : > { %v5338_v29 = vpop.f32.mrf.mxu1 }
 0x235   : > { %v11414_v15 = vadd.f32 %v8912_v8, %v5402_v30  ;;  %v5401_v37 = vadd.f32 %v5338_v29, %v5170_v32  ;;  %v8915_v4 = vpop.f32.mrf.mxu0 }
 0x236   : > { %v8883_v42 = vpop.f32.mrf.mxu1 }
 0x237   : > { %v11416_v56 = vadd.f32 %v5568_v23, %v5401_v37  ;;  %v5404_v34 = vadd.f32 %v8883_v42, %v5173_v25  ;;  %v5578_v45 = vpop.f32.mrf.mxu0 }
 0x238   : > { %v5348_v36 = vpop.f32.mrf.mxu1 }
 0x239   : > { %v11418_v48 = vadd.f32 %v8915_v4, %v5404_v34  ;;  %v5403_v31 = vadd.f32 %v5348_v36, %v5172_v62  ;;  %v8918_v41 = vpop.f32.mrf.mxu0 }
 0x23a   : > { %v8886_v35 = vpop.f32.mrf.mxu1 }
 0x23b   : > { %v11420_v5 = vadd.f32 %v5578_v45, %v5403_v31  ;;  %v5406_v16 = vadd.f32 %v8886_v35, %v5175_v38  ;;  %v5588_v47 = vpop.f32.mrf.mxu0 }
 0x23c   : > { %v5358_v12 = vpop.f32.mrf.mxu1 }
 0x23d   : > { %v11422_v59 = vadd.f32 %v8918_v41, %v5406_v16  ;;  %v5405_v32 = vadd.f32 %v5358_v12, %v5174_v60  ;;  %v8921_v21 = vpop.f32.mrf.mxu0 }
 0x23e   : > { %v8889_v3 = vpop.f32.mrf.mxu1 }
 0x23f   : > { %v11424_v39 = vadd.f32 %v5588_v47, %v5405_v32  ;;  %v5408_v25 = vadd.f32 %v8889_v3, %v5177_v54  ;;  %v5598_v22 = vpop.f32.mrf.mxu0 }
 0x240   : > { %v5368_v57 = vpop.f32.mrf.mxu1 }
 0x241   : > { %v11426_v58 = vadd.f32 %v8921_v21, %v5408_v25  ;;  %v5407_v62 = vadd.f32 %v5368_v57, %v5176_v14  ;;  %v8924_v30 = vpop.f32.mrf.mxu0 }
 0x242   : > { %v8892_v8 = vpop.f32.mrf.mxu1 }
 0x243   : > { %v11428_v29 = vadd.f32 %v5598_v22, %v5407_v62  ;;  %v5410_v38 = vadd.f32 %v8892_v8, %v5179_v18  ;;  %v5608_v37 = vpop.f32.mrf.mxu0 }
 0x244   : > { %v5378_v23 = vpop.f32.mrf.mxu1 }
 0x245   : > { %v11430_v42 = vadd.f32 %v8924_v30, %v5410_v38  ;;  %v5409_v60 = vadd.f32 %v5378_v23, %v5178_v53  ;;  %v8927_v34 = vpop.f32.mrf.mxu0 }
 0x246   : > { %v8895_v4 = vpop.f32.mrf.mxu1 }
 0x247   : > { %v11432_v36 = vadd.f32 %v5608_v37, %v5409_v60  ;;  %v5412_v54 = vadd.f32 %v8895_v4, %v5181_v51  ;;  %v5618_v31 = vpop.f32.mrf.mxu0 }
 0x248   : > { %v5388_v45 = vpop.f32.mrf.mxu1 }
 0x249   : > { %v11434_v35 = vadd.f32 %v8927_v34, %v5412_v54  ;;  %v5411_v14 = vadd.f32 %v5388_v45, %v5180_v49  ;;  %v8970_v16 = vpop.f32.mrf.mxu0  ;;  %v5398_v54 = vadd.f32 %v11400_v1, %v11379_v20 }
 0x24a   : > { %v8938_v41 = vpop.f32.mrf.mxu1 }
 0x24b   : > { %11658 = vst [vmem:[#allocation9_spill] sm:$0xff] %v11434_v35  ;;  %v11436_v12 = vadd.f32 %v5618_v31, %v5411_v14  ;;  %v6009_v47 = vpop.f32.mrf.mxu0  ;;  %v5397_v14 = vadd.f32 %v11404_v40, %v11382_v9  ;;  %v5628_v10 = vadd.f32 %v11402_v0, %v5398_v54  ;;  %v5399_v9 = vadd.f32 %v11408_v28, %v11386_v26 }
 0x24c   : > { %v5778_v18 = vpop.f32.mrf.mxu1 }
 0x24d   : > { %11659 = vst [vmem:[#allocation10_spill] sm:$0xff] %v11436_v12  ;;  %v8973_v3 = vpop.f32.mrf.mxu0  ;;  %v5627_v20 = vadd.f32 %v11406_v7, %v5397_v14  ;;  %v5858_v1 = vadd.f32 %v8938_v41, %v5628_v10  ;;  %v5629_v12 = vadd.f32 %v11410_v17, %v5399_v9 }
 0x24e   : > { %v8941_v32 = vpop.f32.mrf.mxu1 }
 0x24f   : > { %v6019_v53 = vpop.f32.mrf.mxu0  ;;  %v5857_v0 = vadd.f32 %v5778_v18, %v5627_v20  ;;  %v6089_v19 = vadd.f32 %v8970_v16, %v5858_v1  ;;  %v5860_v7 = vadd.f32 %v8941_v32, %v11412_v52 }
 0x250   : > { %v5788_v21 = vpop.f32.mrf.mxu1 }
 0x251   : > { %v8976_v57 = vpop.f32.mrf.mxu0  ;;  %v6088_v26 = vadd.f32 %v6009_v47, %v5857_v0  ;;  %v5859_v10 = vadd.f32 %v5788_v21, %v5629_v12 }
 0x252   : > { %v8944_v25 = vpop.f32.mrf.mxu1 }
 0x253   : > { %v6029_v51 = vpop.f32.mrf.mxu0  ;;  %v5862_v41 = vadd.f32 %v8944_v25, %v11414_v15  ;;  %v6090_v9 = vadd.f32 %v6019_v53, %v5859_v10 }
 0x254   : > { %v5798_v22 = vpop.f32.mrf.mxu1 }
 0x255   : > { %v11438_v8 = vpop.f32.mrf.mxu0  ;;  %v5861_v35 = vadd.f32 %v5798_v22, %v11416_v56  ;;  %v6093_v12 = vadd.f32 %v8976_v57, %v5862_v41 }
 0x256   : > { %v8947_v62 = vpop.f32.mrf.mxu1 }
 0x257   : > { %v11440_v30 = vpop.f32.mrf.mxu0  ;;  %v6092_v0 = vadd.f32 %v6029_v51, %v5861_v35  ;;  %v11509_v35 = vld [vmem:[%s11596_s4] ss:$0 sm:$0xff] }
 0x258   : > { %v5808_v49 = vpop.f32.mrf.mxu1 }
 0x259   : > { %v11444_v23 = vpop.f32.mrf.mxu0  ;;  %v5863_v53 = vadd.f32 %v5808_v49, %v11420_v5 }
 0x25a   : > { %v11442_v38 = vpop.f32.mrf.mxu1 }
 0x25b   : > { %v11448_v60 = vpop.f32.mrf.mxu0 }
 0x25c   : > { %v11446_v37 = vpop.f32.mrf.mxu1 }
 0x25d   : > { %v11452_v34 = vpop.f32.mrf.mxu0  ;;  %v5865_v49 = vadd.f32 %v11446_v37, %v11424_v39 }
 0x25e   : > { %v11450_v4 = vpop.f32.mrf.mxu1 }
 0x25f   : > { %v11458_v31 = vpop.f32.mrf.mxu0  ;;  %v5868_v37 = vadd.f32 %v11450_v4, %v11426_v58 }
 0x260   : > { %v11456_v45 = vpop.f32.mrf.mxu1 }
 0x261   : > { %v11466_v44 = vpop.f32.mrf.mxu0 }
 0x262   : > { %v11464_v13 = vpop.f32.mrf.mxu1 }
 0x263   : > { %v11471_v24 = vpop.f32.mrf.mxu0  ;;  %v5870_v58 = vadd.f32 %v11464_v13, %v11430_v42 }
 0x264   : > { %v11469_v6 = vpop.f32.mrf.mxu1  ;;  %11660 = vst [vmem:[#allocation12_spill] sm:$0xff] %v11471_v24 }
 0x265   : > { %v11482_v63 = vpop.f32.mrf.mxu0 }
 0x266   : > { %v11480_v40 = vpop.f32.mrf.mxu1  ;;  %11663 = vst [vmem:[#allocation14_spill] sm:$0xff] %v11482_v63  ;;  %v11493_v63 = vstv %s6806_s21 }
 0x267   : > { %11662 = vst [vmem:[#allocation13_spill] sm:$0xff] %v11480_v40  ;;  %v11486_v11 = vpop.f32.mrf.mxu0 }
 0x268   : > { %v11484_v54 = vpop.f32.mrf.mxu1  ;;  %11665 = vst [vmem:[#allocation16_spill] sm:$0xff] %v11486_v11 }
 0x269   : > { %11664 = vst [vmem:[#allocation15_spill] sm:$0xff] %v11484_v54  ;;  %v9034_v24 = vpop.f32.mrf.mxu0  ;;  %v6091_v54 = vadd.f32 %v8973_v3, %v5860_v7 }
 0x26a   : > { %v9002_v14 = vpop.f32.mrf.mxu1 }
 0x26b   : > { %v6319_v28 = vadd.f32 %v9002_v14, %v6089_v19  ;;  %v6469_v20 = vpop.f32.mrf.mxu0  ;;  %v5864_v19 = vadd.f32 %v8947_v62, %v11418_v48  ;;  %v5866_v48 = vadd.f32 %v11442_v38, %v11422_v59 }
 0x26c   : > { %v6239_v18 = vpop.f32.mrf.mxu1 }
 0x26d   : > { %v6549_v11 = vadd.f32 %v9034_v24, %v6319_v28  ;;  %v6318_v40 = vadd.f32 %v6239_v18, %v6088_v26  ;;  %v9037_v16 = vpop.f32.mrf.mxu0  ;;  %v6095_v7 = vadd.f32 %v11438_v8, %v5864_v19  ;;  %v6094_v8 = vadd.f32 %v11440_v30, %v5863_v53 }
 0x26e   : > { %v9005_v17 = vpop.f32.mrf.mxu1  ;;  %v6097_v18 = vadd.f32 %v11444_v23, %v5866_v48 }
 0x26f   : > { %v6566_v52 = vmul.f32 %v11493_v63, %v6549_v11  ;;  %v6548_v32 = vadd.f32 %v6469_v20, %v6318_v40  ;;  %v6321_v47 = vadd.f32 %v9005_v17, %v6091_v54  ;;  %v6479_v21 = vpop.f32.mrf.mxu0 }
 0x270   : > { %v6249_v15 = vpop.f32.mrf.mxu1 }
 0x271   : > { %v6582_v25 = vadd.f32 %v6566_v52, %v11263_v27  ;;  %v6565_v3 = vmul.f32 %v11493_v63, %v6548_v32  ;;  %v6320_v24 = vadd.f32 %v6249_v15, %v6090_v9  ;;  %v6551_v1 = vadd.f32 %v9037_v16, %v6321_v47  ;;  %v9040_v22 = vpop.f32.mrf.mxu0 }
 0x272   : > { %v9008_v56 = vpop.f32.mrf.mxu1  ;;  %v6096_v52 = vadd.f32 %v11448_v60, %v5865_v49 }
 0x273   : > { %v6581_v11 = vadd.f32 %v6565_v3, %v11271_v2  ;;  %v6568_v40 = vmul.f32 %v11493_v63, %v6551_v1  ;;  %v6323_v57 = vadd.f32 %v9008_v56, %v6093_v12  ;;  %v6550_v62 = vadd.f32 %v6479_v21, %v6320_v24  ;;  %v6489_v27 = vpop.f32.mrf.mxu0 }
 0x274   : > { %v6259_v54 = vpop.f32.mrf.mxu1 }
 0x275   : > { %v6584_v5 = vadd.f32 %v6568_v40, %v11279_v33  ;;  %v6322_v51 = vadd.f32 %v6259_v54, %v6092_v0  ;;  %v6553_v2 = vadd.f32 %v9040_v22, %v6323_v57  ;;  %v6567_v14 = vmul.f32 %v11493_v63, %v6550_v62  ;;  %v9043_v38 = vpop.f32.mrf.mxu0  ;;  %v11667_v40 = vld [vmem:[#allocation13_spill] sm:$0xff]  ;;  %v11668_v54 = vld [vmem:[#allocation12_spill] sm:$0xff] }
 0x276   : > { %v9011_v59 = vpop.f32.mrf.mxu1  ;;  %v6604_v26 = vadd.f32 %v11509_v35, %v6581_v11  ;;  %v6605_v33 = vadd.f32 %v11509_v35, %v6582_v25  ;;  %v6099_v25 = vadd.f32 %v11452_v34, %v5868_v37  ;;  %v6101_v34 = vadd.f32 %v11466_v44, %v5870_v58 }
 0x277   : > { %v6570_v10 = vmul.f32 %v11493_v63, %v6553_v2  ;;  %v6325_v28 = vadd.f32 %v9011_v59, %v6095_v7  ;;  %v6552_v41 = vadd.f32 %v6489_v27, %v6322_v51  ;;  %v6583_v20 = vadd.f32 %v6567_v14, %v11287_v55  ;;  %v6499_v39 = vpop.f32.mrf.mxu0  ;;  %v11669_v27 = vld [vmem:[#allocation2_spill] sm:$0xff]  ;;  %v11672_v14 = vld [vmem:[#allocation3_spill] sm:$0xff] }
 0x278   : > { %v6269_v17 = vpop.f32.mrf.mxu1  ;;  %9075 = vtanh.f32 %v6604_v26  ;;  %v5867_v55 = vadd.f32 %v11456_v45, %v11428_v29  ;;  %v6607_v53 = vadd.f32 %v11509_v35, %v6584_v5  ;;  %v11670_v2 = vld [vmem:[#allocation10_spill] sm:$0xff]  ;;  %v11671_v5 = vld [vmem:[#allocation15_spill] sm:$0xff] }
 0x279   : > { %v11524_v16 = vadd.f32 %v6570_v10, %v11295_v61  ;;  %v6569_v30 = vmul.f32 %v11493_v63, %v6552_v41  ;;  %v6324_v9 = vadd.f32 %v6269_v17, %v6094_v8  ;;  %v6555_v32 = vadd.f32 %v9043_v38, %v6325_v28  ;;  %v9046_v47 = vpop.f32.mrf.mxu0  ;;  %v11674_v17 = vld [vmem:[#allocation4_spill] sm:$0xff] }
 0x27a   : > { %v9014_v23 = vpop.f32.mrf.mxu1  ;;  %9077 = vtanh.f32 %v6605_v33  ;;  %v6606_v61 = vadd.f32 %v11509_v35, %v6583_v20  ;;  %v6098_v1 = vadd.f32 %v11458_v31, %v5867_v55  ;;  %v5871_v49 = vadd.f32 %v11671_v5, %v11670_v2  ;;  %v11673_v33 = vld [vmem:[#allocation14_spill] sm:$0xff] }
 0x27b   : > { %v6585_v12 = vadd.f32 %v6569_v30, %v11303_v46  ;;  %v6327_v19 = vadd.f32 %v9014_v23, %v6097_v18  ;;  %v6554_v15 = vadd.f32 %v6499_v39, %v6324_v9  ;;  %v6572_v4 = vmul.f32 %v11493_v63, %v6555_v32  ;;  %v6509_v60 = vpop.f32.mrf.mxu0  ;;  %v11675_v23 = vld [vmem:[#allocation16_spill] sm:$0xff] }
 0x27c   : > { %v6279_v21 = vpop.f32.mrf.mxu1  ;;  %v5869_v46 = vadd.f32 %v11469_v6, %v11432_v36  ;;  %9079 = vtanh.f32 %v6606_v61 }
 0x27d   : > { %v6571_v3 = vmul.f32 %v11493_v63, %v6554_v15  ;;  %v6326_v24 = vadd.f32 %v6279_v21, %v6096_v52  ;;  %v11540_v29 = vadd.f32 %v6572_v4, %v11311_v50  ;;  %v6557_v45 = vadd.f32 %v9046_v47, %v6327_v19  ;;  %v9049_v42 = vpop.f32.mrf.mxu0  ;;  %v11666_v50 = vld [vmem:[#allocation9_spill] sm:$0xff] }
 0x27e   : > { %v9017_v13 = vpop.f32.mrf.mxu1  ;;  %v5872_v57 = vadd.f32 %v11667_v40, %v11666_v50  ;;  %9081 = vtanh.f32 %v6607_v53  ;;  %v6608_v8 = vadd.f32 %v11509_v35, %v6585_v12  ;;  %v6102_v47 = vadd.f32 %v11675_v23, %v5871_v49  ;;  %v11676_v15 = vld [vmem:[#allocation5_spill] sm:$0xff] }
 0x27f   : > { %v6587_v0 = vadd.f32 %v6571_v3, %v11319_v43  ;;  %v6329_v56 = vadd.f32 %v9017_v13, %v6099_v25  ;;  %v6556_v22 = vadd.f32 %v6509_v60, %v6326_v24  ;;  %v6574_v11 = vmul.f32 %v11493_v63, %v6557_v45  ;;  %v6519_v36 = vpop.f32.mrf.mxu0  ;;  %v11677_v25 = vld [vmem:[#allocation6_spill] sm:$0xff] }
 0x280   : > { %v6289_v6 = vpop.f32.mrf.mxu1  ;;  %v6100_v43 = vadd.f32 %v11668_v54, %v5869_v46  ;;  %v6103_v20 = vadd.f32 %v11673_v33, %v5872_v57  ;;  %v6609_v19 = vadd.f32 %v11509_v35, %v11524_v16  ;;  %9083 = vtanh.f32 %v6608_v8 }
 0x281   : > { %v6573_v48 = vmul.f32 %v11493_v63, %v6556_v22  ;;  %v6328_v62 = vadd.f32 %v6289_v6, %v6098_v1  ;;  %v6559_v31 = vadd.f32 %v9049_v42, %v6329_v56  ;;  %v6590_v7 = vadd.f32 %v6574_v11, %v11669_v27  ;;  %v9052_v44 = vpop.f32.mrf.mxu0  ;;  %v11678_v1 = vld [vmem:[#allocation7_spill] sm:$0xff]  ;;  %v11680_v6 = vld [vmem:[#allocation8_spill] sm:$0xff] }
 0x282   : > { %v9020_v51 = vpop.f32.mrf.mxu1  ;;  %9085 = vtanh.f32 %v6609_v19  ;;  %v6610_v16 = vadd.f32 %v11509_v35, %v6587_v0  ;;  %v6611_v50 = vadd.f32 %v11509_v35, %v11540_v29 }
 0x283   : > { %v6589_v59 = vadd.f32 %v6573_v48, %v11672_v14  ;;  %v6576_v38 = vmul.f32 %v11493_v63, %v6559_v31  ;;  %v6331_v26 = vadd.f32 %v9020_v51, %v6101_v34  ;;  %v6558_v10 = vadd.f32 %v6519_v36, %v6328_v62  ;;  %v6529_v41 = vpop.f32.mrf.mxu0  ;;  %v11679_v34 = vld [vmem:[#allocation11_spill] sm:$0xff] }
 0x284   : > { %v6299_v28 = vpop.f32.mrf.mxu1  ;;  %9087 = vtanh.f32 %v6610_v16  ;;  %v6613_v48 = vadd.f32 %v11509_v35, %v6590_v7 }
 0x285   : > { %v9076_v18 = vpop.eup %9075  ;;  %v6592_v39 = vadd.f32 %v6576_v38, %v11674_v17  ;;  %v6330_v37 = vadd.f32 %v6299_v28, %v6100_v43  ;;  %v6561_v30 = vadd.f32 %v9052_v44, %v6331_v26  ;;  %v6575_v9 = vmul.f32 %v11493_v63, %v6558_v10  ;;  %v9055_v32 = vpop.f32.mrf.mxu0 }
 0x286   : > { %6636 = vxpose.xlu0.b32.start [1/16] (narrow) %v9076_v18, 8  ;;  %v9023_v52 = vpop.f32.mrf.mxu1  ;;  %9089 = vtanh.f32 %v6611_v50  ;;  %v6612_v57 = vadd.f32 %v11509_v35, %v6589_v59 }
 0x287   : > { %v6578_v55 = vmul.f32 %v11493_v63, %v6561_v30  ;;  %v6333_v12 = vadd.f32 %v9023_v52, %v6103_v20  ;;  %v6591_v58 = vadd.f32 %v6575_v9, %v11676_v15  ;;  %v6560_v61 = vadd.f32 %v6529_v41, %v6330_v37  ;;  %v6539_v21 = vpop.f32.mrf.mxu0  ;;  %v9078_v60 = vpop.eup %9077 }
 0x288   : > { %v6309_v4 = vpop.f32.mrf.mxu1  ;;  %9091 = vtanh.f32 %v6612_v57  ;;  %v6615_v29 = vadd.f32 %v11509_v35, %v6592_v39 }
 0x289   : > { %v6594_v3 = vadd.f32 %v6578_v55, %v11677_v25  ;;  %v6332_v24 = vadd.f32 %v6309_v4, %v6102_v47  ;;  %v6563_v46 = vadd.f32 %v9055_v32, %v6333_v12  ;;  %v6577_v45 = vmul.f32 %v11493_v63, %v6560_v61  ;;  %v9080_v22 = vpop.eup %9079 }
 0x28a   : > { %6637 = vxpose.xlu0.b32.cont [2/16] (narrow) %v9078_v60, 8  ;;  %9093 = vtanh.f32 %v6613_v48 }
 0x28b   : > { %v6580_v13 = vmul.f32 %v11493_v63, %v6563_v46  ;;  %v6562_v42 = vadd.f32 %v6539_v21, %v6332_v24  ;;  %v6593_v56 = vadd.f32 %v6577_v45, %v11678_v1  ;;  %v9082_v40 = vpop.eup %9081  ;;  %v6617_v7 = vadd.f32 %v11509_v35, %v6594_v3 }
 0x28d   : > { %v6596_v53 = vadd.f32 %v6580_v13, %v11679_v34  ;;  %v6579_v11 = vmul.f32 %v11493_v63, %v6562_v42  ;;  %v9084_v0 = vpop.eup %9083  ;;  %v6614_v63 = vadd.f32 %v11509_v35, %v6591_v58  ;;  %v6616_v43 = vadd.f32 %v11509_v35, %v6593_v56 }
 0x28e   : > { %6638 = vxpose.xlu0.b32.cont [3/16] (narrow) %v9080_v22, 8 }
 0x28f   : > { %v6595_v36 = vadd.f32 %v6579_v11, %v11680_v6  ;;  %v9086_v62 = vpop.eup %9085  ;;  %9095 = vtanh.f32 %v6614_v63  ;;  %v6619_v5 = vadd.f32 %v11509_v35, %v6596_v53 }
 0x290   : > { %9097 = vtanh.f32 %v6615_v29 }
 0x291   : > { %v9088_v31 = vpop.eup %9087  ;;  %9099 = vtanh.f32 %v6616_v43  ;;  %v6618_v44 = vadd.f32 %v11509_v35, %v6595_v36 }
 0x292   : > { %6639 = vxpose.xlu0.b32.cont [4/16] (narrow) %v9082_v40, 8  ;;  %9101 = vtanh.f32 %v6617_v7 }
 0x293   : > { %v9090_v54 = vpop.eup %9089  ;;  %9103 = vtanh.f32 %v6618_v44 }
 0x294   : > { %9105 = vtanh.f32 %v6619_v5 }
 0x295   : > { %v9092_v27 = vpop.eup %9091 }
 0x296   : > { %6640 = vxpose.xlu0.b32.cont [5/16] (narrow) %v9084_v0, 8 }
 0x297   : > { %v9094_v51 = vpop.eup %9093 }
 0x29a   : > { %6641 = vxpose.xlu0.b32.cont [6/16] (narrow) %v9086_v62, 8 }
 0x29c   : > { %v9096_v2 = vpop.eup %9095 }
 0x29d   : > { %v9098_v49 = vpop.eup %9097 }
 0x29e   : > { %6642 = vxpose.xlu0.b32.cont [7/16] (narrow) %v9088_v31, 8  ;;  %v9100_v14 = vpop.eup %9099 }
 0x29f   : > { %v9102_v59 = vpop.eup %9101 }
 0x2a0   : > { %v9104_v38 = vpop.eup %9103 }
 0x2a1   : > { %v9106_v26 = vpop.eup %9105 }
 0x2a2   : > { %6643 = vxpose.xlu0.b32.cont [8/16] (narrow) %v9090_v54, 8 }
 0x2a6   : > { %6644 = vxpose.xlu0.b32.cont [9/16] (narrow) %v9092_v27, 8 }
 0x2aa   : > { %6645 = vxpose.xlu0.b32.cont [10/16] (narrow) %v9094_v51, 8 }
 0x2ae   : > { %6646 = vxpose.xlu0.b32.cont [11/16] (narrow) %v9096_v2, 8 }
 0x2b2   : > { %6647 = vxpose.xlu0.b32.cont [12/16] (narrow) %v9098_v49, 8 }
 0x2b6   : > { %6648 = vxpose.xlu0.b32.cont [13/16] (narrow) %v9100_v14, 8 }
 0x2ba   : > { %6649 = vxpose.xlu0.b32.cont [14/16] (narrow) %v9102_v59, 8 }
 0x2be   : > { %6650 = vxpose.xlu0.b32.cont [15/16] (narrow) %v9104_v38, 8 }
 0x2c2   : > { %6651 = vxpose.xlu0.b32.end [16/16] (narrow) %v9106_v26, 8 }
 0x302   : > { %v6652_v35 = vpop.trf.xlu0 }
 0x303   : > { %6668 = vst [vmem:[%s360_s7] sm:$0xf] %v6652_v35 }
 0x304 PF: > { %s15_s18 = sadd.s32 1, %s9113_s18  }
 0x305   : > { %p12_p8 = scmp.ge.s32.totalorder %s15_s18, 18  }
 0x307   :  { %14 = sbr.rel (!%p12_p8) target bundleno = 1 (0x1), region = 108 }

// kernel: _lambda_.2
= control target key start
LH: loop header
LB: loop body
LE: loop exit
PB: predicated region body
PF: predicated region fallthrough
CT: control target
= control target key end

     0   :  { %s10033_s30 = smov 0   ;;  %s12884_s0 = inlined_call_operand.vmem [shape: f32[16,18,10,4], index: 0, kind: input, shape index: {}, may-alias: {0,1,2}]   ;;  %s12885_s1 = inlined_call_operand.vmem [shape: f32[16,18,10,4], index: 1, kind: input, shape index: {}, may-alias: {0,1,2}]   ;;  %s12886_s2 = inlined_call_operand.vmem [shape: f32[16,18,10,4], index: 2, kind: input, shape index: {}, may-alias: {0,1,2}]   ;;  %s12887_s3 = inlined_call_operand.vmem [shape: f32[27,4,32], index: 3, kind: input, shape index: {}]   ;;  %s12888_s4 = inlined_call_operand.vmem [shape: f32[1,32], index: 4, kind: input, shape index: {}]   ;;  %s12889_s5 = inlined_call_operand.vmem [shape: f32[32,32], index: 5, kind: input, shape index: {}]   ;;  %s12890_s6 = inlined_call_operand.vmem [shape: f32[32,8], index: 6, kind: input, shape index: {}]   ;;  %s12891_s7 = inlined_call_operand.vmem [shape: f32[8,32], index: 7, kind: input, shape index: {}]   ;;  %s12892_s8 = inlined_call_operand.vmem [shape: f32[1,32], index: 8, kind: input, shape index: {}]   ;;  %s12893_s9 = inlined_call_operand.vmem [shape: f32[16,18,10,32], index: 9, kind: output, shape index: {}]  }
   0x1 LB: > { %s10039_s10 = sadd.s32 4294967295, %s9980_s30   ;;  %p7705_p0 = scmp.ge.s32.totalorder %s9980_s30, 1  ;;  %s9980_s30 = sphi %s10033_s30, %s19_s30  }
   0x2   : > { %p363_p1 = scmp.lt.s32.totalorder %s9980_s30, 17 }
   0x4   : > { %p364_p2 = pnand %p7705_p0, %p363_p1 }
   0x6   : > { %367 = sbr.rel (%p364_p2) target bundleno = 1582 (0x62e), region = 56 }
   0xb   : > { %v7730_v0 = vld [vmem:[%s12887_s3 + $0x4] sm:$0xf]  ;;  %vm572_vm0 = vcmask 1043456   ;;  %v504_v1 = vld [vmem:[%s12887_s3] sm:$0xf]  ;;  %s10050_s15 = sadd.s32 4294967295, %s10039_s10 }
   0xc   : > { %9105 = vmatprep.subr.msk.mxu0 %vm572_vm0, %v7730_v0  ;;  %9131 = vmatprep.subr.msk.mxu1 %vm572_vm0, %v504_v1  ;;  %p424_p3 = scmp.gt.s32.totalorder %s10050_s15, 0  ;;  %p7707_p4 = scmp.lt.s32.totalorder %s10050_s15, 15  ;;  %v7765_v2 = vld [vmem:[%s12887_s3 + $0x8] sm:$0xf]  ;;  %v7799_v3 = vld [vmem:[%s12887_s3 + $0xc] sm:$0xf] }
   0xd   : > { %9106 = vmatpush3.msk.msra.mxu0 %vm572_vm0, %v7730_v0  ;;  %9132 = vmatpush3.msk.msra.mxu1 %vm572_vm0, %v504_v1  ;;  %vm523_vm1 = vcmask 31744   ;;  %v10095_v10 = vld [vmem:[%s12887_s3 + $0x10] sm:$0xf]  ;;  %v10100_v11 = vld [vmem:[%s12887_s3 + $0x14] sm:$0xf]  ;;  %p438_p6 = scmp.gt.s32.totalorder %s10039_s10, 0 }
   0xe   : > { %s425_s20 = scalar_select %p424_p3, %s10050_s15, 0  ;;  %9157 = vmatprep.subr.msk.mxu0 %vm572_vm0, %v7765_v2  ;;  %9183 = vmatprep.subr.msk.mxu1 %vm572_vm0, %v7799_v3  ;;  %v7901_v41 = vld [vmem:[%s12887_s3 + $0x18] sm:$0xf]  ;;  %v7935_v42 = vld [vmem:[%s12887_s3 + $0x1c] sm:$0xf]  ;;  %vm6751_vm2 = vcmask 261120  }
   0xf   : > { %v7969_v57 = vld [vmem:[%s12887_s3 + $0x20] sm:$0xf]  ;;  %v7988_v58 = vld [vmem:[%s12887_s3 + $0x28] sm:$0xf]  ;;  %v7987_v61 = vld [vmem:[%s12887_s3 + $0x24] sm:$0xf] }
  0x10   : > { %s13063_s20 = smov (!%p7707_p4, %s425_s20), 15  ;;  %v8023_v62 = vld [vmem:[%s12887_s3 + $0x2c] sm:$0xf]  ;;  %p7713_p7 = scmp.lt.s32.totalorder %s10039_s10, 15  ;;  %vm7142_vm3 = vcmask 64512   ;;  %vm7537_vm4 = vcmask 254976  }
  0x11   : > { %p428_p5 = scmp.lt.s32.totalorder %s13063_s20, 15  ;;  %s11058_s27 = sadd.s32 1, %s10039_s10 }
  0x12   : > { %s439_s23 = scalar_select %p438_p6, %s10039_s10, 0 }
  0x13   : > { %s13065_s20 = smov (!%p428_p5, %s13063_s20), 15  ;;  %p452_p9 = scmp.gt.s32.totalorder %s11058_s27, 0 }
  0x14   : > { %s9897_s21 = smul.u32 288, %s13065_s20  ;;  %s13067_s23 = smov (!%p7713_p7, %s439_s23), 15 }
  0x15   : > { %p442_p8 = scmp.lt.s32.totalorder %s13067_s23, 15  ;;  %p7719_p10 = scmp.lt.s32.totalorder %s11058_s27, 15 }
  0x16   : > { %s10070_s24 = scalar_lea.vmem %s12884_s0, %s9897_s21  ;;  %p472_p12 = scmp.ge.s32.totalorder %s10050_s15, 0 }
  0x17   : > { %v505_v4 = vld [vmem:[%s10070_s24 + $0x1] sm:$0xff]  ;;  %v10075_v6 = vld [vmem:[%s10070_s24 + $0x11] sm:$0xff]  ;;  %s13069_s23 = smov (!%p442_p8, %s13067_s23), 15  ;;  %p473_p13 = scmp.lt.s32.totalorder %s10050_s15, 16 }
  0x18   : > { %v488_v5 = vld [vmem:[%s10070_s24] sm:$0xff]  ;;  %9107 = vmatprep.mubr.msk.f32.mxu0 %vm523_vm1, %v505_v4  ;;  %v10080_v7 = vld [vmem:[%s10070_s24 + $0x10] sm:$0xff]  ;;  %s9898_s25 = smul.u32 288, %s13069_s23  ;;  %p477_p0 = scmp.ge.s32.totalorder %s10039_s10, 0 }
  0x19   : > { %9133 = vmatprep.mubr.msk.f32.mxu1 %vm523_vm1, %v488_v5  ;;  %v10083_v8 = vld [vmem:[%s10070_s24 + $0x21] sm:$0xff]  ;;  %9108 = vmatmul.mubr.msk.f32.vlgmr.msra.gmra.mxu0 %vm523_vm1, %v10075_v6  ;;  %v10106_v12 = vld [vmem:[%s10070_s24 + $0x31] sm:$0xff]  ;;  %p478_p1 = scmp.lt.s32.totalorder %s10039_s10, 16  ;;  %p11976_p2 = pnand %p473_p13, %p472_p12 }
  0x1a   : > { %v10086_v9 = vld [vmem:[%s10070_s24 + $0x20] sm:$0xff]  ;;  %9134 = vmatmul.mubr.msk.f32.vlgmr.msra.gmra.mxu1 %vm523_vm1, %v10080_v7  ;;  %9158 = vmatpush3.msk.msra.mxu0 %vm572_vm0, %v7765_v2  ;;  %v10109_v13 = vld [vmem:[%s10070_s24 + $0x30] sm:$0xff]  ;;  %s10509_s28 = scalar_lea.vmem %s12885_s1, %s9898_s25  ;;  %p483_p4 = scmp.ge.s32.totalorder %s11058_s27, 0 }
  0x1b   : > { %9110 = vmatprep.mubr.msk.f32.mxu0 %vm523_vm1, %v10083_v8  ;;  %9136 = vmatprep.mubr.msk.f32.mxu1 %vm523_vm1, %v10086_v9  ;;  %v10114_v14 = vld [vmem:[%s10070_s24 + $0x41] sm:$0xff]  ;;  %v10133_v16 = vld [vmem:[%s10070_s24 + $0x51] sm:$0xff]  ;;  %p11988_p3 = pnand %p478_p1, %p477_p0  ;;  %p484_p5 = scmp.lt.s32.totalorder %s11058_s27, 16 }
  0x1c   : > { %v10117_v15 = vld [vmem:[%s10070_s24 + $0x40] sm:$0xff]  ;;  %9184 = vmatpush3.msk.msra.mxu1 %vm572_vm0, %v7799_v3  ;;  %9209 = vmatprep.subr.msk.mxu0 %vm572_vm0, %v10095_v10  ;;  %v10136_v17 = vld [vmem:[%s10070_s24 + $0x50] sm:$0xff]  ;;  %s7727_s13 = scalar_select %p11976_p2, 0.0, 1.0 }
  0x1d   : > { %9235 = vmatprep.subr.msk.mxu1 %vm572_vm0, %v10100_v11  ;;  %9111 = vmatmul.mubr.msk.f32.gmra.mxu0 %vm523_vm1, %v10106_v12  ;;  %v10139_v18 = vld [vmem:[%s10070_s24 + $0x61] sm:$0xff]  ;;  %v10153_v20 = vld [vmem:[%s10070_s24 + $0x71] sm:$0xff]  ;;  %p12296_p6 = pnand %p484_p5, %p483_p4  ;;  %s13075_s10 = smov (!%p7713_p7, %s10039_s10), 15 }
  0x1e   : > { %9137 = vmatmul.mubr.msk.f32.gmra.mxu1 %vm523_vm1, %v10109_v13  ;;  %9113 = vmatprep.mubr.msk.f32.mxu0 %vm523_vm1, %v10114_v14  ;;  %v10142_v19 = vld [vmem:[%s10070_s24 + $0x60] sm:$0xff]  ;;  %v10156_v21 = vld [vmem:[%s10070_s24 + $0x70] sm:$0xff] }
  0x1f   : > { %9139 = vmatprep.mubr.msk.f32.mxu1 %vm523_vm1, %v10117_v15  ;;  %v10159_v22 = vld [vmem:[%s10070_s24 + $0x81] sm:$0xff]  ;;  %v10173_v24 = vld [vmem:[%s10070_s24 + $0x91] sm:$0xff] }
  0x20   : > { %v10162_v23 = vld [vmem:[%s10070_s24 + $0x80] sm:$0xff]  ;;  %v10176_v25 = vld [vmem:[%s10070_s24 + $0x90] sm:$0xff] }
  0x21   : > { %9114 = vmatmul.mubr.msk.f32.gmra.mxu0 %vm523_vm1, %v10133_v16  ;;  %v10179_v26 = vld [vmem:[%s10070_s24 + $0xa1] sm:$0xff]  ;;  %v10193_v28 = vld [vmem:[%s10070_s24 + $0xb1] sm:$0xff] }
  0x22   : > { %9140 = vmatmul.mubr.msk.f32.gmra.mxu1 %vm523_vm1, %v10136_v17  ;;  %9116 = vmatprep.mubr.msk.f32.mxu0 %vm523_vm1, %v10139_v18  ;;  %v10182_v27 = vld [vmem:[%s10070_s24 + $0xa0] sm:$0xff]  ;;  %v10196_v29 = vld [vmem:[%s10070_s24 + $0xb0] sm:$0xff] }
  0x23   : > { %9142 = vmatprep.mubr.msk.f32.mxu1 %vm523_vm1, %v10142_v19  ;;  %v10199_v30 = vld [vmem:[%s10070_s24 + $0xc1] sm:$0xff]  ;;  %v10213_v32 = vld [vmem:[%s10070_s24 + $0xd1] sm:$0xff] }
  0x24   : > { %v10202_v31 = vld [vmem:[%s10070_s24 + $0xc0] sm:$0xff]  ;;  %v10216_v33 = vld [vmem:[%s10070_s24 + $0xd0] sm:$0xff] }
  0x25   : > { %9117 = vmatmul.mubr.msk.f32.gmra.mxu0 %vm523_vm1, %v10153_v20  ;;  %v10219_v34 = vld [vmem:[%s10070_s24 + $0xe1] sm:$0xff]  ;;  %v10233_v36 = vld [vmem:[%s10070_s24 + $0xf1] sm:$0xff] }
  0x26   : > { %9143 = vmatmul.mubr.msk.f32.gmra.mxu1 %vm523_vm1, %v10156_v21  ;;  %9119 = vmatprep.mubr.msk.f32.mxu0 %vm523_vm1, %v10159_v22  ;;  %v10222_v35 = vld [vmem:[%s10070_s24 + $0xe0] sm:$0xff]  ;;  %v10236_v37 = vld [vmem:[%s10070_s24 + $0xf0] sm:$0xff] }
  0x27   : > { %9145 = vmatprep.mubr.msk.f32.mxu1 %vm523_vm1, %v10162_v23  ;;  %v917_v38 = vld [vmem:[%s10070_s24 + $0x2] sm:$0xff]  ;;  %v918_v39 = vld [vmem:[%s10070_s24 + $0x12] sm:$0xff] }
  0x28   : > { %v10248_v40 = vld [vmem:[%s10070_s24 + $0x22] sm:$0xff]  ;;  %v10264_v43 = vld [vmem:[%s10070_s24 + $0x32] sm:$0xff] }
  0x29   : > { %9120 = vmatmul.mubr.msk.f32.gmra.mxu0 %vm523_vm1, %v10173_v24  ;;  %v10269_v44 = vld [vmem:[%s10070_s24 + $0x42] sm:$0xff]  ;;  %v10284_v45 = vld [vmem:[%s10070_s24 + $0x52] sm:$0xff] }
  0x2a   : > { %9146 = vmatmul.mubr.msk.f32.gmra.mxu1 %vm523_vm1, %v10176_v25  ;;  %9122 = vmatprep.mubr.msk.f32.mxu0 %vm523_vm1, %v10179_v26  ;;  %v10287_v46 = vld [vmem:[%s10070_s24 + $0x62] sm:$0xff]  ;;  %v10298_v47 = vld [vmem:[%s10070_s24 + $0x72] sm:$0xff] }
  0x2b   : > { %9148 = vmatprep.mubr.msk.f32.mxu1 %vm523_vm1, %v10182_v27  ;;  %v10301_v48 = vld [vmem:[%s10070_s24 + $0x82] sm:$0xff]  ;;  %v10312_v49 = vld [vmem:[%s10070_s24 + $0x92] sm:$0xff] }
  0x2c   : > { %v10315_v50 = vld [vmem:[%s10070_s24 + $0xa2] sm:$0xff]  ;;  %v10326_v51 = vld [vmem:[%s10070_s24 + $0xb2] sm:$0xff] }
  0x2d   : > { %9123 = vmatmul.mubr.msk.f32.gmra.mxu0 %vm523_vm1, %v10193_v28  ;;  %v10329_v52 = vld [vmem:[%s10070_s24 + $0xc2] sm:$0xff]  ;;  %v10340_v53 = vld [vmem:[%s10070_s24 + $0xd2] sm:$0xff] }
  0x2e   : > { %9149 = vmatmul.mubr.msk.f32.gmra.mxu1 %vm523_vm1, %v10196_v29  ;;  %9125 = vmatprep.mubr.msk.f32.mxu0 %vm523_vm1, %v10199_v30  ;;  %v10343_v54 = vld [vmem:[%s10070_s24 + $0xe2] sm:$0xff]  ;;  %v10354_v55 = vld [vmem:[%s10070_s24 + $0xf2] sm:$0xff] }
  0x2f   : > { %9151 = vmatprep.mubr.msk.f32.mxu1 %vm523_vm1, %v10202_v31  ;;  %v10357_v56 = vld [vmem:[%s10070_s24 + $0x100] sm:$0xff]  ;;  %v7900_v63 = vld [vmem:[%s10070_s24 + $0x110] sm:$0xff] }
  0x30   : > { %v7832_v59 = vld [vmem:[%s10070_s24 + $0x101] sm:$0xff]  ;;  %v7934_v0 = vld [vmem:[%s10070_s24 + $0x111] sm:$0xff] }
  0x31   : > { %9126 = vmatmul.mubr.msk.f32.gmra.mxu0 %vm523_vm1, %v10213_v32  ;;  %v10434_v60 = vld [vmem:[%s10070_s24 + $0x102] sm:$0xff]  ;;  %v10527_v2 = vld [vmem:[%s10509_s28 + $0x11] sm:$0xff] }
  0x32   : > { %9152 = vmatmul.mubr.msk.f32.gmra.mxu1 %vm523_vm1, %v10216_v33  ;;  %9128 = vmatprep.mubr.msk.f32.mxu0 %vm523_vm1, %v10219_v34  ;;  %v2580_v1 = vld [vmem:[%s10509_s28 + $0x1] sm:$0xff]  ;;  %v8057_v4 = vld [vmem:[%s12887_s3 + $0x30] sm:$0xf]  ;;  %v10542_v5 = vld [vmem:[%s12887_s3 + $0x34] sm:$0xf] }
  0x33   : > { %9154 = vmatprep.mubr.msk.f32.mxu1 %vm523_vm1, %v10222_v35  ;;  %v10530_v3 = vld [vmem:[%s10509_s28 + $0x21] sm:$0xff] }
  0x35   : > { %9129 = vmatmul.mubr.msk.f32.gmra.mxu0 %vm523_vm1, %v10233_v36 }
  0x36   : > { %9155 = vmatmul.mubr.msk.f32.gmra.mxu1 %vm523_vm1, %v10236_v37  ;;  %9159 = vmatprep.mubr.msk.f32.mxu0 %vm523_vm1, %v917_v38  ;;  %v10732_v38 = vld [vmem:[%s10509_s28 + $0x80] sm:$0xff] }
  0x37   : > { %9185 = vmatprep.mubr.msk.f32.mxu1 %vm523_vm1, %v10080_v7  ;;  %v10553_v7 = vld [vmem:[%s10509_s28 + $0x41] sm:$0xff] }
  0x39   : > { %9160 = vmatmul.mubr.msk.f32.vlgmr.msra.gmra.mxu0 %vm523_vm1, %v918_v39 }
  0x3a   : > { %9186 = vmatmul.mubr.msk.f32.vlgmr.msra.gmra.mxu1 %vm523_vm1, %v10086_v9  ;;  %9210 = vmatpush3.msk.msra.mxu0 %vm572_vm0, %v10095_v10  ;;  %v10582_v10 = vld [vmem:[%s10509_s28 + $0x71] sm:$0xff] }
  0x3b   : > { %9162 = vmatprep.mubr.msk.f32.mxu0 %vm523_vm1, %v10248_v40  ;;  %9188 = vmatprep.mubr.msk.f32.mxu1 %vm523_vm1, %v10109_v13 }
  0x3c   : > { %9236 = vmatpush3.msk.msra.mxu1 %vm572_vm0, %v10100_v11  ;;  %9261 = vmatprep.subr.msk.mxu0 %vm572_vm0, %v7901_v41  ;;  %v10585_v11 = vld [vmem:[%s10509_s28 + $0x81] sm:$0xff] }
  0x3d   : > { %9287 = vmatprep.subr.msk.mxu1 %vm572_vm0, %v7935_v42  ;;  %9163 = vmatmul.mubr.msk.f32.gmra.mxu0 %vm523_vm1, %v10264_v43 }
  0x3e   : > { %9189 = vmatmul.mubr.msk.f32.gmra.mxu1 %vm523_vm1, %v10117_v15  ;;  %9165 = vmatprep.mubr.msk.f32.mxu0 %vm523_vm1, %v10269_v44 }
  0x3f   : > { %9191 = vmatprep.mubr.msk.f32.mxu1 %vm523_vm1, %v10136_v17 }
  0x41   : > { %9166 = vmatmul.mubr.msk.f32.gmra.mxu0 %vm523_vm1, %v10284_v45 }
  0x42   : > { %9192 = vmatmul.mubr.msk.f32.gmra.mxu1 %vm523_vm1, %v10142_v19  ;;  %9168 = vmatprep.mubr.msk.f32.mxu0 %vm523_vm1, %v10287_v46 }
  0x43   : > { %9194 = vmatprep.mubr.msk.f32.mxu1 %vm523_vm1, %v10156_v21 }
  0x45   : > { %9169 = vmatmul.mubr.msk.f32.gmra.mxu0 %vm523_vm1, %v10298_v47 }
  0x46   : > { %9195 = vmatmul.mubr.msk.f32.gmra.mxu1 %vm523_vm1, %v10162_v23  ;;  %9171 = vmatprep.mubr.msk.f32.mxu0 %vm523_vm1, %v10301_v48 }
  0x47   : > { %9197 = vmatprep.mubr.msk.f32.mxu1 %vm523_vm1, %v10176_v25 }
  0x49   : > { %9172 = vmatmul.mubr.msk.f32.gmra.mxu0 %vm523_vm1, %v10312_v49 }
  0x4a   : > { %9198 = vmatmul.mubr.msk.f32.gmra.mxu1 %vm523_vm1, %v10182_v27  ;;  %9174 = vmatprep.mubr.msk.f32.mxu0 %vm523_vm1, %v10315_v50 }
  0x4b   : > { %9200 = vmatprep.mubr.msk.f32.mxu1 %vm523_vm1, %v10196_v29 }
  0x4d   : > { %9175 = vmatmul.mubr.msk.f32.gmra.mxu0 %vm523_vm1, %v10326_v51 }
  0x4e   : > { %9201 = vmatmul.mubr.msk.f32.gmra.mxu1 %vm523_vm1, %v10202_v31  ;;  %9177 = vmatprep.mubr.msk.f32.mxu0 %vm523_vm1, %v10329_v52 }
  0x4f   : > { %9203 = vmatprep.mubr.msk.f32.mxu1 %vm523_vm1, %v10216_v33 }
  0x51   : > { %9178 = vmatmul.mubr.msk.f32.gmra.mxu0 %vm523_vm1, %v10340_v53 }
  0x52   : > { %9204 = vmatmul.mubr.msk.f32.gmra.mxu1 %vm523_vm1, %v10222_v35  ;;  %9180 = vmatprep.mubr.msk.f32.mxu0 %vm523_vm1, %v10343_v54 }
  0x53   : > { %9206 = vmatprep.mubr.msk.f32.mxu1 %vm523_vm1, %v10236_v37 }
  0x55   : > { %9181 = vmatmul.mubr.msk.f32.gmra.mxu0 %vm523_vm1, %v10354_v55 }
  0x56   : > { %9207 = vmatmul.mubr.msk.f32.gmra.mxu1 %vm523_vm1, %v10357_v56  ;;  %9211 = vmatprep.mubr.msk.f32.mxu0 %vm523_vm1, %v10075_v6  ;;  %v10548_v6 = vld [vmem:[%s10509_s28 + $0x31] sm:$0xff] }
  0x57   : > { %9237 = vmatprep.mubr.msk.f32.mxu1 %vm523_vm1, %v918_v39  ;;  %v10735_v39 = vld [vmem:[%s10509_s28 + $0x82] sm:$0xff] }
  0x59   : > { %9212 = vmatmul.mubr.msk.f32.vlgmr.msra.gmra.mxu0 %vm523_vm1, %v10083_v8 }
  0x5a   : > { %9238 = vmatmul.mubr.msk.f32.vlgmr.msra.gmra.mxu1 %vm523_vm1, %v10248_v40  ;;  %9262 = vmatpush3.msk.msra.mxu0 %vm572_vm0, %v7901_v41  ;;  %v10749_v41 = vld [vmem:[%s10509_s28 + $0x92] sm:$0xff] }
  0x5b   : > { %9214 = vmatprep.mubr.msk.f32.mxu0 %vm523_vm1, %v10106_v12  ;;  %9240 = vmatprep.mubr.msk.f32.mxu1 %vm523_vm1, %v10264_v43 }
  0x5c   : > { %9288 = vmatpush3.msk.msra.mxu1 %vm572_vm0, %v7935_v42  ;;  %9313 = vmatprep.subr.msk.mxu0 %vm572_vm0, %v7969_v57  ;;  %v10752_v42 = vld [vmem:[%s10509_s28 + $0xa0] sm:$0xff] }
  0x5d   : > { %9339 = vmatprep.subr.msk.mxu1 %vm572_vm0, %v7988_v58  ;;  %9215 = vmatmul.mubr.msk.f32.gmra.mxu0 %vm523_vm1, %v10114_v14 }
  0x5e   : > { %9241 = vmatmul.mubr.msk.f32.gmra.mxu1 %vm523_vm1, %v10269_v44  ;;  %9217 = vmatprep.mubr.msk.f32.mxu0 %vm523_vm1, %v10133_v16 }
  0x5f   : > { %9243 = vmatprep.mubr.msk.f32.mxu1 %vm523_vm1, %v10284_v45 }
  0x61   : > { %9218 = vmatmul.mubr.msk.f32.gmra.mxu0 %vm523_vm1, %v10139_v18 }
  0x62   : > { %9244 = vmatmul.mubr.msk.f32.gmra.mxu1 %vm523_vm1, %v10287_v46  ;;  %9220 = vmatprep.mubr.msk.f32.mxu0 %vm523_vm1, %v10153_v20 }
  0x63   : > { %9246 = vmatprep.mubr.msk.f32.mxu1 %vm523_vm1, %v10298_v47 }
  0x65   : > { %9221 = vmatmul.mubr.msk.f32.gmra.mxu0 %vm523_vm1, %v10159_v22 }
  0x66   : > { %9247 = vmatmul.mubr.msk.f32.gmra.mxu1 %vm523_vm1, %v10301_v48  ;;  %9223 = vmatprep.mubr.msk.f32.mxu0 %vm523_vm1, %v10173_v24 }
  0x67   : > { %9249 = vmatprep.mubr.msk.f32.mxu1 %vm523_vm1, %v10312_v49 }
  0x69   : > { %9224 = vmatmul.mubr.msk.f32.gmra.mxu0 %vm523_vm1, %v10179_v26 }
  0x6a   : > { %9250 = vmatmul.mubr.msk.f32.gmra.mxu1 %vm523_vm1, %v10315_v50  ;;  %9226 = vmatprep.mubr.msk.f32.mxu0 %vm523_vm1, %v10193_v28 }
  0x6b   : > { %9252 = vmatprep.mubr.msk.f32.mxu1 %vm523_vm1, %v10326_v51 }
  0x6d   : > { %9227 = vmatmul.mubr.msk.f32.gmra.mxu0 %vm523_vm1, %v10199_v30 }
  0x6e   : > { %9253 = vmatmul.mubr.msk.f32.gmra.mxu1 %vm523_vm1, %v10329_v52  ;;  %9229 = vmatprep.mubr.msk.f32.mxu0 %vm523_vm1, %v10213_v32 }
  0x6f   : > { %9255 = vmatprep.mubr.msk.f32.mxu1 %vm523_vm1, %v10340_v53 }
  0x71   : > { %9230 = vmatmul.mubr.msk.f32.gmra.mxu0 %vm523_vm1, %v10219_v34 }
  0x72   : > { %9256 = vmatmul.mubr.msk.f32.gmra.mxu1 %vm523_vm1, %v10343_v54  ;;  %9232 = vmatprep.mubr.msk.f32.mxu0 %vm523_vm1, %v10233_v36 }
  0x73   : > { %9258 = vmatprep.mubr.msk.f32.mxu1 %vm523_vm1, %v10354_v55 }
  0x75   : > { %9233 = vmatmul.mubr.msk.f32.gmra.mxu0 %vm523_vm1, %v7832_v59 }
  0x76   : > { %9259 = vmatmul.mubr.msk.f32.gmra.mxu1 %vm523_vm1, %v10434_v60  ;;  %9263 = vmatprep.mubr.msk.f32.mxu0 %vm523_vm1, %v10086_v9  ;;  %v10571_v9 = vld [vmem:[%s10509_s28 + $0x61] sm:$0xff] }
  0x77   : > { %9289 = vmatprep.mubr.msk.f32.mxu1 %vm523_vm1, %v10083_v8  ;;  %v10568_v8 = vld [vmem:[%s10509_s28 + $0x51] sm:$0xff] }
  0x79   : > { %9264 = vmatmul.mubr.msk.f32.vlgmr.msra.gmra.mxu0 %vm523_vm1, %v10109_v13  ;;  %v10599_v13 = vld [vmem:[%s10509_s28 + $0xa1] sm:$0xff] }
  0x7a   : > { %9290 = vmatmul.mubr.msk.f32.vlgmr.msra.gmra.mxu1 %vm523_vm1, %v10106_v12  ;;  %9314 = vmatpush3.msk.msra.mxu0 %vm572_vm0, %v7969_v57  ;;  %v10596_v12 = vld [vmem:[%s10509_s28 + $0x91] sm:$0xff]  ;;  %v10831_v57 = vld [vmem:[%s12887_s3 + $0x44] sm:$0xf] }
  0x7b   : > { %9266 = vmatprep.mubr.msk.f32.mxu0 %vm523_vm1, %v10117_v15  ;;  %9292 = vmatprep.mubr.msk.f32.mxu1 %vm523_vm1, %v10114_v14  ;;  %v10610_v14 = vld [vmem:[%s10509_s28 + $0xb1] sm:$0xff]  ;;  %v10613_v15 = vld [vmem:[%s10509_s28 + $0xc1] sm:$0xff] }
  0x7c   : > { %9340 = vmatpush3.msk.msra.mxu1 %vm572_vm0, %v7988_v58  ;;  %9365 = vmatprep.subr.msk.mxu0 %vm572_vm0, %v7987_v61  ;;  %12910 = vst [vmem:[#allocation2_spill] sm:$0xff] %v10610_v14  ;;  %12911 = vst [vmem:[#allocation3_spill] sm:$0xff] %v10613_v15 }
  0x7d   : > { %9391 = vmatprep.subr.msk.mxu1 %vm572_vm0, %v8023_v62  ;;  %9267 = vmatmul.mubr.msk.f32.gmra.mxu0 %vm523_vm1, %v10136_v17  ;;  %v10627_v17 = vld [vmem:[%s10509_s28 + $0xe1] sm:$0xff] }
  0x7e   : > { %9293 = vmatmul.mubr.msk.f32.gmra.mxu1 %vm523_vm1, %v10133_v16  ;;  %9269 = vmatprep.mubr.msk.f32.mxu0 %vm523_vm1, %v10142_v19  ;;  %v10624_v16 = vld [vmem:[%s10509_s28 + $0xd1] sm:$0xff]  ;;  %12913 = vst [vmem:[#allocation5_spill] sm:$0xff] %v10627_v17 }
  0x7f   : > { %9295 = vmatprep.mubr.msk.f32.mxu1 %vm523_vm1, %v10139_v18  ;;  %12912 = vst [vmem:[#allocation4_spill] sm:$0xff] %v10624_v16  ;;  %v7968_v18 = vld [vmem:[%s10070_s24 + $0x112] sm:$0xff]  ;;  %s453_s24 = scalar_select %p452_p9, %s11058_s27, 0 }
  0x80   : > { %v10639_v19 = vld [vmem:[%s10509_s28 + $0xf1] sm:$0xff]  ;;  %s7729_s27 = scalar_select %p12296_p6, 0.0, 1.0 }
  0x81   : > { %9270 = vmatmul.mubr.msk.f32.gmra.mxu0 %vm523_vm1, %v10156_v21  ;;  %12914 = vst [vmem:[#allocation6_spill] sm:$0xff] %v10639_v19  ;;  %v2990_v21 = vld [vmem:[%s10509_s28 + $0x2] sm:$0xff]  ;;  %s13071_s24 = smov (!%p7719_p10, %s453_s24), 15 }
  0x82   : > { %9296 = vmatmul.mubr.msk.f32.gmra.mxu1 %vm523_vm1, %v10153_v20  ;;  %9272 = vmatprep.mubr.msk.f32.mxu0 %vm523_vm1, %v10162_v23  ;;  %v2562_v20 = vld [vmem:[%s10509_s28] sm:$0xff]  ;;  %v10652_v23 = vld [vmem:[%s10509_s28 + $0x12] sm:$0xff]  ;;  %p456_p11 = scmp.lt.s32.totalorder %s13071_s24, 15 }
  0x83   : > { %9298 = vmatprep.mubr.msk.f32.mxu1 %vm523_vm1, %v10159_v22  ;;  %v10649_v22 = vld [vmem:[%s10509_s28 + $0x10] sm:$0xff] }
  0x84   : > { %s13073_s24 = smov (!%p456_p11, %s13071_s24), 15 }
  0x85   : > { %9273 = vmatmul.mubr.msk.f32.gmra.mxu0 %vm523_vm1, %v10176_v25  ;;  %v10658_v25 = vld [vmem:[%s10509_s28 + $0x22] sm:$0xff]  ;;  %s9899_s14 = smul.u32 288, %s13073_s24 }
  0x86   : > { %9299 = vmatmul.mubr.msk.f32.gmra.mxu1 %vm523_vm1, %v10173_v24  ;;  %9275 = vmatprep.mubr.msk.f32.mxu0 %vm523_vm1, %v10182_v27  ;;  %v10655_v24 = vld [vmem:[%s10509_s28 + $0x20] sm:$0xff]  ;;  %v10672_v27 = vld [vmem:[%s12887_s3 + $0x3c] sm:$0xf]  ;;  %s7728_s24 = scalar_select %p11988_p3, 0.0, 1.0 }
  0x87   : > { %9301 = vmatprep.mubr.msk.f32.mxu1 %vm523_vm1, %v10179_v26  ;;  %v10667_v26 = vld [vmem:[%s12887_s3 + $0x38] sm:$0xf]  ;;  %s11185_s18 = scalar_lea.vmem %s12886_s2, %s9899_s14 }
  0x89   : > { %9276 = vmatmul.mubr.msk.f32.gmra.mxu0 %vm523_vm1, %v10196_v29  ;;  %v10681_v29 = vld [vmem:[%s10509_s28 + $0x32] sm:$0xff] }
  0x8a   : > { %9302 = vmatmul.mubr.msk.f32.gmra.mxu1 %vm523_vm1, %v10193_v28  ;;  %9278 = vmatprep.mubr.msk.f32.mxu0 %vm523_vm1, %v10202_v31  ;;  %v10678_v28 = vld [vmem:[%s10509_s28 + $0x30] sm:$0xff]  ;;  %v10689_v31 = vld [vmem:[%s10509_s28 + $0x42] sm:$0xff] }
  0x8b   : > { %9304 = vmatprep.mubr.msk.f32.mxu1 %vm523_vm1, %v10199_v30  ;;  %v10686_v30 = vld [vmem:[%s10509_s28 + $0x40] sm:$0xff] }
  0x8d   : > { %9279 = vmatmul.mubr.msk.f32.gmra.mxu0 %vm523_vm1, %v10216_v33  ;;  %v10709_v33 = vld [vmem:[%s10509_s28 + $0x52] sm:$0xff] }
  0x8e   : > { %9305 = vmatmul.mubr.msk.f32.gmra.mxu1 %vm523_vm1, %v10213_v32  ;;  %9281 = vmatprep.mubr.msk.f32.mxu0 %vm523_vm1, %v10222_v35  ;;  %v10706_v32 = vld [vmem:[%s10509_s28 + $0x50] sm:$0xff]  ;;  %v10715_v35 = vld [vmem:[%s10509_s28 + $0x62] sm:$0xff] }
  0x8f   : > { %9307 = vmatprep.mubr.msk.f32.mxu1 %vm523_vm1, %v10219_v34  ;;  %v10712_v34 = vld [vmem:[%s10509_s28 + $0x60] sm:$0xff] }
  0x91   : > { %9282 = vmatmul.mubr.msk.f32.gmra.mxu0 %vm523_vm1, %v10236_v37  ;;  %v10729_v37 = vld [vmem:[%s10509_s28 + $0x72] sm:$0xff] }
  0x92   : > { %9308 = vmatmul.mubr.msk.f32.gmra.mxu1 %vm523_vm1, %v10233_v36  ;;  %9284 = vmatprep.mubr.msk.f32.mxu0 %vm523_vm1, %v10357_v56  ;;  %v10726_v36 = vld [vmem:[%s10509_s28 + $0x70] sm:$0xff]  ;;  %v10826_v56 = vld [vmem:[%s12887_s3 + $0x40] sm:$0xf] }
  0x93   : > { %9310 = vmatprep.mubr.msk.f32.mxu1 %vm523_vm1, %v7832_v59 }
  0x95   : > { %9285 = vmatmul.mubr.msk.f32.gmra.mxu0 %vm523_vm1, %v7900_v63 }
  0x96   : > { %9311 = vmatmul.mubr.msk.f32.gmra.mxu1 %vm523_vm1, %v7934_v0  ;;  %9315 = vmatprep.mubr.msk.f32.mxu0 %vm523_vm1, %v10248_v40  ;;  %v10746_v40 = vld [vmem:[%s10509_s28 + $0x90] sm:$0xff] }
  0x97   : > { %9341 = vmatprep.mubr.msk.f32.mxu1 %vm523_vm1, %v2580_v1 }
  0x99   : > { %9316 = vmatmul.mubr.msk.f32.vlgmr.msra.gmra.mxu0 %vm523_vm1, %v10264_v43  ;;  %v10755_v43 = vld [vmem:[%s10509_s28 + $0xa2] sm:$0xff] }
  0x9a   : > { %9342 = vmatmul.mubr.msk.f32.vlgmr.msra.gmra.mxu1 %vm523_vm1, %v10527_v2  ;;  %9366 = vmatpush3.msk.msra.mxu0 %vm572_vm0, %v7987_v61 }
  0x9b   : > { %9318 = vmatprep.mubr.msk.f32.mxu0 %vm523_vm1, %v10269_v44  ;;  %9344 = vmatprep.mubr.msk.f32.mxu1 %vm523_vm1, %v10530_v3  ;;  %v10766_v44 = vld [vmem:[%s10509_s28 + $0xb0] sm:$0xff] }
  0x9c   : > { %9392 = vmatpush3.msk.msra.mxu1 %vm572_vm0, %v8023_v62  ;;  %9417 = vmatprep.subr.msk.mxu0 %vm572_vm0, %v8057_v4 }
  0x9d   : > { %9443 = vmatprep.subr.msk.mxu1 %vm572_vm0, %v10542_v5  ;;  %9319 = vmatmul.mubr.msk.f32.gmra.mxu0 %vm523_vm1, %v10284_v45  ;;  %v10769_v45 = vld [vmem:[%s10509_s28 + $0xb2] sm:$0xff] }
  0x9e   : > { %9345 = vmatmul.mubr.msk.f32.gmra.mxu1 %vm523_vm1, %v10548_v6  ;;  %9321 = vmatprep.mubr.msk.f32.mxu0 %vm523_vm1, %v10287_v46  ;;  %v10772_v46 = vld [vmem:[%s10509_s28 + $0xc0] sm:$0xff] }
  0x9f   : > { %9347 = vmatprep.mubr.msk.f32.mxu1 %vm523_vm1, %v10553_v7 }
  0xa1   : > { %9322 = vmatmul.mubr.msk.f32.gmra.mxu0 %vm523_vm1, %v10298_v47  ;;  %v10775_v47 = vld [vmem:[%s10509_s28 + $0xc2] sm:$0xff] }
  0xa2   : > { %9348 = vmatmul.mubr.msk.f32.gmra.mxu1 %vm523_vm1, %v10568_v8  ;;  %9324 = vmatprep.mubr.msk.f32.mxu0 %vm523_vm1, %v10301_v48  ;;  %v10786_v48 = vld [vmem:[%s10509_s28 + $0xd0] sm:$0xff] }
  0xa3   : > { %9350 = vmatprep.mubr.msk.f32.mxu1 %vm523_vm1, %v10571_v9 }
  0xa5   : > { %9325 = vmatmul.mubr.msk.f32.gmra.mxu0 %vm523_vm1, %v10312_v49  ;;  %v10789_v49 = vld [vmem:[%s10509_s28 + $0xd2] sm:$0xff] }
  0xa6   : > { %9351 = vmatmul.mubr.msk.f32.gmra.mxu1 %vm523_vm1, %v10582_v10  ;;  %9327 = vmatprep.mubr.msk.f32.mxu0 %vm523_vm1, %v10315_v50  ;;  %v10792_v50 = vld [vmem:[%s10509_s28 + $0xe0] sm:$0xff] }
  0xa7   : > { %9353 = vmatprep.mubr.msk.f32.mxu1 %vm523_vm1, %v10585_v11 }
  0xa9   : > { %9328 = vmatmul.mubr.msk.f32.gmra.mxu0 %vm523_vm1, %v10326_v51  ;;  %v10795_v51 = vld [vmem:[%s10509_s28 + $0xe2] sm:$0xff] }
  0xaa   : > { %9354 = vmatmul.mubr.msk.f32.gmra.mxu1 %vm523_vm1, %v10596_v12  ;;  %9330 = vmatprep.mubr.msk.f32.mxu0 %vm523_vm1, %v10329_v52  ;;  %v10806_v52 = vld [vmem:[%s10509_s28 + $0xf0] sm:$0xff] }
  0xab   : > { %9356 = vmatprep.mubr.msk.f32.mxu1 %vm523_vm1, %v10599_v13 }
  0xad   : > { %9331 = vmatmul.mubr.msk.f32.gmra.mxu0 %vm523_vm1, %v10340_v53  ;;  %v10809_v53 = vld [vmem:[%s10509_s28 + $0xf2] sm:$0xff] }
  0xae   : > { %9357 = vmatmul.mubr.msk.f32.gmra.mxu1 %vm523_vm1, %v10610_v14  ;;  %9333 = vmatprep.mubr.msk.f32.mxu0 %vm523_vm1, %v10343_v54 }
  0xaf   : > { %9359 = vmatprep.mubr.msk.f32.mxu1 %vm523_vm1, %v10613_v15 }
  0xb1   : > { %9334 = vmatmul.mubr.msk.f32.gmra.mxu0 %vm523_vm1, %v10354_v55 }
  0xb2   : > { %9360 = vmatmul.mubr.msk.f32.gmra.mxu1 %vm523_vm1, %v10624_v16  ;;  %9336 = vmatprep.mubr.msk.f32.mxu0 %vm523_vm1, %v10434_v60 }
  0xb3   : > { %9362 = vmatprep.mubr.msk.f32.mxu1 %vm523_vm1, %v10627_v17 }
  0xb5   : > { %9337 = vmatmul.mubr.msk.f32.gmra.mxu0 %vm523_vm1, %v7968_v18 }
  0xb6   : > { %9363 = vmatmul.mubr.msk.f32.gmra.mxu1 %vm523_vm1, %v10639_v19  ;;  %9367 = vmatprep.mubr.msk.f32.mxu0 %vm523_vm1, %v2562_v20 }
  0xb7   : > { %9393 = vmatprep.mubr.msk.f32.mxu1 %vm523_vm1, %v2990_v21 }
  0xb9   : > { %9368 = vmatmul.mubr.msk.f32.vlgmr.msra.gmra.mxu0 %vm523_vm1, %v10649_v22 }
  0xba   : > { %9394 = vmatmul.mubr.msk.f32.vlgmr.msra.gmra.mxu1 %vm523_vm1, %v10652_v23  ;;  %9418 = vmatpush3.msk.msra.mxu0 %vm572_vm0, %v8057_v4 }
  0xbb   : > { %9370 = vmatprep.mubr.msk.f32.mxu0 %vm523_vm1, %v10655_v24  ;;  %9396 = vmatprep.mubr.msk.f32.mxu1 %vm523_vm1, %v10658_v25 }
  0xbc   : > { %9444 = vmatpush3.msk.msra.mxu1 %vm572_vm0, %v10542_v5  ;;  %9469 = vmatprep.subr.msk.mxu0 %vm572_vm0, %v10667_v26 }
  0xbd   : > { %9495 = vmatprep.subr.msk.mxu1 %vm572_vm0, %v10672_v27  ;;  %9371 = vmatmul.mubr.msk.f32.gmra.mxu0 %vm523_vm1, %v10678_v28 }
  0xbe   : > { %9397 = vmatmul.mubr.msk.f32.gmra.mxu1 %vm523_vm1, %v10681_v29  ;;  %9373 = vmatprep.mubr.msk.f32.mxu0 %vm523_vm1, %v10686_v30 }
  0xbf   : > { %9399 = vmatprep.mubr.msk.f32.mxu1 %vm523_vm1, %v10689_v31 }
  0xc1   : > { %9374 = vmatmul.mubr.msk.f32.gmra.mxu0 %vm523_vm1, %v10706_v32 }
  0xc2   : > { %9400 = vmatmul.mubr.msk.f32.gmra.mxu1 %vm523_vm1, %v10709_v33  ;;  %9376 = vmatprep.mubr.msk.f32.mxu0 %vm523_vm1, %v10712_v34 }
  0xc3   : > { %9402 = vmatprep.mubr.msk.f32.mxu1 %vm523_vm1, %v10715_v35 }
  0xc5   : > { %9377 = vmatmul.mubr.msk.f32.gmra.mxu0 %vm523_vm1, %v10726_v36 }
  0xc6   : > { %9403 = vmatmul.mubr.msk.f32.gmra.mxu1 %vm523_vm1, %v10729_v37  ;;  %9379 = vmatprep.mubr.msk.f32.mxu0 %vm523_vm1, %v10732_v38 }
  0xc7   : > { %9405 = vmatprep.mubr.msk.f32.mxu1 %vm523_vm1, %v10735_v39 }
  0xc9   : > { %9380 = vmatmul.mubr.msk.f32.gmra.mxu0 %vm523_vm1, %v10746_v40 }
  0xca   : > { %9406 = vmatmul.mubr.msk.f32.gmra.mxu1 %vm523_vm1, %v10749_v41  ;;  %9382 = vmatprep.mubr.msk.f32.mxu0 %vm523_vm1, %v10752_v42 }
  0xcb   : > { %9408 = vmatprep.mubr.msk.f32.mxu1 %vm523_vm1, %v10755_v43 }
  0xcd   : > { %9383 = vmatmul.mubr.msk.f32.gmra.mxu0 %vm523_vm1, %v10766_v44 }
  0xce   : > { %9409 = vmatmul.mubr.msk.f32.gmra.mxu1 %vm523_vm1, %v10769_v45  ;;  %9385 = vmatprep.mubr.msk.f32.mxu0 %vm523_vm1, %v10772_v46 }
  0xcf   : > { %9411 = vmatprep.mubr.msk.f32.mxu1 %vm523_vm1, %v10775_v47 }
  0xd1   : > { %9386 = vmatmul.mubr.msk.f32.gmra.mxu0 %vm523_vm1, %v10786_v48 }
  0xd2   : > { %9412 = vmatmul.mubr.msk.f32.gmra.mxu1 %vm523_vm1, %v10789_v49  ;;  %9388 = vmatprep.mubr.msk.f32.mxu0 %vm523_vm1, %v10792_v50 }
  0xd3   : > { %9414 = vmatprep.mubr.msk.f32.mxu1 %vm523_vm1, %v10795_v51 }
  0xd5   : > { %9389 = vmatmul.mubr.msk.f32.gmra.mxu0 %vm523_vm1, %v10806_v52 }
  0xd6   : > { %9415 = vmatmul.mubr.msk.f32.gmra.mxu1 %vm523_vm1, %v10809_v53  ;;  %9419 = vmatprep.mubr.msk.f32.mxu0 %vm523_vm1, %v10649_v22 }
  0xd7   : > { %9445 = vmatprep.mubr.msk.f32.mxu1 %vm523_vm1, %v10527_v2 }
  0xd9   : > { %v9109_v54 = vpop.f32.mrf.mxu0  ;;  %9420 = vmatmul.mubr.msk.f32.vlgmr.msra.gmra.mxu0 %vm523_vm1, %v10655_v24 }
  0xda   : > { %v9135_v55 = vpop.f32.mrf.mxu1  ;;  %9446 = vmatmul.mubr.msk.f32.vlgmr.msra.gmra.mxu1 %vm523_vm1, %v10530_v3  ;;  %9470 = vmatpush3.msk.msra.mxu0 %vm572_vm0, %v10667_v26 }
  0xdb   : > { %v10833_v58 = vadd.f32 %v9135_v55, %v9109_v54  ;;  %9422 = vmatprep.mubr.msk.f32.mxu0 %vm523_vm1, %v10678_v28  ;;  %v642_v59 = vpop.f32.mrf.mxu0  ;;  %9448 = vmatprep.mubr.msk.f32.mxu1 %vm523_vm1, %v10548_v6 }
  0xdc   : > { %v838_v60 = vpop.f32.mrf.mxu1  ;;  %9496 = vmatpush3.msk.msra.mxu1 %vm572_vm0, %v10672_v27  ;;  %9521 = vmatprep.subr.msk.mxu0 %vm572_vm0, %v10826_v56 }
  0xdd   : > { %v10843_v61 = vadd.f32 %v838_v60, %v642_v59  ;;  %9547 = vmatprep.subr.msk.mxu1 %vm572_vm0, %v10831_v57  ;;  %v9112_v62 = vpop.f32.mrf.mxu0  ;;  %9423 = vmatmul.mubr.msk.f32.gmra.mxu0 %vm523_vm1, %v10686_v30 }
  0xde   : > { %v9138_v63 = vpop.f32.mrf.mxu1  ;;  %9449 = vmatmul.mubr.msk.f32.gmra.mxu1 %vm523_vm1, %v10553_v7  ;;  %9425 = vmatprep.mubr.msk.f32.mxu0 %vm523_vm1, %v10706_v32 }
  0xdf   : > { %v10853_v0 = vadd.f32 %v9138_v63, %v9112_v62  ;;  %9451 = vmatprep.mubr.msk.f32.mxu1 %vm523_vm1, %v10568_v8  ;;  %v652_v1 = vpop.f32.mrf.mxu0 }
  0xe0   : > { %v848_v2 = vpop.f32.mrf.mxu1 }
  0xe1   : > { %v10859_v4 = vadd.f32 %v848_v2, %v652_v1  ;;  %v9115_v5 = vpop.f32.mrf.mxu0  ;;  %9426 = vmatmul.mubr.msk.f32.gmra.mxu0 %vm523_vm1, %v10712_v34 }
  0xe2   : > { %v9141_v18 = vpop.f32.mrf.mxu1  ;;  %9452 = vmatmul.mubr.msk.f32.gmra.mxu1 %vm523_vm1, %v10571_v9  ;;  %9428 = vmatprep.mubr.msk.f32.mxu0 %vm523_vm1, %v10726_v36 }
  0xe3   : > { %v10865_v20 = vadd.f32 %v9141_v18, %v9115_v5  ;;  %9454 = vmatprep.mubr.msk.f32.mxu1 %vm523_vm1, %v10582_v10  ;;  %v662_v21 = vpop.f32.mrf.mxu0 }
  0xe4   : > { %v858_v22 = vpop.f32.mrf.mxu1 }
  0xe5   : > { %v10871_v26 = vadd.f32 %v858_v22, %v662_v21  ;;  %v9118_v27 = vpop.f32.mrf.mxu0  ;;  %9429 = vmatmul.mubr.msk.f32.gmra.mxu0 %vm523_vm1, %v10732_v38 }
  0xe6   : > { %v9144_v54 = vpop.f32.mrf.mxu1  ;;  %9455 = vmatmul.mubr.msk.f32.gmra.mxu1 %vm523_vm1, %v10585_v11  ;;  %9431 = vmatprep.mubr.msk.f32.mxu0 %vm523_vm1, %v10746_v40 }
  0xe7   : > { %v10877_v55 = vadd.f32 %v9144_v54, %v9118_v27  ;;  %9457 = vmatprep.mubr.msk.f32.mxu1 %vm523_vm1, %v10596_v12  ;;  %v672_v59 = vpop.f32.mrf.mxu0 }
  0xe8   : > { %v868_v60 = vpop.f32.mrf.mxu1 }
  0xe9   : > { %v10883_v62 = vadd.f32 %v868_v60, %v672_v59  ;;  %v9121_v63 = vpop.f32.mrf.mxu0  ;;  %9432 = vmatmul.mubr.msk.f32.gmra.mxu0 %vm523_vm1, %v10752_v42 }
  0xea   : > { %v9147_v1 = vpop.f32.mrf.mxu1  ;;  %9458 = vmatmul.mubr.msk.f32.gmra.mxu1 %vm523_vm1, %v10599_v13  ;;  %9434 = vmatprep.mubr.msk.f32.mxu0 %vm523_vm1, %v10766_v44 }
  0xeb   : > { %v10889_v2 = vadd.f32 %v9147_v1, %v9121_v63  ;;  %9460 = vmatprep.mubr.msk.f32.mxu1 %vm523_vm1, %v10610_v14  ;;  %v682_v5 = vpop.f32.mrf.mxu0 }
  0xec   : > { %v878_v18 = vpop.f32.mrf.mxu1 }
  0xed   : > { %v10895_v21 = vadd.f32 %v878_v18, %v682_v5  ;;  %v9124_v22 = vpop.f32.mrf.mxu0  ;;  %9435 = vmatmul.mubr.msk.f32.gmra.mxu0 %vm523_vm1, %v10772_v46 }
  0xee   : > { %v9150_v27 = vpop.f32.mrf.mxu1  ;;  %9461 = vmatmul.mubr.msk.f32.gmra.mxu1 %vm523_vm1, %v10613_v15  ;;  %9437 = vmatprep.mubr.msk.f32.mxu0 %vm523_vm1, %v10786_v48 }
  0xef   : > { %v10901_v54 = vadd.f32 %v9150_v27, %v9124_v22  ;;  %9463 = vmatprep.mubr.msk.f32.mxu1 %vm523_vm1, %v10624_v16  ;;  %v692_v59 = vpop.f32.mrf.mxu0  ;;  %v10920_v22 = vld [vmem:[%s10509_s28 + $0x100] sm:$0xff] }
  0xf0   : > { %v888_v60 = vpop.f32.mrf.mxu1  ;;  %v10923_v27 = vld [vmem:[%s10509_s28 + $0x101] sm:$0xff] }
  0xf1   : > { %v10907_v63 = vadd.f32 %v888_v60, %v692_v59  ;;  %v9127_v1 = vpop.f32.mrf.mxu0  ;;  %9438 = vmatmul.mubr.msk.f32.gmra.mxu0 %vm523_vm1, %v10792_v50  ;;  %12915 = vst [vmem:[#allocation7_spill] sm:$0xff] %v10923_v27 }
  0xf2   : > { %v9153_v5 = vpop.f32.mrf.mxu1  ;;  %9464 = vmatmul.mubr.msk.f32.gmra.mxu1 %vm523_vm1, %v10627_v17  ;;  %9440 = vmatprep.mubr.msk.f32.mxu0 %vm523_vm1, %v10806_v52 }
  0xf3   : > { %v10913_v18 = vadd.f32 %v9153_v5, %v9127_v1  ;;  %9466 = vmatprep.mubr.msk.f32.mxu1 %vm523_vm1, %v10639_v19  ;;  %v702_v59 = vpop.f32.mrf.mxu0 }
  0xf4   : > { %v898_v60 = vpop.f32.mrf.mxu1 }
  0xf5   : > { %v10925_v16 = vadd.f32 %v898_v60, %v702_v59  ;;  %v9130_v15 = vpop.f32.mrf.mxu0  ;;  %9441 = vmatmul.mubr.msk.f32.gmra.mxu0 %vm523_vm1, %v10920_v22 }
  0xf6   : > { %v9156_v14 = vpop.f32.mrf.mxu1  ;;  %9467 = vmatmul.mubr.msk.f32.gmra.mxu1 %vm523_vm1, %v10923_v27  ;;  %9471 = vmatprep.mubr.msk.f32.mxu0 %vm523_vm1, %v10652_v23 }
  0xf7   : > { %v10931_v1 = vadd.f32 %v9156_v14, %v9130_v15  ;;  %9497 = vmatprep.mubr.msk.f32.mxu1 %vm523_vm1, %v10655_v24  ;;  %v712_v5 = vpop.f32.mrf.mxu0  ;;  %v10946_v14 = vld [vmem:[%s12887_s3 + $0x4c] sm:$0xf]  ;;  %v10951_v15 = vld [vmem:[%s12887_s3 + $0x48] sm:$0xf] }
  0xf8   : > { %v908_v19 = vpop.f32.mrf.mxu1 }
  0xf9   : > { %v10937_v59 = vadd.f32 %v908_v19, %v712_v5  ;;  %v9161_v60 = vpop.f32.mrf.mxu0  ;;  %9472 = vmatmul.mubr.msk.f32.vlgmr.msra.gmra.mxu0 %vm523_vm1, %v10658_v25 }
  0xfa   : > { %v9187_v17 = vpop.f32.mrf.mxu1  ;;  %9498 = vmatmul.mubr.msk.f32.vlgmr.msra.gmra.mxu1 %vm523_vm1, %v10678_v28  ;;  %v1132_v19 = vadd.f32 %v9161_v60, %v10833_v58  ;;  %9522 = vmatpush3.msk.msra.mxu0 %vm572_vm0, %v10826_v56 }
  0xfb   : > { %9474 = vmatprep.mubr.msk.f32.mxu0 %vm523_vm1, %v10681_v29  ;;  %v1052_v23 = vpop.f32.mrf.mxu0  ;;  %9500 = vmatprep.mubr.msk.f32.mxu1 %vm523_vm1, %v10686_v30 }
  0xfc   : > { %v1283_v24 = vpop.f32.mrf.mxu1  ;;  %9548 = vmatpush3.msk.msra.mxu1 %vm572_vm0, %v10831_v57  ;;  %v10962_v28 = vadd.f32 %v9187_v17, %v1132_v19  ;;  %v1131_v5 = vadd.f32 %v1052_v23, %v10843_v61  ;;  %9573 = vmatprep.subr.msk.mxu0 %vm572_vm0, %v10946_v14 }
  0xfd   : > { %9599 = vmatprep.subr.msk.mxu1 %vm572_vm0, %v10951_v15  ;;  %v9164_v56 = vpop.f32.mrf.mxu0  ;;  %9475 = vmatmul.mubr.msk.f32.gmra.mxu0 %vm523_vm1, %v10689_v31 }
  0xfe   : > { %v9190_v58 = vpop.f32.mrf.mxu1  ;;  %9501 = vmatmul.mubr.msk.f32.gmra.mxu1 %vm523_vm1, %v10706_v32  ;;  %v10973_v30 = vadd.f32 %v1283_v24, %v1131_v5  ;;  %v1134_v17 = vadd.f32 %v9164_v56, %v10853_v0  ;;  %9477 = vmatprep.mubr.msk.f32.mxu0 %vm523_vm1, %v10709_v33 }
  0xff   : > { %9503 = vmatprep.mubr.msk.f32.mxu1 %vm523_vm1, %v10712_v34  ;;  %v1062_v57 = vpop.f32.mrf.mxu0 }
 0x100   : > { %v1293_v61 = vpop.f32.mrf.mxu1  ;;  %v10980_v60 = vadd.f32 %v9190_v58, %v1134_v17  ;;  %v1133_v19 = vadd.f32 %v1062_v57, %v10859_v4 }
 0x101   : > { %v9167_v23 = vpop.f32.mrf.mxu0  ;;  %9478 = vmatmul.mubr.msk.f32.gmra.mxu0 %vm523_vm1, %v10715_v35 }
 0x102   : > { %v9193_v27 = vpop.f32.mrf.mxu1  ;;  %9504 = vmatmul.mubr.msk.f32.gmra.mxu1 %vm523_vm1, %v10726_v36  ;;  %v10987_v32 = vadd.f32 %v1293_v61, %v1133_v19  ;;  %v1136_v0 = vadd.f32 %v9167_v23, %v10865_v20  ;;  %9480 = vmatprep.mubr.msk.f32.mxu0 %vm523_vm1, %v10729_v37 }
 0x103   : > { %9506 = vmatprep.mubr.msk.f32.mxu1 %vm523_vm1, %v10732_v38  ;;  %v1072_v34 = vpop.f32.mrf.mxu0 }
 0x104   : > { %v1303_v4 = vpop.f32.mrf.mxu1  ;;  %v10994_v24 = vadd.f32 %v9193_v27, %v1136_v0  ;;  %v1135_v5 = vadd.f32 %v1072_v34, %v10871_v26 }
 0x105   : > { %v9170_v56 = vpop.f32.mrf.mxu0  ;;  %9481 = vmatmul.mubr.msk.f32.gmra.mxu0 %vm523_vm1, %v10735_v39 }
 0x106   : > { %v9196_v58 = vpop.f32.mrf.mxu1  ;;  %9507 = vmatmul.mubr.msk.f32.gmra.mxu1 %vm523_vm1, %v10746_v40  ;;  %v11001_v36 = vadd.f32 %v1303_v4, %v1135_v5  ;;  %v1138_v20 = vadd.f32 %v9170_v56, %v10877_v55  ;;  %9483 = vmatprep.mubr.msk.f32.mxu0 %vm523_vm1, %v10749_v41 }
 0x107   : > { %9509 = vmatprep.mubr.msk.f32.mxu1 %vm523_vm1, %v10752_v42  ;;  %v1082_v38 = vpop.f32.mrf.mxu0 }
 0x108   : > { %v1313_v26 = vpop.f32.mrf.mxu1  ;;  %v11008_v27 = vadd.f32 %v9196_v58, %v1138_v20  ;;  %v1137_v17 = vadd.f32 %v1082_v38, %v10883_v62 }
 0x109   : > { %v9173_v57 = vpop.f32.mrf.mxu0  ;;  %9484 = vmatmul.mubr.msk.f32.gmra.mxu0 %vm523_vm1, %v10755_v43 }
 0x10a   : > { %v9199_v61 = vpop.f32.mrf.mxu1  ;;  %9510 = vmatmul.mubr.msk.f32.gmra.mxu1 %vm523_vm1, %v10766_v44  ;;  %v11015_v40 = vadd.f32 %v1313_v26, %v1137_v17  ;;  %v1140_v55 = vadd.f32 %v9173_v57, %v10889_v2  ;;  %9486 = vmatprep.mubr.msk.f32.mxu0 %vm523_vm1, %v10769_v45 }
 0x10b   : > { %9512 = vmatprep.mubr.msk.f32.mxu1 %vm523_vm1, %v10772_v46  ;;  %v1092_v42 = vpop.f32.mrf.mxu0 }
 0x10c   : > { %v1323_v62 = vpop.f32.mrf.mxu1  ;;  %v11022_v19 = vadd.f32 %v9199_v61, %v1140_v55  ;;  %v1139_v23 = vadd.f32 %v1092_v42, %v10895_v21 }
 0x10d   : > { %v9176_v0 = vpop.f32.mrf.mxu0  ;;  %9487 = vmatmul.mubr.msk.f32.gmra.mxu0 %vm523_vm1, %v10775_v47 }
 0x10e   : > { %v9202_v34 = vpop.f32.mrf.mxu1  ;;  %9513 = vmatmul.mubr.msk.f32.gmra.mxu1 %vm523_vm1, %v10786_v48  ;;  %v11029_v44 = vadd.f32 %v1323_v62, %v1139_v23  ;;  %v1142_v2 = vadd.f32 %v9176_v0, %v10901_v54  ;;  %9489 = vmatprep.mubr.msk.f32.mxu0 %vm523_vm1, %v10789_v49 }
 0x10f   : > { %9515 = vmatprep.mubr.msk.f32.mxu1 %vm523_vm1, %v10792_v50  ;;  %v1102_v46 = vpop.f32.mrf.mxu0  ;;  %v11051_v50 = vld [vmem:[%s10509_s28 + $0x102] sm:$0xff] }
 0x110   : > { %v1333_v21 = vpop.f32.mrf.mxu1  ;;  %v11036_v4 = vadd.f32 %v9202_v34, %v1142_v2  ;;  %v1141_v5 = vadd.f32 %v1102_v46, %v10907_v63  ;;  %v8158_v63 = vld [vmem:[%s10509_s28 + $0x110] sm:$0xff] }
 0x111   : > { %v9179_v48 = vpop.f32.mrf.mxu0  ;;  %9490 = vmatmul.mubr.msk.f32.gmra.mxu0 %vm523_vm1, %v10795_v51 }
 0x112   : > { %v9205_v56 = vpop.f32.mrf.mxu1  ;;  %9516 = vmatmul.mubr.msk.f32.gmra.mxu1 %vm523_vm1, %v10806_v52  ;;  %v11043_v54 = vadd.f32 %v1333_v21, %v1141_v5  ;;  %v1144_v58 = vadd.f32 %v9179_v48, %v10913_v18  ;;  %9492 = vmatprep.mubr.msk.f32.mxu0 %vm523_vm1, %v10809_v53 }
 0x113   : > { %9518 = vmatprep.mubr.msk.f32.mxu1 %vm523_vm1, %v10920_v22  ;;  %v1112_v20 = vpop.f32.mrf.mxu0 }
 0x114   : > { %v1343_v38 = vpop.f32.mrf.mxu1  ;;  %v11054_v26 = vadd.f32 %v9205_v56, %v1144_v58  ;;  %v1143_v17 = vadd.f32 %v1112_v20, %v10925_v16 }
 0x115   : > { %v9182_v52 = vpop.f32.mrf.mxu0  ;;  %9493 = vmatmul.mubr.msk.f32.gmra.mxu0 %vm523_vm1, %v11051_v50 }
 0x116   : > { %v9208_v18 = vpop.f32.mrf.mxu1  ;;  %9519 = vmatmul.mubr.msk.f32.gmra.mxu1 %vm523_vm1, %v8158_v63  ;;  %v11063_v22 = vadd.f32 %v1343_v38, %v1143_v17  ;;  %v1146_v57 = vadd.f32 %v9182_v52, %v10931_v1  ;;  %9523 = vmatprep.mubr.msk.f32.mxu0 %vm523_vm1, %v10530_v3  ;;  %v11081_v3 = vld [vmem:[%s12887_s3 + $0x50] sm:$0xf] }
 0x117   : > { %9549 = vmatprep.mubr.msk.f32.mxu1 %vm523_vm1, %v10658_v25  ;;  %v1122_v16 = vpop.f32.mrf.mxu0  ;;  %v11086_v25 = vld [vmem:[%s12887_s3 + $0x54] sm:$0xf] }
 0x118   : > { %v1353_v61 = vpop.f32.mrf.mxu1  ;;  %v11071_v55 = vadd.f32 %v9208_v18, %v1146_v57  ;;  %v1145_v42 = vadd.f32 %v1122_v16, %v10937_v59 }
 0x119   : > { %v9213_v62 = vpop.f32.mrf.mxu0  ;;  %9524 = vmatmul.mubr.msk.f32.vlgmr.msra.gmra.mxu0 %vm523_vm1, %v10548_v6 }
 0x11a   : > { %v9239_v23 = vpop.f32.mrf.mxu1  ;;  %9550 = vmatmul.mubr.msk.f32.vlgmr.msra.gmra.mxu1 %vm523_vm1, %v10681_v29  ;;  %v11088_v1 = vadd.f32 %v1353_v61, %v1145_v42  ;;  %v1593_v59 = vadd.f32 %v9213_v62, %v10962_v28  ;;  %9574 = vmatpush3.msk.msra.mxu0 %vm572_vm0, %v10946_v14  ;;  %v12920_v42 = vld [vmem:[#allocation6_spill] sm:$0xff] }
 0x11b   : > { %9526 = vmatprep.mubr.msk.f32.mxu0 %vm523_vm1, %v10553_v7  ;;  %v1513_v6 = vpop.f32.mrf.mxu0  ;;  %9552 = vmatprep.mubr.msk.f32.mxu1 %vm523_vm1, %v10689_v31 }
 0x11c   : > { %v1743_v29 = vpop.f32.mrf.mxu1  ;;  %9600 = vmatpush3.msk.msra.mxu1 %vm572_vm0, %v10951_v15  ;;  %v11102_v0 = vadd.f32 %v9239_v23, %v1593_v59  ;;  %v1592_v28 = vadd.f32 %v1513_v6, %v10973_v30  ;;  %9625 = vmatprep.subr.msk.mxu0 %vm572_vm0, %v11081_v3  ;;  %v8192_v23 = vld [vmem:[%s10509_s28 + $0x111] sm:$0xff] }
 0x11d   : > { %9651 = vmatprep.subr.msk.mxu1 %vm572_vm0, %v11086_v25  ;;  %v9216_v7 = vpop.f32.mrf.mxu0  ;;  %9527 = vmatmul.mubr.msk.f32.gmra.mxu0 %vm523_vm1, %v10568_v8  ;;  %v8226_v59 = vld [vmem:[%s10509_s28 + $0x112] sm:$0xff] }
 0x11e   : > { %v9242_v14 = vpop.f32.mrf.mxu1  ;;  %9553 = vmatmul.mubr.msk.f32.gmra.mxu1 %vm523_vm1, %v10709_v33  ;;  %v11114_v31 = vadd.f32 %v1743_v29, %v1592_v28  ;;  %v1595_v15 = vadd.f32 %v9216_v7, %v10980_v60  ;;  %9529 = vmatprep.mubr.msk.f32.mxu0 %vm523_vm1, %v10571_v9  ;;  %v4653_v28 = vld [vmem:[%s11185_s18 + $0x1] sm:$0xff] }
 0x11f   : > { %9555 = vmatprep.mubr.msk.f32.mxu1 %vm523_vm1, %v10715_v35  ;;  %v1523_v30 = vpop.f32.mrf.mxu0  ;;  %v4635_v7 = vld [vmem:[%s11185_s18] sm:$0xff] }
 0x120   : > { %v1753_v34 = vpop.f32.mrf.mxu1  ;;  %v11121_v2 = vadd.f32 %v9242_v14, %v1595_v15  ;;  %v1594_v46 = vadd.f32 %v1523_v30, %v10987_v32 }
 0x121   : > { %v9219_v8 = vpop.f32.mrf.mxu0  ;;  %9530 = vmatmul.mubr.msk.f32.gmra.mxu0 %vm523_vm1, %v10582_v10 }
 0x122   : > { %v9245_v33 = vpop.f32.mrf.mxu1  ;;  %9556 = vmatmul.mubr.msk.f32.gmra.mxu1 %vm523_vm1, %v10729_v37  ;;  %v11130_v9 = vadd.f32 %v1753_v34, %v1594_v46  ;;  %v1597_v35 = vadd.f32 %v9219_v8, %v10994_v24  ;;  %9532 = vmatprep.mubr.msk.f32.mxu0 %vm523_vm1, %v10585_v11  ;;  %v11213_v34 = vld [vmem:[%s11185_s18 + $0x11] sm:$0xff] }
 0x123   : > { %9558 = vmatprep.mubr.msk.f32.mxu1 %vm523_vm1, %v10735_v39  ;;  %v1533_v60 = vpop.f32.mrf.mxu0  ;;  %v11216_v46 = vld [vmem:[%s11185_s18 + $0x10] sm:$0xff] }
 0x124   : > { %v1763_v32 = vpop.f32.mrf.mxu1  ;;  %v11137_v21 = vadd.f32 %v9245_v33, %v1597_v35  ;;  %v1596_v5 = vadd.f32 %v1533_v60, %v11001_v36  ;;  %v11219_v33 = vld [vmem:[%s11185_s18 + $0x21] sm:$0xff] }
 0x125   : > { %v9222_v10 = vpop.f32.mrf.mxu0  ;;  %9533 = vmatmul.mubr.msk.f32.gmra.mxu0 %vm523_vm1, %v10596_v12 }
 0x126   : > { %v9248_v48 = vpop.f32.mrf.mxu1  ;;  %9559 = vmatmul.mubr.msk.f32.gmra.mxu1 %vm523_vm1, %v10749_v41  ;;  %v11144_v37 = vadd.f32 %v1763_v32, %v1596_v5  ;;  %v1599_v11 = vadd.f32 %v9222_v10, %v11008_v27  ;;  %9535 = vmatprep.mubr.msk.f32.mxu0 %vm523_vm1, %v10599_v13  ;;  %v12916_v41 = vld [vmem:[#allocation2_spill] sm:$0xff]  ;;  %v11234_v10 = vld [vmem:[%s12887_s3 + $0x58] sm:$0xf] }
 0x127   : > { %9561 = vmatprep.mubr.msk.f32.mxu1 %vm523_vm1, %v10755_v43  ;;  %v1543_v39 = vpop.f32.mrf.mxu0  ;;  %v12917_v43 = vld [vmem:[#allocation3_spill] sm:$0xff]  ;;  %v11225_v32 = vld [vmem:[%s11185_s18 + $0x20] sm:$0xff] }
 0x128   : > { %v1773_v24 = vpop.f32.mrf.mxu1  ;;  %v11151_v36 = vadd.f32 %v9248_v48, %v1599_v11  ;;  %v1598_v56 = vadd.f32 %v1543_v39, %v11015_v40  ;;  %v11249_v39 = vld [vmem:[%s11185_s18 + $0x31] sm:$0xff] }
 0x129   : > { %v9225_v12 = vpop.f32.mrf.mxu0  ;;  %9536 = vmatmul.mubr.msk.f32.gmra.mxu0 %vm523_vm1, %v12916_v41 }
 0x12a   : > { %v9251_v58 = vpop.f32.mrf.mxu1  ;;  %9562 = vmatmul.mubr.msk.f32.gmra.mxu1 %vm523_vm1, %v10769_v45  ;;  %v11158_v27 = vadd.f32 %v1773_v24, %v1598_v56  ;;  %v1601_v13 = vadd.f32 %v9225_v12, %v11022_v19  ;;  %9538 = vmatprep.mubr.msk.f32.mxu0 %vm523_vm1, %v12917_v43  ;;  %v12918_v45 = vld [vmem:[#allocation4_spill] sm:$0xff] }
 0x12b   : > { %9564 = vmatprep.mubr.msk.f32.mxu1 %vm523_vm1, %v10775_v47  ;;  %v1553_v40 = vpop.f32.mrf.mxu0  ;;  %v12919_v47 = vld [vmem:[#allocation5_spill] sm:$0xff]  ;;  %v11252_v24 = vld [vmem:[%s11185_s18 + $0x30] sm:$0xff] }
 0x12c   : > { %v1783_v63 = vpop.f32.mrf.mxu1  ;;  %v11165_v20 = vadd.f32 %v9251_v58, %v1601_v13  ;;  %v1600_v38 = vadd.f32 %v1553_v40, %v11029_v44  ;;  %v11257_v58 = vld [vmem:[%s11185_s18 + $0x41] sm:$0xff] }
 0x12d   : > { %v9228_v17 = vpop.f32.mrf.mxu0  ;;  %9539 = vmatmul.mubr.msk.f32.gmra.mxu0 %vm523_vm1, %v12918_v45  ;;  %v11292_v45 = vld [vmem:[%s11185_s18 + $0x60] sm:$0xff] }
 0x12e   : > { %v9254_v52 = vpop.f32.mrf.mxu1  ;;  %9565 = vmatmul.mubr.msk.f32.gmra.mxu1 %vm523_vm1, %v10789_v49  ;;  %v11172_v19 = vadd.f32 %v1783_v63, %v1600_v38  ;;  %v1603_v18 = vadd.f32 %v9228_v17, %v11036_v4  ;;  %9541 = vmatprep.mubr.msk.f32.mxu0 %vm523_vm1, %v12919_v47  ;;  %v11286_v63 = vld [vmem:[%s11185_s18 + $0x50] sm:$0xff] }
 0x12f   : > { %9567 = vmatprep.mubr.msk.f32.mxu1 %vm523_vm1, %v10795_v51  ;;  %v1563_v44 = vpop.f32.mrf.mxu0 }
 0x130   : > { %v1793_v57 = vpop.f32.mrf.mxu1  ;;  %v11179_v16 = vadd.f32 %v9254_v52, %v1603_v18  ;;  %v1602_v61 = vadd.f32 %v1563_v44, %v11043_v54  ;;  %v12921_v54 = vld [vmem:[#allocation7_spill] sm:$0xff] }
 0x131   : > { %v9231_v49 = vpop.f32.mrf.mxu0  ;;  %9542 = vmatmul.mubr.msk.f32.gmra.mxu0 %vm523_vm1, %v12920_v42  ;;  %v11289_v52 = vld [vmem:[%s11185_s18 + $0x61] sm:$0xff] }
 0x132   : > { %v9257_v4 = vpop.f32.mrf.mxu1  ;;  %9568 = vmatmul.mubr.msk.f32.gmra.mxu1 %vm523_vm1, %v10809_v53  ;;  %v11191_v51 = vadd.f32 %v1793_v57, %v1602_v61  ;;  %v1605_v62 = vadd.f32 %v9231_v49, %v11054_v26  ;;  %9544 = vmatprep.mubr.msk.f32.mxu0 %vm523_vm1, %v12921_v54  ;;  %v11309_v49 = vld [vmem:[%s11185_s18 + $0x71] sm:$0xff]  ;;  %v11318_v54 = vld [vmem:[%s11185_s18 + $0x80] sm:$0xff] }
 0x133   : > { %9570 = vmatprep.mubr.msk.f32.mxu1 %vm523_vm1, %v11051_v50  ;;  %v1573_v6 = vpop.f32.mrf.mxu0  ;;  %12922 = vst [vmem:[#allocation2_spill] sm:$0xff] %v11318_v54 }
 0x134   : > { %v1803_v29 = vpop.f32.mrf.mxu1  ;;  %v11202_v53 = vadd.f32 %v9257_v4, %v1605_v62  ;;  %v1604_v14 = vadd.f32 %v1573_v6, %v11063_v22  ;;  %v11315_v62 = vld [vmem:[%s11185_s18 + $0x81] sm:$0xff] }
 0x135   : > { %v9234_v26 = vpop.f32.mrf.mxu0  ;;  %9545 = vmatmul.mubr.msk.f32.gmra.mxu0 %vm523_vm1, %v8192_v23 }
 0x136   : > { %v9260_v15 = vpop.f32.mrf.mxu1  ;;  %9571 = vmatmul.mubr.msk.f32.gmra.mxu1 %vm523_vm1, %v8226_v59  ;;  %v11207_v50 = vadd.f32 %v1803_v29, %v1604_v14  ;;  %v1607_v30 = vadd.f32 %v9234_v26, %v11071_v55  ;;  %9575 = vmatprep.mubr.msk.f32.mxu0 %vm523_vm1, %v4653_v28 }
 0x137   : > { %9601 = vmatprep.mubr.msk.f32.mxu1 %vm523_vm1, %v4635_v7  ;;  %v1583_v22 = vpop.f32.mrf.mxu0  ;;  %v11335_v7 = vld [vmem:[%s11185_s18 + $0x91] sm:$0xff] }
 0x138   : > { %v1813_v8 = vpop.f32.mrf.mxu1  ;;  %v11221_v35 = vadd.f32 %v9260_v15, %v1607_v30  ;;  %v1606_v60 = vadd.f32 %v1583_v22, %v11088_v1  ;;  %v11239_v1 = vld [vmem:[%s12887_s3 + $0x5c] sm:$0xf]  ;;  %v11341_v15 = vld [vmem:[%s11185_s18 + $0xa1] sm:$0xff] }
 0x139   : > { %v9265_v55 = vpop.f32.mrf.mxu0  ;;  %9576 = vmatmul.mubr.msk.f32.vlgmr.msra.gmra.mxu0 %vm523_vm1, %v11213_v34  ;;  %v11344_v30 = vld [vmem:[%s11185_s18 + $0xa0] sm:$0xff] }
 0x13a   : > { %v9291_v5 = vpop.f32.mrf.mxu1  ;;  %9602 = vmatmul.mubr.msk.f32.vlgmr.msra.gmra.mxu1 %vm523_vm1, %v11216_v46  ;;  %v11241_v48 = vadd.f32 %v1813_v8, %v1606_v60  ;;  %v2054_v11 = vadd.f32 %v9265_v55, %v11102_v0  ;;  %9626 = vmatpush3.msk.msra.mxu0 %vm572_vm0, %v11081_v3  ;;  %v11260_v0 = vld [vmem:[%s11185_s18 + $0x40] sm:$0xff]  ;;  %12924 = vst [vmem:[#allocation4_spill] sm:$0xff] %v11344_v30 }
 0x13b   : > { %9578 = vmatprep.mubr.msk.f32.mxu0 %vm523_vm1, %v11219_v33  ;;  %v1974_v56 = vpop.f32.mrf.mxu0  ;;  %9604 = vmatprep.mubr.msk.f32.mxu1 %vm523_vm1, %v11225_v32 }
 0x13c   : > { %v2204_v12 = vpop.f32.mrf.mxu1  ;;  %9652 = vmatpush3.msk.msra.mxu1 %vm572_vm0, %v11086_v25  ;;  %v11264_v3 = vadd.f32 %v9291_v5, %v2054_v11  ;;  %v2053_v41 = vadd.f32 %v1974_v56, %v11114_v31  ;;  %9677 = vmatprep.subr.msk.mxu0 %vm572_vm0, %v11234_v10  ;;  %v11283_v31 = vld [vmem:[%s11185_s18 + $0x51] sm:$0xff] }
 0x13d   : > { %9703 = vmatprep.subr.msk.mxu1 %vm572_vm0, %v11239_v1  ;;  %v9268_v13 = vpop.f32.mrf.mxu0  ;;  %9579 = vmatmul.mubr.msk.f32.gmra.mxu0 %vm523_vm1, %v11249_v39  ;;  %v11361_v11 = vld [vmem:[%s11185_s18 + $0xb1] sm:$0xff] }
 0x13e   : > { %v9294_v43 = vpop.f32.mrf.mxu1  ;;  %9605 = vmatmul.mubr.msk.f32.gmra.mxu1 %vm523_vm1, %v11252_v24  ;;  %v11275_v25 = vadd.f32 %v2204_v12, %v2053_v41  ;;  %v2056_v40 = vadd.f32 %v9268_v13, %v11121_v2  ;;  %9581 = vmatprep.mubr.msk.f32.mxu0 %vm523_vm1, %v11257_v58  ;;  %v11367_v41 = vld [vmem:[%s11185_s18 + $0xc1] sm:$0xff] }
 0x13f   : > { %9607 = vmatprep.mubr.msk.f32.mxu1 %vm523_vm1, %v11260_v0  ;;  %v1984_v38 = vpop.f32.mrf.mxu0  ;;  %v11370_v13 = vld [vmem:[%s11185_s18 + $0xc0] sm:$0xff] }
 0x140   : > { %v2214_v17 = vpop.f32.mrf.mxu1  ;;  %v11294_v2 = vadd.f32 %v9294_v43, %v2056_v40  ;;  %v2055_v18 = vadd.f32 %v1984_v38, %v11130_v9  ;;  %v11312_v9 = vld [vmem:[%s11185_s18 + $0x70] sm:$0xff]  ;;  %12926 = vst [vmem:[#allocation6_spill] sm:$0xff] %v11370_v13 }
 0x141   : > { %v9271_v47 = vpop.f32.mrf.mxu0  ;;  %9582 = vmatmul.mubr.msk.f32.gmra.mxu0 %vm523_vm1, %v11283_v31 }
 0x142   : > { %v9297_v44 = vpop.f32.mrf.mxu1  ;;  %9608 = vmatmul.mubr.msk.f32.gmra.mxu1 %vm523_vm1, %v11286_v63  ;;  %v11301_v57 = vadd.f32 %v2214_v17, %v2055_v18  ;;  %v2058_v61 = vadd.f32 %v9271_v47, %v11137_v21  ;;  %9584 = vmatprep.mubr.msk.f32.mxu0 %vm523_vm1, %v11289_v52  ;;  %v11387_v47 = vld [vmem:[%s11185_s18 + $0xd1] sm:$0xff] }
 0x143   : > { %9610 = vmatprep.mubr.msk.f32.mxu1 %vm523_vm1, %v11292_v45  ;;  %v1994_v4 = vpop.f32.mrf.mxu0 }
 0x144   : > { %v2224_v42 = vpop.f32.mrf.mxu1  ;;  %v11320_v21 = vadd.f32 %v9297_v44, %v2058_v61  ;;  %v2057_v23 = vadd.f32 %v1994_v4, %v11144_v37  ;;  %v11338_v37 = vld [vmem:[%s11185_s18 + $0x90] sm:$0xff]  ;;  %v11393_v4 = vld [vmem:[%s11185_s18 + $0xe1] sm:$0xff] }
 0x145   : > { %v9274_v59 = vpop.f32.mrf.mxu0  ;;  %9585 = vmatmul.mubr.msk.f32.gmra.mxu0 %vm523_vm1, %v11309_v49  ;;  %12923 = vst [vmem:[#allocation3_spill] sm:$0xff] %v11338_v37 }
 0x146   : > { %v9300_v6 = vpop.f32.mrf.mxu1  ;;  %9611 = vmatmul.mubr.msk.f32.gmra.mxu1 %vm523_vm1, %v11312_v9  ;;  %v11327_v29 = vadd.f32 %v2224_v42, %v2057_v23  ;;  %v2060_v28 = vadd.f32 %v9274_v59, %v11151_v36  ;;  %9587 = vmatprep.mubr.msk.f32.mxu0 %vm523_vm1, %v11315_v62  ;;  %v11396_v42 = vld [vmem:[%s11185_s18 + $0xe0] sm:$0xff] }
 0x147   : > { %9613 = vmatprep.mubr.msk.f32.mxu1 %vm523_vm1, %v11318_v54  ;;  %v2004_v14 = vpop.f32.mrf.mxu0  ;;  %12928 = vst [vmem:[#allocation8_spill] sm:$0xff] %v11396_v42 }
 0x148   : > { %v2234_v26 = vpop.f32.mrf.mxu1  ;;  %v11346_v36 = vadd.f32 %v9300_v6, %v2060_v28  ;;  %v2059_v22 = vadd.f32 %v2004_v14, %v11158_v27  ;;  %v11364_v27 = vld [vmem:[%s11185_s18 + $0xb0] sm:$0xff] }
 0x149   : > { %v9277_v8 = vpop.f32.mrf.mxu0  ;;  %9588 = vmatmul.mubr.msk.f32.gmra.mxu0 %vm523_vm1, %v11335_v7  ;;  %12925 = vst [vmem:[#allocation5_spill] sm:$0xff] %v11364_v27 }
 0x14a   : > { %v9303_v60 = vpop.f32.mrf.mxu1  ;;  %9614 = vmatmul.mubr.msk.f32.gmra.mxu1 %vm523_vm1, %v11338_v37  ;;  %v11353_v55 = vadd.f32 %v2234_v26, %v2059_v22  ;;  %v2062_v5 = vadd.f32 %v9277_v8, %v11165_v20  ;;  %9590 = vmatprep.mubr.msk.f32.mxu0 %vm523_vm1, %v11341_v15  ;;  %v11416_v26 = vld [vmem:[%s11185_s18 + $0xf0] sm:$0xff] }
 0x14b   : > { %9616 = vmatprep.mubr.msk.f32.mxu1 %vm523_vm1, %v11344_v30  ;;  %v2014_v56 = vpop.f32.mrf.mxu0 }
 0x14c   : > { %v2244_v12 = vpop.f32.mrf.mxu1  ;;  %v11372_v20 = vadd.f32 %v9303_v60, %v2062_v5  ;;  %v2061_v43 = vadd.f32 %v2014_v56, %v11172_v19  ;;  %v11390_v19 = vld [vmem:[%s11185_s18 + $0xd0] sm:$0xff]  ;;  %v5063_v60 = vld [vmem:[%s11185_s18 + $0x2] sm:$0xff] }
 0x14d   : > { %v9280_v40 = vpop.f32.mrf.mxu0  ;;  %9591 = vmatmul.mubr.msk.f32.gmra.mxu0 %vm523_vm1, %v11361_v11  ;;  %12927 = vst [vmem:[#allocation7_spill] sm:$0xff] %v11390_v19 }
 0x14e   : > { %v9306_v38 = vpop.f32.mrf.mxu1  ;;  %9617 = vmatmul.mubr.msk.f32.gmra.mxu1 %vm523_vm1, %v11364_v27  ;;  %v11379_v17 = vadd.f32 %v2244_v12, %v2061_v43  ;;  %v2064_v18 = vadd.f32 %v9280_v40, %v11179_v16  ;;  %9593 = vmatprep.mubr.msk.f32.mxu0 %vm523_vm1, %v11367_v41 }
 0x14f   : > { %9619 = vmatprep.mubr.msk.f32.mxu1 %vm523_vm1, %v11370_v13  ;;  %v2024_v44 = vpop.f32.mrf.mxu0 }
 0x150   : > { %v2254_v61 = vpop.f32.mrf.mxu1  ;;  %v11398_v16 = vadd.f32 %v9306_v38, %v2064_v18  ;;  %v2063_v23 = vadd.f32 %v2024_v44, %v11191_v51  ;;  %v11413_v51 = vld [vmem:[%s11185_s18 + $0xf1] sm:$0xff]  ;;  %v11436_v44 = vld [vmem:[%s11185_s18 + $0x22] sm:$0xff] }
 0x151   : > { %v9283_v59 = vpop.f32.mrf.mxu0  ;;  %9594 = vmatmul.mubr.msk.f32.gmra.mxu0 %vm523_vm1, %v11387_v47  ;;  %v11431_v38 = vld [vmem:[%s11185_s18 + $0x12] sm:$0xff] }
 0x152   : > { %v9309_v6 = vpop.f32.mrf.mxu1  ;;  %9620 = vmatmul.mubr.msk.f32.gmra.mxu1 %vm523_vm1, %v11390_v19  ;;  %v11405_v28 = vadd.f32 %v2254_v61, %v2063_v23  ;;  %v2066_v14 = vadd.f32 %v9283_v59, %v11202_v53  ;;  %9596 = vmatprep.mubr.msk.f32.mxu0 %vm523_vm1, %v11393_v4 }
 0x153   : > { %9622 = vmatprep.mubr.msk.f32.mxu1 %vm523_vm1, %v11396_v42  ;;  %v2034_v22 = vpop.f32.mrf.mxu0 }
 0x154   : > { %v2264_v8 = vpop.f32.mrf.mxu1  ;;  %v11419_v5 = vadd.f32 %v9309_v6, %v2066_v14  ;;  %v2065_v56 = vadd.f32 %v2034_v22, %v11207_v50  ;;  %v11467_v22 = vld [vmem:[%s11185_s18 + $0x32] sm:$0xff] }
 0x155   : > { %v9286_v53 = vpop.f32.mrf.mxu0  ;;  %9597 = vmatmul.mubr.msk.f32.gmra.mxu0 %vm523_vm1, %v11413_v51 }
 0x156   : > { %v9312_v12 = vpop.f32.mrf.mxu1  ;;  %9623 = vmatmul.mubr.msk.f32.gmra.mxu1 %vm523_vm1, %v11416_v26  ;;  %v11426_v43 = vadd.f32 %v2264_v8, %v2065_v56  ;;  %v2068_v40 = vadd.f32 %v9286_v53, %v11221_v35  ;;  %9627 = vmatprep.mubr.msk.f32.mxu0 %vm523_vm1, %v5063_v60  ;;  %v11455_v35 = vld [vmem:[%s12887_s3 + $0x64] sm:$0xf] }
 0x157   : > { %9653 = vmatprep.mubr.msk.f32.mxu1 %vm523_vm1, %v11216_v46  ;;  %v2044_v50 = vpop.f32.mrf.mxu0  ;;  %v11450_v46 = vld [vmem:[%s12887_s3 + $0x60] sm:$0xf] }
 0x158   : > { %v2274_v18 = vpop.f32.mrf.mxu1  ;;  %v11438_v61 = vadd.f32 %v9312_v12, %v2068_v40  ;;  %v2067_v23 = vadd.f32 %v2044_v50, %v11241_v48  ;;  %v11474_v56 = vld [vmem:[%s11185_s18 + $0x42] sm:$0xff] }
 0x159   : > { %v9317_v59 = vpop.f32.mrf.mxu0  ;;  %9628 = vmatmul.mubr.msk.f32.vlgmr.msra.gmra.mxu0 %vm523_vm1, %v11431_v38  ;;  %v11504_v50 = vld [vmem:[%s11185_s18 + $0x62] sm:$0xff] }
 0x15a   : > { %v11441_v6 = vpop.f32.mrf.mxu1  ;;  %9654 = vmatmul.mubr.msk.f32.vlgmr.msra.gmra.mxu1 %vm523_vm1, %v11225_v32  ;;  %v11457_v48 = vadd.f32 %v2274_v18, %v2067_v23  ;;  %v11460_v14 = vadd.f32 %v9317_v59, %v11264_v3  ;;  %9678 = vmatpush3.msk.msra.mxu0 %vm572_vm0, %v11234_v10 }
 0x15b   : > { %9630 = vmatprep.mubr.msk.f32.mxu0 %vm523_vm1, %v11436_v44  ;;  %v2434_v8 = vpop.f32.mrf.mxu0  ;;  %9656 = vmatprep.mubr.msk.f32.mxu1 %vm523_vm1, %v11252_v24 }
 0x15c   : > { %12929 = vst [vmem:[#allocation9_spill] sm:$0xff] %v11460_v14  ;;  %v11469_v60 = vpop.f32.mrf.mxu1  ;;  %9704 = vmatpush3.msk.msra.mxu1 %vm572_vm0, %v11239_v1  ;;  %v11479_v10 = vadd.f32 %v2434_v8, %v11275_v25  ;;  %9729 = vmatprep.subr.msk.mxu0 %vm572_vm0, %v11450_v46  ;;  %v11497_v25 = vld [vmem:[%s11185_s18 + $0x52] sm:$0xff] }
 0x15d   : > { %9755 = vmatprep.subr.msk.mxu1 %vm572_vm0, %v11455_v35  ;;  %v9320_v3 = vpop.f32.mrf.mxu0  ;;  %9631 = vmatmul.mubr.msk.f32.gmra.mxu0 %vm523_vm1, %v11467_v22  ;;  %v11521_v8 = vld [vmem:[%s11185_s18 + $0x72] sm:$0xff] }
 0x15e   : > { %12930 = vst [vmem:[#allocation10_spill] sm:$0xff] %v11479_v10  ;;  %v11485_v53 = vpop.f32.mrf.mxu1  ;;  %9657 = vmatmul.mubr.msk.f32.gmra.mxu1 %vm523_vm1, %v11260_v0  ;;  %v11492_v1 = vadd.f32 %v9320_v3, %v11294_v2  ;;  %9633 = vmatprep.mubr.msk.f32.mxu0 %vm523_vm1, %v11474_v56 }
 0x15f   : > { %9659 = vmatprep.mubr.msk.f32.mxu1 %vm523_vm1, %v11286_v63  ;;  %v2444_v12 = vpop.f32.mrf.mxu0 }
 0x160   : > { %12931 = vst [vmem:[#allocation11_spill] sm:$0xff] %v11492_v1  ;;  %v11501_v40 = vpop.f32.mrf.mxu1  ;;  %v11507_v18 = vadd.f32 %v2444_v12, %v11301_v57  ;;  %v11528_v12 = vld [vmem:[%s11185_s18 + $0x82] sm:$0xff] }
 0x161   : > { %v9323_v23 = vpop.f32.mrf.mxu0  ;;  %9634 = vmatmul.mubr.msk.f32.gmra.mxu0 %vm523_vm1, %v11497_v25 }
 0x162   : > { %12932 = vst [vmem:[#allocation12_spill] sm:$0xff] %v11507_v18  ;;  %v11509_v2 = vpop.f32.mrf.mxu1  ;;  %9660 = vmatmul.mubr.msk.f32.gmra.mxu1 %vm523_vm1, %v11292_v45  ;;  %v11516_v59 = vadd.f32 %v9323_v23, %v11320_v21  ;;  %9636 = vmatprep.mubr.msk.f32.mxu0 %vm523_vm1, %v11504_v50 }
 0x163   : > { %9662 = vmatprep.mubr.msk.f32.mxu1 %vm523_vm1, %v11312_v9  ;;  %v2454_v57 = vpop.f32.mrf.mxu0 }
 0x164   : > { %12933 = vst [vmem:[#allocation13_spill] sm:$0xff] %v11516_v59  ;;  %v11525_v3 = vpop.f32.mrf.mxu1  ;;  %v11531_v18 = vadd.f32 %v2454_v57, %v11327_v29  ;;  %v11545_v59 = vld [vmem:[%s11185_s18 + $0x92] sm:$0xff] }
 0x165   : > { %v9326_v1 = vpop.f32.mrf.mxu0  ;;  %9637 = vmatmul.mubr.msk.f32.gmra.mxu0 %vm523_vm1, %v11521_v8 }
 0x166   : > { %12934 = vst [vmem:[#allocation14_spill] sm:$0xff] %v11531_v18  ;;  %v11533_v21 = vpop.f32.mrf.mxu1  ;;  %9663 = vmatmul.mubr.msk.f32.gmra.mxu1 %vm523_vm1, %v11318_v54  ;;  %v11540_v23 = vadd.f32 %v9326_v1, %v11346_v36  ;;  %9639 = vmatprep.mubr.msk.f32.mxu0 %vm523_vm1, %v11528_v12  ;;  %v11552_v18 = vld [vmem:[%s11185_s18 + $0xa2] sm:$0xff] }
 0x167   : > { %9665 = vmatprep.mubr.msk.f32.mxu1 %vm523_vm1, %v11338_v37  ;;  %v2464_v29 = vpop.f32.mrf.mxu0 }
 0x168   : > { %12935 = vst [vmem:[#allocation15_spill] sm:$0xff] %v11540_v23  ;;  %v11549_v57 = vpop.f32.mrf.mxu1  ;;  %v11555_v10 = vadd.f32 %v2464_v29, %v11353_v55  ;;  %v11569_v23 = vld [vmem:[%s11185_s18 + $0xb2] sm:$0xff] }
 0x169   : > { %v9329_v14 = vpop.f32.mrf.mxu0  ;;  %9640 = vmatmul.mubr.msk.f32.gmra.mxu0 %vm523_vm1, %v11545_v59 }
 0x16a   : > { %12936 = vst [vmem:[#allocation16_spill] sm:$0xff] %v11555_v10  ;;  %v11557_v36 = vpop.f32.mrf.mxu1  ;;  %9666 = vmatmul.mubr.msk.f32.gmra.mxu1 %vm523_vm1, %v11344_v30  ;;  %v11564_v1 = vadd.f32 %v9329_v14, %v11372_v20  ;;  %9642 = vmatprep.mubr.msk.f32.mxu0 %vm523_vm1, %v11552_v18  ;;  %v11576_v10 = vld [vmem:[%s11185_s18 + $0xc2] sm:$0xff] }
 0x16b   : > { %9668 = vmatprep.mubr.msk.f32.mxu1 %vm523_vm1, %v11364_v27  ;;  %v2474_v55 = vpop.f32.mrf.mxu0 }
 0x16c   : > { %12937 = vst [vmem:[#allocation17_spill] sm:$0xff] %v11564_v1  ;;  %v11573_v29 = vpop.f32.mrf.mxu1  ;;  %v11579_v37 = vadd.f32 %v2474_v55, %v11379_v17  ;;  %v11593_v1 = vld [vmem:[%s11185_s18 + $0xd2] sm:$0xff] }
 0x16d   : > { %v9332_v30 = vpop.f32.mrf.mxu0  ;;  %9643 = vmatmul.mubr.msk.f32.gmra.mxu0 %vm523_vm1, %v11569_v23 }
 0x16e   : > { %12938 = vst [vmem:[#allocation18_spill] sm:$0xff] %v11579_v37  ;;  %v11581_v20 = vpop.f32.mrf.mxu1  ;;  %9669 = vmatmul.mubr.msk.f32.gmra.mxu1 %vm523_vm1, %v11370_v13  ;;  %v11588_v14 = vadd.f32 %v9332_v30, %v11398_v16  ;;  %9645 = vmatprep.mubr.msk.f32.mxu0 %vm523_vm1, %v11576_v10  ;;  %v11600_v37 = vld [vmem:[%s11185_s18 + $0xe2] sm:$0xff] }
 0x16f   : > { %9671 = vmatprep.mubr.msk.f32.mxu1 %vm523_vm1, %v11390_v19  ;;  %v2484_v17 = vpop.f32.mrf.mxu0  ;;  %12940 = vst [vmem:[#allocation20_spill] sm:$0xff] %v11600_v37 }
 0x170   : > { %12939 = vst [vmem:[#allocation19_spill] sm:$0xff] %v11588_v14  ;;  %v11597_v55 = vpop.f32.mrf.mxu1  ;;  %v11603_v27 = vadd.f32 %v2484_v17, %v11405_v28  ;;  %v11617_v14 = vld [vmem:[%s11185_s18 + $0xf2] sm:$0xff]  ;;  %v11622_v28 = vld [vmem:[%s11185_s18 + $0x100] sm:$0xff] }
 0x171   : > { %v9335_v13 = vpop.f32.mrf.mxu0  ;;  %9646 = vmatmul.mubr.msk.f32.gmra.mxu0 %vm523_vm1, %v11593_v1  ;;  %12943 = vst [vmem:[#allocation23_spill] sm:$0xff] %v11617_v14 }
 0x172   : > { %12941 = vst [vmem:[#allocation21_spill] sm:$0xff] %v11603_v27  ;;  %v11605_v30 = vpop.f32.mrf.mxu1  ;;  %9672 = vmatmul.mubr.msk.f32.gmra.mxu1 %vm523_vm1, %v11396_v42  ;;  %v11612_v16 = vadd.f32 %v9335_v13, %v11419_v5  ;;  %9648 = vmatprep.mubr.msk.f32.mxu0 %vm523_vm1, %v11600_v37 }
 0x173   : > { %9674 = vmatprep.mubr.msk.f32.mxu1 %vm523_vm1, %v11416_v26  ;;  %v2494_v17 = vpop.f32.mrf.mxu0 }
 0x174   : > { %12942 = vst [vmem:[#allocation22_spill] sm:$0xff] %v11612_v16  ;;  %v11624_v27 = vpop.f32.mrf.mxu1  ;;  %v11627_v19 = vadd.f32 %v2494_v17, %v11426_v43 }
 0x175   : > { %v9338_v42 = vpop.f32.mrf.mxu0  ;;  %9649 = vmatmul.mubr.msk.f32.gmra.mxu0 %vm523_vm1, %v11617_v14 }
 0x176   : > { %12944 = vst [vmem:[#allocation24_spill] sm:$0xff] %v11627_v19  ;;  %v11629_v54 = vpop.f32.mrf.mxu1  ;;  %9675 = vmatmul.mubr.msk.f32.gmra.mxu1 %vm523_vm1, %v11622_v28  ;;  %v11636_v13 = vadd.f32 %v9338_v42, %v11438_v61  ;;  %9679 = vmatprep.mubr.msk.f32.mxu0 %vm523_vm1, %v11213_v34  ;;  %v11654_v34 = vld [vmem:[%s12887_s3 + $0x68] sm:$0xf] }
 0x177   : > { %9705 = vmatprep.mubr.msk.f32.mxu1 %vm523_vm1, %v11431_v38  ;;  %v2504_v5 = vpop.f32.mrf.mxu0 }
 0x178   : > { %12945 = vst [vmem:[#allocation25_spill] sm:$0xff] %v11636_v13  ;;  %v11642_v43 = vpop.f32.mrf.mxu1  ;;  %v11645_v17 = vadd.f32 %v2504_v5, %v11457_v48 }
 0x179   : > { %v9369_v19 = vpop.f32.mrf.mxu0  ;;  %9680 = vmatmul.mubr.msk.f32.vlgmr.msra.gmra.mxu0 %vm523_vm1, %v11219_v33 }
 0x17a   : > { %12946 = vst [vmem:[#allocation26_spill] sm:$0xff] %v11645_v17  ;;  %v9395_v16 = vpop.f32.mrf.mxu1  ;;  %9706 = vmatmul.mubr.msk.f32.vlgmr.msra.gmra.mxu1 %vm523_vm1, %v11436_v44  ;;  %v2917_v42 = vadd.f32 %v9369_v19, %v11441_v6  ;;  %9730 = vmatpush3.msk.msra.mxu0 %vm572_vm0, %v11450_v46 }
 0x17b   : > { %9682 = vmatprep.mubr.msk.f32.mxu0 %vm523_vm1, %v11249_v39  ;;  %v2911_v38 = vpop.f32.mrf.mxu0  ;;  %9708 = vmatprep.mubr.msk.f32.mxu1 %vm523_vm1, %v11467_v22 }
 0x17c   : > { %v3125_v61 = vpop.f32.mrf.mxu1  ;;  %9756 = vmatpush3.msk.msra.mxu1 %vm572_vm0, %v11455_v35  ;;  %v11665_v48 = vadd.f32 %v9395_v16, %v2917_v42  ;;  %v2912_v5 = vadd.f32 %v2911_v38, %v11469_v60  ;;  %9781 = vmatprep.subr.msk.mxu0 %vm572_vm0, %v11654_v34 }
 0x17d   : > { %v9372_v19 = vpop.f32.mrf.mxu0  ;;  %9683 = vmatmul.mubr.msk.f32.gmra.mxu0 %vm523_vm1, %v11257_v58 }
 0x17e   : > { %v9398_v6 = vpop.f32.mrf.mxu1  ;;  %9709 = vmatmul.mubr.msk.f32.gmra.mxu1 %vm523_vm1, %v11474_v56  ;;  %v11674_v46 = vadd.f32 %v3125_v61, %v2912_v5  ;;  %v2927_v17 = vadd.f32 %v9372_v19, %v11485_v53  ;;  %9685 = vmatprep.mubr.msk.f32.mxu0 %vm523_vm1, %v11283_v31 }
 0x17f   : > { %9711 = vmatprep.mubr.msk.f32.mxu1 %vm523_vm1, %v11497_v25  ;;  %v2921_v35 = vpop.f32.mrf.mxu0 }
 0x180   : > { %v3135_v60 = vpop.f32.mrf.mxu1  ;;  %v11681_v16 = vadd.f32 %v9398_v6, %v2927_v17  ;;  %v2922_v42 = vadd.f32 %v2921_v35, %v11501_v40 }
 0x181   : > { %v9375_v38 = vpop.f32.mrf.mxu0  ;;  %9686 = vmatmul.mubr.msk.f32.gmra.mxu0 %vm523_vm1, %v11289_v52 }
 0x182   : > { %v9401_v13 = vpop.f32.mrf.mxu1  ;;  %9712 = vmatmul.mubr.msk.f32.gmra.mxu1 %vm523_vm1, %v11504_v50  ;;  %v11688_v53 = vadd.f32 %v3135_v60, %v2922_v42  ;;  %v2937_v61 = vadd.f32 %v9375_v38, %v11509_v2  ;;  %9688 = vmatprep.mubr.msk.f32.mxu0 %vm523_vm1, %v11309_v49 }
 0x183   : > { %9714 = vmatprep.mubr.msk.f32.mxu1 %vm523_vm1, %v11521_v8  ;;  %v2931_v17 = vpop.f32.mrf.mxu0 }
 0x184   : > { %v3145_v40 = vpop.f32.mrf.mxu1  ;;  %v11695_v5 = vadd.f32 %v9401_v13, %v2937_v61  ;;  %v2932_v19 = vadd.f32 %v2931_v17, %v11525_v3 }
 0x185   : > { %v9378_v6 = vpop.f32.mrf.mxu0  ;;  %9689 = vmatmul.mubr.msk.f32.gmra.mxu0 %vm523_vm1, %v11315_v62 }
 0x186   : > { %v9404_v35 = vpop.f32.mrf.mxu1  ;;  %9715 = vmatmul.mubr.msk.f32.gmra.mxu1 %vm523_vm1, %v11528_v12  ;;  %v11702_v2 = vadd.f32 %v3145_v40, %v2932_v19  ;;  %v2947_v60 = vadd.f32 %v9378_v6, %v11533_v21  ;;  %9691 = vmatprep.mubr.msk.f32.mxu0 %vm523_vm1, %v11335_v7 }
 0x187   : > { %9717 = vmatprep.mubr.msk.f32.mxu1 %vm523_vm1, %v11545_v59  ;;  %v2941_v13 = vpop.f32.mrf.mxu0 }
 0x188   : > { %v3155_v3 = vpop.f32.mrf.mxu1  ;;  %v11709_v42 = vadd.f32 %v9404_v35, %v2947_v60  ;;  %v2942_v38 = vadd.f32 %v2941_v13, %v11549_v57 }
 0x189   : > { %v9381_v61 = vpop.f32.mrf.mxu0  ;;  %9692 = vmatmul.mubr.msk.f32.gmra.mxu0 %vm523_vm1, %v11341_v15 }
 0x18a   : > { %v9407_v17 = vpop.f32.mrf.mxu1  ;;  %9718 = vmatmul.mubr.msk.f32.gmra.mxu1 %vm523_vm1, %v11552_v18  ;;  %v11716_v21 = vadd.f32 %v3155_v3, %v2942_v38  ;;  %v2957_v40 = vadd.f32 %v9381_v61, %v11557_v36  ;;  %9694 = vmatprep.mubr.msk.f32.mxu0 %vm523_vm1, %v11361_v11 }
 0x18b   : > { %9720 = vmatprep.mubr.msk.f32.mxu1 %vm523_vm1, %v11569_v23  ;;  %v2951_v19 = vpop.f32.mrf.mxu0 }
 0x18c   : > { %v3165_v57 = vpop.f32.mrf.mxu1  ;;  %v11723_v6 = vadd.f32 %v9407_v17, %v2957_v40  ;;  %v2952_v35 = vadd.f32 %v2951_v19, %v11573_v29 }
 0x18d   : > { %v9384_v60 = vpop.f32.mrf.mxu0  ;;  %9695 = vmatmul.mubr.msk.f32.gmra.mxu0 %vm523_vm1, %v11367_v41 }
 0x18e   : > { %v9410_v13 = vpop.f32.mrf.mxu1  ;;  %9721 = vmatmul.mubr.msk.f32.gmra.mxu1 %vm523_vm1, %v11576_v10  ;;  %v11730_v36 = vadd.f32 %v3165_v57, %v2952_v35  ;;  %v2967_v3 = vadd.f32 %v9384_v60, %v11581_v20  ;;  %9697 = vmatprep.mubr.msk.f32.mxu0 %vm523_vm1, %v11387_v47  ;;  %v11750_v35 = vld [vmem:[%s11185_s18 + $0x101] sm:$0xff] }
 0x18f   : > { %9723 = vmatprep.mubr.msk.f32.mxu1 %vm523_vm1, %v11593_v1  ;;  %v2961_v29 = vpop.f32.mrf.mxu0 }
 0x190   : > { %v3175_v38 = vpop.f32.mrf.mxu1  ;;  %v11737_v61 = vadd.f32 %v9410_v13, %v2967_v3  ;;  %v2962_v17 = vadd.f32 %v2961_v29, %v11597_v55  ;;  %v11755_v55 = vld [vmem:[%s11185_s18 + $0x102] sm:$0xff] }
 0x191   : > { %v9387_v40 = vpop.f32.mrf.mxu0  ;;  %9698 = vmatmul.mubr.msk.f32.gmra.mxu0 %vm523_vm1, %v11393_v4 }
 0x192   : > { %v9413_v19 = vpop.f32.mrf.mxu1  ;;  %9724 = vmatmul.mubr.msk.f32.gmra.mxu1 %vm523_vm1, %v11600_v37  ;;  %v11744_v20 = vadd.f32 %v3175_v38, %v2962_v17  ;;  %v2977_v57 = vadd.f32 %v9387_v40, %v11605_v30  ;;  %9700 = vmatprep.mubr.msk.f32.mxu0 %vm523_vm1, %v11413_v51 }
 0x193   : > { %9726 = vmatprep.mubr.msk.f32.mxu1 %vm523_vm1, %v11617_v14  ;;  %v2971_v60 = vpop.f32.mrf.mxu0 }
 0x194   : > { %v3185_v13 = vpop.f32.mrf.mxu1  ;;  %v11757_v3 = vadd.f32 %v9413_v19, %v2977_v57  ;;  %v2972_v29 = vadd.f32 %v2971_v60, %v11624_v27 }
 0x195   : > { %v9390_v38 = vpop.f32.mrf.mxu0  ;;  %9701 = vmatmul.mubr.msk.f32.gmra.mxu0 %vm523_vm1, %v11750_v35 }
 0x196   : > { %v9416_v17 = vpop.f32.mrf.mxu1  ;;  %9727 = vmatmul.mubr.msk.f32.gmra.mxu1 %vm523_vm1, %v11755_v55  ;;  %v11764_v30 = vadd.f32 %v3185_v13, %v2972_v29  ;;  %v2987_v40 = vadd.f32 %v9390_v38, %v11629_v54  ;;  %9731 = vmatprep.mubr.msk.f32.mxu0 %vm523_vm1, %v11225_v32 }
 0x197   : > { %9757 = vmatprep.mubr.msk.f32.mxu1 %vm523_vm1, %v11219_v33  ;;  %v2981_v19 = vpop.f32.mrf.mxu0 }
 0x198   : > { %v3195_v27 = vpop.f32.mrf.mxu1  ;;  %v11771_v57 = vadd.f32 %v9416_v17, %v2987_v40  ;;  %v2982_v60 = vadd.f32 %v2981_v19, %v11642_v43  ;;  %v12948_v17 = vld [vmem:[#allocation3_spill] sm:$0xff] }
 0x199   : > { %v9421_v14 = vpop.f32.mrf.mxu0  ;;  %9732 = vmatmul.mubr.msk.f32.vlgmr.msra.gmra.mxu0 %vm523_vm1, %v11252_v24 }
 0x19a   : > { %v9447_v37 = vpop.f32.mrf.mxu1  ;;  %9758 = vmatmul.mubr.msk.f32.vlgmr.msra.gmra.mxu1 %vm523_vm1, %v11249_v39  ;;  %v11778_v54 = vadd.f32 %v3195_v27, %v2982_v60  ;;  %v3436_v32 = vadd.f32 %v9421_v14, %v11665_v48  ;;  %9782 = vmatpush3.msk.msra.mxu0 %vm572_vm0, %v11654_v34 }
 0x19b   : > { %9734 = vmatprep.mubr.msk.f32.mxu0 %vm523_vm1, %v11260_v0  ;;  %v3356_v33 = vpop.f32.mrf.mxu0  ;;  %9760 = vmatprep.mubr.msk.f32.mxu1 %vm523_vm1, %v11257_v58 }
 0x19c   : > { %v11785_v43 = vpop.f32.mrf.mxu1  ;;  %v11789_v24 = vadd.f32 %v9447_v37, %v3436_v32  ;;  %v11792_v39 = vadd.f32 %v3356_v33, %v11674_v46  ;;  %v12950_v32 = vld [vmem:[#allocation5_spill] sm:$0xff] }
 0x19d   : > { %v9424_v13 = vpop.f32.mrf.mxu0  ;;  %9735 = vmatmul.mubr.msk.f32.gmra.mxu0 %vm523_vm1, %v11286_v63 }
 0x19e   : > { %v9450_v29 = vpop.f32.mrf.mxu1  ;;  %9761 = vmatmul.mubr.msk.f32.gmra.mxu1 %vm523_vm1, %v11283_v31  ;;  %v3438_v0 = vadd.f32 %v9424_v13, %v11681_v16  ;;  %9737 = vmatprep.mubr.msk.f32.mxu0 %vm523_vm1, %v11292_v45  ;;  %v12947_v45 = vld [vmem:[#allocation2_spill] sm:$0xff] }
 0x19f   : > { %9763 = vmatprep.mubr.msk.f32.mxu1 %vm523_vm1, %v11289_v52  ;;  %v3366_v58 = vpop.f32.mrf.mxu0 }
 0x1a0   : > { %v11803_v37 = vpop.f32.mrf.mxu1  ;;  %v11805_v14 = vadd.f32 %v9450_v29, %v3438_v0  ;;  %v11808_v34 = vadd.f32 %v3366_v58, %v11688_v53  ;;  %v12952_v58 = vld [vmem:[#allocation7_spill] sm:$0xff] }
 0x1a1   : > { %v9427_v63 = vpop.f32.mrf.mxu0  ;;  %9738 = vmatmul.mubr.msk.f32.gmra.mxu0 %vm523_vm1, %v11312_v9 }
 0x1a2   : > { %v9453_v48 = vpop.f32.mrf.mxu1  ;;  %9764 = vmatmul.mubr.msk.f32.gmra.mxu1 %vm523_vm1, %v11309_v49  ;;  %v3440_v31 = vadd.f32 %v9427_v63, %v11695_v5  ;;  %9740 = vmatprep.mubr.msk.f32.mxu0 %vm523_vm1, %v12947_v45  ;;  %v12949_v5 = vld [vmem:[#allocation4_spill] sm:$0xff] }
 0x1a3   : > { %9766 = vmatprep.mubr.msk.f32.mxu1 %vm523_vm1, %v11315_v62  ;;  %v3376_v52 = vpop.f32.mrf.mxu0 }
 0x1a4   : > { %v11819_v46 = vpop.f32.mrf.mxu1  ;;  %v11821_v16 = vadd.f32 %v9453_v48, %v3440_v31  ;;  %v11824_v53 = vadd.f32 %v3376_v52, %v11702_v2 }
 0x1a5   : > { %v9430_v9 = vpop.f32.mrf.mxu0  ;;  %9741 = vmatmul.mubr.msk.f32.gmra.mxu0 %vm523_vm1, %v12948_v17 }
 0x1a6   : > { %v9456_v38 = vpop.f32.mrf.mxu1  ;;  %9767 = vmatmul.mubr.msk.f32.gmra.mxu1 %vm523_vm1, %v11335_v7  ;;  %v3442_v49 = vadd.f32 %v9430_v9, %v11709_v42  ;;  %9743 = vmatprep.mubr.msk.f32.mxu0 %vm523_vm1, %v12949_v5  ;;  %v12951_v42 = vld [vmem:[#allocation6_spill] sm:$0xff] }
 0x1a7   : > { %9769 = vmatprep.mubr.msk.f32.mxu1 %vm523_vm1, %v11341_v15  ;;  %v3386_v62 = vpop.f32.mrf.mxu0 }
 0x1a8   : > { %v11835_v40 = vpop.f32.mrf.mxu1  ;;  %v11837_v2 = vadd.f32 %v9456_v38, %v3442_v49  ;;  %v11840_v19 = vadd.f32 %v3386_v62, %v11716_v21 }
 0x1a9   : > { %v9433_v27 = vpop.f32.mrf.mxu0  ;;  %9744 = vmatmul.mubr.msk.f32.gmra.mxu0 %vm523_vm1, %v12950_v32 }
 0x1aa   : > { %v9459_v60 = vpop.f32.mrf.mxu1  ;;  %9770 = vmatmul.mubr.msk.f32.gmra.mxu1 %vm523_vm1, %v11361_v11  ;;  %v3444_v7 = vadd.f32 %v9433_v27, %v11723_v6  ;;  %9746 = vmatprep.mubr.msk.f32.mxu0 %vm523_vm1, %v12951_v42 }
 0x1ab   : > { %9772 = vmatprep.mubr.msk.f32.mxu1 %vm523_vm1, %v11367_v41  ;;  %v3396_v15 = vpop.f32.mrf.mxu0  ;;  %v12953_v41 = vld [vmem:[#allocation8_spill] sm:$0xff] }
 0x1ac   : > { %v11851_v33 = vpop.f32.mrf.mxu1  ;;  %v11853_v21 = vadd.f32 %v9459_v60, %v3444_v7  ;;  %v11856_v13 = vadd.f32 %v3396_v15, %v11730_v36 }
 0x1ad   : > { %v9436_v29 = vpop.f32.mrf.mxu0  ;;  %9747 = vmatmul.mubr.msk.f32.gmra.mxu0 %vm523_vm1, %v12952_v58 }
 0x1ae   : > { %v9462_v0 = vpop.f32.mrf.mxu1  ;;  %9773 = vmatmul.mubr.msk.f32.gmra.mxu1 %vm523_vm1, %v11387_v47  ;;  %v3446_v11 = vadd.f32 %v9436_v29, %v11737_v61  ;;  %9749 = vmatprep.mubr.msk.f32.mxu0 %vm523_vm1, %v12953_v41  ;;  %v8450_v61 = vld [vmem:[%s11185_s18 + $0x111] sm:$0xff] }
 0x1af   : > { %9775 = vmatprep.mubr.msk.f32.mxu1 %vm523_vm1, %v11393_v4  ;;  %v3406_v6 = vpop.f32.mrf.mxu0  ;;  %v8416_v4 = vld [vmem:[%s11185_s18 + $0x110] sm:$0xff] }
 0x1b0   : > { %v11867_v36 = vpop.f32.mrf.mxu1  ;;  %v11869_v63 = vadd.f32 %v9462_v0, %v3446_v11  ;;  %v11872_v48 = vadd.f32 %v3406_v6, %v11744_v20 }
 0x1b1   : > { %v9439_v31 = vpop.f32.mrf.mxu0  ;;  %9750 = vmatmul.mubr.msk.f32.gmra.mxu0 %vm523_vm1, %v11416_v26 }
 0x1b2   : > { %v9465_v45 = vpop.f32.mrf.mxu1  ;;  %9776 = vmatmul.mubr.msk.f32.gmra.mxu1 %vm523_vm1, %v11413_v51  ;;  %v3448_v47 = vadd.f32 %v9439_v31, %v11757_v3  ;;  %9752 = vmatprep.mubr.msk.f32.mxu0 %vm523_vm1, %v11622_v28 }
 0x1b3   : > { %9778 = vmatprep.mubr.msk.f32.mxu1 %vm523_vm1, %v11750_v35  ;;  %v3416_v20 = vpop.f32.mrf.mxu0 }
 0x1b4   : > { %v11885_v52 = vpop.f32.mrf.mxu1  ;;  %v11887_v9 = vadd.f32 %v9465_v45, %v3448_v47  ;;  %v11890_v26 = vadd.f32 %v3416_v20, %v11764_v30 }
 0x1b5   : > { %v9442_v38 = vpop.f32.mrf.mxu0  ;;  %9753 = vmatmul.mubr.msk.f32.gmra.mxu0 %vm523_vm1, %v8416_v4 }
 0x1b6   : > { %v9468_v51 = vpop.f32.mrf.mxu1  ;;  %9779 = vmatmul.mubr.msk.f32.gmra.mxu1 %vm523_vm1, %v8450_v61  ;;  %v3450_v28 = vadd.f32 %v9442_v38, %v11771_v57  ;;  %9783 = vmatprep.mubr.msk.f32.mxu0 %vm523_vm1, %v11436_v44  ;;  %v12955_v38 = vld [vmem:[#allocation23_spill] sm:$0xff] }
 0x1b7   : > { %v3426_v35 = vpop.f32.mrf.mxu0 }
 0x1b8   : > { %v11897_v3 = vpop.f32.mrf.mxu1  ;;  %v11899_v17 = vadd.f32 %v9468_v51, %v3450_v28  ;;  %v11902_v49 = vadd.f32 %v3426_v35, %v11778_v54  ;;  %v3665_v35 = vadd.f32 %v11785_v43, %v11792_v39  ;;  %v3667_v43 = vadd.f32 %v11803_v37, %v11808_v34 }
 0x1b9   : > { %v9473_v30 = vpop.f32.mrf.mxu0  ;;  %9784 = vmatmul.mubr.msk.f32.vlgmr.msra.gmra.mxu0 %vm523_vm1, %v11467_v22 }
 0x1ba   : > { %v9499_v5 = vpop.f32.mrf.mxu1  ;;  %v3896_v62 = vadd.f32 %v9473_v30, %v11789_v24  ;;  %9786 = vmatprep.mubr.msk.f32.mxu0 %vm523_vm1, %v11474_v56 }
 0x1bb   : > { %v11909_v57 = vpop.f32.mrf.mxu0 }
 0x1bc   : > { %v11911_v44 = vpop.f32.mrf.mxu1  ;;  %v11913_v27 = vadd.f32 %v9499_v5, %v3896_v62 }
 0x1bd   : > { %v9476_v60 = vpop.f32.mrf.mxu0  ;;  %9787 = vmatmul.mubr.msk.f32.gmra.mxu0 %vm523_vm1, %v11497_v25 }
 0x1be   : > { %v9502_v32 = vpop.f32.mrf.mxu1  ;;  %v3898_v54 = vadd.f32 %v9476_v60, %v11805_v14  ;;  %9789 = vmatprep.mubr.msk.f32.mxu0 %vm523_vm1, %v11504_v50 }
 0x1bf   : > { %v11920_v22 = vpop.f32.mrf.mxu0 }
 0x1c0   : > { %v11922_v24 = vpop.f32.mrf.mxu1  ;;  %v11924_v56 = vadd.f32 %v9502_v32, %v3898_v54 }
 0x1c1   : > { %v9479_v7 = vpop.f32.mrf.mxu0  ;;  %9790 = vmatmul.mubr.msk.f32.gmra.mxu0 %vm523_vm1, %v11521_v8 }
 0x1c2   : > { %v9505_v42 = vpop.f32.mrf.mxu1  ;;  %v3900_v15 = vadd.f32 %v9479_v7, %v11821_v16  ;;  %9792 = vmatprep.mubr.msk.f32.mxu0 %vm523_vm1, %v11528_v12 }
 0x1c3   : > { %v11931_v25 = vpop.f32.mrf.mxu0 }
 0x1c4   : > { %v11933_v14 = vpop.f32.mrf.mxu1  ;;  %v11935_v50 = vadd.f32 %v9505_v42, %v3900_v15  ;;  %v12011_v42 = vstv %s7727_s13 }
 0x1c5   : > { %v9482_v29 = vpop.f32.mrf.mxu0  ;;  %9793 = vmatmul.mubr.msk.f32.gmra.mxu0 %vm523_vm1, %v11545_v59 }
 0x1c6   : > { %v9508_v0 = vpop.f32.mrf.mxu1  ;;  %v3902_v58 = vadd.f32 %v9482_v29, %v11837_v2  ;;  %9795 = vmatprep.mubr.msk.f32.mxu0 %vm523_vm1, %v11552_v18  ;;  %v3669_v29 = vadd.f32 %v11819_v46, %v11824_v53  ;;  %v12959_v53 = vld [vmem:[#allocation10_spill] sm:$0xff] }
 0x1c7   : > { %v11942_v8 = vpop.f32.mrf.mxu0 }
 0x1c8   : > { %v11944_v12 = vpop.f32.mrf.mxu1  ;;  %v11946_v16 = vadd.f32 %v9508_v0, %v3902_v58  ;;  %v12018_v0 = vstv %s7728_s24 }
 0x1c9   : > { %v9485_v11 = vpop.f32.mrf.mxu0  ;;  %9796 = vmatmul.mubr.msk.f32.gmra.mxu0 %vm523_vm1, %v11569_v23 }
 0x1ca   : > { %v9511_v41 = vpop.f32.mrf.mxu1  ;;  %v3904_v59 = vadd.f32 %v9485_v11, %v11853_v21  ;;  %9798 = vmatprep.mubr.msk.f32.mxu0 %vm523_vm1, %v11576_v10  ;;  %v12954_v21 = vld [vmem:[#allocation20_spill] sm:$0xff] }
 0x1cb   : > { %v11953_v18 = vpop.f32.mrf.mxu0 }
 0x1cc   : > { %v11955_v2 = vpop.f32.mrf.mxu1  ;;  %v11957_v6 = vadd.f32 %v9511_v41, %v3904_v59  ;;  %v12958_v41 = vld [vmem:[#allocation9_spill] sm:$0xff] }
 0x1cd   : > { %v9488_v31 = vpop.f32.mrf.mxu0  ;;  %9799 = vmatmul.mubr.msk.f32.gmra.mxu0 %vm523_vm1, %v11593_v1  ;;  %v2531_v59 = vmul.f32 %v12011_v42, %v12958_v41 }
 0x1ce   : > { %v9514_v45 = vpop.f32.mrf.mxu1  ;;  %v3906_v23 = vadd.f32 %v9488_v31, %v11869_v63  ;;  %9801 = vmatprep.mubr.msk.f32.mxu0 %vm523_vm1, %v12954_v21  ;;  %v8484_v63 = vld [vmem:[%s11185_s18 + $0x112] sm:$0xff]  ;;  %v3899_v31 = vadd.f32 %v11931_v25, %v3669_v29  ;;  %v2530_v21 = vmul.f32 %v12011_v42, %v12959_v53  ;;  %s9900_s18 = smul.u32 288, %s13075_s10 }
 0x1cf   : > { %v11966_v10 = vpop.f32.mrf.mxu0 }
 0x1d0   : > { %v11968_v47 = vpop.f32.mrf.mxu1  ;;  %v11972_v4 = vadd.f32 %v9514_v45, %v3906_v23  ;;  %s12740_s20 = scalar_lea.vmem %s12893_s9, %s9900_s18 }
 0x1d1   : > { %v9491_v61 = vpop.f32.mrf.mxu0  ;;  %9802 = vmatmul.mubr.msk.f32.gmra.mxu0 %vm523_vm1, %v12955_v38 }
 0x1d2   : > { %v9517_v20 = vpop.f32.mrf.mxu1  ;;  %v3908_v1 = vadd.f32 %v9491_v61, %v11887_v9  ;;  %9804 = vmatprep.mubr.msk.f32.mxu0 %vm523_vm1, %v11755_v55  ;;  %v3895_v55 = vadd.f32 %v11909_v57, %v3665_v35  ;;  %v3897_v57 = vadd.f32 %v11920_v22, %v3667_v43  ;;  %v3671_v61 = vadd.f32 %v11835_v40, %v11840_v19 }
 0x1d3   : > { %v11984_v51 = vpop.f32.mrf.mxu0 }
 0x1d4   : > { %v11986_v28 = vpop.f32.mrf.mxu1  ;;  %v11994_v30 = vadd.f32 %v9517_v20, %v3908_v1  ;;  %v4126_v15 = vadd.f32 %v11911_v44, %v3895_v55  ;;  %v4128_v22 = vadd.f32 %v11922_v24, %v3897_v57  ;;  %v12961_v24 = vld [vmem:[#allocation11_spill] sm:$0xff]  ;;  %v3673_v57 = vadd.f32 %v11851_v33, %v11856_v13 }
 0x1d5   : > { %v9494_v5 = vpop.f32.mrf.mxu0  ;;  %9805 = vmatmul.mubr.msk.f32.gmra.mxu0 %vm523_vm1, %v8484_v63 }
 0x1d6   : > { %v9520_v9 = vpop.f32.mrf.mxu1  ;;  %v3910_v62 = vadd.f32 %v9494_v5, %v11899_v17  ;;  %v2533_v5 = vmul.f32 %v12011_v42, %v12961_v24 }
 0x1d7   : > { %v12001_v60 = vpop.f32.mrf.mxu0 }
 0x1d8   : > { %v12003_v32 = vpop.f32.mrf.mxu1  ;;  %v12009_v39 = vadd.f32 %v9520_v9, %v3910_v62  ;;  %v4130_v9 = vadd.f32 %v11933_v14, %v3899_v31 }
 0x1d9   : > { %v9525_v54 = vpop.f32.mrf.mxu0 }
 0x1da   : > { %v9551_v7 = vpop.f32.mrf.mxu1  ;;  %v4357_v17 = vadd.f32 %v9525_v54, %v11913_v27 }
 0x1db   : > { %v4277_v58 = vpop.f32.mrf.mxu0 }
 0x1dc   : > { %v4507_v11 = vpop.f32.mrf.mxu1  ;;  %v4587_v37 = vadd.f32 %v9551_v7, %v4357_v17  ;;  %v4356_v34 = vadd.f32 %v4277_v58, %v4126_v15  ;;  %v12963_v7 = vld [vmem:[#allocation12_spill] sm:$0xff] }
 0x1dd   : > { %v9528_v45 = vpop.f32.mrf.mxu0  ;;  %v2532_v15 = vmul.f32 %v12011_v42, %v12963_v7 }
 0x1de   : > { %v9554_v44 = vpop.f32.mrf.mxu1  ;;  %v4604_v27 = vmul.f32 %v12018_v0, %v4587_v37  ;;  %v4586_v23 = vadd.f32 %v4507_v11, %v4356_v34  ;;  %v4359_v46 = vadd.f32 %v9528_v45, %v11924_v56  ;;  %v3901_v56 = vadd.f32 %v11942_v8, %v3671_v61  ;;  %v12965_v37 = vld [vmem:[#allocation13_spill] sm:$0xff] }
 0x1df   : > { %v4287_v20 = vpop.f32.mrf.mxu0  ;;  %v2535_v34 = vmul.f32 %v12011_v42, %v12965_v37  ;;  %v6749_v37 = vld [vmem:[%s12889_s5 + $0x10] sm:$0xff] }
 0x1e0   : > { %v4517_v38 = vpop.f32.mrf.mxu1  ;;  %v12030_v1 = vadd.f32 %v4604_v27, %v2531_v59  ;;  %v4603_v25 = vmul.f32 %v12018_v0, %v4586_v23  ;;  %v4589_v63 = vadd.f32 %v9554_v44, %v4359_v46  ;;  %v4358_v35 = vadd.f32 %v4287_v20, %v4128_v22  ;;  %v6750_v22 = vld [vmem:[%s12889_s5 + $0x18] sm:$0xff]  ;;  %v12967_v27 = vld [vmem:[#allocation14_spill] sm:$0xff] }
 0x1e1   : > { %v9531_v55 = vpop.f32.mrf.mxu0  ;;  %v4132_v41 = vadd.f32 %v11944_v12, %v3901_v56  ;;  %v2534_v23 = vmul.f32 %v12011_v42, %v12967_v27  ;;  %v3675_v12 = vadd.f32 %v11867_v36, %v11872_v48  ;;  %9807 = vmatprep.subr.mxu1 %v6750_v22  ;;  %v12971_v56 = vld [vmem:[#allocation16_spill] sm:$0xff] }
 0x1e2   : > { %12960 = vst [vmem:[#allocation2_spill] sm:$0xff] %v12030_v1  ;;  %v9557_v62 = vpop.f32.mrf.mxu1  ;;  %v12037_v43 = vadd.f32 %v4603_v25, %v2530_v21  ;;  %v4606_v40 = vmul.f32 %v12018_v0, %v4589_v63  ;;  %v4588_v19 = vadd.f32 %v4517_v38, %v4358_v35  ;;  %v4361_v54 = vadd.f32 %v9531_v55, %v11935_v50 }
 0x1e3   : > { %v4297_v17 = vpop.f32.mrf.mxu0  ;;  %v3903_v50 = vadd.f32 %v11953_v18, %v3673_v57  ;;  %9808 = vmatpush3.msra.mxu1 %v6750_v22  ;;  %v3905_v63 = vadd.f32 %v11966_v10, %v3675_v12  ;;  %v2536_v55 = vmul.f32 %v12011_v42, %v12971_v56 }
 0x1e4   : > { %12962 = vst [vmem:[#allocation3_spill] sm:$0xff] %v12037_v43  ;;  %v4527_v29 = vpop.f32.mrf.mxu1  ;;  %v12045_v14 = vadd.f32 %v4606_v40, %v2533_v5  ;;  %v4605_v8 = vmul.f32 %v12018_v0, %v4588_v19  ;;  %v4591_v58 = vadd.f32 %v9557_v62, %v4361_v54  ;;  %v4360_v11 = vadd.f32 %v4297_v17, %v4130_v9 }
 0x1e5   : > { %v9534_v59 = vpop.f32.mrf.mxu0  ;;  %v4134_v25 = vadd.f32 %v11955_v2, %v3903_v50  ;;  %v3677_v62 = vadd.f32 %v11885_v52, %v11890_v26  ;;  %v4136_v17 = vadd.f32 %v11968_v47, %v3905_v63  ;;  %v3679_v47 = vadd.f32 %v11897_v3, %v11902_v49  ;;  %9809 = vmatprep.subr.mxu1 %v6749_v37  ;;  %v12981_v63 = vld [vmem:[#allocation22_spill] sm:$0xff] }
 0x1e6   : > { %12964 = vst [vmem:[#allocation4_spill] sm:$0xff] %v12045_v14  ;;  %v9560_v31 = vpop.f32.mrf.mxu1  ;;  %v12052_v45 = vadd.f32 %v4605_v8, %v2532_v15  ;;  %v4608_v33 = vmul.f32 %v12018_v0, %v4591_v58  ;;  %v4590_v13 = vadd.f32 %v4527_v29, %v4360_v11  ;;  %v4363_v44 = vadd.f32 %v9534_v59, %v11946_v16  ;;  %v12969_v16 = vld [vmem:[#allocation15_spill] sm:$0xff]  ;;  %v12973_v15 = vld [vmem:[#allocation17_spill] sm:$0xff] }
 0x1e7   : > { %v4307_v18 = vpop.f32.mrf.mxu0  ;;  %v2537_v38 = vmul.f32 %v12011_v42, %v12969_v16  ;;  %v2539_v57 = vmul.f32 %v12011_v42, %v12973_v15  ;;  %9810 = vmatpush3.msra.mxu1 %v6749_v37  ;;  %v3909_v27 = vadd.f32 %v12001_v60, %v3679_v47 }
 0x1e8   : > { %12966 = vst [vmem:[#allocation5_spill] sm:$0xff] %v12052_v45  ;;  %v4537_v46 = vpop.f32.mrf.mxu1  ;;  %v12063_v53 = vadd.f32 %v4608_v33, %v2535_v34  ;;  %v4607_v21 = vmul.f32 %v12018_v0, %v4590_v13  ;;  %v4593_v61 = vadd.f32 %v9560_v31, %v4363_v44  ;;  %v4362_v20 = vadd.f32 %v4307_v18, %v4132_v41  ;;  %v12975_v34 = vld [vmem:[#allocation18_spill] sm:$0xff] }
 0x1e9   : > { %v9537_v35 = vpop.f32.mrf.mxu0  ;;  %v2538_v41 = vmul.f32 %v12011_v42, %v12975_v34 }
 0x1ea   : > { %12968 = vst [vmem:[#allocation6_spill] sm:$0xff] %v12063_v53  ;;  %v9563_v24 = vpop.f32.mrf.mxu1  ;;  %v12070_v36 = vadd.f32 %v4607_v21, %v2534_v23  ;;  %v4610_v48 = vmul.f32 %v12018_v0, %v4593_v61  ;;  %v4592_v5 = vadd.f32 %v4537_v46, %v4362_v20  ;;  %v4365_v9 = vadd.f32 %v9537_v35, %v11957_v6  ;;  %v12979_v21 = vld [vmem:[#allocation21_spill] sm:$0xff] }
 0x1eb   : > { %v4317_v40 = vpop.f32.mrf.mxu0  ;;  %v3907_v6 = vadd.f32 %v11984_v51, %v3677_v62  ;;  %v2540_v61 = vmul.f32 %v12011_v42, %v12979_v21  ;;  %v2543_v35 = vmul.f32 %v12011_v42, %v12981_v63  ;;  %v6748_v62 = vld [vmem:[%s12889_s5 + $0x8] sm:$0xff] }
 0x1ec   : > { %12970 = vst [vmem:[#allocation7_spill] sm:$0xff] %v12070_v36  ;;  %v4547_v19 = vpop.f32.mrf.mxu1  ;;  %v12078_v2 = vadd.f32 %v4610_v48, %v2537_v38  ;;  %v4609_v10 = vmul.f32 %v12018_v0, %v4592_v5  ;;  %v4595_v54 = vadd.f32 %v9563_v24, %v4365_v9  ;;  %v4364_v7 = vadd.f32 %v4317_v40, %v4134_v25  ;;  %v12983_v40 = vld [vmem:[#allocation24_spill] sm:$0xff] }
 0x1ed   : > { %v9540_v29 = vpop.f32.mrf.mxu0  ;;  %v4138_v22 = vadd.f32 %v11986_v28, %v3907_v6  ;;  %v4140_v24 = vadd.f32 %v12003_v32, %v3909_v27  ;;  %9811 = vmatprep.subr.mxu1 %v6748_v62 }
 0x1ee   : > { %12972 = vst [vmem:[#allocation8_spill] sm:$0xff] %v12078_v2  ;;  %v9566_v8 = vpop.f32.mrf.mxu1  ;;  %v12085_v58 = vadd.f32 %v4609_v10, %v2536_v55  ;;  %v4612_v52 = vmul.f32 %v12018_v0, %v4595_v54  ;;  %v4594_v26 = vadd.f32 %v4547_v19, %v4364_v7  ;;  %v4367_v11 = vadd.f32 %v9540_v29, %v11972_v4  ;;  %v12977_v4 = vld [vmem:[#allocation19_spill] sm:$0xff] }
 0x1ef   : > { %v4327_v51 = vpop.f32.mrf.mxu0  ;;  %v2541_v44 = vmul.f32 %v12011_v42, %v12977_v4  ;;  %v2542_v19 = vmul.f32 %v12011_v42, %v12983_v40  ;;  %9812 = vmatpush3.msra.mxu1 %v6748_v62 }
 0x1f0   : > { %12974 = vst [vmem:[#allocation20_spill] sm:$0xff] %v12085_v58  ;;  %v4557_v50 = vpop.f32.mrf.mxu1  ;;  %v12096_v59 = vadd.f32 %v4612_v52, %v2539_v57  ;;  %v4611_v31 = vmul.f32 %v12018_v0, %v4594_v26  ;;  %v4597_v33 = vadd.f32 %v9566_v8, %v4367_v11  ;;  %v4366_v13 = vadd.f32 %v4327_v51, %v4136_v17  ;;  %v12985_v17 = vld [vmem:[#allocation25_spill] sm:$0xff] }
 0x1f1   : > { %v9543_v23 = vpop.f32.mrf.mxu0 }
 0x1f2   : > { %12976 = vst [vmem:[#allocation23_spill] sm:$0xff] %v12096_v59  ;;  %v9569_v12 = vpop.f32.mrf.mxu1  ;;  %v12103_v3 = vadd.f32 %v4611_v31, %v2538_v41  ;;  %v4614_v49 = vmul.f32 %v12018_v0, %v4597_v33  ;;  %v4596_v18 = vadd.f32 %v4557_v50, %v4366_v13  ;;  %v4369_v46 = vadd.f32 %v9543_v23, %v11994_v30  ;;  %v12987_v41 = vld [vmem:[#allocation26_spill] sm:$0xff] }
 0x1f3   : > { %v4337_v20 = vpop.f32.mrf.mxu0  ;;  %v2544_v47 = vmul.f32 %v12011_v42, %v12987_v41 }
 0x1f4   : > { %12978 = vst [vmem:[#allocation9_spill] sm:$0xff] %v12103_v3  ;;  %v4567_v16 = vpop.f32.mrf.mxu1  ;;  %v12109_v38 = vadd.f32 %v4614_v49, %v2541_v44  ;;  %v4613_v28 = vmul.f32 %v12018_v0, %v4596_v18  ;;  %v4599_v25 = vadd.f32 %v9569_v12, %v4369_v46  ;;  %v4368_v60 = vadd.f32 %v4337_v20, %v4138_v22 }
 0x1f5   : > { %v9546_v48 = vpop.f32.mrf.mxu0 }
 0x1f6   : > { %12980 = vst [vmem:[#allocation10_spill] sm:$0xff] %v12109_v38  ;;  %v9572_v5 = vpop.f32.mrf.mxu1  ;;  %v12115_v9 = vadd.f32 %v4613_v28, %v2540_v61  ;;  %v4616_v30 = vmul.f32 %v12018_v0, %v4599_v25  ;;  %v4598_v56 = vadd.f32 %v4567_v16, %v4368_v60  ;;  %v4371_v55 = vadd.f32 %v9546_v48, %v12009_v39 }
 0x1f7   : > { %v4347_v10 = vpop.f32.mrf.mxu0  ;;  %v2545_v39 = vmul.f32 %v12011_v42, %v12985_v17  ;;  %v6747_v42 = vld [vmem:[%s12889_s5] sm:$0xff] }
 0x1f8   : > { %12982 = vst [vmem:[#allocation11_spill] sm:$0xff] %v12115_v9  ;;  %v4577_v54 = vpop.f32.mrf.mxu1  ;;  %v12124_v32 = vadd.f32 %v4616_v30, %v2543_v35  ;;  %v4615_v7 = vmul.f32 %v12018_v0, %v4598_v56  ;;  %v4601_v15 = vadd.f32 %v9572_v5, %v4371_v55  ;;  %v4370_v57 = vadd.f32 %v4347_v10, %v4140_v24 }
 0x1f9   : > { %v9577_v6 = vpop.f32.mrf.mxu0  ;;  %9813 = vmatprep.subr.mxu1 %v6747_v42 }
 0x1fa   : > { %12984 = vst [vmem:[#allocation12_spill] sm:$0xff] %v12124_v32  ;;  %v9603_v29 = vpop.f32.mrf.mxu1  ;;  %v12129_v8 = vadd.f32 %v4615_v7, %v2542_v19  ;;  %v4618_v52 = vmul.f32 %v12018_v0, %v4601_v15  ;;  %v4600_v26 = vadd.f32 %v4577_v54, %v4370_v57  ;;  %9814 = vmatpush3.msra.mxu1 %v6747_v42 }
 0x1fb   : > { %v4990_v11 = vadd.f32 %v9603_v29, %v9577_v6  ;;  %v4788_v37 = vpop.f32.mrf.mxu0 }
 0x1fc   : > { %12986 = vst [vmem:[#allocation13_spill] sm:$0xff] %v12129_v8  ;;  %v4984_v34 = vpop.f32.mrf.mxu1  ;;  %v12134_v51 = vadd.f32 %v4618_v52, %v2545_v39  ;;  %v4617_v50 = vmul.f32 %v12018_v0, %v4600_v26 }
 0x1fd   : > { %v4985_v31 = vadd.f32 %v4984_v34, %v4788_v37  ;;  %v9580_v33 = vpop.f32.mrf.mxu0 }
 0x1fe   : > { %12988 = vst [vmem:[#allocation14_spill] sm:$0xff] %v12134_v51  ;;  %v9606_v13 = vpop.f32.mrf.mxu1  ;;  %v12137_v4 = vadd.f32 %v4617_v50, %v2544_v47 }
 0x1ff   : > { %v5000_v44 = vadd.f32 %v9606_v13, %v9580_v33  ;;  %v4798_v22 = vpop.f32.mrf.mxu0 }
 0x200   : > { %12989 = vst [vmem:[#allocation15_spill] sm:$0xff] %v12137_v4  ;;  %v4994_v27 = vpop.f32.mrf.mxu1 }
 0x201   : > { %v4995_v23 = vadd.f32 %v4994_v27, %v4798_v22  ;;  %v9583_v12 = vpop.f32.mrf.mxu0 }
 0x202   : > { %v9609_v49 = vpop.f32.mrf.mxu1 }
 0x203   : > { %v5010_v18 = vadd.f32 %v9609_v49, %v9583_v12  ;;  %v4808_v46 = vpop.f32.mrf.mxu0 }
 0x204   : > { %v5004_v21 = vpop.f32.mrf.mxu1 }
 0x205   : > { %v5005_v61 = vadd.f32 %v5004_v21, %v4808_v46  ;;  %v9586_v0 = vpop.f32.mrf.mxu0 }
 0x206   : > { %v9612_v20 = vpop.f32.mrf.mxu1 }
 0x207   : > { %v5020_v16 = vadd.f32 %v9612_v20, %v9586_v0  ;;  %v4818_v28 = vpop.f32.mrf.mxu0 }
 0x208   : > { %v5014_v25 = vpop.f32.mrf.mxu1 }
 0x209   : > { %v5015_v60 = vadd.f32 %v5014_v25, %v4818_v28  ;;  %v9589_v63 = vpop.f32.mrf.mxu0 }
 0x20a   : > { %v9615_v35 = vpop.f32.mrf.mxu1 }
 0x20b   : > { %v5030_v24 = vadd.f32 %v9615_v35, %v9589_v63  ;;  %v4828_v48 = vpop.f32.mrf.mxu0  ;;  %v6947_v63 = vld [vmem:[%s12890_s6 + $0x10] sm:$0xff] }
 0x20c   : > { %v5024_v5 = vpop.f32.mrf.mxu1 }
 0x20d   : > { %v5025_v30 = vadd.f32 %v5024_v5, %v4828_v48  ;;  %v9592_v56 = vpop.f32.mrf.mxu0 }
 0x20e   : > { %v9618_v55 = vpop.f32.mrf.mxu1 }
 0x20f   : > { %v5040_v62 = vadd.f32 %v9618_v55, %v9592_v56  ;;  %v4838_v40 = vpop.f32.mrf.mxu0  ;;  %v6945_v55 = vld [vmem:[%s12890_s6] sm:$0xff] }
 0x210   : > { %v5034_v19 = vpop.f32.mrf.mxu1 }
 0x211   : > { %v5035_v10 = vadd.f32 %v5034_v19, %v4838_v40  ;;  %v9595_v54 = vpop.f32.mrf.mxu0 }
 0x212   : > { %v9621_v7 = vpop.f32.mrf.mxu1 }
 0x213   : > { %v5050_v15 = vadd.f32 %v9621_v7, %v9595_v54  ;;  %v4848_v57 = vpop.f32.mrf.mxu0 }
 0x214   : > { %v5044_v17 = vpop.f32.mrf.mxu1 }
 0x215   : > { %v5045_v39 = vadd.f32 %v5044_v17, %v4848_v57  ;;  %v9598_v6 = vpop.f32.mrf.mxu0 }
 0x216   : > { %v9624_v29 = vpop.f32.mrf.mxu1 }
 0x217   : > { %v5060_v52 = vadd.f32 %v9624_v29, %v9598_v6  ;;  %v4858_v26 = vpop.f32.mrf.mxu0 }
 0x218   : > { %v5054_v37 = vpop.f32.mrf.mxu1 }
 0x219   : > { %v5055_v34 = vadd.f32 %v5054_v37, %v4858_v26  ;;  %v9629_v41 = vpop.f32.mrf.mxu0 }
 0x21a   : > { %v12142_v47 = vpop.f32.mrf.mxu1  ;;  %v12144_v50 = vadd.f32 %v9629_v41, %v4990_v11 }
 0x21b   : > { %v5198_v33 = vpop.f32.mrf.mxu0 }
 0x21c   : > { %v12146_v13 = vpop.f32.mrf.mxu1  ;;  %v12148_v22 = vadd.f32 %v5198_v33, %v4985_v31 }
 0x21d   : > { %v9632_v27 = vpop.f32.mrf.mxu0 }
 0x21e   : > { %v12150_v12 = vpop.f32.mrf.mxu1  ;;  %v12152_v49 = vadd.f32 %v9632_v27, %v5000_v44  ;;  %v6948_v44 = vld [vmem:[%s12890_s6 + $0x18] sm:$0xff] }
 0x21f   : > { %v5208_v46 = vpop.f32.mrf.mxu0  ;;  %9839 = vmatprep.subr.mxu0 %v6948_v44 }
 0x220   : > { %v12154_v21 = vpop.f32.mrf.mxu1  ;;  %v12156_v42 = vadd.f32 %v5208_v46, %v4995_v23  ;;  %9840 = vmatpush3.msra.mxu0 %v6948_v44 }
 0x221   : > { %v9635_v0 = vpop.f32.mrf.mxu0  ;;  %9841 = vmatprep.subr.mxu0 %v6947_v63 }
 0x222   : > { %v12158_v20 = vpop.f32.mrf.mxu1  ;;  %v12160_v11 = vadd.f32 %v9635_v0, %v5010_v18  ;;  %v6946_v18 = vld [vmem:[%s12890_s6 + $0x8] sm:$0xff]  ;;  %9842 = vmatpush3.msra.mxu0 %v6947_v63 }
 0x223   : > { %v5218_v28 = vpop.f32.mrf.mxu0  ;;  %9843 = vmatprep.subr.mxu0 %v6946_v18 }
 0x224   : > { %v12162_v25 = vpop.f32.mrf.mxu1  ;;  %v12164_v31 = vadd.f32 %v5218_v28, %v5005_v61  ;;  %9844 = vmatpush3.msra.mxu0 %v6946_v18 }
 0x225   : > { %v9638_v23 = vpop.f32.mrf.mxu0  ;;  %9845 = vmatprep.subr.mxu0 %v6945_v55 }
 0x226   : > { %v12172_v35 = vpop.f32.mrf.mxu1  ;;  %v12174_v48 = vadd.f32 %v9638_v23, %v5020_v16  ;;  %9846 = vmatpush3.msra.mxu0 %v6945_v55 }
 0x227   : > { %v5228_v61 = vpop.f32.mrf.mxu0 }
 0x228   : > { %v12179_v5 = vpop.f32.mrf.mxu1  ;;  %v12181_v56 = vadd.f32 %v5228_v61, %v5015_v60 }
 0x229   : > { %v9641_v40 = vpop.f32.mrf.mxu0 }
 0x22a   : > { %v12186_v19 = vpop.f32.mrf.mxu1  ;;  %v12188_v16 = vadd.f32 %v9641_v40, %v5030_v24 }
 0x22b   : > { %v5238_v54 = vpop.f32.mrf.mxu0 }
 0x22c   : > { %v12190_v7 = vpop.f32.mrf.mxu1  ;;  %v12192_v57 = vadd.f32 %v5238_v54, %v5025_v30 }
 0x22d   : > { %v9644_v60 = vpop.f32.mrf.mxu0 }
 0x22e   : > { %v12194_v17 = vpop.f32.mrf.mxu1  ;;  %v12196_v6 = vadd.f32 %v9644_v60, %v5040_v62 }
 0x22f   : > { %v5248_v29 = vpop.f32.mrf.mxu0 }
 0x230   : > { %v12198_v26 = vpop.f32.mrf.mxu1  ;;  %v12200_v37 = vadd.f32 %v5248_v29, %v5035_v10 }
 0x231   : > { %v9647_v24 = vpop.f32.mrf.mxu0 }
 0x232   : > { %v12202_v41 = vpop.f32.mrf.mxu1  ;;  %v12204_v33 = vadd.f32 %v9647_v24, %v5050_v15 }
 0x233   : > { %v5258_v27 = vpop.f32.mrf.mxu0 }
 0x234   : > { %v12206_v46 = vpop.f32.mrf.mxu1  ;;  %v12208_v30 = vadd.f32 %v5258_v27, %v5045_v39 }
 0x235   : > { %v9650_v0 = vpop.f32.mrf.mxu0 }
 0x236   : > { %v12210_v28 = vpop.f32.mrf.mxu1  ;;  %v12212_v62 = vadd.f32 %v9650_v0, %v5060_v52 }
 0x237   : > { %v5268_v44 = vpop.f32.mrf.mxu0 }
 0x238   : > { %v12214_v63 = vpop.f32.mrf.mxu1  ;;  %v12216_v10 = vadd.f32 %v5268_v44, %v5055_v34 }
 0x239   : > { %v9681_v23 = vpop.f32.mrf.mxu0 }
 0x23a   : > { %v9707_v18 = vpop.f32.mrf.mxu1 }
 0x23b   : > { %v5659_v61 = vpop.f32.mrf.mxu0 }
 0x23c   : > { %v12218_v15 = vpop.f32.mrf.mxu1 }
 0x23d   : > { %v9684_v55 = vpop.f32.mrf.mxu0 }
 0x23e   : > { %v12220_v40 = vpop.f32.mrf.mxu1 }
 0x23f   : > { %v12222_v39 = vpop.f32.mrf.mxu0 }
 0x240   : > { %v12224_v54 = vpop.f32.mrf.mxu1 }
 0x241   : > { %v12226_v60 = vpop.f32.mrf.mxu0 }
 0x242   : > { %v12228_v52 = vpop.f32.mrf.mxu1 }
 0x243   : > { %v12230_v29 = vpop.f32.mrf.mxu0 }
 0x244   : > { %v12232_v34 = vpop.f32.mrf.mxu1 }
 0x245   : > { %v12234_v24 = vpop.f32.mrf.mxu0 }
 0x246   : > { %v12236_v27 = vpop.f32.mrf.mxu1 }
 0x247   : > { %12990 = vst [vmem:[#allocation16_spill] sm:$0xff] %v12236_v27  ;;  %v12238_v0 = vpop.f32.mrf.mxu0 }
 0x248   : > { %v12240_v44 = vpop.f32.mrf.mxu1 }
 0x249   : > { %12991 = vst [vmem:[#allocation17_spill] sm:$0xff] %v12240_v44  ;;  %v12242_v4 = vpop.f32.mrf.mxu0 }
 0x24a   : > { %v12244_v51 = vpop.f32.mrf.mxu1 }
 0x24b   : > { %12992 = vst [vmem:[#allocation18_spill] sm:$0xff] %v12244_v51  ;;  %v12246_v8 = vpop.f32.mrf.mxu0 }
 0x24c   : > { %v12248_v32 = vpop.f32.mrf.mxu1 }
 0x24d   : > { %12993 = vst [vmem:[#allocation19_spill] sm:$0xff] %v12248_v32  ;;  %v12250_v9 = vpop.f32.mrf.mxu0 }
 0x24e   : > { %12994 = vst [vmem:[#allocation21_spill] sm:$0xff] %v12250_v9  ;;  %v12252_v38 = vpop.f32.mrf.mxu1 }
 0x24f   : > { %12995 = vst [vmem:[#allocation22_spill] sm:$0xff] %v12252_v38  ;;  %v12254_v3 = vpop.f32.mrf.mxu0 }
 0x250   : > { %12996 = vst [vmem:[#allocation24_spill] sm:$0xff] %v12254_v3  ;;  %v12256_v59 = vpop.f32.mrf.mxu1 }
 0x251   : > { %12997 = vst [vmem:[#allocation25_spill] sm:$0xff] %v12256_v59  ;;  %v12258_v58 = vpop.f32.mrf.mxu0 }
 0x252   : > { %12998 = vst [vmem:[#allocation26_spill] sm:$0xff] %v12258_v58  ;;  %v12260_v2 = vpop.f32.mrf.mxu1 }
 0x253   : > { %12999 = vst [vmem:[#allocation27_spill] sm:$0xff] %v12260_v2  ;;  %v12262_v36 = vpop.f32.mrf.mxu0 }
 0x254   : > { %13000 = vst [vmem:[#allocation28_spill] sm:$0xff] %v12262_v36  ;;  %v12264_v53 = vpop.f32.mrf.mxu1 }
 0x255   : > { %13001 = vst [vmem:[#allocation29_spill] sm:$0xff] %v12264_v53  ;;  %v12266_v45 = vpop.f32.mrf.mxu0 }
 0x256   : > { %13002 = vst [vmem:[#allocation30_spill] sm:$0xff] %v12266_v45  ;;  %v12268_v14 = vpop.f32.mrf.mxu1 }
 0x257   : > { %13003 = vst [vmem:[#allocation31_spill] sm:$0xff] %v12268_v14  ;;  %v12270_v43 = vpop.f32.mrf.mxu0 }
 0x258   : > { %13004 = vst [vmem:[#allocation32_spill] sm:$0xff] %v12270_v43  ;;  %v12272_v38 = vpop.f32.mrf.mxu1 }
 0x259   : > { %13005 = vst [vmem:[#allocation33_spill] sm:$0xff] %v12272_v38  ;;  %v9733_v32 = vpop.f32.mrf.mxu0 }
 0x25a   : > { %v9759_v59 = vpop.f32.mrf.mxu1 }
 0x25b   : > { %v6120_v51 = vpop.f32.mrf.mxu0 }
 0x25c   : > { %v6350_v58 = vpop.f32.mrf.mxu1 }
 0x25d   : > { %v9736_v1 = vpop.f32.mrf.mxu0 }
 0x25e   : > { %v12274_v2 = vpop.f32.mrf.mxu1 }
 0x25f   : > { %13006 = vst [vmem:[#allocation34_spill] sm:$0xff] %v12274_v2  ;;  %v6130_v36 = vpop.f32.mrf.mxu0 }
 0x260   : > { %v12278_v53 = vpop.f32.mrf.mxu1 }
 0x261   : > { %v12276_v3 = vpop.f32.mrf.mxu0  ;;  %13008 = vst [vmem:[#allocation36_spill] sm:$0xff] %v12278_v53 }
 0x262   : > { %13007 = vst [vmem:[#allocation35_spill] sm:$0xff] %v12276_v3  ;;  %v12284_v43 = vpop.f32.mrf.mxu1 }
 0x263   : > { %v12280_v45 = vpop.f32.mrf.mxu0  ;;  %13011 = vst [vmem:[#allocation39_spill] sm:$0xff] %v12284_v43 }
 0x264   : > { %13009 = vst [vmem:[#allocation37_spill] sm:$0xff] %v12280_v45  ;;  %v12292_v27 = vpop.f32.mrf.mxu1 }
 0x265   : > { %v12282_v14 = vpop.f32.mrf.mxu0  ;;  %13014 = vst [vmem:[#allocation42_spill] sm:$0xff] %v12292_v27 }
 0x266   : > { %13010 = vst [vmem:[#allocation38_spill] sm:$0xff] %v12282_v14  ;;  %v5509_v14 = vadd.f32 %v12142_v47, %v12144_v50  ;;  %v12306_v45 = vpop.f32.mrf.mxu1  ;;  %v5510_v47 = vadd.f32 %v12154_v21, %v12156_v42  ;;  %v5517_v21 = vadd.f32 %v12186_v19, %v12188_v16 }
 0x267   : > { %v12286_v44 = vpop.f32.mrf.mxu0 }
 0x268   : > { %13012 = vst [vmem:[#allocation40_spill] sm:$0xff] %v12286_v44  ;;  %v5508_v44 = vadd.f32 %v12146_v13, %v12148_v22  ;;  %v5739_v43 = vadd.f32 %v9681_v23, %v5509_v14  ;;  %v12318_v9 = vpop.f32.mrf.mxu1  ;;  %v12322_v13 = vstv %s7729_s27  ;;  %v5513_v22 = vadd.f32 %v12158_v20, %v12160_v11 }
 0x269   : > { %v12290_v38 = vpop.f32.mrf.mxu0  ;;  %v5516_v20 = vadd.f32 %v12190_v7, %v12192_v57  ;;  %v5520_v7 = vadd.f32 %v12206_v46, %v12208_v30  ;;  %v5523_v57 = vadd.f32 %v12210_v28, %v12212_v62  ;;  %v5747_v46 = vadd.f32 %v12242_v4, %v5517_v21  ;;  %v13018_v28 = vld [vmem:[#allocation21_spill] sm:$0xff] }
 0x26a   : > { %13013 = vst [vmem:[#allocation41_spill] sm:$0xff] %v12290_v38  ;;  %v5738_v27 = vadd.f32 %v5659_v61, %v5508_v44  ;;  %v5969_v50 = vadd.f32 %v9707_v18, %v5739_v43  ;;  %v5512_v61 = vadd.f32 %v12162_v25, %v12164_v31  ;;  %v5515_v43 = vadd.f32 %v12172_v35, %v12174_v48  ;;  %v12342_v25 = vpop.f32.mrf.mxu1 }
 0x26b   : > { %v12294_v2 = vpop.f32.mrf.mxu0  ;;  %v5519_v31 = vadd.f32 %v12194_v17, %v12196_v6  ;;  %v5518_v35 = vadd.f32 %v12198_v26, %v12200_v37  ;;  %v5521_v48 = vadd.f32 %v12202_v41, %v12204_v33  ;;  %v12361_v17 = vadd.f32 %v12214_v63, %v12216_v10  ;;  %v13019_v10 = vld [vmem:[#allocation16_spill] sm:$0xff]  ;;  %v13024_v4 = vld [vmem:[#allocation37_spill] sm:$0xff] }
 0x26c   : > { %13015 = vst [vmem:[#allocation43_spill] sm:$0xff] %v12294_v2  ;;  %v5511_v2 = vadd.f32 %v12150_v12, %v12152_v49  ;;  %v5968_v23 = vadd.f32 %v12218_v15, %v5738_v27  ;;  %v5740_v12 = vadd.f32 %v12222_v39, %v5510_v47  ;;  %v6200_v49 = vadd.f32 %v9733_v32, %v5969_v50  ;;  %v12365_v15 = vpop.f32.mrf.mxu1  ;;  %v13026_v50 = vld [vmem:[#allocation2_spill] sm:$0xff] }
 0x26d   : > { %v12302_v53 = vpop.f32.mrf.mxu0  ;;  %v5743_v32 = vadd.f32 %v12226_v60, %v5513_v22  ;;  %v5745_v19 = vadd.f32 %v12234_v24, %v5515_v43  ;;  %v5746_v30 = vadd.f32 %v12246_v8, %v5516_v20  ;;  %v5749_v62 = vadd.f32 %v13018_v28, %v5519_v31  ;;  %v13029_v20 = vld [vmem:[#allocation22_spill] sm:$0xff] }
 0x26e   : > { %13017 = vst [vmem:[#allocation44_spill] sm:$0xff] %v12302_v53  ;;  %v5741_v53 = vadd.f32 %v9684_v55, %v5511_v2  ;;  %v5514_v2 = vadd.f32 %v12179_v5, %v12181_v56  ;;  %v6199_v18 = vadd.f32 %v6120_v51, %v5968_v23  ;;  %v5742_v5 = vadd.f32 %v12230_v29, %v5512_v61  ;;  %v12379_v47 = vpop.f32.mrf.mxu1  ;;  %v12385_v23 = vld [vmem:[%s12888_s4] ss:$0 sm:$0xff] }
 0x26f   : > { %v12308_v38 = vpop.f32.mrf.mxu0  ;;  %v6430_v51 = vadd.f32 %v9759_v59, %v6200_v49  ;;  %v5973_v37 = vadd.f32 %v12228_v52, %v5743_v32  ;;  %v5975_v55 = vadd.f32 %v13019_v10, %v5745_v19  ;;  %v13022_v52 = vld [vmem:[#allocation24_spill] sm:$0xff]  ;;  %v13027_v61 = vld [vmem:[#allocation18_spill] sm:$0xff] }
 0x270   : > { %v5971_v11 = vadd.f32 %v12220_v40, %v5741_v53  ;;  %v5970_v53 = vadd.f32 %v12224_v54, %v5740_v12  ;;  %v5744_v6 = vadd.f32 %v12238_v0, %v5514_v2  ;;  %v6429_v41 = vadd.f32 %v6350_v58, %v6199_v18  ;;  %v13020_v40 = vld [vmem:[#allocation34_spill] sm:$0xff]  ;;  %v13021_v54 = vld [vmem:[#allocation17_spill] sm:$0xff]  ;;  %v13025_v0 = vld [vmem:[#allocation36_spill] sm:$0xff]  ;;  %v6400_v28 = vpop.f32.mrf.mxu1 }
 0x271   : > { %v12314_v3 = vpop.f32.mrf.mxu0  ;;  %v5972_v59 = vadd.f32 %v12232_v34, %v5742_v5  ;;  %v5748_v29 = vadd.f32 %v13022_v52, %v5518_v35  ;;  %v13023_v34 = vld [vmem:[#allocation35_spill] sm:$0xff]  ;;  %v5977_v43 = vadd.f32 %v13027_v61, %v5747_v46  ;;  %v13030_v32 = vld [vmem:[#allocation26_spill] sm:$0xff] }
 0x272   : > { %v6202_v16 = vadd.f32 %v9736_v1, %v5971_v11  ;;  %v6201_v33 = vadd.f32 %v6130_v36, %v5970_v53  ;;  %v5974_v60 = vadd.f32 %v13021_v54, %v5744_v6  ;;  %v6204_v24 = vadd.f32 %v13023_v34, %v5973_v37  ;;  %v13028_v2 = vld [vmem:[#allocation19_spill] sm:$0xff]  ;;  %v13031_v35 = vld [vmem:[#allocation38_spill] sm:$0xff]  ;;  %v13033_v6 = vld [vmem:[#allocation25_spill] sm:$0xff]  ;;  %v9777_v61 = vpop.f32.mrf.mxu1 }
 0x273   : > { %v12320_v14 = vpop.f32.mrf.mxu0  ;;  %v6203_v27 = vadd.f32 %v13024_v4, %v5972_v59  ;;  %v5976_v21 = vadd.f32 %v13028_v2, %v5746_v30  ;;  %v5979_v11 = vadd.f32 %v13029_v20, %v5749_v62  ;;  %v5751_v18 = vadd.f32 %v13030_v32, %v5521_v48  ;;  %v13032_v53 = vld [vmem:[#allocation3_spill] sm:$0xff]  ;;  %v13036_v30 = vld [vmem:[#allocation40_spill] sm:$0xff]  ;;  %v13040_v54 = vld [vmem:[#allocation41_spill] sm:$0xff] }
 0x274   : > { %v6432_v39 = vadd.f32 %v13020_v40, %v6202_v16  ;;  %v6431_v44 = vadd.f32 %v13025_v0, %v6201_v33  ;;  %v6206_v5 = vadd.f32 %v13031_v35, %v5975_v55  ;;  %v13034_v37 = vld [vmem:[#allocation39_spill] sm:$0xff]  ;;  %v13035_v33 = vld [vmem:[#allocation42_spill] sm:$0xff]  ;;  %v6205_v48 = vadd.f32 %v13036_v30, %v5974_v60  ;;  %v13038_v40 = vld [vmem:[#allocation28_spill] sm:$0xff] }
 0x275   : > { %v12336_v42 = vpop.f32.mrf.mxu0  ;;  %v6208_v52 = vadd.f32 %v13040_v54, %v5977_v43  ;;  %v13041_v4 = vld [vmem:[#allocation5_spill] sm:$0xff]  ;;  %v13042_v0 = vld [vmem:[#allocation30_spill] sm:$0xff]  ;;  %v13048_v30 = vld [vmem:[#allocation8_spill] sm:$0xff] }
 0x276   : > { %v13045_v35 = vld [vmem:[#allocation6_spill] sm:$0xff] }
 0x277   : > { %v12351_v56 = vpop.f32.mrf.mxu0  ;;  %v6438_v32 = vadd.f32 %v12342_v25, %v6208_v52 }
 0x279   : > { %v9785_v26 = vpop.f32.mrf.mxu0 }
 0x27a   : > { %v6660_v1 = vadd.f32 %v9785_v26, %v6430_v51  ;;  %v5978_v26 = vadd.f32 %v13033_v6, %v5748_v29 }
 0x27b   : > { %v6580_v63 = vpop.f32.mrf.mxu0 }
 0x27c   : > { %v6677_v58 = vmul.f32 %v12322_v13, %v6660_v1  ;;  %v6659_v36 = vadd.f32 %v6580_v63, %v6429_v41  ;;  %v6434_v41 = vadd.f32 %v13034_v37, %v6204_v24  ;;  %v6433_v1 = vadd.f32 %v13035_v33, %v6203_v27  ;;  %v13037_v63 = vld [vmem:[#allocation4_spill] sm:$0xff]  ;;  %v13047_v37 = vld [vmem:[#allocation29_spill] sm:$0xff] }
 0x27d   : > { %v9788_v8 = vpop.f32.mrf.mxu0  ;;  %v6436_v24 = vadd.f32 %v12306_v45, %v6206_v5  ;;  %v6209_v25 = vadd.f32 %v12308_v38, %v5978_v26  ;;  %v13049_v38 = vld [vmem:[#allocation32_spill] sm:$0xff] }
 0x27e   : > { %v6693_v22 = vadd.f32 %v6677_v58, %v13026_v50  ;;  %v6676_v12 = vmul.f32 %v12322_v13, %v6659_v36  ;;  %v6662_v49 = vadd.f32 %v9788_v8, %v6432_v39  ;;  %v5750_v39 = vadd.f32 %v13038_v40, %v5520_v7  ;;  %v13039_v58 = vld [vmem:[#allocation27_spill] sm:$0xff] }
 0x27f   : > { %v6590_v31 = vpop.f32.mrf.mxu0  ;;  %v5981_v36 = vadd.f32 %v13039_v58, %v5751_v18  ;;  %v13044_v18 = vld [vmem:[#allocation44_spill] sm:$0xff]  ;;  %v5752_v26 = vadd.f32 %v13049_v38, %v12361_v17  ;;  %v6439_v17 = vadd.f32 %v6400_v28, %v6209_v25  ;;  %v13053_v28 = vld [vmem:[#allocation33_spill] sm:$0xff] }
 0x280   : > { %v6692_v19 = vadd.f32 %v6676_v12, %v13032_v53  ;;  %v6679_v51 = vmul.f32 %v12322_v13, %v6662_v49  ;;  %v6661_v16 = vadd.f32 %v6590_v31, %v6431_v44  ;;  %v12399_v59 = vadd.f32 %v12385_v23, %v6693_v22 }
 0x281   : > { %v9791_v46 = vpop.f32.mrf.mxu0  ;;  %v5753_v44 = vadd.f32 %v13042_v0, %v5523_v57  ;;  %v6435_v49 = vadd.f32 %v12318_v9, %v6205_v48  ;;  %v13043_v57 = vld [vmem:[#allocation43_spill] sm:$0xff]  ;;  %v6210_v31 = vadd.f32 %v13044_v18, %v5979_v11  ;;  %v6212_v58 = vadd.f32 %v12314_v3, %v5981_v36 }
 0x282   : > { %v12403_v62 = vadd.f32 %v12385_v23, %v6692_v19  ;;  %v6695_v10 = vadd.f32 %v6679_v51, %v13037_v63  ;;  %v6678_v55 = vmul.f32 %v12322_v13, %v6661_v16  ;;  %v6664_v29 = vadd.f32 %v9791_v46, %v6434_v41  ;;  %v13046_v19 = vld [vmem:[#allocation7_spill] sm:$0xff] }
 0x283   : > { %v6600_v34 = vpop.f32.mrf.mxu0  ;;  %v6732_v50 = vmax.f32 %v12399_v59, 0.0  ;;  %v6207_v20 = vadd.f32 %v13043_v57, %v5976_v21  ;;  %v5980_v21 = vadd.f32 %v13047_v37, %v5750_v39  ;;  %v6440_v52 = vadd.f32 %v12379_v47, %v6210_v31  ;;  %v13052_v47 = vld [vmem:[#allocation23_spill] sm:$0xff] }
 0x284   : > { %v6731_v60 = vmax.f32 %v12403_v62, 0.0  ;;  %v6694_v27 = vadd.f32 %v6678_v55, %v13041_v4  ;;  %v6663_v8 = vadd.f32 %v6600_v34, %v6433_v1  ;;  %v12416_v22 = vadd.f32 %v12385_v23, %v6695_v10  ;;  %v6410_v1 = vpop.f32.mrf.mxu1  ;;  %v13050_v55 = vld [vmem:[#allocation31_spill] sm:$0xff]  ;;  %v13051_v34 = vld [vmem:[#allocation20_spill] sm:$0xff] }
 0x285   : > { %v6681_v7 = vmul.f32 %v12322_v13, %v6664_v29  ;;  %v9794_v12 = vpop.f32.mrf.mxu0  ;;  %v5983_v40 = vadd.f32 %v13050_v55, %v5753_v44  ;;  %v6437_v39 = vadd.f32 %v12365_v15, %v6207_v20 }
 0x286   : > { %v12421_v45 = vadd.f32 %v12385_v23, %v6694_v27  ;;  %v6680_v43 = vmul.f32 %v12322_v13, %v6663_v8  ;;  %v6666_v2 = vadd.f32 %v9794_v12, %v6436_v24  ;;  %9815 = vmatprep.mubr.msk.f32.mxu1 %vm6751_vm2, %v6731_v60  ;;  %v6734_v11 = vmax.f32 %v12416_v22, 0.0  ;;  %v9780_v0 = vpop.f32.mrf.mxu1 }
 0x287   : > { %v6697_v5 = vadd.f32 %v6681_v7, %v13045_v35  ;;  %v6610_v9 = vpop.f32.mrf.mxu0  ;;  %9816 = vmatmul.mubr.msk.f32.vlgmr.msra.gmra.mxu1 %vm6751_vm2, %v6732_v50  ;;  %v6211_v8 = vadd.f32 %v12320_v14, %v5980_v21  ;;  %v6214_v14 = vadd.f32 %v12336_v42, %v5983_v40 }
 0x288   : > { %v6733_v53 = vmax.f32 %v12421_v45, 0.0  ;;  %v6696_v51 = vadd.f32 %v6680_v43, %v13046_v19  ;;  %v6683_v16 = vmul.f32 %v12322_v13, %v6666_v2  ;;  %v6665_v6 = vadd.f32 %v6610_v9, %v6435_v49 }
 0x289   : > { %v12441_v41 = vadd.f32 %v12385_v23, %v6697_v5  ;;  %v9797_v33 = vpop.f32.mrf.mxu0  ;;  %v5982_v49 = vadd.f32 %v13053_v28, %v5752_v26  ;;  %v6442_v43 = vadd.f32 %v9777_v61, %v6212_v58  ;;  %v13054_v5 = vld [vmem:[#allocation9_spill] sm:$0xff]  ;;  %v13057_v58 = vld [vmem:[#allocation12_spill] sm:$0xff]  ;;  %v13059_v28 = vld [vmem:[#allocation14_spill] sm:$0xff] }
 0x28a   : > { %v12444_v46 = vadd.f32 %v12385_v23, %v6696_v51  ;;  %v6699_v48 = vadd.f32 %v6683_v16, %v13048_v30  ;;  %v6682_v63 = vmul.f32 %v12322_v13, %v6665_v6  ;;  %v6668_v10 = vadd.f32 %v9797_v33, %v6438_v32  ;;  %9818 = vmatprep.mubr.msk.f32.mxu1 %vm6751_vm2, %v6733_v53  ;;  %v6420_v16 = vpop.f32.mrf.mxu1  ;;  %v13055_v6 = vld [vmem:[#allocation10_spill] sm:$0xff]  ;;  %v13056_v33 = vld [vmem:[#allocation11_spill] sm:$0xff] }
 0x28b   : > { %v6620_v54 = vpop.f32.mrf.mxu0  ;;  %9819 = vmatmul.mubr.msk.f32.gmra.mxu1 %vm6751_vm2, %v6734_v11  ;;  %v6736_v27 = vmax.f32 %v12441_v41, 0.0  ;;  %v6213_v31 = vadd.f32 %v12351_v56, %v5982_v49  ;;  %v6441_v51 = vadd.f32 %v6410_v1, %v6211_v8 }
 0x28c   : > { %v6735_v29 = vmax.f32 %v12444_v46, 0.0  ;;  %v6698_v24 = vadd.f32 %v6682_v63, %v13051_v34  ;;  %v6685_v4 = vmul.f32 %v12322_v13, %v6668_v10  ;;  %v12465_v15 = vadd.f32 %v12385_v23, %v6699_v48 }
 0x28d   : > { %v6667_v3 = vadd.f32 %v6620_v54, %v6437_v39  ;;  %v9800_v36 = vpop.f32.mrf.mxu0  ;;  %v6444_v63 = vadd.f32 %v9780_v0, %v6214_v14  ;;  %v6443_v10 = vadd.f32 %v6420_v16, %v6213_v31 }
 0x28e   : > { %v12469_v44 = vadd.f32 %v12385_v23, %v6698_v24  ;;  %v6701_v7 = vadd.f32 %v6685_v4, %v13052_v47  ;;  %v6670_v12 = vadd.f32 %v9800_v36, %v6440_v52  ;;  %9821 = vmatprep.mubr.msk.f32.mxu1 %vm6751_vm2, %v6735_v29  ;;  %v6738_v35 = vmax.f32 %v12465_v15, 0.0 }
 0x28f   : > { %v6684_v2 = vmul.f32 %v12322_v13, %v6667_v3  ;;  %v6630_v57 = vpop.f32.mrf.mxu0  ;;  %9822 = vmatmul.mubr.msk.f32.gmra.mxu1 %vm6751_vm2, %v6736_v27 }
 0x290   : > { %v6737_v20 = vmax.f32 %v12469_v44, 0.0  ;;  %v6687_v32 = vmul.f32 %v12322_v13, %v6670_v12  ;;  %v6669_v18 = vadd.f32 %v6630_v57, %v6439_v17  ;;  %v12486_v61 = vadd.f32 %v12385_v23, %v6701_v7  ;;  %v13058_v17 = vld [vmem:[#allocation13_spill] sm:$0xff] }
 0x291   : > { %v6700_v9 = vadd.f32 %v6684_v2, %v13054_v5  ;;  %v9803_v19 = vpop.f32.mrf.mxu0  ;;  %v13060_v2 = vld [vmem:[#allocation15_spill] sm:$0xff] }
 0x292   : > { %v6703_v37 = vadd.f32 %v6687_v32, %v13055_v6  ;;  %v6686_v42 = vmul.f32 %v12322_v13, %v6669_v18  ;;  %v6672_v21 = vadd.f32 %v9803_v19, %v6442_v43  ;;  %9824 = vmatprep.mubr.msk.f32.mxu1 %vm6751_vm2, %v6737_v20  ;;  %v6740_v38 = vmax.f32 %v12486_v61, 0.0 }
 0x293   : > { %v12495_v56 = vadd.f32 %v12385_v23, %v6700_v9  ;;  %v6640_v25 = vpop.f32.mrf.mxu0  ;;  %9825 = vmatmul.mubr.msk.f32.gmra.mxu1 %vm6751_vm2, %v6738_v35 }
 0x294   : > { %v6702_v1 = vadd.f32 %v6686_v42, %v13056_v33  ;;  %v6689_v30 = vmul.f32 %v12322_v13, %v6672_v21  ;;  %v6671_v48 = vadd.f32 %v6640_v25, %v6441_v51  ;;  %v12505_v40 = vadd.f32 %v12385_v23, %v6703_v37 }
 0x295   : > { %v6739_v26 = vmax.f32 %v12495_v56, 0.0  ;;  %v9806_v55 = vpop.f32.mrf.mxu0 }
 0x296   : > { %v12508_v39 = vadd.f32 %v12385_v23, %v6702_v1  ;;  %v6705_v54 = vadd.f32 %v6689_v30, %v13057_v58  ;;  %v6688_v52 = vmul.f32 %v12322_v13, %v6671_v48  ;;  %v6674_v34 = vadd.f32 %v9806_v55, %v6444_v63 }
 0x297   : > { %9827 = vmatprep.mubr.msk.f32.mxu1 %vm6751_vm2, %v6739_v26  ;;  %v6650_v24 = vpop.f32.mrf.mxu0  ;;  %v6742_v0 = vmax.f32 %v12505_v40, 0.0 }
 0x298   : > { %v6741_v4 = vmax.f32 %v12508_v39, 0.0  ;;  %v6704_v3 = vadd.f32 %v6688_v52, %v13058_v17  ;;  %v6673_v36 = vadd.f32 %v6650_v24, %v6443_v10  ;;  %9828 = vmatmul.mubr.msk.f32.gmra.mxu1 %vm6751_vm2, %v6740_v38  ;;  %v6691_v8 = vmul.f32 %v12322_v13, %v6674_v34 }
 0x299   : > { %v12523_v47 = vadd.f32 %v12385_v23, %v6705_v54 }
 0x29a   : > { %v12526_v7 = vadd.f32 %v12385_v23, %v6704_v3  ;;  %v6690_v12 = vmul.f32 %v12322_v13, %v6673_v36  ;;  %9830 = vmatprep.mubr.msk.f32.mxu1 %vm6751_vm2, %v6741_v4  ;;  %v6707_v49 = vadd.f32 %v6691_v8, %v13059_v28 }
 0x29b   : > { %v6744_v14 = vmax.f32 %v12523_v47, 0.0 }
 0x29c   : > { %v6743_v43 = vmax.f32 %v12526_v7, 0.0  ;;  %v6706_v57 = vadd.f32 %v6690_v12, %v13060_v2  ;;  %9831 = vmatmul.mubr.msk.f32.gmra.mxu1 %vm6751_vm2, %v6742_v0  ;;  %v12540_v32 = vadd.f32 %v12385_v23, %v6707_v49 }
 0x29e   : > { %v12543_v13 = vadd.f32 %v12385_v23, %v6706_v57  ;;  %9833 = vmatprep.mubr.msk.f32.mxu1 %vm6751_vm2, %v6743_v43  ;;  %v6746_v31 = vmax.f32 %v12540_v32, 0.0 }
 0x2a0   : > { %v12909_v18 = vmax.f32 %v12543_v13, 0.0  ;;  %9834 = vmatmul.mubr.msk.f32.gmra.mxu1 %vm6751_vm2, %v6744_v14  ;;  %v13061_v47 = vmax.f32 %v12543_v13, 0.0 }
 0x2a2   : > { %9836 = vmatprep.mubr.msk.f32.mxu1 %vm6751_vm2, %v12909_v18 }
 0x2a4   : > { %9837 = vmatmul.mubr.msk.f32.gmra.mxu1 %vm6751_vm2, %v6746_v31 }
 0x347   : > { %v9817_v23 = vpop.f32.mrf.mxu1 }
 0x349   : > { %v6866_v5 = vpop.f32.mrf.mxu1 }
 0x34a   : > { %9847 = vmatprep.mubr.msk.f32.mxu0 %vm6751_vm2, %v6866_v5 }
 0x34b   : > { %v9820_v9 = vpop.f32.mrf.mxu1  ;;  %9848 = vmatmul.mubr.msk.f32.vlgmr.msra.gmra.mxu0 %vm6751_vm2, %v9817_v23 }
 0x34d   : > { %v6876_v19 = vpop.f32.mrf.mxu1 }
 0x34e   : > { %9850 = vmatprep.mubr.msk.f32.mxu0 %vm6751_vm2, %v6876_v19 }
 0x34f   : > { %v9823_v51 = vpop.f32.mrf.mxu1  ;;  %9851 = vmatmul.mubr.msk.f32.gmra.mxu0 %vm6751_vm2, %v9820_v9 }
 0x351   : > { %v6886_v16 = vpop.f32.mrf.mxu1 }
 0x352   : > { %9853 = vmatprep.mubr.msk.f32.mxu0 %vm6751_vm2, %v6886_v16 }
 0x353   : > { %v9826_v6 = vpop.f32.mrf.mxu1  ;;  %9854 = vmatmul.mubr.msk.f32.gmra.mxu0 %vm6751_vm2, %v9823_v51 }
 0x355   : > { %v6896_v37 = vpop.f32.mrf.mxu1 }
 0x356   : > { %9856 = vmatprep.mubr.msk.f32.mxu0 %vm6751_vm2, %v6896_v37 }
 0x357   : > { %9857 = vmatmul.mubr.msk.f32.gmra.mxu0 %vm6751_vm2, %v9826_v6 }
 0x358   : > { %v9829_v42 = vpop.f32.mrf.mxu1 }
 0x35a   : > { %v6906_v21 = vpop.f32.mrf.mxu1 }
 0x35b   : > { %9859 = vmatprep.mubr.msk.f32.mxu0 %vm6751_vm2, %v6906_v21 }
 0x35c   : > { %v9832_v25 = vpop.f32.mrf.mxu1  ;;  %9860 = vmatmul.mubr.msk.f32.gmra.mxu0 %vm6751_vm2, %v9829_v42 }
 0x35e   : > { %v6916_v33 = vpop.f32.mrf.mxu1 }
 0x35f   : > { %9862 = vmatprep.mubr.msk.f32.mxu0 %vm6751_vm2, %v6916_v33 }
 0x360   : > { %v9835_v1 = vpop.f32.mrf.mxu1  ;;  %9863 = vmatmul.mubr.msk.f32.gmra.mxu0 %vm6751_vm2, %v9832_v25 }
 0x362   : > { %v6926_v30 = vpop.f32.mrf.mxu1 }
 0x363   : > { %9865 = vmatprep.mubr.msk.f32.mxu0 %vm6751_vm2, %v6926_v30 }
 0x364   : > { %v9838_v48 = vpop.f32.mrf.mxu1  ;;  %9866 = vmatmul.mubr.msk.f32.gmra.mxu0 %vm6751_vm2, %v9835_v1 }
 0x366   : > { %v6936_v63 = vpop.f32.mrf.mxu1 }
 0x367   : > { %9868 = vmatprep.mubr.msk.f32.mxu0 %vm6751_vm2, %v6936_v63 }
 0x368   : > { %9869 = vmatmul.mubr.msk.f32.gmra.mxu0 %vm6751_vm2, %v9838_v48 }
 0x40b   : > { %v9849_v10 = vpop.f32.mrf.mxu0 }
 0x40c   : > { %v7146_v34 = vsel %vm7142_vm3, %v9849_v10, -inf }
 0x40d   : > { %v7063_v55 = vpop.f32.mrf.mxu0 }
 0x40e   : > { %v7143_v58 = vsel %vm7142_vm3, %v7063_v55, -inf }
 0x40f   : > { %7144 = vmax.xlane.f32.xlu0 %v7143_v58  ;;  %v12576_v54 = vpop.f32.mrf.mxu0  ;;  %v7319_v58 = vld [vmem:[%s12891_s7] sm:$0xff] }
 0x410   : > { %v7152_v36 = vsel %vm7142_vm3, %v12576_v54, -inf  ;;  %9871 = vmatprep.subr.mxu1 %v7319_v58 }
 0x411   : > { %v7073_v52 = vpop.f32.mrf.mxu0  ;;  %9872 = vmatpush3.msra.mxu1 %v7319_v58 }
 0x412   : > { %v7149_v24 = vsel %vm7142_vm3, %v7073_v52, -inf }
 0x413   : > { %7147 = vmax.xlane.f32.xlu0 %v7146_v34  ;;  %7150 = vmax.xlane.f32.xlu1 %v7149_v24  ;;  %v12580_v17 = vpop.f32.mrf.mxu0 }
 0x414   : > { %v7158_v49 = vsel %vm7142_vm3, %v12580_v17, -inf }
 0x415   : > { %v7083_v3 = vpop.f32.mrf.mxu0 }
 0x416   : > { %v7155_v8 = vsel %vm7142_vm3, %v7083_v3, -inf }
 0x417   : > { %7153 = vmax.xlane.f32.xlu1 %v7152_v36  ;;  %7156 = vmax.xlane.f32.xlu0 %v7155_v8  ;;  %v12585_v12 = vpop.f32.mrf.mxu0 }
 0x418   : > { %v7164_v5 = vsel %vm7142_vm3, %v12585_v12, -inf }
 0x419   : > { %v7093_v28 = vpop.f32.mrf.mxu0 }
 0x41a   : > { %v7161_v2 = vsel %vm7142_vm3, %v7093_v28, -inf }
 0x41b   : > { %7159 = vmax.xlane.f32.xlu1 %v7158_v49  ;;  %7162 = vmax.xlane.f32.xlu0 %v7161_v2 }
 0x41c   : > { %v12590_v57 = vpop.f32.mrf.mxu0 }
 0x41d   : > { %v7170_v16 = vsel %vm7142_vm3, %v12590_v57, -inf }
 0x41e   : > { %v12592_v23 = vpop.f32.mrf.mxu0 }
 0x41f   : > { %7165 = vmax.xlane.f32.xlu1 %v7164_v5  ;;  %v7167_v9 = vsel %vm7142_vm3, %v12592_v23, -inf }
 0x420   : > { %7168 = vmax.xlane.f32.xlu0 %v7167_v9  ;;  %v12598_v19 = vpop.f32.mrf.mxu0 }
 0x421   : > { %v7176_v21 = vsel %vm7142_vm3, %v12598_v19, -inf }
 0x422   : > { %v12600_v51 = vpop.f32.mrf.mxu0 }
 0x423   : > { %7171 = vmax.xlane.f32.xlu1 %v7170_v16  ;;  %v7173_v6 = vsel %vm7142_vm3, %v12600_v51, -inf }
 0x424   : > { %7174 = vmax.xlane.f32.xlu0 %v7173_v6  ;;  %v12606_v37 = vpop.f32.mrf.mxu0 }
 0x425   : > { %v7182_v30 = vsel %vm7142_vm3, %v12606_v37, -inf }
 0x426   : > { %v12608_v42 = vpop.f32.mrf.mxu0 }
 0x427   : > { %7177 = vmax.xlane.f32.xlu1 %v7176_v21  ;;  %v7179_v25 = vsel %vm7142_vm3, %v12608_v42, -inf }
 0x428   : > { %7180 = vmax.xlane.f32.xlu0 %v7179_v25  ;;  %v12614_v33 = vpop.f32.mrf.mxu0 }
 0x429   : > { %v7188_v63 = vsel %vm7142_vm3, %v12614_v33, -inf }
 0x42a   : > { %v12616_v1 = vpop.f32.mrf.mxu0 }
 0x42b   : > { %7183 = vmax.xlane.f32.xlu1 %v7182_v30  ;;  %v7185_v48 = vsel %vm7142_vm3, %v12616_v1, -inf }
 0x42c   : > { %7186 = vmax.xlane.f32.xlu0 %v7185_v48 }
 0x42f   : > { %7189 = vmax.xlane.f32.xlu1 %v7188_v63 }
 0x498   : > { %v7145_v34 = vpop.xlane.xlu0 %7144 }
 0x499   : > { %v7191_v24 = vsub.f32 %v7063_v55, %v7145_v34 }
 0x49b   : > { %v7207_v36 = vmul.f32 1.442695, %v7191_v24 }
 0x49c   : > { %v7148_v8 = vpop.xlane.xlu0 %7147  ;;  %v7151_v49 = vpop.xlane.xlu1 %7150 }
 0x49d   : > { %9910 = vpow2.f32 %v7207_v36  ;;  %v7192_v2 = vsub.f32 %v9849_v10, %v7148_v8  ;;  %v7193_v5 = vsub.f32 %v7073_v52, %v7151_v49 }
 0x49f   : > { %v7209_v9 = vmul.f32 1.442695, %v7192_v2  ;;  %v7211_v16 = vmul.f32 1.442695, %v7193_v5 }
 0x4a0   : > { %v7154_v6 = vpop.xlane.xlu1 %7153  ;;  %v7157_v21 = vpop.xlane.xlu0 %7156 }
 0x4a1   : > { %9912 = vpow2.f32 %v7209_v9  ;;  %v7194_v25 = vsub.f32 %v12576_v54, %v7154_v6  ;;  %v7195_v30 = vsub.f32 %v7083_v3, %v7157_v21 }
 0x4a2   : > { %9914 = vpow2.f32 %v7211_v16 }
 0x4a3   : > { %v7213_v48 = vmul.f32 1.442695, %v7194_v25  ;;  %v7215_v63 = vmul.f32 1.442695, %v7195_v30 }
 0x4a4   : > { %v7160_v58 = vpop.xlane.xlu1 %7159  ;;  %v7163_v18 = vpop.xlane.xlu0 %7162 }
 0x4a5   : > { %9916 = vpow2.f32 %v7213_v48  ;;  %v7196_v55 = vsub.f32 %v12580_v17, %v7160_v58  ;;  %v7197_v34 = vsub.f32 %v7093_v28, %v7163_v18 }
 0x4a6   : > { %9918 = vpow2.f32 %v7215_v63 }
 0x4a7   : > { %v7217_v10 = vmul.f32 1.442695, %v7196_v55  ;;  %v7219_v52 = vmul.f32 1.442695, %v7197_v34 }
 0x4a8   : > { %v7166_v24 = vpop.xlane.xlu1 %7165 }
 0x4a9   : > { %9920 = vpow2.f32 %v7217_v10  ;;  %v7198_v36 = vsub.f32 %v12585_v12, %v7166_v24  ;;  %v7169_v8 = vpop.xlane.xlu0 %7168 }
 0x4aa   : > { %v12630_v49 = vpop.eup %9910  ;;  %9922 = vpow2.f32 %v7219_v52  ;;  %v7199_v54 = vsub.f32 %v12592_v23, %v7169_v8 }
 0x4ab   : > { %v7221_v3 = vmul.f32 1.442695, %v7198_v36  ;;  %v7239_v2 = vsel %vm7142_vm3, %v12630_v49, 0.0 }
 0x4ac   : > { %v7223_v5 = vmul.f32 1.442695, %v7199_v54  ;;  %v7172_v17 = vpop.xlane.xlu1 %7171  ;;  %7240 = vadd.xlane.f32.xlu0 %v7239_v2 }
 0x4ad   : > { %9924 = vpow2.f32 %v7221_v3  ;;  %v7200_v18 = vsub.f32 %v12590_v57, %v7172_v17  ;;  %v7175_v28 = vpop.xlane.xlu0 %7174 }
 0x4ae   : > { %v12636_v9 = vpop.eup %9912  ;;  %9926 = vpow2.f32 %v7223_v5  ;;  %v7201_v12 = vsub.f32 %v12600_v51, %v7175_v28 }
 0x4af   : > { %v12639_v16 = vpop.eup %9914  ;;  %v7225_v6 = vmul.f32 1.442695, %v7200_v18  ;;  %v7242_v23 = vsel %vm7142_vm3, %v12636_v9, 0.0 }
 0x4b0   : > { %v7227_v21 = vmul.f32 1.442695, %v7201_v12  ;;  %v7178_v25 = vpop.xlane.xlu1 %7177  ;;  %7243 = vadd.xlane.f32.xlu1 %v7242_v23  ;;  %v7245_v30 = vsel %vm7142_vm3, %v12639_v16, 0.0 }
 0x4b1   : > { %9928 = vpow2.f32 %v7225_v6  ;;  %v7202_v57 = vsub.f32 %v12598_v19, %v7178_v25  ;;  %v7181_v48 = vpop.xlane.xlu0 %7180  ;;  %7246 = vadd.xlane.f32.xlu0 %v7245_v30 }
 0x4b2   : > { %v12646_v63 = vpop.eup %9916  ;;  %9930 = vpow2.f32 %v7227_v21  ;;  %v7203_v51 = vsub.f32 %v12608_v42, %v7181_v48 }
 0x4b3   : > { %v12649_v58 = vpop.eup %9918  ;;  %v7229_v55 = vmul.f32 1.442695, %v7202_v57  ;;  %v7248_v34 = vsel %vm7142_vm3, %v12646_v63, 0.0 }
 0x4b4   : > { %v7231_v10 = vmul.f32 1.442695, %v7203_v51  ;;  %v7184_v52 = vpop.xlane.xlu1 %7183  ;;  %7249 = vadd.xlane.f32.xlu1 %v7248_v34  ;;  %v7251_v24 = vsel %vm7142_vm3, %v12649_v58, 0.0 }
 0x4b5   : > { %9932 = vpow2.f32 %v7229_v55  ;;  %v7204_v19 = vsub.f32 %v12606_v37, %v7184_v52  ;;  %7252 = vadd.xlane.f32.xlu0 %v7251_v24  ;;  %v7187_v36 = vpop.xlane.xlu0 %7186 }
 0x4b6   : > { %v12656_v8 = vpop.eup %9920  ;;  %9934 = vpow2.f32 %v7231_v10  ;;  %v7205_v42 = vsub.f32 %v12616_v1, %v7187_v36 }
 0x4b7   : > { %v12659_v54 = vpop.eup %9922  ;;  %v7233_v3 = vmul.f32 1.442695, %v7204_v19  ;;  %v7254_v2 = vsel %vm7142_vm3, %v12656_v8, 0.0 }
 0x4b8   : > { %v7235_v5 = vmul.f32 1.442695, %v7205_v42  ;;  %7255 = vadd.xlane.f32.xlu1 %v7254_v2  ;;  %v7190_v17 = vpop.xlane.xlu1 %7189  ;;  %v7257_v18 = vsel %vm7142_vm3, %v12659_v54, 0.0 }
 0x4b9   : > { %9936 = vpow2.f32 %v7233_v3  ;;  %v7206_v37 = vsub.f32 %v12614_v33, %v7190_v17  ;;  %7258 = vadd.xlane.f32.xlu0 %v7257_v18 }
 0x4ba   : > { %v12666_v28 = vpop.eup %9924  ;;  %9938 = vpow2.f32 %v7235_v5 }
 0x4bb   : > { %v12668_v1 = vpop.eup %9926  ;;  %v7237_v12 = vmul.f32 1.442695, %v7206_v37  ;;  %v7260_v6 = vsel %vm7142_vm3, %v12666_v28, 0.0 }
 0x4bc   : > { %7261 = vadd.xlane.f32.xlu1 %v7260_v6  ;;  %v7263_v23 = vsel %vm7142_vm3, %v12668_v1, 0.0 }
 0x4bd   : > { %9940 = vpow2.f32 %v7237_v12  ;;  %7264 = vadd.xlane.f32.xlu0 %v7263_v23 }
 0x4be   : > { %v12674_v21 = vpop.eup %9928 }
 0x4bf   : > { %v12676_v25 = vpop.eup %9930  ;;  %v7266_v33 = vsel %vm7142_vm3, %v12674_v21, 0.0 }
 0x4c0   : > { %7267 = vadd.xlane.f32.xlu1 %v7266_v33  ;;  %v7269_v30 = vsel %vm7142_vm3, %v12676_v25, 0.0 }
 0x4c1   : > { %7270 = vadd.xlane.f32.xlu0 %v7269_v30 }
 0x4c2   : > { %v12682_v57 = vpop.eup %9932 }
 0x4c3   : > { %v12684_v48 = vpop.eup %9934  ;;  %v7272_v51 = vsel %vm7142_vm3, %v12682_v57, 0.0 }
 0x4c4   : > { %7273 = vadd.xlane.f32.xlu1 %v7272_v51  ;;  %v7275_v55 = vsel %vm7142_vm3, %v12684_v48, 0.0 }
 0x4c5   : > { %7276 = vadd.xlane.f32.xlu0 %v7275_v55 }
 0x4c6   : > { %v12690_v34 = vpop.eup %9936 }
 0x4c7   : > { %v12692_v10 = vpop.eup %9938  ;;  %v7278_v52 = vsel %vm7142_vm3, %v12690_v34, 0.0 }
 0x4c8   : > { %7279 = vadd.xlane.f32.xlu1 %v7278_v52  ;;  %v7281_v24 = vsel %vm7142_vm3, %v12692_v10, 0.0 }
 0x4c9   : > { %7282 = vadd.xlane.f32.xlu0 %v7281_v24 }
 0x4ca   : > { %v12698_v19 = vpop.eup %9940 }
 0x4cb   : > { %v7284_v36 = vsel %vm7142_vm3, %v12698_v19, 0.0 }
 0x4cc   : > { %7285 = vadd.xlane.f32.xlu1 %v7284_v36 }
 0x535   : > { %v7241_v42 = vpop.xlane.xlu0 %7240 }
 0x536   : > { %9942 = vrcp.f32 %v7241_v42 }
 0x539   : > { %v7244_v3 = vpop.xlane.xlu1 %7243 }
 0x53a   : > { %9944 = vrcp.f32 %v7244_v3  ;;  %v7247_v2 = vpop.xlane.xlu0 %7246 }
 0x53b   : > { %9946 = vrcp.f32 %v7247_v2 }
 0x53d   : > { %v7250_v5 = vpop.xlane.xlu1 %7249 }
 0x53e   : > { %9948 = vrcp.f32 %v7250_v5  ;;  %v7253_v17 = vpop.xlane.xlu0 %7252 }
 0x53f   : > { %9950 = vrcp.f32 %v7253_v17 }
 0x541   : > { %v7256_v18 = vpop.xlane.xlu1 %7255 }
 0x542   : > { %9952 = vrcp.f32 %v7256_v18  ;;  %v7259_v37 = vpop.xlane.xlu0 %7258 }
 0x543   : > { %v9943_v12 = vpop.eup %9942  ;;  %9954 = vrcp.f32 %v7259_v37 }
 0x544   : > { %v7288_v6 = vmul.f32 %v9943_v12, %v12630_v49 }
 0x545   : > { %v7262_v23 = vpop.xlane.xlu1 %7261 }
 0x546   : > { %9956 = vrcp.f32 %v7262_v23  ;;  %v7265_v33 = vpop.xlane.xlu0 %7264  ;;  %9873 = vmatprep.mubr.msk.f32.mxu1 %vm7142_vm3, %v7288_v6 }
 0x547   : > { %v9945_v30 = vpop.eup %9944  ;;  %9958 = vrcp.f32 %v7265_v33 }
 0x548   : > { %v9947_v51 = vpop.eup %9946  ;;  %v7290_v55 = vmul.f32 %v9945_v30, %v12636_v9 }
 0x549   : > { %v7268_v52 = vpop.xlane.xlu1 %7267  ;;  %v7292_v24 = vmul.f32 %v9947_v51, %v12639_v16 }
 0x54a   : > { %9960 = vrcp.f32 %v7268_v52  ;;  %v7271_v36 = vpop.xlane.xlu0 %7270  ;;  %9874 = vmatmul.mubr.msk.f32.vlgmr.msra.gmra.mxu1 %vm7142_vm3, %v7290_v55 }
 0x54b   : > { %v9949_v42 = vpop.eup %9948  ;;  %9962 = vrcp.f32 %v7271_v36  ;;  %9876 = vmatprep.mubr.msk.f32.mxu1 %vm7142_vm3, %v7292_v24 }
 0x54c   : > { %v9951_v49 = vpop.eup %9950  ;;  %v7294_v3 = vmul.f32 %v9949_v42, %v12646_v63 }
 0x54d   : > { %v7274_v2 = vpop.xlane.xlu1 %7273  ;;  %v7296_v5 = vmul.f32 %v9951_v49, %v12649_v58 }
 0x54e   : > { %9964 = vrcp.f32 %v7274_v2  ;;  %v7277_v17 = vpop.xlane.xlu0 %7276  ;;  %9877 = vmatmul.mubr.msk.f32.gmra.mxu1 %vm7142_vm3, %v7294_v3 }
 0x54f   : > { %v9953_v9 = vpop.eup %9952  ;;  %9966 = vrcp.f32 %v7277_v17  ;;  %9879 = vmatprep.mubr.msk.f32.mxu1 %vm7142_vm3, %v7296_v5 }
 0x550   : > { %v9955_v16 = vpop.eup %9954  ;;  %v7298_v18 = vmul.f32 %v9953_v9, %v12656_v8 }
 0x551   : > { %v7280_v37 = vpop.xlane.xlu1 %7279  ;;  %v7300_v12 = vmul.f32 %v9955_v16, %v12659_v54 }
 0x552   : > { %9968 = vrcp.f32 %v7280_v37  ;;  %v7283_v6 = vpop.xlane.xlu0 %7282  ;;  %9880 = vmatmul.mubr.msk.f32.gmra.mxu1 %vm7142_vm3, %v7298_v18 }
 0x553   : > { %v9957_v63 = vpop.eup %9956  ;;  %9970 = vrcp.f32 %v7283_v6  ;;  %9882 = vmatprep.mubr.msk.f32.mxu1 %vm7142_vm3, %v7300_v12 }
 0x554   : > { %v9959_v58 = vpop.eup %9958  ;;  %v7302_v23 = vmul.f32 %v9957_v63, %v12666_v28 }
 0x555   : > { %v7286_v33 = vpop.xlane.xlu1 %7285  ;;  %v7304_v30 = vmul.f32 %v9959_v58, %v12668_v1 }
 0x556   : > { %9972 = vrcp.f32 %v7286_v33  ;;  %9883 = vmatmul.mubr.msk.f32.gmra.mxu1 %vm7142_vm3, %v7302_v23 }
 0x557   : > { %v9961_v8 = vpop.eup %9960  ;;  %9885 = vmatprep.mubr.msk.f32.mxu1 %vm7142_vm3, %v7304_v30 }
 0x558   : > { %v9963_v54 = vpop.eup %9962  ;;  %v7306_v51 = vmul.f32 %v9961_v8, %v12674_v21 }
 0x559   : > { %v7308_v55 = vmul.f32 %v9963_v54, %v12676_v25 }
 0x55a   : > { %9886 = vmatmul.mubr.msk.f32.gmra.mxu1 %vm7142_vm3, %v7306_v51 }
 0x55b   : > { %v9965_v52 = vpop.eup %9964  ;;  %9888 = vmatprep.mubr.msk.f32.mxu1 %vm7142_vm3, %v7308_v55 }
 0x55c   : > { %v9967_v28 = vpop.eup %9966  ;;  %v7310_v1 = vmul.f32 %v9965_v52, %v12682_v57  ;;  %v9982_v57 = vmov 0.0  }
 0x55d   : > { %v7312_v24 = vmul.f32 %v9967_v28, %v12684_v48  ;;  %7538 = vst.msk [vmem:[%s12740_s20 + $0x8] sm:$0x3] %vm7537_vm4, %v9982_v57  ;;  %7542 = vst.msk [vmem:[%s12740_s20 + $0x28] sm:$0x3] %vm7537_vm4, %v9982_v57  ;;  %v8536_v48 = vld [vmem:[%s12892_s8] ss:$0 sm:$0xff] }
 0x55e   : > { %9889 = vmatmul.mubr.msk.f32.gmra.mxu1 %vm7142_vm3, %v7310_v1  ;;  %7541 = vst.msk [vmem:[%s12740_s20 + $0x20] sm:$0xff] %vm6751_vm2, %v9982_v57  ;;  %7536 = vst.msk [vmem:[%s12740_s20] sm:$0xff] %vm6751_vm2, %v9982_v57 }
 0x55f   : > { %v9969_v36 = vpop.eup %9968  ;;  %9891 = vmatprep.mubr.msk.f32.mxu1 %vm7142_vm3, %v7312_v24  ;;  %7572 = vst.msk [vmem:[%s12740_s20 + $0x118] sm:$0x3] %vm7537_vm4, %v9982_v57  ;;  %7540 = vst.msk [vmem:[%s12740_s20 + $0x18] sm:$0x3] %vm7537_vm4, %v9982_v57 }
 0x560   : > { %v9971_v21 = vpop.eup %9970  ;;  %v7314_v25 = vmul.f32 %v9969_v36, %v12690_v34  ;;  %7539 = vst.msk [vmem:[%s12740_s20 + $0x10] sm:$0xff] %vm6751_vm2, %v9982_v57  ;;  %7543 = vst.msk [vmem:[%s12740_s20 + $0x30] sm:$0xff] %vm6751_vm2, %v9982_v57 }
 0x561   : > { %v7316_v42 = vmul.f32 %v9971_v21, %v12692_v10  ;;  %7544 = vst.msk [vmem:[%s12740_s20 + $0x38] sm:$0x3] %vm7537_vm4, %v9982_v57  ;;  %7546 = vst.msk [vmem:[%s12740_s20 + $0x48] sm:$0x3] %vm7537_vm4, %v9982_v57 }
 0x562   : > { %9892 = vmatmul.mubr.msk.f32.gmra.mxu1 %vm7142_vm3, %v7314_v25  ;;  %7545 = vst.msk [vmem:[%s12740_s20 + $0x40] sm:$0xff] %vm6751_vm2, %v9982_v57  ;;  %7547 = vst.msk [vmem:[%s12740_s20 + $0x50] sm:$0xff] %vm6751_vm2, %v9982_v57 }
 0x563   : > { %v9973_v49 = vpop.eup %9972  ;;  %9894 = vmatprep.mubr.msk.f32.mxu1 %vm7142_vm3, %v7316_v42  ;;  %7548 = vst.msk [vmem:[%s12740_s20 + $0x58] sm:$0x3] %vm7537_vm4, %v9982_v57  ;;  %7550 = vst.msk [vmem:[%s12740_s20 + $0x68] sm:$0x3] %vm7537_vm4, %v9982_v57 }
 0x564   : > { %v7318_v3 = vmul.f32 %v9973_v49, %v12698_v19  ;;  %7549 = vst.msk [vmem:[%s12740_s20 + $0x60] sm:$0xff] %vm6751_vm2, %v9982_v57  ;;  %7551 = vst.msk [vmem:[%s12740_s20 + $0x70] sm:$0xff] %vm6751_vm2, %v9982_v57 }
 0x565   : > { %7552 = vst.msk [vmem:[%s12740_s20 + $0x78] sm:$0x3] %vm7537_vm4, %v9982_v57  ;;  %7554 = vst.msk [vmem:[%s12740_s20 + $0x88] sm:$0x3] %vm7537_vm4, %v9982_v57 }
 0x566   : > { %9895 = vmatmul.mubr.msk.f32.gmra.mxu1 %vm7142_vm3, %v7318_v3  ;;  %7553 = vst.msk [vmem:[%s12740_s20 + $0x80] sm:$0xff] %vm6751_vm2, %v9982_v57  ;;  %7555 = vst.msk [vmem:[%s12740_s20 + $0x90] sm:$0xff] %vm6751_vm2, %v9982_v57 }
 0x567   : > { %7556 = vst.msk [vmem:[%s12740_s20 + $0x98] sm:$0x3] %vm7537_vm4, %v9982_v57  ;;  %7558 = vst.msk [vmem:[%s12740_s20 + $0xa8] sm:$0x3] %vm7537_vm4, %v9982_v57 }
 0x568   : > { %7557 = vst.msk [vmem:[%s12740_s20 + $0xa0] sm:$0xff] %vm6751_vm2, %v9982_v57  ;;  %7559 = vst.msk [vmem:[%s12740_s20 + $0xb0] sm:$0xff] %vm6751_vm2, %v9982_v57 }
 0x569   : > { %7560 = vst.msk [vmem:[%s12740_s20 + $0xb8] sm:$0x3] %vm7537_vm4, %v9982_v57  ;;  %7562 = vst.msk [vmem:[%s12740_s20 + $0xc8] sm:$0x3] %vm7537_vm4, %v9982_v57 }
 0x56a   : > { %7561 = vst.msk [vmem:[%s12740_s20 + $0xc0] sm:$0xff] %vm6751_vm2, %v9982_v57  ;;  %7563 = vst.msk [vmem:[%s12740_s20 + $0xd0] sm:$0xff] %vm6751_vm2, %v9982_v57 }
 0x56b   : > { %7564 = vst.msk [vmem:[%s12740_s20 + $0xd8] sm:$0x3] %vm7537_vm4, %v9982_v57  ;;  %7566 = vst.msk [vmem:[%s12740_s20 + $0xe8] sm:$0x3] %vm7537_vm4, %v9982_v57 }
 0x56c   : > { %7565 = vst.msk [vmem:[%s12740_s20 + $0xe0] sm:$0xff] %vm6751_vm2, %v9982_v57  ;;  %7567 = vst.msk [vmem:[%s12740_s20 + $0xf0] sm:$0xff] %vm6751_vm2, %v9982_v57 }
 0x56d   : > { %7568 = vst.msk [vmem:[%s12740_s20 + $0xf8] sm:$0x3] %vm7537_vm4, %v9982_v57  ;;  %7570 = vst.msk [vmem:[%s12740_s20 + $0x108] sm:$0x3] %vm7537_vm4, %v9982_v57 }
 0x56e   : > { %7569 = vst.msk [vmem:[%s12740_s20 + $0x100] sm:$0xff] %vm6751_vm2, %v9982_v57  ;;  %7571 = vst.msk [vmem:[%s12740_s20 + $0x110] sm:$0xff] %vm6751_vm2, %v9982_v57 }
 0x60a   : > { %v9875_v34 = vpop.f32.mrf.mxu1 }
 0x60b   : > { %v7447_v10 = vadd.f32 %v9875_v34, %v8536_v48 }
 0x60c   : > { %v7441_v19 = vpop.f32.mrf.mxu1 }
 0x60d   : > { %v7521_v2 = vadd.f32 %v7447_v10, %v6732_v50  ;;  %v7442_v5 = vadd.f32 %v8536_v48, %v7441_v19 }
 0x60e   : > { %v9878_v17 = vpop.f32.mrf.mxu1 }
 0x60f   : > { %8554 = vst.msk [vmem:[%s12740_s20 + $0x21] sm:$0xff] %vm6751_vm2, %v7521_v2  ;;  %v7520_v9 = vadd.f32 %v7442_v5, %v6731_v60  ;;  %v7457_v16 = vadd.f32 %v9878_v17, %v8536_v48 }
 0x610   : > { %v7451_v18 = vpop.f32.mrf.mxu1 }
 0x611   : > { %8553 = vst.msk [vmem:[%s12740_s20 + $0x11] sm:$0xff] %vm6751_vm2, %v7520_v9  ;;  %v7523_v37 = vadd.f32 %v7457_v16, %v6734_v11  ;;  %v7452_v12 = vadd.f32 %v8536_v48, %v7451_v18 }
 0x612   : > { %v9881_v59 = vpop.f32.mrf.mxu1 }
 0x613   : > { %8556 = vst.msk [vmem:[%s12740_s20 + $0x41] sm:$0xff] %vm6751_vm2, %v7523_v37  ;;  %v7522_v50 = vadd.f32 %v7452_v12, %v6733_v53  ;;  %v7467_v6 = vadd.f32 %v9881_v59, %v8536_v48 }
 0x614   : > { %v7461_v62 = vpop.f32.mrf.mxu1 }
 0x615   : > { %8555 = vst.msk [vmem:[%s12740_s20 + $0x31] sm:$0xff] %vm6751_vm2, %v7522_v50  ;;  %v7525_v60 = vadd.f32 %v7467_v6, %v6736_v27  ;;  %v7462_v63 = vadd.f32 %v8536_v48, %v7461_v62 }
 0x616   : > { %v9884_v22 = vpop.f32.mrf.mxu1 }
 0x617   : > { %8558 = vst.msk [vmem:[%s12740_s20 + $0x61] sm:$0xff] %vm6751_vm2, %v7525_v60  ;;  %v7524_v11 = vadd.f32 %v7462_v63, %v6735_v29  ;;  %v7477_v58 = vadd.f32 %v9884_v22, %v8536_v48 }
 0x618   : > { %v7471_v45 = vpop.f32.mrf.mxu1 }
 0x619   : > { %8557 = vst.msk [vmem:[%s12740_s20 + $0x51] sm:$0xff] %vm6751_vm2, %v7524_v11  ;;  %v7527_v53 = vadd.f32 %v7477_v58, %v6738_v35  ;;  %v7472_v23 = vadd.f32 %v8536_v48, %v7471_v45 }
 0x61a   : > { %v9887_v41 = vpop.f32.mrf.mxu1 }
 0x61b   : > { %8560 = vst.msk [vmem:[%s12740_s20 + $0x81] sm:$0xff] %vm6751_vm2, %v7527_v53  ;;  %v7526_v27 = vadd.f32 %v7472_v23, %v6737_v20  ;;  %v7487_v33 = vadd.f32 %v9887_v41, %v8536_v48 }
 0x61c   : > { %v7481_v46 = vpop.f32.mrf.mxu1 }
 0x61d   : > { %8559 = vst.msk [vmem:[%s12740_s20 + $0x71] sm:$0xff] %vm6751_vm2, %v7526_v27  ;;  %v7529_v29 = vadd.f32 %v7487_v33, %v6740_v38  ;;  %v7482_v30 = vadd.f32 %v8536_v48, %v7481_v46 }
 0x61e   : > { %v9890_v15 = vpop.f32.mrf.mxu1 }
 0x61f   : > { %8562 = vst.msk [vmem:[%s12740_s20 + $0xa1] sm:$0xff] %vm6751_vm2, %v7529_v29  ;;  %v7528_v35 = vadd.f32 %v7482_v30, %v6739_v26  ;;  %v7497_v8 = vadd.f32 %v9890_v15, %v8536_v48 }
 0x620   : > { %v7491_v44 = vpop.f32.mrf.mxu1 }
 0x621   : > { %8561 = vst.msk [vmem:[%s12740_s20 + $0x91] sm:$0xff] %vm6751_vm2, %v7528_v35  ;;  %v7531_v20 = vadd.f32 %v7497_v8, %v6742_v0  ;;  %v7492_v54 = vadd.f32 %v8536_v48, %v7491_v44 }
 0x622   : > { %v9893_v61 = vpop.f32.mrf.mxu1 }
 0x623   : > { %8564 = vst.msk [vmem:[%s12740_s20 + $0xc1] sm:$0xff] %vm6751_vm2, %v7531_v20  ;;  %v7530_v38 = vadd.f32 %v7492_v54, %v6741_v4  ;;  %v7507_v56 = vadd.f32 %v9893_v61, %v8536_v48 }
 0x624   : > { %v7501_v51 = vpop.f32.mrf.mxu1 }
 0x625   : > { %8563 = vst.msk [vmem:[%s12740_s20 + $0xb1] sm:$0xff] %vm6751_vm2, %v7530_v38  ;;  %v7533_v26 = vadd.f32 %v7507_v56, %v6744_v14  ;;  %v7502_v55 = vadd.f32 %v8536_v48, %v7501_v51 }
 0x626   : > { %v9896_v40 = vpop.f32.mrf.mxu1 }
 0x627   : > { %8566 = vst.msk [vmem:[%s12740_s20 + $0xe1] sm:$0xff] %vm6751_vm2, %v7533_v26  ;;  %v7532_v0 = vadd.f32 %v7502_v55, %v6743_v43  ;;  %v7517_v52 = vadd.f32 %v9896_v40, %v8536_v48 }
 0x628   : > { %v7511_v28 = vpop.f32.mrf.mxu1 }
 0x629   : > { %8565 = vst.msk [vmem:[%s12740_s20 + $0xd1] sm:$0xff] %vm6751_vm2, %v7532_v0  ;;  %v7535_v39 = vadd.f32 %v7517_v52, %v6746_v31  ;;  %v7512_v4 = vadd.f32 %v8536_v48, %v7511_v28 }
 0x62b   : > { %8568 = vst.msk [vmem:[%s12740_s20 + $0x101] sm:$0xff] %vm6751_vm2, %v7535_v39  ;;  %v7534_v14 = vadd.f32 %v7512_v4, %v13061_v47 }
 0x62d   : > { %8567 = vst.msk [vmem:[%s12740_s20 + $0xf1] sm:$0xff] %vm6751_vm2, %v7534_v14 }
 0x62e PF: > { %s19_s30 = sadd.s32 1, %s9980_s30  }
 0x62f   : > { %p16_p7 = scmp.ge.s32.totalorder %s19_s30, 18  }
 0x631   :  { %18 = sbr.rel (!%p16_p7) target bundleno = 1 (0x1), region = 125 }

</bundles_post_ra>
